<compile_context>
chip_gen: v7x
topology: tpu7x:2x2x1
jax: 0.10.0
libtpu: 0.0.40
codegen_flags: <defaults>
</compile_context>

<pallas_src>
import functools

import jax
import jax.numpy as jnp
from jax.experimental import pallas as pl
from jax.experimental.pallas import tpu as pltpu

# Explicit scoped-VMEM budget (>= v5e default, == v6e/v7x default); actual
# per-step usage of every kernel below is < 2 MiB, so double-buffering always
# survives on v5e/v6e/v7x.
_VMEM_LIMIT = 32 * 1024 * 1024


def _tile(dim, prefs):
    """Largest preferred tile that evenly divides `dim`, else the full dim."""
    for p in prefs:
        if dim % p == 0:
            return p
    # TODO(synk): pl.cdiv grid + masked tail for dims not divisible by any
    # preferred tile (needed at real resnet200d shapes); the full-dim fallback
    # is only hit by the tiny K=27 stem contraction at the toy shapes here.
    return dim


# ----------------------------------------------------------------------------
# Kernel 1: tiled matmul (1x1 convs / im2col'd stem / downsample) with fused
#           BN-affine + optional residual-add + optional ReLU epilogue.
# ----------------------------------------------------------------------------
def _mm_kernel(x_ref, w_ref, s_ref, b_ref, *rest, relu, has_res):
    if has_res:
        res_ref, o_ref, acc_ref = rest
    else:
        res_ref = None
        o_ref, acc_ref = rest

    @pl.when(pl.program_id(2) == 0)
    def _():
        acc_ref[...] = jnp.zeros_like(acc_ref)

    acc_ref[...] += jnp.dot(x_ref[...], w_ref[...],
                            preferred_element_type=jnp.float32)

    @pl.when(pl.program_id(2) == pl.num_programs(2) - 1)
    def _():
        y = acc_ref[...] * s_ref[...] + b_ref[...]           # folded BN (f32)
        if res_ref is not None:
            y = y + res_ref[...].astype(jnp.float32)         # fused residual
        if relu:
            y = jnp.maximum(y, 0.0)
        o_ref[...] = y.astype(o_ref.dtype)


def matmul_bn_act(x, w, scale, shift, *, relu, residual=None):
    M, K = x.shape
    N = w.shape[-1]
    tn = _tile(N, (256, 128))
    tk = _tile(K, (512, 256, 128))
    # Prefer big M tiles (fewer ~0.35us grid steps, better HBM roofline), but
    # keep >= 2 parallel grid steps so both v7x TensorCores get work when the
    # N axis collapses to a single tile.
    m_prefs = (512, 256, 128)
    if N // tn < 2:
        filt = tuple(p for p in m_prefs if M // p >= 2)
        m_prefs = filt if filt else m_prefs
    tm = _tile(M, m_prefs)
    grid = (M // tm, N // tn, K // tk)

    in_specs = [
        pl.BlockSpec((tm, tk), lambda i, j, k: (i, k)),
        pl.BlockSpec((tk, tn), lambda i, j, k: (k, j)),
        pl.BlockSpec((1, tn), lambda i, j, k: (0, j)),
        pl.BlockSpec((1, tn), lambda i, j, k: (0, j)),
    ]
    args = [x, w, scale.reshape(1, N), shift.reshape(1, N)]
    bytes_accessed = 2 * (M * K + K * N + M * N) + 8 * N
    if residual is not None:
        in_specs.append(pl.BlockSpec((tm, tn), lambda i, j, k: (i, j)))
        args.append(residual)
        bytes_accessed += 2 * M * N

    kernel = functools.partial(_mm_kernel, relu=relu,
                               has_res=residual is not None)
    return pl.pallas_call(
        kernel,
        out_shape=jax.ShapeDtypeStruct((M, N), jnp.bfloat16),
        grid=grid,
        in_specs=in_specs,
        out_specs=pl.BlockSpec((tm, tn), lambda i, j, k: (i, j)),
        scratch_shapes=[pltpu.VMEM((tm, tn), jnp.float32)],
        compiler_params=pltpu.CompilerParams(
            dimension_semantics=("parallel", "parallel", "arbitrary"),
            vmem_limit_bytes=_VMEM_LIMIT),
        cost_estimate=pl.CostEstimate(flops=2 * M * N * K,
                                      transcendentals=0,
                                      bytes_accessed=bytes_accessed),
    )(*args)


# ----------------------------------------------------------------------------
# Kernel 2: 3x3 conv, row-tiled, 9-tap accumulation into a VMEM f32 scratch
#           accumulator, trailing Cin reduction axis, fused BN + ReLU epilogue.
# ----------------------------------------------------------------------------
def _conv3x3_kernel(x_ref, w_ref, s_ref, b_ref, o_ref, acc_ref, *, rt, W, relu):
    # x_ref:   (1, 1, rt+2, W+2, ck)  bf16 row-tile halo slab
    # w_ref:   (3, 3, ck, tn)
    # acc_ref: (rt*W, tn) f32 VMEM accumulator (streams MXU results to memory
    #          instead of pinning ~32 vregs across the 9 taps)
    ck = x_ref.shape[-1]
    tn = w_ref.shape[-1]

    @pl.when(pl.program_id(3) == 0)
    def _():
        acc_ref[...] = jnp.zeros_like(acc_ref)

    for dh in range(3):                      # unrolled: 9 accumulated matmuls
        slab = x_ref[0, 0, dh:dh + rt]       # leading-axis slice: free view
        for dw in range(3):
            # TODO(synk): replace the dw=1,2 sublane-offset slices with
            # pltpu.roll along W (XLU slot) once bf16 sublane rotates lower
            # reliably; this is the remaining vld/vst hotspot on v5e.
            xt = slab[:, dw:dw + W, :].reshape(rt * W, ck)
            acc_ref[...] += jnp.dot(xt, w_ref[dh, dw],
                                    preferred_element_type=jnp.float32)

    @pl.when(pl.program_id(3) == pl.num_programs(3) - 1)
    def _():
        y = acc_ref[...] * s_ref[...] + b_ref[...]           # folded BN (f32)
        if relu:
            y = jnp.maximum(y, 0.0)
        o_ref[...] = y.reshape(1, rt, W, tn).astype(o_ref.dtype)


def conv3x3_bn_act(x_nhwc, w, scale, shift, *, relu):
    # TODO(synk): stride-2 support is required for the real backbone's
    # downsampling stages; only stride-1 is implemented here.
    B, H, W, Cin = x_nhwc.shape
    Cout = w.shape[-1]
    rt = _tile(H, (32, 16, 8))              # output rows per grid step
    tn = _tile(Cout, (256, 128))
    ck = _tile(Cin, (512, 256, 128))        # Cin reduction tile
    Wp = W + 2
    n_rt = H // rt

    xp = jnp.pad(x_nhwc, ((0, 0), (1, 1), (1, 1), (0, 0)))   # spatial halo pad
    # Non-overlapping row-tile slabs with a 2-row halo: (B, n_rt, rt+2, Wp, Cin)
    # TODO(synk): at real resolutions replace this (rt+2)/rt HBM duplication
    # with a manual halo DMA (memory_space=pl.ANY + make_async_copy).
    slabs = jnp.stack([xp[:, r * rt:r * rt + rt + 2] for r in range(n_rt)],
                      axis=1)

    kernel = functools.partial(_conv3x3_kernel, rt=rt, W=W, relu=relu)
    return pl.pallas_call(
        kernel,
        out_shape=jax.ShapeDtypeStruct((B, H, W, Cout), jnp.bfloat16),
        grid=(B, n_rt, Cout // tn, Cin // ck),
        in_specs=[
            pl.BlockSpec((1, 1, rt + 2, Wp, ck),
                         lambda b, r, j, c: (b, r, 0, 0, c)),
            pl.BlockSpec((3, 3, ck, tn), lambda b, r, j, c: (0, 0, c, j)),
            pl.BlockSpec((1, tn), lambda b, r, j, c: (0, j)),
            pl.BlockSpec((1, tn), lambda b, r, j, c: (0, j)),
        ],
        out_specs=pl.BlockSpec((1, rt, W, tn), lambda b, r, j, c: (b, r, 0, j)),
        scratch_shapes=[pltpu.VMEM((rt * W, tn), jnp.float32)],
        compiler_params=pltpu.CompilerParams(
            dimension_semantics=("parallel", "parallel", "parallel",
                                 "arbitrary"),
            vmem_limit_bytes=_VMEM_LIMIT),
        cost_estimate=pl.CostEstimate(
            flops=2 * B * H * W * 9 * Cin * Cout,
            transcendentals=0,
            bytes_accessed=2 * (B * n_rt * (rt + 2) * Wp * Cin
                                + 9 * Cin * Cout + B * H * W * Cout) + 8 * Cout),
    )(slabs, w, scale.reshape(1, Cout), shift.reshape(1, Cout))


# ----------------------------------------------------------------------------
# Kernel 3: fused AdaptiveAvgPool2d(1) + Linear + sigmoid head (f32, like the
#           PyTorch head).
# ----------------------------------------------------------------------------
def _head_kernel(x_ref, w_ref, b_ref, o_ref):
    pooled = jnp.mean(x_ref[...].astype(jnp.float32), axis=1)       # GAP (f32)
    y = jnp.dot(pooled, w_ref[...],
                preferred_element_type=jnp.float32) + b_ref[...]    # FC (f32)
    sig = pl.reciprocal(1.0 + jnp.exp(-y), approx=True)   # exp + rcp -> EUP
    o_ref[...] = jnp.clip(sig, 0.0, 1.0)                  # guard approx rcp


def gap_fc_sigmoid(x_nhwc, w, b):
    # TODO(synk): fuse the GAP into the last bottleneck's matmul epilogue so
    # the full feature map never round-trips HBM just to be averaged.
    B, H, W, F = x_nhwc.shape
    Np = w.shape[-1]
    x3 = x_nhwc.reshape(B, H * W, F)
    return pl.pallas_call(
        _head_kernel,
        out_shape=jax.ShapeDtypeStruct((B, Np), jnp.float32),
        grid=(1,),
        in_specs=[
            pl.BlockSpec((B, H * W, F), lambda i: (0, 0, 0)),
            pl.BlockSpec((F, Np), lambda i: (0, 0)),
            pl.BlockSpec((1, Np), lambda i: (0, 0)),
        ],
        out_specs=pl.BlockSpec((B, Np), lambda i: (0, 0)),
        compiler_params=pltpu.CompilerParams(
            dimension_semantics=("arbitrary",),
            vmem_limit_bytes=_VMEM_LIMIT),
    )(x3, w, b.reshape(1, Np))


# ----------------------------------------------------------------------------
# Glue (stem im2col, layer plumbing) in plain JAX.
# ----------------------------------------------------------------------------
def _im2col_3x3(x):
    # Used ONLY for the 3-channel stem: 9x inflation of a 3-channel image is
    # negligible. Wide 3x3 convs use the in-kernel tap-accumulation path.
    # TODO(synk): tap ordering (dh-major, dw, channel) must match timm OIHW
    # layout when real pretrained weights are loaded.
    B, H, W, C = x.shape
    xp = jnp.pad(x, ((0, 0), (1, 1), (1, 1), (0, 0)))
    patches = [xp[:, dh:dh + H, dw:dw + W, :]
               for dh in range(3) for dw in range(3)]
    return jnp.concatenate(patches, axis=-1)                 # (B, H, W, 9C)


def bottleneck(x_nhwc, p):
    B, H, W, C = x_nhwc.shape
    x2 = x_nhwc.reshape(B * H * W, C)
    y = matmul_bn_act(x2, p["conv1"]["w"], p["conv1"]["scale"],
                      p["conv1"]["shift"], relu=True)                 # 1x1 reduce
    y = conv3x3_bn_act(y.reshape(B, H, W, -1), p["conv2"]["w"],
                       p["conv2"]["scale"], p["conv2"]["shift"],
                       relu=True)                                     # 3x3
    if "down" in p:
        sc = matmul_bn_act(x2, p["down"]["w"], p["down"]["scale"],
                           p["down"]["shift"], relu=False)            # shortcut
    else:
        sc = x2
    out = matmul_bn_act(y.reshape(B * H * W, -1), p["conv3"]["w"],
                        p["conv3"]["scale"], p["conv3"]["shift"],
                        relu=True, residual=sc)          # 1x1 expand + add+ReLU
    return out.reshape(B, H, W, -1)


def resnet_forward(params, x_nchw, target_size):
    B = x_nchw.shape[0]
    x = jnp.transpose(x_nchw, (0, 2, 3, 1)).astype(jnp.bfloat16)  # NCHW -> NHWC
    _, H, W, C = x.shape
    # stem 3x3 conv (+BN+ReLU) as a tiny im2col matmul
    rows = _im2col_3x3(x).reshape(B * H * W, 9 * C)
    x = matmul_bn_act(rows, params["stem"]["w"], params["stem"]["scale"],
                      params["stem"]["shift"], relu=True)
    x = x.reshape(B, H, W, -1)
    x = bottleneck(x, params["block1"])
    x = bottleneck(x, params["block2"])
    # pooled = self.pooling(features).view(bs, -1); output = sigmoid(self.fc(.))
    out = gap_fc_sigmoid(x, params["fc_w"], params["fc_b"])   # (B, NPAD) f32
    return out[:, :target_size]


# ----------------------------------------------------------------------------
# Deterministic synthetic parameters (BN folded to scale/shift, bf16 weights).
# ----------------------------------------------------------------------------
def _conv_bn_params(key, fan_in, cout, shape=None):
    kw, ks, kb = jax.random.split(key, 3)
    wshape = shape if shape is not None else (fan_in, cout)
    w = (jax.random.normal(kw, wshape, jnp.float32)
         / jnp.sqrt(jnp.float32(fan_in))).astype(jnp.bfloat16)
    scale = 1.0 + 0.05 * jax.random.normal(ks, (cout,), jnp.float32)
    shift = 0.05 * jax.random.normal(kb, (cout,), jnp.float32)
    return {"w": w, "scale": scale, "shift": shift}


def init_params(key, in_chans=3, stem_ch=128, width=128, expansion=4,
                target_size=11, n_pad=128):
    feat = width * expansion
    keys = jax.random.split(key, 10)
    params = {
        "stem": _conv_bn_params(keys[0], 9 * in_chans, stem_ch),
        "block1": {
            "conv1": _conv_bn_params(keys[1], stem_ch, width),
            "conv2": _conv_bn_params(keys[2], 9 * width, width,
                                     shape=(3, 3, width, width)),
            "conv3": _conv_bn_params(keys[3], width, feat),
            "down":  _conv_bn_params(keys[4], stem_ch, feat),
        },
        "block2": {
            "conv1": _conv_bn_params(keys[5], feat, width),
            "conv2": _conv_bn_params(keys[6], 9 * width, width,
                                     shape=(3, 3, width, width)),
            "conv3": _conv_bn_params(keys[7], width, feat),
        },
    }
    fc_w = (jax.random.normal(keys[8], (feat, target_size), jnp.float32)
            / jnp.sqrt(jnp.float32(feat)))
    fc_b = 0.01 * jax.random.normal(keys[9], (target_size,), jnp.float32)
    # lane-dense (128-padded) FC output, kept in f32 like the PyTorch head;
    # real logits live in columns [:target_size]
    params["fc_w"] = jnp.pad(fc_w, ((0, 0), (0, n_pad - target_size)))
    params["fc_b"] = jnp.pad(fc_b, (0, n_pad - target_size))
    return params


if __name__ == "__main__":
    key = jax.random.PRNGKey(0)
    k_param, k_input = jax.random.split(key)

    cfg = {"TARGET_SIZE": 11}
    params = init_params(k_param, target_size=cfg["TARGET_SIZE"])

    # Small NCHW input consistent with the module (batch=2, 3 channels, 16x16).
    x = jax.random.normal(k_input, (2, 3, 16, 16), jnp.float32)

    fwd = jax.jit(functools.partial(resnet_forward,
                                    target_size=cfg["TARGET_SIZE"]))
    out = jax.block_until_ready(fwd(params, x))

    assert out.shape == (2, cfg["TARGET_SIZE"])
    assert bool(jnp.all((out >= 0.0) & (out <= 1.0)))
    print("KERNEL_OK")
</pallas_src>

<mosaic_0001>
module attributes {stable_mosaic.version = 11 : i64} {
  func.func @_mm_kernel(%arg0: i32, %arg1: i32, %arg2: i32, %arg3: memref<256x128xbf16, #tpu.memory_space<vmem>>, %arg4: memref<128x128xbf16, #tpu.memory_space<vmem>>, %arg5: memref<1x128xf32, #tpu.memory_space<vmem>>, %arg6: memref<1x128xf32, #tpu.memory_space<vmem>>, %arg7: memref<256x128xbf16, #tpu.memory_space<vmem>>, %arg8: memref<256x128xf32, #tpu.memory_space<vmem>>) attributes {dimension_semantics = [#tpu.dimension_semantics<parallel>, #tpu.dimension_semantics<parallel>, #tpu.dimension_semantics<arbitrary>], iteration_bounds = array<i64: 2, 1, 1>, scalar_prefetch = 0 : i64, scratch_operands = 1 : i64, tpu.core_type = #tpu.core_type<tc>, window_params = [{transform_indices = @transform_0, window_bounds = array<i64: 256, 128>}, {transform_indices = @transform_1, window_bounds = array<i64: 128, 128>}, {transform_indices = @transform_2, window_bounds = array<i64: 1, 128>}, {transform_indices = @transform_3, window_bounds = array<i64: 1, 128>}, {transform_indices = @transform_4, window_bounds = array<i64: 256, 128>}]} {
    %c0_i32 = arith.constant 0 : i32
    %0 = arith.cmpi eq, %arg2, %c0_i32 : i32
    %1 = arith.extui %0 : i1 to i32
    %c0_i32_0 = arith.constant 0 : i32
    %2 = arith.cmpi ne, %1, %c0_i32_0 : i32
    scf.if %2 {
      %cst_10 = arith.constant 0.000000e+00 : f32
      %12 = vector.broadcast %cst_10 : f32 to vector<256x128xf32>
      %c0_11 = arith.constant 0 : index
      %c0_12 = arith.constant 0 : index
      %13 = vector.load %arg8[%c0_11, %c0_12] : memref<256x128xf32, #tpu.memory_space<vmem>>, vector<256x128xf32>
      tpu.vector_store %arg8[%c0_11, %c0_12], %12 {strides = array<i32>} : memref<256x128xf32, #tpu.memory_space<vmem>>, vector<256x128xf32>,
    } else {
    }
    %c0 = arith.constant 0 : index
    %c0_1 = arith.constant 0 : index
    %3 = vector.load %arg8[%c0, %c0_1] : memref<256x128xf32, #tpu.memory_space<vmem>>, vector<256x128xf32>
    %c0_2 = arith.constant 0 : index
    %c0_3 = arith.constant 0 : index
    %4 = vector.load %arg3[%c0_2, %c0_3] : memref<256x128xbf16, #tpu.memory_space<vmem>>, vector<256x128xbf16>
    %c0_4 = arith.constant 0 : index
    %c0_5 = arith.constant 0 : index
    %5 = vector.load %arg4[%c0_4, %c0_5] : memref<128x128xbf16, #tpu.memory_space<vmem>>, vector<128x128xbf16>
    %cst = arith.constant dense<0.000000e+00> : vector<256x128xf32>
    %6 = tpu.matmul %4, %5, %cst {dimension_numbers = #tpu.dot_dimension_numbers<[1], [0], [0], [1], [0, 0, 1, 1], [], []>} : vector<256x128xbf16>, vector<128x128xbf16>, vector<256x128xf32> -> vector<256x128xf32>
    %7 = arith.addf %3, %6 : vector<256x128xf32>
    %c0_6 = arith.constant 0 : index
    %c0_7 = arith.constant 0 : index
    %8 = vector.load %arg8[%c0_6, %c0_7] : memref<256x128xf32, #tpu.memory_space<vmem>>, vector<256x128xf32>
    tpu.vector_store %arg8[%c0_6, %c0_7], %7 {strides = array<i32>} : memref<256x128xf32, #tpu.memory_space<vmem>>, vector<256x128xf32>,
    %c0_i32_8 = arith.constant 0 : i32
    %9 = arith.cmpi eq, %arg2, %c0_i32_8 : i32
    %10 = arith.extui %9 : i1 to i32
    %c0_i32_9 = arith.constant 0 : i32
    %11 = arith.cmpi ne, %10, %c0_i32_9 : i32
    scf.if %11 {
      %c0_10 = arith.constant 0 : index
      %c0_11 = arith.constant 0 : index
      %12 = vector.load %arg8[%c0_10, %c0_11] : memref<256x128xf32, #tpu.memory_space<vmem>>, vector<256x128xf32>
      %c0_12 = arith.constant 0 : index
      %c0_13 = arith.constant 0 : index
      %13 = vector.load %arg5[%c0_12, %c0_13] : memref<1x128xf32, #tpu.memory_space<vmem>>, vector<1x128xf32>
      %14 = vector.broadcast %13 : vector<1x128xf32> to vector<256x128xf32>
      %15 = arith.mulf %12, %14 : vector<256x128xf32>
      %c0_14 = arith.constant 0 : index
      %c0_15 = arith.constant 0 : index
      %16 = vector.load %arg6[%c0_14, %c0_15] : memref<1x128xf32, #tpu.memory_space<vmem>>, vector<1x128xf32>
      %17 = vector.broadcast %16 : vector<1x128xf32> to vector<256x128xf32>
      %18 = arith.addf %15, %17 : vector<256x128xf32>
      %cst_16 = arith.constant 0.000000e+00 : f32
      %19 = vector.broadcast %cst_16 : f32 to vector<256x128xf32>
      %20 = arith.maximumf %18, %19 : vector<256x128xf32>
      %21 = arith.truncf %20 : vector<256x128xf32> to vector<256x128xbf16>
      %c0_17 = arith.constant 0 : index
      %c0_18 = arith.constant 0 : index
      %22 = vector.load %arg7[%c0_17, %c0_18] : memref<256x128xbf16, #tpu.memory_space<vmem>>, vector<256x128xbf16>
      tpu.vector_store %arg7[%c0_17, %c0_18], %21 {strides = array<i32>} : memref<256x128xbf16, #tpu.memory_space<vmem>>, vector<256x128xbf16>,
    } else {
    }
    return
  }
  func.func @transform_0(%arg0: i32, %arg1: i32, %arg2: i32) -> (i32, i32) {
    %c0_i32 = arith.constant 0 : i32
    return %arg0, %arg2 : i32, i32
  }
  func.func @transform_1(%arg0: i32, %arg1: i32, %arg2: i32) -> (i32, i32) {
    %c0_i32 = arith.constant 0 : i32
    return %arg2, %arg1 : i32, i32
  }
  func.func @transform_2(%arg0: i32, %arg1: i32, %arg2: i32) -> (i32, i32) {
    %c0_i32 = arith.constant 0 : i32
    %c0_i32_0 = arith.constant 0 : i32
    return %c0_i32, %arg1 : i32, i32
  }
  func.func @transform_3(%arg0: i32, %arg1: i32, %arg2: i32) -> (i32, i32) {
    %c0_i32 = arith.constant 0 : i32
    %c0_i32_0 = arith.constant 0 : i32
    return %c0_i32, %arg1 : i32, i32
  }
  func.func @transform_4(%arg0: i32, %arg1: i32, %arg2: i32) -> (i32, i32) {
    %c0_i32 = arith.constant 0 : i32
    return %arg0, %arg1 : i32, i32
  }
}

module attributes {stable_mosaic.version = 11 : i64} {
  func.func @_mm_kernel(%arg0: i32, %arg1: i32, %arg2: i32, %arg3: memref<256x27xbf16, #tpu.memory_space<vmem>>, %arg4: memref<27x128xbf16, #tpu.memory_space<vmem>>, %arg5: memref<1x128xf32, #tpu.memory_space<vmem>>, %arg6: memref<1x128xf32, #tpu.memory_space<vmem>>, %arg7: memref<256x128xbf16, #tpu.memory_space<vmem>>, %arg8: memref<256x128xf32, #tpu.memory_space<vmem>>) attributes {dimension_semantics = [#tpu.dimension_semantics<parallel>, #tpu.dimension_semantics<parallel>, #tpu.dimension_semantics<arbitrary>], iteration_bounds = array<i64: 2, 1, 1>, scalar_prefetch = 0 : i64, scratch_operands = 1 : i64, tpu.core_type = #tpu.core_type<tc>, window_params = [{transform_indices = @transform_0, window_bounds = array<i64: 256, 27>}, {transform_indices = @transform_1, window_bounds = array<i64: 27, 128>}, {transform_indices = @transform_2, window_bounds = array<i64: 1, 128>}, {transform_indices = @transform_3, window_bounds = array<i64: 1, 128>}, {transform_indices = @transform_4, window_bounds = array<i64: 256, 128>}]} {
    %c0_i32 = arith.constant 0 : i32
    %0 = arith.cmpi eq, %arg2, %c0_i32 : i32
    %1 = arith.extui %0 : i1 to i32
    %c0_i32_0 = arith.constant 0 : i32
    %2 = arith.cmpi ne, %1, %c0_i32_0 : i32
    scf.if %2 {
      %cst_10 = arith.constant 0.000000e+00 : f32
      %12 = vector.broadcast %cst_10 : f32 to vector<256x128xf32>
      %c0_11 = arith.constant 0 : index
      %c0_12 = arith.constant 0 : index
      %13 = vector.load %arg8[%c0_11, %c0_12] : memref<256x128xf32, #tpu.memory_space<vmem>>, vector<256x128xf32>
      tpu.vector_store %arg8[%c0_11, %c0_12], %12 {strides = array<i32>} : memref<256x128xf32, #tpu.memory_space<vmem>>, vector<256x128xf32>,
    } else {
    }
    %c0 = arith.constant 0 : index
    %c0_1 = arith.constant 0 : index
    %3 = vector.load %arg8[%c0, %c0_1] : memref<256x128xf32, #tpu.memory_space<vmem>>, vector<256x128xf32>
    %c0_2 = arith.constant 0 : index
    %c0_3 = arith.constant 0 : index
    %4 = vector.load %arg3[%c0_2, %c0_3] : memref<256x27xbf16, #tpu.memory_space<vmem>>, vector<256x27xbf16>
    %c0_4 = arith.constant 0 : index
    %c0_5 = arith.constant 0 : index
    %5 = vector.load %arg4[%c0_4, %c0_5] : memref<27x128xbf16, #tpu.memory_space<vmem>>, vector<27x128xbf16>
    %cst = arith.constant dense<0.000000e+00> : vector<256x128xf32>
    %6 = tpu.matmul %4, %5, %cst {dimension_numbers = #tpu.dot_dimension_numbers<[1], [0], [0], [1], [0, 0, 1, 1], [], []>} : vector<256x27xbf16>, vector<27x128xbf16>, vector<256x128xf32> -> vector<256x128xf32>
    %7 = arith.addf %3, %6 : vector<256x128xf32>
    %c0_6 = arith.constant 0 : index
    %c0_7 = arith.constant 0 : index
    %8 = vector.load %arg8[%c0_6, %c0_7] : memref<256x128xf32, #tpu.memory_space<vmem>>, vector<256x128xf32>
    tpu.vector_store %arg8[%c0_6, %c0_7], %7 {strides = array<i32>} : memref<256x128xf32, #tpu.memory_space<vmem>>, vector<256x128xf32>,
    %c0_i32_8 = arith.constant 0 : i32
    %9 = arith.cmpi eq, %arg2, %c0_i32_8 : i32
    %10 = arith.extui %9 : i1 to i32
    %c0_i32_9 = arith.constant 0 : i32
    %11 = arith.cmpi ne, %10, %c0_i32_9 : i32
    scf.if %11 {
      %c0_10 = arith.constant 0 : index
      %c0_11 = arith.constant 0 : index
      %12 = vector.load %arg8[%c0_10, %c0_11] : memref<256x128xf32, #tpu.memory_space<vmem>>, vector<256x128xf32>
      %c0_12 = arith.constant 0 : index
      %c0_13 = arith.constant 0 : index
      %13 = vector.load %arg5[%c0_12, %c0_13] : memref<1x128xf32, #tpu.memory_space<vmem>>, vector<1x128xf32>
      %14 = vector.broadcast %13 : vector<1x128xf32> to vector<256x128xf32>
      %15 = arith.mulf %12, %14 : vector<256x128xf32>
      %c0_14 = arith.constant 0 : index
      %c0_15 = arith.constant 0 : index
      %16 = vector.load %arg6[%c0_14, %c0_15] : memref<1x128xf32, #tpu.memory_space<vmem>>, vector<1x128xf32>
      %17 = vector.broadcast %16 : vector<1x128xf32> to vector<256x128xf32>
      %18 = arith.addf %15, %17 : vector<256x128xf32>
      %cst_16 = arith.constant 0.000000e+00 : f32
      %19 = vector.broadcast %cst_16 : f32 to vector<256x128xf32>
      %20 = arith.maximumf %18, %19 : vector<256x128xf32>
      %21 = arith.truncf %20 : vector<256x128xf32> to vector<256x128xbf16>
      %c0_17 = arith.constant 0 : index
      %c0_18 = arith.constant 0 : index
      %22 = vector.load %arg7[%c0_17, %c0_18] : memref<256x128xbf16, #tpu.memory_space<vmem>>, vector<256x128xbf16>
      tpu.vector_store %arg7[%c0_17, %c0_18], %21 {strides = array<i32>} : memref<256x128xbf16, #tpu.memory_space<vmem>>, vector<256x128xbf16>,
    } else {
    }
    return
  }
  func.func @transform_0(%arg0: i32, %arg1: i32, %arg2: i32) -> (i32, i32) {
    %c0_i32 = arith.constant 0 : i32
    return %arg0, %arg2 : i32, i32
  }
  func.func @transform_1(%arg0: i32, %arg1: i32, %arg2: i32) -> (i32, i32) {
    %c0_i32 = arith.constant 0 : i32
    return %arg2, %arg1 : i32, i32
  }
  func.func @transform_2(%arg0: i32, %arg1: i32, %arg2: i32) -> (i32, i32) {
    %c0_i32 = arith.constant 0 : i32
    %c0_i32_0 = arith.constant 0 : i32
    return %c0_i32, %arg1 : i32, i32
  }
  func.func @transform_3(%arg0: i32, %arg1: i32, %arg2: i32) -> (i32, i32) {
    %c0_i32 = arith.constant 0 : i32
    %c0_i32_0 = arith.constant 0 : i32
    return %c0_i32, %arg1 : i32, i32
  }
  func.func @transform_4(%arg0: i32, %arg1: i32, %arg2: i32) -> (i32, i32) {
    %c0_i32 = arith.constant 0 : i32
    return %arg0, %arg1 : i32, i32
  }
}

module attributes {stable_mosaic.version = 11 : i64} {
  func.func @_conv3x3_kernel(%arg0: i32, %arg1: i32, %arg2: i32, %arg3: i32, %arg4: memref<1x1x18x18x128xbf16, #tpu.memory_space<vmem>>, %arg5: memref<3x3x128x128xbf16, #tpu.memory_space<vmem>>, %arg6: memref<1x128xf32, #tpu.memory_space<vmem>>, %arg7: memref<1x128xf32, #tpu.memory_space<vmem>>, %arg8: memref<1x16x16x128xbf16, #tpu.memory_space<vmem>>, %arg9: memref<256x128xf32, #tpu.memory_space<vmem>>) attributes {dimension_semantics = [#tpu.dimension_semantics<parallel>, #tpu.dimension_semantics<parallel>, #tpu.dimension_semantics<parallel>, #tpu.dimension_semantics<arbitrary>], iteration_bounds = array<i64: 2, 1, 1, 1>, scalar_prefetch = 0 : i64, scratch_operands = 1 : i64, tpu.core_type = #tpu.core_type<tc>, window_params = [{transform_indices = @transform_0, window_bounds = array<i64: 1, 1, 18, 18, 128>}, {transform_indices = @transform_1, window_bounds = array<i64: 3, 3, 128, 128>}, {transform_indices = @transform_2, window_bounds = array<i64: 1, 128>}, {transform_indices = @transform_3, window_bounds = array<i64: 1, 128>}, {transform_indices = @transform_4, window_bounds = array<i64: 1, 16, 16, 128>}]} {
    %c0_i32 = arith.constant 0 : i32
    %0 = arith.cmpi eq, %arg3, %c0_i32 : i32
    %1 = arith.extui %0 : i1 to i32
    %c0_i32_0 = arith.constant 0 : i32
    %2 = arith.cmpi ne, %1, %c0_i32_0 : i32
    scf.if %2 {
      %cst_95 = arith.constant 0.000000e+00 : f32
      %84 = vector.broadcast %cst_95 : f32 to vector<256x128xf32>
      %c0_96 = arith.constant 0 : index
      %c0_97 = arith.constant 0 : index
      %85 = vector.load %arg9[%c0_96, %c0_97] : memref<256x128xf32, #tpu.memory_space<vmem>>, vector<256x128xf32>
      tpu.vector_store %arg9[%c0_96, %c0_97], %84 {strides = array<i32>} : memref<256x128xf32, #tpu.memory_space<vmem>>, vector<256x128xf32>,
    } else {
    }
    %c0 = arith.constant 0 : index
    %c0_1 = arith.constant 0 : index
    %c0_2 = arith.constant 0 : index
    %c0_3 = arith.constant 0 : index
    %c0_4 = arith.constant 0 : index
    %3 = vector.load %arg4[%c0, %c0_1, %c0_2, %c0_3, %c0_4] : memref<1x1x18x18x128xbf16, #tpu.memory_space<vmem>>, vector<1x1x16x18x128xbf16>
    %4 = vector.shape_cast %3 : vector<1x1x16x18x128xbf16> to vector<16x18x128xbf16>
    %5 = vector.extract_strided_slice %4 {offsets = [0, 0, 0], sizes = [16, 16, 128], strides = [1, 1, 1]} : vector<16x18x128xbf16> to vector<16x16x128xbf16>
    %6 = vector.shape_cast %5 : vector<16x16x128xbf16> to vector<256x128xbf16>
    %c0_5 = arith.constant 0 : index
    %c0_6 = arith.constant 0 : index
    %7 = vector.load %arg9[%c0_5, %c0_6] : memref<256x128xf32, #tpu.memory_space<vmem>>, vector<256x128xf32>
    %c0_7 = arith.constant 0 : index
    %c0_8 = arith.constant 0 : index
    %c0_9 = arith.constant 0 : index
    %c0_10 = arith.constant 0 : index
    %8 = vector.load %arg5[%c0_7, %c0_8, %c0_9, %c0_10] : memref<3x3x128x128xbf16, #tpu.memory_space<vmem>>, vector<1x1x128x128xbf16>
    %9 = vector.shape_cast %8 : vector<1x1x128x128xbf16> to vector<128x128xbf16>
    %cst = arith.constant dense<0.000000e+00> : vector<256x128xf32>
    %10 = tpu.matmul %6, %9, %cst {dimension_numbers = #tpu.dot_dimension_numbers<[1], [0], [0], [1], [0, 0, 1, 1], [], []>} : vector<256x128xbf16>, vector<128x128xbf16>, vector<256x128xf32> -> vector<256x128xf32>
    %11 = arith.addf %7, %10 : vector<256x128xf32>
    %c0_11 = arith.constant 0 : index
    %c0_12 = arith.constant 0 : index
    %12 = vector.load %arg9[%c0_11, %c0_12] : memref<256x128xf32, #tpu.memory_space<vmem>>, vector<256x128xf32>
    tpu.vector_store %arg9[%c0_11, %c0_12], %11 {strides = array<i32>} : memref<256x128xf32, #tpu.memory_space<vmem>>, vector<256x128xf32>,
    %13 = vector.extract_strided_slice %4 {offsets = [0, 1, 0], sizes = [16, 16, 128], strides = [1, 1, 1]} : vector<16x18x128xbf16> to vector<16x16x128xbf16>
    %14 = vector.shape_cast %13 : vector<16x16x128xbf16> to vector<256x128xbf16>
    %c0_13 = arith.constant 0 : index
    %c0_14 = arith.constant 0 : index
    %15 = vector.load %arg9[%c0_13, %c0_14] : memref<256x128xf32, #tpu.memory_space<vmem>>, vector<256x128xf32>
    %c0_15 = arith.constant 0 : index
    %c1 = arith.constant 1 : index
    %c0_16 = arith.constant 0 : index
    %c0_17 = arith.constant 0 : index
    %16 = vector.load %arg5[%c0_15, %c1, %c0_16, %c0_17] : memref<3x3x128x128xbf16, #tpu.memory_space<vmem>>, vector<1x1x128x128xbf16>
    %17 = vector.shape_cast %16 : vector<1x1x128x128xbf16> to vector<128x128xbf16>
    %cst_18 = arith.constant dense<0.000000e+00> : vector<256x128xf32>
    %18 = tpu.matmul %14, %17, %cst_18 {dimension_numbers = #tpu.dot_dimension_numbers<[1], [0], [0], [1], [0, 0, 1, 1], [], []>} : vector<256x128xbf16>, vector<128x128xbf16>, vector<256x128xf32> -> vector<256x128xf32>
    %19 = arith.addf %15, %18 : vector<256x128xf32>
    %c0_19 = arith.constant 0 : index
    %c0_20 = arith.constant 0 : index
    %20 = vector.load %arg9[%c0_19, %c0_20] : memref<256x128xf32, #tpu.memory_space<vmem>>, vector<256x128xf32>
    tpu.vector_store %arg9[%c0_19, %c0_20], %19 {strides = array<i32>} : memref<256x128xf32, #tpu.memory_space<vmem>>, vector<256x128xf32>,
    %21 = vector.extract_strided_slice %4 {offsets = [0, 2, 0], sizes = [16, 16, 128], strides = [1, 1, 1]} : vector<16x18x128xbf16> to vector<16x16x128xbf16>
    %22 = vector.shape_cast %21 : vector<16x16x128xbf16> to vector<256x128xbf16>
    %c0_21 = arith.constant 0 : index
    %c0_22 = arith.constant 0 : index
    %23 = vector.load %arg9[%c0_21, %c0_22] : memref<256x128xf32, #tpu.memory_space<vmem>>, vector<256x128xf32>
    %c0_23 = arith.constant 0 : index
    %c2 = arith.constant 2 : index
    %c0_24 = arith.constant 0 : index
    %c0_25 = arith.constant 0 : index
    %24 = vector.load %arg5[%c0_23, %c2, %c0_24, %c0_25] : memref<3x3x128x128xbf16, #tpu.memory_space<vmem>>, vector<1x1x128x128xbf16>
    %25 = vector.shape_cast %24 : vector<1x1x128x128xbf16> to vector<128x128xbf16>
    %cst_26 = arith.constant dense<0.000000e+00> : vector<256x128xf32>
    %26 = tpu.matmul %22, %25, %cst_26 {dimension_numbers = #tpu.dot_dimension_numbers<[1], [0], [0], [1], [0, 0, 1, 1], [], []>} : vector<256x128xbf16>, vector<128x128xbf16>, vector<256x128xf32> -> vector<256x128xf32>
    %27 = arith.addf %23, %26 : vector<256x128xf32>
    %c0_27 = arith.constant 0 : index
    %c0_28 = arith.constant 0 : index
    %28 = vector.load %arg9[%c0_27, %c0_28] : memref<256x128xf32, #tpu.memory_space<vmem>>, vector<256x128xf32>
    tpu.vector_store %arg9[%c0_27, %c0_28], %27 {strides = array<i32>} : memref<256x128xf32, #tpu.memory_space<vmem>>, vector<256x128xf32>,
    %c0_29 = arith.constant 0 : index
    %c0_30 = arith.constant 0 : index
    %c1_31 = arith.constant 1 : index
    %c0_32 = arith.constant 0 : index
    %c0_33 = arith.constant 0 : index
    %29 = vector.load %arg4[%c0_29, %c0_30, %c1_31, %c0_32, %c0_33] : memref<1x1x18x18x128xbf16, #tpu.memory_space<vmem>>, vector<1x1x16x18x128xbf16>
    %30 = vector.shape_cast %29 : vector<1x1x16x18x128xbf16> to vector<16x18x128xbf16>
    %31 = vector.extract_strided_slice %30 {offsets = [0, 0, 0], sizes = [16, 16, 128], strides = [1, 1, 1]} : vector<16x18x128xbf16> to vector<16x16x128xbf16>
    %32 = vector.shape_cast %31 : vector<16x16x128xbf16> to vector<256x128xbf16>
    %c0_34 = arith.constant 0 : index
    %c0_35 = arith.constant 0 : index
    %33 = vector.load %arg9[%c0_34, %c0_35] : memref<256x128xf32, #tpu.memory_space<vmem>>, vector<256x128xf32>
    %c1_36 = arith.constant 1 : index
    %c0_37 = arith.constant 0 : index
    %c0_38 = arith.constant 0 : index
    %c0_39 = arith.constant 0 : index
    %34 = vector.load %arg5[%c1_36, %c0_37, %c0_38, %c0_39] : memref<3x3x128x128xbf16, #tpu.memory_space<vmem>>, vector<1x1x128x128xbf16>
    %35 = vector.shape_cast %34 : vector<1x1x128x128xbf16> to vector<128x128xbf16>
    %cst_40 = arith.constant dense<0.000000e+00> : vector<256x128xf32>
    %36 = tpu.matmul %32, %35, %cst_40 {dimension_numbers = #tpu.dot_dimension_numbers<[1], [0], [0], [1], [0, 0, 1, 1], [], []>} : vector<256x128xbf16>, vector<128x128xbf16>, vector<256x128xf32> -> vector<256x128xf32>
    %37 = arith.addf %33, %36 : vector<256x128xf32>
    %c0_41 = arith.constant 0 : index
    %c0_42 = arith.constant 0 : index
    %38 = vector.load %arg9[%c0_41, %c0_42] : memref<256x128xf32, #tpu.memory_space<vmem>>, vector<256x128xf32>
    tpu.vector_store %arg9[%c0_41, %c0_42], %37 {strides = array<i32>} : memref<256x128xf32, #tpu.memory_space<vmem>>, vector<256x128xf32>,
    %39 = vector.extract_strided_slice %30 {offsets = [0, 1, 0], sizes = [16, 16, 128], strides = [1, 1, 1]} : vector<16x18x128xbf16> to vector<16x16x128xbf16>
    %40 = vector.shape_cast %39 : vector<16x16x128xbf16> to vector<256x128xbf16>
    %c0_43 = arith.constant 0 : index
    %c0_44 = arith.constant 0 : index
    %41 = vector.load %arg9[%c0_43, %c0_44] : memref<256x128xf32, #tpu.memory_space<vmem>>, vector<256x128xf32>
    %c1_45 = arith.constant 1 : index
    %c1_46 = arith.constant 1 : index
    %c0_47 = arith.constant 0 : index
    %c0_48 = arith.constant 0 : index
    %42 = vector.load %arg5[%c1_45, %c1_46, %c0_47, %c0_48] : memref<3x3x128x128xbf16, #tpu.memory_space<vmem>>, vector<1x1x128x128xbf16>
    %43 = vector.shape_cast %42 : vector<1x1x128x128xbf16> to vector<128x128xbf16>
    %cst_49 = arith.constant dense<0.000000e+00> : vector<256x128xf32>
    %44 = tpu.matmul %40, %43, %cst_49 {dimension_numbers = #tpu.dot_dimension_numbers<[1], [0], [0], [1], [0, 0, 1, 1], [], []>} : vector<256x128xbf16>, vector<128x128xbf16>, vector<256x128xf32> -> vector<256x128xf32>
    %45 = arith.addf %41, %44 : vector<256x128xf32>
    %c0_50 = arith.constant 0 : index
    %c0_51 = arith.constant 0 : index
    %46 = vector.load %arg9[%c0_50, %c0_51] : memref<256x128xf32, #tpu.memory_space<vmem>>, vector<256x128xf32>
    tpu.vector_store %arg9[%c0_50, %c0_51], %45 {strides = array<i32>} : memref<256x128xf32, #tpu.memory_space<vmem>>, vector<256x128xf32>,
    %47 = vector.extract_strided_slice %30 {offsets = [0, 2, 0], sizes = [16, 16, 128], strides = [1, 1, 1]} : vector<16x18x128xbf16> to vector<16x16x128xbf16>
    %48 = vector.shape_cast %47 : vector<16x16x128xbf16> to vector<256x128xbf16>
    %c0_52 = arith.constant 0 : index
    %c0_53 = arith.constant 0 : index
    %49 = vector.load %arg9[%c0_52, %c0_53] : memref<256x128xf32, #tpu.memory_space<vmem>>, vector<256x128xf32>
    %c1_54 = arith.constant 1 : index
    %c2_55 = arith.constant 2 : index
    %c0_56 = arith.constant 0 : index
    %c0_57 = arith.constant 0 : index
    %50 = vector.load %arg5[%c1_54, %c2_55, %c0_56, %c0_57] : memref<3x3x128x128xbf16, #tpu.memory_space<vmem>>, vector<1x1x128x128xbf16>
    %51 = vector.shape_cast %50 : vector<1x1x128x128xbf16> to vector<128x128xbf16>
    %cst_58 = arith.constant dense<0.000000e+00> : vector<256x128xf32>
    %52 = tpu.matmul %48, %51, %cst_58 {dimension_numbers = #tpu.dot_dimension_numbers<[1], [0], [0], [1], [0, 0, 1, 1], [], []>} : vector<256x128xbf16>, vector<128x128xbf16>, vector<256x128xf32> -> vector<256x128xf32>
    %53 = arith.addf %49, %52 : vector<256x128xf32>
    %c0_59 = arith.constant 0 : index
    %c0_60 = arith.constant 0 : index
    %54 = vector.load %arg9[%c0_59, %c0_60] : memref<256x128xf32, #tpu.memory_space<vmem>>, vector<256x128xf32>
    tpu.vector_store %arg9[%c0_59, %c0_60], %53 {strides = array<i32>} : memref<256x128xf32, #tpu.memory_space<vmem>>, vector<256x128xf32>,
    %c0_61 = arith.constant 0 : index
    %c0_62 = arith.constant 0 : index
    %c2_63 = arith.constant 2 : index
    %c0_64 = arith.constant 0 : index
    %c0_65 = arith.constant 0 : index
    %55 = vector.load %arg4[%c0_61, %c0_62, %c2_63, %c0_64, %c0_65] : memref<1x1x18x18x128xbf16, #tpu.memory_space<vmem>>, vector<1x1x16x18x128xbf16>
    %56 = vector.shape_cast %55 : vector<1x1x16x18x128xbf16> to vector<16x18x128xbf16>
    %57 = vector.extract_strided_slice %56 {offsets = [0, 0, 0], sizes = [16, 16, 128], strides = [1, 1, 1]} : vector<16x18x128xbf16> to vector<16x16x128xbf16>
    %58 = vector.shape_cast %57 : vector<16x16x128xbf16> to vector<256x128xbf16>
    %c0_66 = arith.constant 0 : index
    %c0_67 = arith.constant 0 : index
    %59 = vector.load %arg9[%c0_66, %c0_67] : memref<256x128xf32, #tpu.memory_space<vmem>>, vector<256x128xf32>
    %c2_68 = arith.constant 2 : index
    %c0_69 = arith.constant 0 : index
    %c0_70 = arith.constant 0 : index
    %c0_71 = arith.constant 0 : index
    %60 = vector.load %arg5[%c2_68, %c0_69, %c0_70, %c0_71] : memref<3x3x128x128xbf16, #tpu.memory_space<vmem>>, vector<1x1x128x128xbf16>
    %61 = vector.shape_cast %60 : vector<1x1x128x128xbf16> to vector<128x128xbf16>
    %cst_72 = arith.constant dense<0.000000e+00> : vector<256x128xf32>
    %62 = tpu.matmul %58, %61, %cst_72 {dimension_numbers = #tpu.dot_dimension_numbers<[1], [0], [0], [1], [0, 0, 1, 1], [], []>} : vector<256x128xbf16>, vector<128x128xbf16>, vector<256x128xf32> -> vector<256x128xf32>
    %63 = arith.addf %59, %62 : vector<256x128xf32>
    %c0_73 = arith.constant 0 : index
    %c0_74 = arith.constant 0 : index
    %64 = vector.load %arg9[%c0_73, %c0_74] : memref<256x128xf32, #tpu.memory_space<vmem>>, vector<256x128xf32>
    tpu.vector_store %arg9[%c0_73, %c0_74], %63 {strides = array<i32>} : memref<256x128xf32, #tpu.memory_space<vmem>>, vector<256x128xf32>,
    %65 = vector.extract_strided_slice %56 {offsets = [0, 1, 0], sizes = [16, 16, 128], strides = [1, 1, 1]} : vector<16x18x128xbf16> to vector<16x16x128xbf16>
    %66 = vector.shape_cast %65 : vector<16x16x128xbf16> to vector<256x128xbf16>
    %c0_75 = arith.constant 0 : index
    %c0_76 = arith.constant 0 : index
    %67 = vector.load %arg9[%c0_75, %c0_76] : memref<256x128xf32, #tpu.memory_space<vmem>>, vector<256x128xf32>
    %c2_77 = arith.constant 2 : index
    %c1_78 = arith.constant 1 : index
    %c0_79 = arith.constant 0 : index
    %c0_80 = arith.constant 0 : index
    %68 = vector.load %arg5[%c2_77, %c1_78, %c0_79, %c0_80] : memref<3x3x128x128xbf16, #tpu.memory_space<vmem>>, vector<1x1x128x128xbf16>
    %69 = vector.shape_cast %68 : vector<1x1x128x128xbf16> to vector<128x128xbf16>
    %cst_81 = arith.constant dense<0.000000e+00> : vector<256x128xf32>
    %70 = tpu.matmul %66, %69, %cst_81 {dimension_numbers = #tpu.dot_dimension_numbers<[1], [0], [0], [1], [0, 0, 1, 1], [], []>} : vector<256x128xbf16>, vector<128x128xbf16>, vector<256x128xf32> -> vector<256x128xf32>
    %71 = arith.addf %67, %70 : vector<256x128xf32>
    %c0_82 = arith.constant 0 : index
    %c0_83 = arith.constant 0 : index
    %72 = vector.load %arg9[%c0_82, %c0_83] : memref<256x128xf32, #tpu.memory_space<vmem>>, vector<256x128xf32>
    tpu.vector_store %arg9[%c0_82, %c0_83], %71 {strides = array<i32>} : memref<256x128xf32, #tpu.memory_space<vmem>>, vector<256x128xf32>,
    %73 = vector.extract_strided_slice %56 {offsets = [0, 2, 0], sizes = [16, 16, 128], strides = [1, 1, 1]} : vector<16x18x128xbf16> to vector<16x16x128xbf16>
    %74 = vector.shape_cast %73 : vector<16x16x128xbf16> to vector<256x128xbf16>
    %c0_84 = arith.constant 0 : index
    %c0_85 = arith.constant 0 : index
    %75 = vector.load %arg9[%c0_84, %c0_85] : memref<256x128xf32, #tpu.memory_space<vmem>>, vector<256x128xf32>
    %c2_86 = arith.constant 2 : index
    %c2_87 = arith.constant 2 : index
    %c0_88 = arith.constant 0 : index
    %c0_89 = arith.constant 0 : index
    %76 = vector.load %arg5[%c2_86, %c2_87, %c0_88, %c0_89] : memref<3x3x128x128xbf16, #tpu.memory_space<vmem>>, vector<1x1x128x128xbf16>
    %77 = vector.shape_cast %76 : vector<1x1x128x128xbf16> to vector<128x128xbf16>
    %cst_90 = arith.constant dense<0.000000e+00> : vector<256x128xf32>
    %78 = tpu.matmul %74, %77, %cst_90 {dimension_numbers = #tpu.dot_dimension_numbers<[1], [0], [0], [1], [0, 0, 1, 1], [], []>} : vector<256x128xbf16>, vector<128x128xbf16>, vector<256x128xf32> -> vector<256x128xf32>
    %79 = arith.addf %75, %78 : vector<256x128xf32>
    %c0_91 = arith.constant 0 : index
    %c0_92 = arith.constant 0 : index
    %80 = vector.load %arg9[%c0_91, %c0_92] : memref<256x128xf32, #tpu.memory_space<vmem>>, vector<256x128xf32>
    tpu.vector_store %arg9[%c0_91, %c0_92], %79 {strides = array<i32>} : memref<256x128xf32, #tpu.memory_space<vmem>>, vector<256x128xf32>,
    %c0_i32_93 = arith.constant 0 : i32
    %81 = arith.cmpi eq, %arg3, %c0_i32_93 : i32
    %82 = arith.extui %81 : i1 to i32
    %c0_i32_94 = arith.constant 0 : i32
    %83 = arith.cmpi ne, %82, %c0_i32_94 : i32
    scf.if %83 {
      %c0_95 = arith.constant 0 : index
      %c0_96 = arith.constant 0 : index
      %84 = vector.load %arg9[%c0_95, %c0_96] : memref<256x128xf32, #tpu.memory_space<vmem>>, vector<256x128xf32>
      %c0_97 = arith.constant 0 : index
      %c0_98 = arith.constant 0 : index
      %85 = vector.load %arg6[%c0_97, %c0_98] : memref<1x128xf32, #tpu.memory_space<vmem>>, vector<1x128xf32>
      %86 = vector.broadcast %85 : vector<1x128xf32> to vector<256x128xf32>
      %87 = arith.mulf %84, %86 : vector<256x128xf32>
      %c0_99 = arith.constant 0 : index
      %c0_100 = arith.constant 0 : index
      %88 = vector.load %arg7[%c0_99, %c0_100] : memref<1x128xf32, #tpu.memory_space<vmem>>, vector<1x128xf32>
      %89 = vector.broadcast %88 : vector<1x128xf32> to vector<256x128xf32>
      %90 = arith.addf %87, %89 : vector<256x128xf32>
      %cst_101 = arith.constant 0.000000e+00 : f32
      %91 = vector.broadcast %cst_101 : f32 to vector<256x128xf32>
      %92 = arith.maximumf %90, %91 : vector<256x128xf32>
      %93 = vector.shape_cast %92 : vector<256x128xf32> to vector<1x16x16x128xf32>
      %94 = arith.truncf %93 : vector<1x16x16x128xf32> to vector<1x16x16x128xbf16>
      %c0_102 = arith.constant 0 : index
      %c0_103 = arith.constant 0 : index
      %c0_104 = arith.constant 0 : index
      %c0_105 = arith.constant 0 : index
      %95 = vector.load %arg8[%c0_102, %c0_103, %c0_104, %c0_105] : memref<1x16x16x128xbf16, #tpu.memory_space<vmem>>, vector<1x16x16x128xbf16>
      tpu.vector_store %arg8[%c0_102, %c0_103, %c0_104, %c0_105], %94 {strides = array<i32>} : memref<1x16x16x128xbf16, #tpu.memory_space<vmem>>, vector<1x16x16x128xbf16>,
    } else {
    }
    return
  }
  func.func @transform_0(%arg0: i32, %arg1: i32, %arg2: i32, %arg3: i32) -> (i32, i32, i32, i32, i32) {
    %c0_i32 = arith.constant 0 : i32
    %c0_i32_0 = arith.constant 0 : i32
    %c0_i32_1 = arith.constant 0 : i32
    return %arg0, %arg1, %c0_i32, %c0_i32_0, %arg3 : i32, i32, i32, i32, i32
  }
  func.func @transform_1(%arg0: i32, %arg1: i32, %arg2: i32, %arg3: i32) -> (i32, i32, i32, i32) {
    %c0_i32 = arith.constant 0 : i32
    %c0_i32_0 = arith.constant 0 : i32
    %c0_i32_1 = arith.constant 0 : i32
    return %c0_i32, %c0_i32_0, %arg3, %arg2 : i32, i32, i32, i32
  }
  func.func @transform_2(%arg0: i32, %arg1: i32, %arg2: i32, %arg3: i32) -> (i32, i32) {
    %c0_i32 = arith.constant 0 : i32
    %c0_i32_0 = arith.constant 0 : i32
    return %c0_i32, %arg2 : i32, i32
  }
  func.func @transform_3(%arg0: i32, %arg1: i32, %arg2: i32, %arg3: i32) -> (i32, i32) {
    %c0_i32 = arith.constant 0 : i32
    %c0_i32_0 = arith.constant 0 : i32
    return %c0_i32, %arg2 : i32, i32
  }
  func.func @transform_4(%arg0: i32, %arg1: i32, %arg2: i32, %arg3: i32) -> (i32, i32, i32, i32) {
    %c0_i32 = arith.constant 0 : i32
    %c0_i32_0 = arith.constant 0 : i32
    return %arg0, %arg1, %c0_i32, %arg2 : i32, i32, i32, i32
  }
}

module attributes {stable_mosaic.version = 11 : i64} {
  func.func @_mm_kernel(%arg0: i32, %arg1: i32, %arg2: i32, %arg3: memref<512x128xbf16, #tpu.memory_space<vmem>>, %arg4: memref<128x256xbf16, #tpu.memory_space<vmem>>, %arg5: memref<1x256xf32, #tpu.memory_space<vmem>>, %arg6: memref<1x256xf32, #tpu.memory_space<vmem>>, %arg7: memref<512x256xbf16, #tpu.memory_space<vmem>>, %arg8: memref<512x256xf32, #tpu.memory_space<vmem>>) attributes {dimension_semantics = [#tpu.dimension_semantics<parallel>, #tpu.dimension_semantics<parallel>, #tpu.dimension_semantics<arbitrary>], iteration_bounds = array<i64: 1, 2, 1>, scalar_prefetch = 0 : i64, scratch_operands = 1 : i64, tpu.core_type = #tpu.core_type<tc>, window_params = [{transform_indices = @transform_0, window_bounds = array<i64: 512, 128>}, {transform_indices = @transform_1, window_bounds = array<i64: 128, 256>}, {transform_indices = @transform_2, window_bounds = array<i64: 1, 256>}, {transform_indices = @transform_3, window_bounds = array<i64: 1, 256>}, {transform_indices = @transform_4, window_bounds = array<i64: 512, 256>}]} {
    %c0_i32 = arith.constant 0 : i32
    %0 = arith.cmpi eq, %arg2, %c0_i32 : i32
    %1 = arith.extui %0 : i1 to i32
    %c0_i32_0 = arith.constant 0 : i32
    %2 = arith.cmpi ne, %1, %c0_i32_0 : i32
    scf.if %2 {
      %cst_10 = arith.constant 0.000000e+00 : f32
      %12 = vector.broadcast %cst_10 : f32 to vector<512x256xf32>
      %c0_11 = arith.constant 0 : index
      %c0_12 = arith.constant 0 : index
      %13 = vector.load %arg8[%c0_11, %c0_12] : memref<512x256xf32, #tpu.memory_space<vmem>>, vector<512x256xf32>
      tpu.vector_store %arg8[%c0_11, %c0_12], %12 {strides = array<i32>} : memref<512x256xf32, #tpu.memory_space<vmem>>, vector<512x256xf32>,
    } else {
    }
    %c0 = arith.constant 0 : index
    %c0_1 = arith.constant 0 : index
    %3 = vector.load %arg8[%c0, %c0_1] : memref<512x256xf32, #tpu.memory_space<vmem>>, vector<512x256xf32>
    %c0_2 = arith.constant 0 : index
    %c0_3 = arith.constant 0 : index
    %4 = vector.load %arg3[%c0_2, %c0_3] : memref<512x128xbf16, #tpu.memory_space<vmem>>, vector<512x128xbf16>
    %c0_4 = arith.constant 0 : index
    %c0_5 = arith.constant 0 : index
    %5 = vector.load %arg4[%c0_4, %c0_5] : memref<128x256xbf16, #tpu.memory_space<vmem>>, vector<128x256xbf16>
    %cst = arith.constant dense<0.000000e+00> : vector<512x256xf32>
    %6 = tpu.matmul %4, %5, %cst {dimension_numbers = #tpu.dot_dimension_numbers<[1], [0], [0], [1], [0, 0, 1, 1], [], []>} : vector<512x128xbf16>, vector<128x256xbf16>, vector<512x256xf32> -> vector<512x256xf32>
    %7 = arith.addf %3, %6 : vector<512x256xf32>
    %c0_6 = arith.constant 0 : index
    %c0_7 = arith.constant 0 : index
    %8 = vector.load %arg8[%c0_6, %c0_7] : memref<512x256xf32, #tpu.memory_space<vmem>>, vector<512x256xf32>
    tpu.vector_store %arg8[%c0_6, %c0_7], %7 {strides = array<i32>} : memref<512x256xf32, #tpu.memory_space<vmem>>, vector<512x256xf32>,
    %c0_i32_8 = arith.constant 0 : i32
    %9 = arith.cmpi eq, %arg2, %c0_i32_8 : i32
    %10 = arith.extui %9 : i1 to i32
    %c0_i32_9 = arith.constant 0 : i32
    %11 = arith.cmpi ne, %10, %c0_i32_9 : i32
    scf.if %11 {
      %c0_10 = arith.constant 0 : index
      %c0_11 = arith.constant 0 : index
      %12 = vector.load %arg8[%c0_10, %c0_11] : memref<512x256xf32, #tpu.memory_space<vmem>>, vector<512x256xf32>
      %c0_12 = arith.constant 0 : index
      %c0_13 = arith.constant 0 : index
      %13 = vector.load %arg5[%c0_12, %c0_13] : memref<1x256xf32, #tpu.memory_space<vmem>>, vector<1x256xf32>
      %14 = vector.broadcast %13 : vector<1x256xf32> to vector<512x256xf32>
      %15 = arith.mulf %12, %14 : vector<512x256xf32>
      %c0_14 = arith.constant 0 : index
      %c0_15 = arith.constant 0 : index
      %16 = vector.load %arg6[%c0_14, %c0_15] : memref<1x256xf32, #tpu.memory_space<vmem>>, vector<1x256xf32>
      %17 = vector.broadcast %16 : vector<1x256xf32> to vector<512x256xf32>
      %18 = arith.addf %15, %17 : vector<512x256xf32>
      %19 = arith.truncf %18 : vector<512x256xf32> to vector<512x256xbf16>
      %c0_16 = arith.constant 0 : index
      %c0_17 = arith.constant 0 : index
      %20 = vector.load %arg7[%c0_16, %c0_17] : memref<512x256xbf16, #tpu.memory_space<vmem>>, vector<512x256xbf16>
      tpu.vector_store %arg7[%c0_16, %c0_17], %19 {strides = array<i32>} : memref<512x256xbf16, #tpu.memory_space<vmem>>, vector<512x256xbf16>,
    } else {
    }
    return
  }
  func.func @transform_0(%arg0: i32, %arg1: i32, %arg2: i32) -> (i32, i32) {
    %c0_i32 = arith.constant 0 : i32
    return %arg0, %arg2 : i32, i32
  }
  func.func @transform_1(%arg0: i32, %arg1: i32, %arg2: i32) -> (i32, i32) {
    %c0_i32 = arith.constant 0 : i32
    return %arg2, %arg1 : i32, i32
  }
  func.func @transform_2(%arg0: i32, %arg1: i32, %arg2: i32) -> (i32, i32) {
    %c0_i32 = arith.constant 0 : i32
    %c0_i32_0 = arith.constant 0 : i32
    return %c0_i32, %arg1 : i32, i32
  }
  func.func @transform_3(%arg0: i32, %arg1: i32, %arg2: i32) -> (i32, i32) {
    %c0_i32 = arith.constant 0 : i32
    %c0_i32_0 = arith.constant 0 : i32
    return %c0_i32, %arg1 : i32, i32
  }
  func.func @transform_4(%arg0: i32, %arg1: i32, %arg2: i32) -> (i32, i32) {
    %c0_i32 = arith.constant 0 : i32
    return %arg0, %arg1 : i32, i32
  }
}

module attributes {stable_mosaic.version = 11 : i64} {
  func.func @_mm_kernel(%arg0: i32, %arg1: i32, %arg2: i32, %arg3: memref<256x512xbf16, #tpu.memory_space<vmem>>, %arg4: memref<512x128xbf16, #tpu.memory_space<vmem>>, %arg5: memref<1x128xf32, #tpu.memory_space<vmem>>, %arg6: memref<1x128xf32, #tpu.memory_space<vmem>>, %arg7: memref<256x128xbf16, #tpu.memory_space<vmem>>, %arg8: memref<256x128xf32, #tpu.memory_space<vmem>>) attributes {dimension_semantics = [#tpu.dimension_semantics<parallel>, #tpu.dimension_semantics<parallel>, #tpu.dimension_semantics<arbitrary>], iteration_bounds = array<i64: 2, 1, 1>, scalar_prefetch = 0 : i64, scratch_operands = 1 : i64, tpu.core_type = #tpu.core_type<tc>, window_params = [{transform_indices = @transform_0, window_bounds = array<i64: 256, 512>}, {transform_indices = @transform_1, window_bounds = array<i64: 512, 128>}, {transform_indices = @transform_2, window_bounds = array<i64: 1, 128>}, {transform_indices = @transform_3, window_bounds = array<i64: 1, 128>}, {transform_indices = @transform_4, window_bounds = array<i64: 256, 128>}]} {
    %c0_i32 = arith.constant 0 : i32
    %0 = arith.cmpi eq, %arg2, %c0_i32 : i32
    %1 = arith.extui %0 : i1 to i32
    %c0_i32_0 = arith.constant 0 : i32
    %2 = arith.cmpi ne, %1, %c0_i32_0 : i32
    scf.if %2 {
      %cst_10 = arith.constant 0.000000e+00 : f32
      %12 = vector.broadcast %cst_10 : f32 to vector<256x128xf32>
      %c0_11 = arith.constant 0 : index
      %c0_12 = arith.constant 0 : index
      %13 = vector.load %arg8[%c0_11, %c0_12] : memref<256x128xf32, #tpu.memory_space<vmem>>, vector<256x128xf32>
      tpu.vector_store %arg8[%c0_11, %c0_12], %12 {strides = array<i32>} : memref<256x128xf32, #tpu.memory_space<vmem>>, vector<256x128xf32>,
    } else {
    }
    %c0 = arith.constant 0 : index
    %c0_1 = arith.constant 0 : index
    %3 = vector.load %arg8[%c0, %c0_1] : memref<256x128xf32, #tpu.memory_space<vmem>>, vector<256x128xf32>
    %c0_2 = arith.constant 0 : index
    %c0_3 = arith.constant 0 : index
    %4 = vector.load %arg3[%c0_2, %c0_3] : memref<256x512xbf16, #tpu.memory_space<vmem>>, vector<256x512xbf16>
    %c0_4 = arith.constant 0 : index
    %c0_5 = arith.constant 0 : index
    %5 = vector.load %arg4[%c0_4, %c0_5] : memref<512x128xbf16, #tpu.memory_space<vmem>>, vector<512x128xbf16>
    %cst = arith.constant dense<0.000000e+00> : vector<256x128xf32>
    %6 = tpu.matmul %4, %5, %cst {dimension_numbers = #tpu.dot_dimension_numbers<[1], [0], [0], [1], [0, 0, 1, 1], [], []>} : vector<256x512xbf16>, vector<512x128xbf16>, vector<256x128xf32> -> vector<256x128xf32>
    %7 = arith.addf %3, %6 : vector<256x128xf32>
    %c0_6 = arith.constant 0 : index
    %c0_7 = arith.constant 0 : index
    %8 = vector.load %arg8[%c0_6, %c0_7] : memref<256x128xf32, #tpu.memory_space<vmem>>, vector<256x128xf32>
    tpu.vector_store %arg8[%c0_6, %c0_7], %7 {strides = array<i32>} : memref<256x128xf32, #tpu.memory_space<vmem>>, vector<256x128xf32>,
    %c0_i32_8 = arith.constant 0 : i32
    %9 = arith.cmpi eq, %arg2, %c0_i32_8 : i32
    %10 = arith.extui %9 : i1 to i32
    %c0_i32_9 = arith.constant 0 : i32
    %11 = arith.cmpi ne, %10, %c0_i32_9 : i32
    scf.if %11 {
      %c0_10 = arith.constant 0 : index
      %c0_11 = arith.constant 0 : index
      %12 = vector.load %arg8[%c0_10, %c0_11] : memref<256x128xf32, #tpu.memory_space<vmem>>, vector<256x128xf32>
      %c0_12 = arith.constant 0 : index
      %c0_13 = arith.constant 0 : index
      %13 = vector.load %arg5[%c0_12, %c0_13] : memref<1x128xf32, #tpu.memory_space<vmem>>, vector<1x128xf32>
      %14 = vector.broadcast %13 : vector<1x128xf32> to vector<256x128xf32>
      %15 = arith.mulf %12, %14 : vector<256x128xf32>
      %c0_14 = arith.constant 0 : index
      %c0_15 = arith.constant 0 : index
      %16 = vector.load %arg6[%c0_14, %c0_15] : memref<1x128xf32, #tpu.memory_space<vmem>>, vector<1x128xf32>
      %17 = vector.broadcast %16 : vector<1x128xf32> to vector<256x128xf32>
      %18 = arith.addf %15, %17 : vector<256x128xf32>
      %cst_16 = arith.constant 0.000000e+00 : f32
      %19 = vector.broadcast %cst_16 : f32 to vector<256x128xf32>
      %20 = arith.maximumf %18, %19 : vector<256x128xf32>
      %21 = arith.truncf %20 : vector<256x128xf32> to vector<256x128xbf16>
      %c0_17 = arith.constant 0 : index
      %c0_18 = arith.constant 0 : index
      %22 = vector.load %arg7[%c0_17, %c0_18] : memref<256x128xbf16, #tpu.memory_space<vmem>>, vector<256x128xbf16>
      tpu.vector_store %arg7[%c0_17, %c0_18], %21 {strides = array<i32>} : memref<256x128xbf16, #tpu.memory_space<vmem>>, vector<256x128xbf16>,
    } else {
    }
    return
  }
  func.func @transform_0(%arg0: i32, %arg1: i32, %arg2: i32) -> (i32, i32) {
    %c0_i32 = arith.constant 0 : i32
    return %arg0, %arg2 : i32, i32
  }
  func.func @transform_1(%arg0: i32, %arg1: i32, %arg2: i32) -> (i32, i32) {
    %c0_i32 = arith.constant 0 : i32
    return %arg2, %arg1 : i32, i32
  }
  func.func @transform_2(%arg0: i32, %arg1: i32, %arg2: i32) -> (i32, i32) {
    %c0_i32 = arith.constant 0 : i32
    %c0_i32_0 = arith.constant 0 : i32
    return %c0_i32, %arg1 : i32, i32
  }
  func.func @transform_3(%arg0: i32, %arg1: i32, %arg2: i32) -> (i32, i32) {
    %c0_i32 = arith.constant 0 : i32
    %c0_i32_0 = arith.constant 0 : i32
    return %c0_i32, %arg1 : i32, i32
  }
  func.func @transform_4(%arg0: i32, %arg1: i32, %arg2: i32) -> (i32, i32) {
    %c0_i32 = arith.constant 0 : i32
    return %arg0, %arg1 : i32, i32
  }
}

module attributes {stable_mosaic.version = 11 : i64} {
  func.func @_mm_kernel(%arg0: i32, %arg1: i32, %arg2: i32, %arg3: memref<512x128xbf16, #tpu.memory_space<vmem>>, %arg4: memref<128x256xbf16, #tpu.memory_space<vmem>>, %arg5: memref<1x256xf32, #tpu.memory_space<vmem>>, %arg6: memref<1x256xf32, #tpu.memory_space<vmem>>, %arg7: memref<512x256xbf16, #tpu.memory_space<vmem>>, %arg8: memref<512x256xbf16, #tpu.memory_space<vmem>>, %arg9: memref<512x256xf32, #tpu.memory_space<vmem>>) attributes {dimension_semantics = [#tpu.dimension_semantics<parallel>, #tpu.dimension_semantics<parallel>, #tpu.dimension_semantics<arbitrary>], iteration_bounds = array<i64: 1, 2, 1>, scalar_prefetch = 0 : i64, scratch_operands = 1 : i64, tpu.core_type = #tpu.core_type<tc>, window_params = [{transform_indices = @transform_0, window_bounds = array<i64: 512, 128>}, {transform_indices = @transform_1, window_bounds = array<i64: 128, 256>}, {transform_indices = @transform_2, window_bounds = array<i64: 1, 256>}, {transform_indices = @transform_3, window_bounds = array<i64: 1, 256>}, {transform_indices = @transform_4, window_bounds = array<i64: 512, 256>}, {transform_indices = @transform_5, window_bounds = array<i64: 512, 256>}]} {
    %c0_i32 = arith.constant 0 : i32
    %0 = arith.cmpi eq, %arg2, %c0_i32 : i32
    %1 = arith.extui %0 : i1 to i32
    %c0_i32_0 = arith.constant 0 : i32
    %2 = arith.cmpi ne, %1, %c0_i32_0 : i32
    scf.if %2 {
      %cst_10 = arith.constant 0.000000e+00 : f32
      %12 = vector.broadcast %cst_10 : f32 to vector<512x256xf32>
      %c0_11 = arith.constant 0 : index
      %c0_12 = arith.constant 0 : index
      %13 = vector.load %arg9[%c0_11, %c0_12] : memref<512x256xf32, #tpu.memory_space<vmem>>, vector<512x256xf32>
      tpu.vector_store %arg9[%c0_11, %c0_12], %12 {strides = array<i32>} : memref<512x256xf32, #tpu.memory_space<vmem>>, vector<512x256xf32>,
    } else {
    }
    %c0 = arith.constant 0 : index
    %c0_1 = arith.constant 0 : index
    %3 = vector.load %arg9[%c0, %c0_1] : memref<512x256xf32, #tpu.memory_space<vmem>>, vector<512x256xf32>
    %c0_2 = arith.constant 0 : index
    %c0_3 = arith.constant 0 : index
    %4 = vector.load %arg3[%c0_2, %c0_3] : memref<512x128xbf16, #tpu.memory_space<vmem>>, vector<512x128xbf16>
    %c0_4 = arith.constant 0 : index
    %c0_5 = arith.constant 0 : index
    %5 = vector.load %arg4[%c0_4, %c0_5] : memref<128x256xbf16, #tpu.memory_space<vmem>>, vector<128x256xbf16>
    %cst = arith.constant dense<0.000000e+00> : vector<512x256xf32>
    %6 = tpu.matmul %4, %5, %cst {dimension_numbers = #tpu.dot_dimension_numbers<[1], [0], [0], [1], [0, 0, 1, 1], [], []>} : vector<512x128xbf16>, vector<128x256xbf16>, vector<512x256xf32> -> vector<512x256xf32>
    %7 = arith.addf %3, %6 : vector<512x256xf32>
    %c0_6 = arith.constant 0 : index
    %c0_7 = arith.constant 0 : index
    %8 = vector.load %arg9[%c0_6, %c0_7] : memref<512x256xf32, #tpu.memory_space<vmem>>, vector<512x256xf32>
    tpu.vector_store %arg9[%c0_6, %c0_7], %7 {strides = array<i32>} : memref<512x256xf32, #tpu.memory_space<vmem>>, vector<512x256xf32>,
    %c0_i32_8 = arith.constant 0 : i32
    %9 = arith.cmpi eq, %arg2, %c0_i32_8 : i32
    %10 = arith.extui %9 : i1 to i32
    %c0_i32_9 = arith.constant 0 : i32
    %11 = arith.cmpi ne, %10, %c0_i32_9 : i32
    scf.if %11 {
      %c0_10 = arith.constant 0 : index
      %c0_11 = arith.constant 0 : index
      %12 = vector.load %arg9[%c0_10, %c0_11] : memref<512x256xf32, #tpu.memory_space<vmem>>, vector<512x256xf32>
      %c0_12 = arith.constant 0 : index
      %c0_13 = arith.constant 0 : index
      %13 = vector.load %arg5[%c0_12, %c0_13] : memref<1x256xf32, #tpu.memory_space<vmem>>, vector<1x256xf32>
      %14 = vector.broadcast %13 : vector<1x256xf32> to vector<512x256xf32>
      %15 = arith.mulf %12, %14 : vector<512x256xf32>
      %c0_14 = arith.constant 0 : index
      %c0_15 = arith.constant 0 : index
      %16 = vector.load %arg6[%c0_14, %c0_15] : memref<1x256xf32, #tpu.memory_space<vmem>>, vector<1x256xf32>
      %17 = vector.broadcast %16 : vector<1x256xf32> to vector<512x256xf32>
      %18 = arith.addf %15, %17 : vector<512x256xf32>
      %c0_16 = arith.constant 0 : index
      %c0_17 = arith.constant 0 : index
      %19 = vector.load %arg7[%c0_16, %c0_17] : memref<512x256xbf16, #tpu.memory_space<vmem>>, vector<512x256xbf16>
      %20 = arith.extf %19 : vector<512x256xbf16> to vector<512x256xf32>
      %21 = arith.addf %18, %20 : vector<512x256xf32>
      %cst_18 = arith.constant 0.000000e+00 : f32
      %22 = vector.broadcast %cst_18 : f32 to vector<512x256xf32>
      %23 = arith.maximumf %21, %22 : vector<512x256xf32>
      %24 = arith.truncf %23 : vector<512x256xf32> to vector<512x256xbf16>
      %c0_19 = arith.constant 0 : index
      %c0_20 = arith.constant 0 : index
      %25 = vector.load %arg8[%c0_19, %c0_20] : memref<512x256xbf16, #tpu.memory_space<vmem>>, vector<512x256xbf16>
      tpu.vector_store %arg8[%c0_19, %c0_20], %24 {strides = array<i32>} : memref<512x256xbf16, #tpu.memory_space<vmem>>, vector<512x256xbf16>,
    } else {
    }
    return
  }
  func.func @transform_0(%arg0: i32, %arg1: i32, %arg2: i32) -> (i32, i32) {
    %c0_i32 = arith.constant 0 : i32
    return %arg0, %arg2 : i32, i32
  }
  func.func @transform_1(%arg0: i32, %arg1: i32, %arg2: i32) -> (i32, i32) {
    %c0_i32 = arith.constant 0 : i32
    return %arg2, %arg1 : i32, i32
  }
  func.func @transform_2(%arg0: i32, %arg1: i32, %arg2: i32) -> (i32, i32) {
    %c0_i32 = arith.constant 0 : i32
    %c0_i32_0 = arith.constant 0 : i32
    return %c0_i32, %arg1 : i32, i32
  }
  func.func @transform_3(%arg0: i32, %arg1: i32, %arg2: i32) -> (i32, i32) {
    %c0_i32 = arith.constant 0 : i32
    %c0_i32_0 = arith.constant 0 : i32
    return %c0_i32, %arg1 : i32, i32
  }
  func.func @transform_4(%arg0: i32, %arg1: i32, %arg2: i32) -> (i32, i32) {
    %c0_i32 = arith.constant 0 : i32
    return %arg0, %arg1 : i32, i32
  }
  func.func @transform_5(%arg0: i32, %arg1: i32, %arg2: i32) -> (i32, i32) {
    %c0_i32 = arith.constant 0 : i32
    return %arg0, %arg1 : i32, i32
  }
}

module attributes {stable_mosaic.version = 11 : i64} {
  func.func @_head_kernel(%arg0: i32, %arg1: memref<2x256x512xbf16, #tpu.memory_space<vmem>>, %arg2: memref<512x128xf32, #tpu.memory_space<vmem>>, %arg3: memref<1x128xf32, #tpu.memory_space<vmem>>, %arg4: memref<2x128xf32, #tpu.memory_space<vmem>>) attributes {dimension_semantics = [#tpu.dimension_semantics<arbitrary>], iteration_bounds = array<i64: 1>, scalar_prefetch = 0 : i64, scratch_operands = 0 : i64, tpu.core_type = #tpu.core_type<tc>, window_params = [{pipeline_mode = #tpu.pipeline_mode<synchronous>, transform_indices = @transform_0, window_bounds = array<i64: 2, 256, 512>}, {pipeline_mode = #tpu.pipeline_mode<synchronous>, transform_indices = @transform_1, window_bounds = array<i64: 512, 128>}, {pipeline_mode = #tpu.pipeline_mode<synchronous>, transform_indices = @transform_2, window_bounds = array<i64: 1, 128>}, {pipeline_mode = #tpu.pipeline_mode<synchronous>, transform_indices = @transform_3, window_bounds = array<i64: 2, 128>}]} {
    %c0 = arith.constant 0 : index
    %c0_0 = arith.constant 0 : index
    %c0_1 = arith.constant 0 : index
    %0 = vector.load %arg1[%c0, %c0_0, %c0_1] : memref<2x256x512xbf16, #tpu.memory_space<vmem>>, vector<2x256x512xbf16>
    %1 = arith.extf %0 : vector<2x256x512xbf16> to vector<2x256x512xf32>
    %cst = arith.constant dense<0.000000e+00> : vector<2x512xf32>
    %2 = vector.multi_reduction <add>, %1, %cst [1] : vector<2x256x512xf32> to vector<2x512xf32>
    %cst_2 = arith.constant 2.560000e+02 : f32
    %3 = vector.broadcast %cst_2 : f32 to vector<2x512xf32>
    %4 = arith.divf %2, %3 : vector<2x512xf32>
    %c0_3 = arith.constant 0 : index
    %c0_4 = arith.constant 0 : index
    %5 = vector.load %arg2[%c0_3, %c0_4] : memref<512x128xf32, #tpu.memory_space<vmem>>, vector<512x128xf32>
    %cst_5 = arith.constant dense<0.000000e+00> : vector<2x128xf32>
    %6 = tpu.matmul %4, %5, %cst_5 {dimension_numbers = #tpu.dot_dimension_numbers<[1], [0], [0], [1], [0, 0, 1, 1], [], []>} : vector<2x512xf32>, vector<512x128xf32>, vector<2x128xf32> -> vector<2x128xf32>
    %c0_6 = arith.constant 0 : index
    %c0_7 = arith.constant 0 : index
    %7 = vector.load %arg3[%c0_6, %c0_7] : memref<1x128xf32, #tpu.memory_space<vmem>>, vector<1x128xf32>
    %8 = vector.broadcast %7 : vector<1x128xf32> to vector<2x128xf32>
    %9 = arith.addf %6, %8 : vector<2x128xf32>
    %cst_8 = arith.constant 0.000000e+00 : f32
    %10 = vector.broadcast %cst_8 : f32 to vector<2x128xf32>
    %11 = arith.subf %10, %9 : vector<2x128xf32>
    %12 = math.exp %11 : vector<2x128xf32>
    %cst_9 = arith.constant 1.000000e+00 : f32
    %13 = vector.broadcast %cst_9 : f32 to vector<2x128xf32>
    %14 = arith.addf %13, %12 : vector<2x128xf32>
    %15 = tpu.reciprocal %14 {approx = true} : vector<2x128xf32> -> vector<2x128xf32>
    %cst_10 = arith.constant 0.000000e+00 : f32
    %cst_11 = arith.constant 1.000000e+00 : f32
    %16 = vector.broadcast %cst_10 : f32 to vector<2x128xf32>
    %17 = arith.maximumf %16, %15 : vector<2x128xf32>
    %18 = vector.broadcast %cst_11 : f32 to vector<2x128xf32>
    %19 = arith.minimumf %18, %17 : vector<2x128xf32>
    %c0_12 = arith.constant 0 : index
    %c0_13 = arith.constant 0 : index
    %20 = vector.load %arg4[%c0_12, %c0_13] : memref<2x128xf32, #tpu.memory_space<vmem>>, vector<2x128xf32>
    tpu.vector_store %arg4[%c0_12, %c0_13], %19 {strides = array<i32>} : memref<2x128xf32, #tpu.memory_space<vmem>>, vector<2x128xf32>,
    return
  }
  func.func @transform_0(%arg0: i32) -> (i32, i32, i32) {
    %c0_i32 = arith.constant 0 : i32
    %c0_i32_0 = arith.constant 0 : i32
    %c0_i32_1 = arith.constant 0 : i32
    %c0_i32_2 = arith.constant 0 : i32
    return %c0_i32, %c0_i32_0, %c0_i32_1 : i32, i32, i32
  }
  func.func @transform_1(%arg0: i32) -> (i32, i32) {
    %c0_i32 = arith.constant 0 : i32
    %c0_i32_0 = arith.constant 0 : i32
    %c0_i32_1 = arith.constant 0 : i32
    return %c0_i32, %c0_i32_0 : i32, i32
  }
  func.func @transform_2(%arg0: i32) -> (i32, i32) {
    %c0_i32 = arith.constant 0 : i32
    %c0_i32_0 = arith.constant 0 : i32
    %c0_i32_1 = arith.constant 0 : i32
    return %c0_i32, %c0_i32_0 : i32, i32
  }
  func.func @transform_3(%arg0: i32) -> (i32, i32) {
    %c0_i32 = arith.constant 0 : i32
    %c0_i32_0 = arith.constant 0 : i32
    %c0_i32_1 = arith.constant 0 : i32
    return %c0_i32, %c0_i32_0 : i32, i32
  }
}

</mosaic_0001>

<bundles_post_ra>
// kernel: resnet_forward.10
= control target key start
LH: loop header
LB: loop body
LE: loop exit
PB: predicated region body
PF: predicated region fallthrough
CT: control target
= control target key end

     0   :  { %s1598_s15 = smov 0   ;;  %s1600_s16 = smov 0   ;;  %s1772_s0 = inlined_call_operand.vmem [shape: bf16[512,128], index: 0, kind: input, shape index: {}]   ;;  %s1773_s1 = inlined_call_operand.vmem [shape: bf16[128,128], index: 1, kind: input, shape index: {}]   ;;  %s1774_s2 = inlined_call_operand.vmem [shape: f32[1,128], index: 2, kind: input, shape index: {}]   ;;  %s1775_s3 = inlined_call_operand.vmem [shape: f32[1,128], index: 3, kind: input, shape index: {}]   ;;  %s1776_s4 = inlined_call_operand.vmem [shape: bf16[512,128], index: 4, kind: output, shape index: {}]  }
   0x1   :  { %s1602_s17 = smov 0  }
   0x2 LB: > { %s33_s18 = sadd.s32 1, %s1567_s16  ;;  %p1221_p0 = scmp.ge.s32.totalorder %s1571_s17, 1  ;;  %s1571_s17 = sphi %s1602_s17, %s14_s17   ;;  %s1567_s16 = sphi %s1600_s16, %s1778_s16   ;;  %s1563_s15 = sphi %s1598_s15, %s1777_s15  }
   0x3   : > { %p35_p1 = scmp.ge.s32.totalorder %s33_s18, 2  ;;  %p221_p2 = scmp.lt.s32.totalorder %s1571_s17, 3 }
   0x5   : > { %s1780_s18 = smov (%p35_p1, %s33_s18), 0  ;;  %p222_p3 = pnand %p1221_p0, %p221_p2 }
   0x6   : > { %v1525_v0 = vld [vmem:[%s1773_s1] sm:$0xff] (!%p222_p3)   ;;  %s1222_s21 = sshll.u32 (!%p222_p3), %s1563_s15, 5  ;;  %v1526_v1 = vld [vmem:[%s1773_s1 + $0x8] sm:$0xff] (!%p222_p3)   ;;  %v1527_v2 = vld [vmem:[%s1773_s1 + $0x10] sm:$0xff] (!%p222_p3)  }
   0x7   : > { %225 = sbr.rel (%p222_p3) target bundleno = 288 (0x120), region = 36  ;;  %p268_p4 = scmp.lt.s32.totalorder (!%p222_p3), %s1222_s21, 63  ;;  %1437 = vmatprep.subr.bf16.mxu0 (!%p222_p3), %v1525_v0  ;;  %1485 = vmatprep.subr.bf16.mxu1 (!%p222_p3), %v1525_v0  ;;  %v1528_v3 = vld [vmem:[%s1773_s1 + $0x18] sm:$0xff] (!%p222_p3)   ;;  %v1529_v6 = vld [vmem:[%s1773_s1 + $0x20] sm:$0xff] (!%p222_p3)   ;;  %v1530_v7 = vld [vmem:[%s1773_s1 + $0x28] sm:$0xff] (!%p222_p3)  }
   0x8   : > { %1438 = vmatpush3.bf16.msra.mxu0 (!%p222_p3), %v1525_v0  ;;  %1493 = vmatpush3.bf16.msra.mxu1 (!%p222_p3), %v1525_v0  ;;  %v1531_v8 = vld [vmem:[%s1773_s1 + $0x30] sm:$0xff] (!%p222_p3)   ;;  %v1532_v9 = vld [vmem:[%s1773_s1 + $0x38] sm:$0xff] (!%p222_p3)   ;;  %v1669_v24 = vld [vmem:[%s1774_s2] ss:$0 sm:$0xff] (!%p222_p3) }
   0x9   : > { %1439 = vmatprep.subr.bf16.mxu0 (!%p222_p3), %v1526_v1  ;;  %1486 = vmatprep.subr.bf16.mxu1 (!%p222_p3), %v1526_v1  ;;  %v1674_v26 = vld [vmem:[%s1775_s3] ss:$0 sm:$0xff] (!%p222_p3) }
   0xc   : > { %1440 = vmatpush3.bf16.msra.mxu0 (!%p222_p3), %v1526_v1  ;;  %1494 = vmatpush3.bf16.msra.mxu1 (!%p222_p3), %v1526_v1 }
   0xd   : > { %1441 = vmatprep.subr.bf16.mxu0 (!%p222_p3), %v1527_v2  ;;  %1487 = vmatprep.subr.bf16.mxu1 (!%p222_p3), %v1527_v2 }
   0xe   : > { %s1782_s21 = smov (!%p268_p4, %s1222_s21), 63 }
   0xf   : > { %s1223_s26 = sshll.u32 %s1782_s21, 2 }
  0x10   : > { %s1633_s29 = scalar_lea.vmem %s1772_s0, %s1223_s26  ;;  %1442 = vmatpush3.bf16.msra.mxu0 %v1527_v2  ;;  %1495 = vmatpush3.bf16.msra.mxu1 %v1527_v2  ;;  %s1697_s24 = scalar_lea.vmem %s1776_s4, %s1223_s26 }
  0x11   : > { %v1533_v4 = vld [vmem:[%s1633_s29] sm:$0xff]   ;;  %1443 = vmatprep.subr.bf16.mxu0 %v1528_v3  ;;  %1488 = vmatprep.subr.bf16.mxu1 %v1528_v3  ;;  %v1535_v10 = vld [vmem:[%s1633_s29 + $0x8] sm:$0xff]   ;;  %v1537_v12 = vld [vmem:[%s1633_s29 + $0x10] sm:$0xff]  }
  0x12   : > { %v1534_v5 = vld [vmem:[%s1633_s29 + $0x40] sm:$0xff]   ;;  %1453 = vmatprep.mubr.bf16.mxu0 %v1533_v4  ;;  %v1536_v11 = vld [vmem:[%s1633_s29 + $0x48] sm:$0xff]   ;;  %v1538_v13 = vld [vmem:[%s1633_s29 + $0x50] sm:$0xff]  }
  0x13   : > { %1469 = vmatprep.mubr.bf16.mxu1 %v1534_v5  ;;  %v1539_v14 = vld [vmem:[%s1633_s29 + $0x18] sm:$0xff]   ;;  %v1541_v16 = vld [vmem:[%s1633_s29 + $0x20] sm:$0xff]   ;;  %v1543_v18 = vld [vmem:[%s1633_s29 + $0x28] sm:$0xff]  }
  0x14   : > { %1444 = vmatpush3.bf16.msra.mxu0 %v1528_v3  ;;  %1496 = vmatpush3.bf16.msra.mxu1 %v1528_v3  ;;  %v1540_v15 = vld [vmem:[%s1633_s29 + $0x58] sm:$0xff]   ;;  %v1542_v17 = vld [vmem:[%s1633_s29 + $0x60] sm:$0xff]   ;;  %v1544_v19 = vld [vmem:[%s1633_s29 + $0x68] sm:$0xff]  }
  0x15   : > { %1445 = vmatprep.subr.bf16.mxu0 %v1529_v6  ;;  %1489 = vmatprep.subr.bf16.mxu1 %v1529_v6  ;;  %v1545_v20 = vld [vmem:[%s1633_s29 + $0x30] sm:$0xff]   ;;  %v1547_v22 = vld [vmem:[%s1633_s29 + $0x38] sm:$0xff]  }
  0x16   : > { %v1546_v21 = vld [vmem:[%s1633_s29 + $0x70] sm:$0xff]   ;;  %v1548_v23 = vld [vmem:[%s1633_s29 + $0x78] sm:$0xff]  }
  0x18   : > { %1446 = vmatpush3.bf16.msra.mxu0 %v1529_v6  ;;  %1497 = vmatpush3.bf16.msra.mxu1 %v1529_v6 }
  0x19   : > { %1447 = vmatprep.subr.bf16.mxu0 %v1530_v7  ;;  %1490 = vmatprep.subr.bf16.mxu1 %v1530_v7 }
  0x1c   : > { %1448 = vmatpush3.bf16.msra.mxu0 %v1530_v7  ;;  %1498 = vmatpush3.bf16.msra.mxu1 %v1530_v7 }
  0x1d   : > { %1449 = vmatprep.subr.bf16.mxu0 %v1531_v8  ;;  %1491 = vmatprep.subr.bf16.mxu1 %v1531_v8 }
  0x20   : > { %1450 = vmatpush3.bf16.msra.mxu0 %v1531_v8  ;;  %1499 = vmatpush3.bf16.msra.mxu1 %v1531_v8 }
  0x21   : > { %1451 = vmatprep.subr.bf16.mxu0 %v1532_v9  ;;  %1492 = vmatprep.subr.bf16.mxu1 %v1532_v9 }
  0x24   : > { %1452 = vmatpush3.bf16.msra.mxu0 %v1532_v9  ;;  %1500 = vmatpush3.bf16.msra.mxu1 %v1532_v9 }
  0x27   : > { %1454 = vmatmul.mubr.bf16.vlgmr.msra.gmra.mrb[0].mxu0 %v1535_v10  ;;  %1470 = vmatmul.mubr.bf16.vlgmr.msra.gmra.mrb[0].mxu1 %v1536_v11 }
  0x28   : > { %1457 = vmatprep.mubr.bf16.mxu0 %v1537_v12  ;;  %1473 = vmatprep.mubr.bf16.mxu1 %v1538_v13 }
  0x2f   : > { %1458 = vmatmul.mubr.bf16.gmra.mrb[4].mxu0 %v1539_v14  ;;  %1474 = vmatmul.mubr.bf16.gmra.mrb[4].mxu1 %v1540_v15 }
  0x30   : > { %1461 = vmatprep.mubr.bf16.mxu0 %v1541_v16  ;;  %1477 = vmatprep.mubr.bf16.mxu1 %v1542_v17 }
  0x37   : > { %1462 = vmatmul.mubr.bf16.gmra.mrb[8].mxu0 %v1543_v18  ;;  %1478 = vmatmul.mubr.bf16.gmra.mrb[8].mxu1 %v1544_v19 }
  0x38   : > { %1465 = vmatprep.mubr.bf16.mxu0 %v1545_v20  ;;  %1481 = vmatprep.mubr.bf16.mxu1 %v1546_v21 }
  0x3f   : > { %1466 = vmatmul.mubr.bf16.gmra.mrb[12].mxu0 %v1547_v22  ;;  %1482 = vmatmul.mubr.bf16.gmra.mrb[12].mxu1 %v1548_v23 }
  0xfa   : > { %v1455_v25 = vpop.f32.mrb[0].mxu0  ;;  %v1471_v27 = vpop.f32.mrb[0].mxu1 }
  0xfb   : > { %v830_v28 = vmul.f32 %v1455_v25, %v1669_v24  ;;  %v846_v29 = vmul.f32 %v1471_v27, %v1669_v24  ;;  %v595_v30 = vpop.f32.mrb[1].mxu0  ;;  %v659_v31 = vpop.f32.mrb[1].mxu1 }
  0xfc   : > { %v828_v32 = vmul.f32 %v1669_v24, %v595_v30  ;;  %v844_v33 = vmul.f32 %v1669_v24, %v659_v31  ;;  %v1456_v34 = vpop.f32.mrb[2].mxu0  ;;  %v1472_v35 = vpop.f32.mrb[2].mxu1 }
  0xfd   : > { %v869_v36 = vadd.f32 %v1674_v26, %v830_v28  ;;  %v885_v37 = vadd.f32 %v1674_v26, %v846_v29  ;;  %v831_v38 = vmul.f32 %v1456_v34, %v1669_v24  ;;  %v847_v39 = vmul.f32 %v1472_v35, %v1669_v24  ;;  %v598_v40 = vpop.f32.mrb[3].mxu0  ;;  %v662_v41 = vpop.f32.mrb[3].mxu1 }
  0xfe   : > { %v867_v42 = vadd.f32 %v1674_v26, %v828_v32  ;;  %v883_v43 = vadd.f32 %v1674_v26, %v844_v33  ;;  %v829_v44 = vmul.f32 %v1669_v24, %v598_v40  ;;  %v845_v45 = vmul.f32 %v1669_v24, %v662_v41 }
  0xff   : > { %v870_v46 = vadd.f32 %v1674_v26, %v831_v38  ;;  %v886_v47 = vadd.f32 %v1674_v26, %v847_v39  ;;  %v901_v50 = vmax.f32 %v869_v36, 0.0  ;;  %v917_v51 = vmax.f32 %v885_v37, 0.0 }
 0x100   : > { %v868_v48 = vadd.f32 %v1674_v26, %v829_v44  ;;  %v884_v49 = vadd.f32 %v1674_v26, %v845_v45  ;;  %v899_v54 = vmax.f32 %v867_v42, 0.0  ;;  %v915_v55 = vmax.f32 %v883_v43, 0.0 }
 0x101   : > { %v902_v52 = vmax.f32 %v870_v46, 0.0  ;;  %v918_v53 = vmax.f32 %v886_v47, 0.0 }
 0x102   : > { %v900_v56 = vmax.f32 %v868_v48, 0.0  ;;  %v916_v57 = vmax.f32 %v884_v49, 0.0  ;;  %v1459_v58 = vpop.f32.mrb[4].mxu0  ;;  %v1475_v59 = vpop.f32.mrb[4].mxu1 }
 0x103   : > { %v1326_v60 = vpack.c.bf16 %v902_v52, %v901_v50  ;;  %v1366_v61 = vpack.c.bf16 %v918_v53, %v917_v51  ;;  %v834_v62 = vmul.f32 %v1459_v58, %v1669_v24  ;;  %v850_v63 = vmul.f32 %v1475_v59, %v1669_v24  ;;  %v611_v0 = vpop.f32.mrb[5].mxu0  ;;  %v675_v1 = vpop.f32.mrb[5].mxu1 }
 0x104   : > { %v1321_v2 = vpack.c.bf16 %v900_v56, %v899_v54  ;;  %v1361_v3 = vpack.c.bf16 %v916_v57, %v915_v55  ;;  %v832_v4 = vmul.f32 %v1669_v24, %v611_v0  ;;  %v848_v5 = vmul.f32 %v1669_v24, %v675_v1  ;;  %v1460_v6 = vpop.f32.mrb[6].mxu0  ;;  %v1476_v7 = vpop.f32.mrb[6].mxu1 }
 0x105   : > { %1398 = vst [vmem:[%s1697_s24 + $0x8] sm:$0xff] %v1326_v60   ;;  %1406 = vst [vmem:[%s1697_s24 + $0x48] sm:$0xff] %v1366_v61   ;;  %v873_v8 = vadd.f32 %v1674_v26, %v834_v62  ;;  %v889_v9 = vadd.f32 %v1674_v26, %v850_v63  ;;  %v835_v10 = vmul.f32 %v1460_v6, %v1669_v24  ;;  %v614_v12 = vpop.f32.mrb[7].mxu0  ;;  %v678_v13 = vpop.f32.mrb[7].mxu1 }
 0x106   : > { %v851_v11 = vmul.f32 %v1476_v7, %v1669_v24  ;;  %1322 = vst [vmem:[%s1697_s24] sm:$0xff] %v1321_v2   ;;  %1405 = vst [vmem:[%s1697_s24 + $0x40] sm:$0xff] %v1361_v3   ;;  %v871_v14 = vadd.f32 %v1674_v26, %v832_v4  ;;  %v887_v15 = vadd.f32 %v1674_v26, %v848_v5 }
 0x107   : > { %v833_v16 = vmul.f32 %v1669_v24, %v614_v12  ;;  %v849_v17 = vmul.f32 %v1669_v24, %v678_v13  ;;  %v874_v18 = vadd.f32 %v1674_v26, %v835_v10  ;;  %v905_v22 = vmax.f32 %v873_v8, 0.0 }
 0x108   : > { %v890_v19 = vadd.f32 %v1674_v26, %v851_v11  ;;  %v921_v23 = vmax.f32 %v889_v9, 0.0  ;;  %v903_v28 = vmax.f32 %v871_v14, 0.0  ;;  %v919_v29 = vmax.f32 %v887_v15, 0.0 }
 0x109   : > { %v872_v20 = vadd.f32 %v1674_v26, %v833_v16  ;;  %v888_v21 = vadd.f32 %v1674_v26, %v849_v17  ;;  %v906_v25 = vmax.f32 %v874_v18, 0.0 }
 0x10a   : > { %v922_v27 = vmax.f32 %v890_v19, 0.0  ;;  %v1463_v32 = vpop.f32.mrb[8].mxu0  ;;  %v1479_v33 = vpop.f32.mrb[8].mxu1 }
 0x10b   : > { %v904_v30 = vmax.f32 %v872_v20, 0.0  ;;  %v920_v31 = vmax.f32 %v888_v21, 0.0  ;;  %v1336_v34 = vpack.c.bf16 %v906_v25, %v905_v22  ;;  %v838_v36 = vmul.f32 %v1463_v32, %v1669_v24  ;;  %v627_v38 = vpop.f32.mrb[9].mxu0  ;;  %v691_v39 = vpop.f32.mrb[9].mxu1 }
 0x10c   : > { %v1376_v35 = vpack.c.bf16 %v922_v27, %v921_v23  ;;  %v854_v37 = vmul.f32 %v1479_v33, %v1669_v24  ;;  %v836_v42 = vmul.f32 %v1669_v24, %v627_v38  ;;  %v852_v43 = vmul.f32 %v1669_v24, %v691_v39  ;;  %v1464_v44 = vpop.f32.mrb[10].mxu0  ;;  %v1480_v45 = vpop.f32.mrb[10].mxu1 }
 0x10d   : > { %v1331_v40 = vpack.c.bf16 %v904_v30, %v903_v28  ;;  %v1371_v41 = vpack.c.bf16 %v920_v31, %v919_v29  ;;  %1400 = vst [vmem:[%s1697_s24 + $0x18] sm:$0xff] %v1336_v34   ;;  %v877_v46 = vadd.f32 %v1674_v26, %v838_v36  ;;  %v839_v48 = vmul.f32 %v1464_v44, %v1669_v24  ;;  %v630_v50 = vpop.f32.mrb[11].mxu0  ;;  %v694_v51 = vpop.f32.mrb[11].mxu1 }
 0x10e   : > { %1408 = vst [vmem:[%s1697_s24 + $0x58] sm:$0xff] %v1376_v35   ;;  %v893_v47 = vadd.f32 %v1674_v26, %v854_v37  ;;  %v855_v49 = vmul.f32 %v1480_v45, %v1669_v24  ;;  %v875_v52 = vadd.f32 %v1674_v26, %v836_v42  ;;  %v891_v53 = vadd.f32 %v1674_v26, %v852_v43 }
 0x10f   : > { %1399 = vst [vmem:[%s1697_s24 + $0x10] sm:$0xff] %v1331_v40   ;;  %1407 = vst [vmem:[%s1697_s24 + $0x50] sm:$0xff] %v1371_v41   ;;  %v837_v54 = vmul.f32 %v1669_v24, %v630_v50  ;;  %v853_v55 = vmul.f32 %v1669_v24, %v694_v51  ;;  %v878_v56 = vadd.f32 %v1674_v26, %v839_v48  ;;  %v909_v60 = vmax.f32 %v877_v46, 0.0 }
 0x110   : > { %v894_v57 = vadd.f32 %v1674_v26, %v855_v49  ;;  %v925_v61 = vmax.f32 %v893_v47, 0.0  ;;  %v907_v0 = vmax.f32 %v875_v52, 0.0  ;;  %v923_v1 = vmax.f32 %v891_v53, 0.0 }
 0x111   : > { %v876_v58 = vadd.f32 %v1674_v26, %v837_v54  ;;  %v892_v59 = vadd.f32 %v1674_v26, %v853_v55  ;;  %v910_v62 = vmax.f32 %v878_v56, 0.0 }
 0x112   : > { %v926_v63 = vmax.f32 %v894_v57, 0.0  ;;  %v1467_v4 = vpop.f32.mrb[12].mxu0  ;;  %v1483_v5 = vpop.f32.mrb[12].mxu1 }
 0x113   : > { %v908_v2 = vmax.f32 %v876_v58, 0.0  ;;  %v924_v3 = vmax.f32 %v892_v59, 0.0  ;;  %v1346_v6 = vpack.c.bf16 %v910_v62, %v909_v60  ;;  %v842_v8 = vmul.f32 %v1467_v4, %v1669_v24  ;;  %v643_v10 = vpop.f32.mrb[13].mxu0  ;;  %v707_v11 = vpop.f32.mrb[13].mxu1 }
 0x114   : > { %v1386_v7 = vpack.c.bf16 %v926_v63, %v925_v61  ;;  %v858_v9 = vmul.f32 %v1483_v5, %v1669_v24  ;;  %v840_v14 = vmul.f32 %v1669_v24, %v643_v10  ;;  %v856_v15 = vmul.f32 %v1669_v24, %v707_v11  ;;  %v1468_v16 = vpop.f32.mrb[14].mxu0  ;;  %v1484_v17 = vpop.f32.mrb[14].mxu1 }
 0x115   : > { %v1341_v12 = vpack.c.bf16 %v908_v2, %v907_v0  ;;  %v1381_v13 = vpack.c.bf16 %v924_v3, %v923_v1  ;;  %1402 = vst [vmem:[%s1697_s24 + $0x28] sm:$0xff] %v1346_v6   ;;  %v881_v18 = vadd.f32 %v1674_v26, %v842_v8  ;;  %v843_v20 = vmul.f32 %v1468_v16, %v1669_v24  ;;  %v646_v22 = vpop.f32.mrb[15].mxu0  ;;  %v710_v23 = vpop.f32.mrb[15].mxu1 }
 0x116   : > { %1410 = vst [vmem:[%s1697_s24 + $0x68] sm:$0xff] %v1386_v7   ;;  %v897_v19 = vadd.f32 %v1674_v26, %v858_v9  ;;  %v859_v21 = vmul.f32 %v1484_v17, %v1669_v24  ;;  %v879_v25 = vadd.f32 %v1674_v26, %v840_v14  ;;  %v895_v27 = vadd.f32 %v1674_v26, %v856_v15 }
 0x117   : > { %1401 = vst [vmem:[%s1697_s24 + $0x20] sm:$0xff] %v1341_v12   ;;  %1409 = vst [vmem:[%s1697_s24 + $0x60] sm:$0xff] %v1381_v13   ;;  %v841_v28 = vmul.f32 %v1669_v24, %v646_v22  ;;  %v857_v29 = vmul.f32 %v1669_v24, %v710_v23  ;;  %v882_v30 = vadd.f32 %v1674_v26, %v843_v20  ;;  %v913_v34 = vmax.f32 %v881_v18, 0.0 }
 0x118   : > { %v898_v31 = vadd.f32 %v1674_v26, %v859_v21  ;;  %v929_v35 = vmax.f32 %v897_v19, 0.0  ;;  %v911_v38 = vmax.f32 %v879_v25, 0.0  ;;  %v927_v39 = vmax.f32 %v895_v27, 0.0 }
 0x119   : > { %v880_v32 = vadd.f32 %v1674_v26, %v841_v28  ;;  %v896_v33 = vadd.f32 %v1674_v26, %v857_v29  ;;  %v914_v36 = vmax.f32 %v882_v30, 0.0 }
 0x11a   : > { %v930_v37 = vmax.f32 %v898_v31, 0.0 }
 0x11b   : > { %v912_v40 = vmax.f32 %v880_v32, 0.0  ;;  %v928_v24 = vmax.f32 %v896_v33, 0.0  ;;  %v1356_v41 = vpack.c.bf16 %v914_v36, %v913_v34 }
 0x11c   : > { %v1396_v42 = vpack.c.bf16 %v930_v37, %v929_v35 }
 0x11d   : > { %v1351_v43 = vpack.c.bf16 %v912_v40, %v911_v38  ;;  %v1391_v44 = vpack.c.bf16 %v928_v24, %v927_v39  ;;  %1404 = vst [vmem:[%s1697_s24 + $0x38] sm:$0xff] %v1356_v41  }
 0x11e   : > { %1412 = vst [vmem:[%s1697_s24 + $0x78] sm:$0xff] %v1396_v42  }
 0x11f   : > { %1403 = vst [vmem:[%s1697_s24 + $0x30] sm:$0xff] %v1351_v43   ;;  %1411 = vst [vmem:[%s1697_s24 + $0x70] sm:$0xff] %v1391_v44  }
 0x120 PF: > { %s14_s17 = sadd.s32 1, %s1571_s17   ;;  %s1777_s15 = smov %s1567_s16 }
 0x121   : > { %p11_p5 = scmp.ge.s32.totalorder %s14_s17, 4   ;;  %s1778_s16 = smov %s1780_s18 }
 0x123   :  { %13 = sbr.rel (!%p11_p5) target bundleno = 2 (0x2), region = 83 }

// kernel: resnet_forward.9
= control target key start
LH: loop header
LB: loop body
LE: loop exit
PB: predicated region body
PF: predicated region fallthrough
CT: control target
= control target key end

     0   :  { %s1565_s15 = smov 0   ;;  %s1567_s16 = smov 0   ;;  %s1737_s0 = inlined_call_operand.vmem [shape: bf16[512,27], index: 0, kind: input, shape index: {}]   ;;  %s1738_s1 = inlined_call_operand.vmem [shape: bf16[27,128], index: 1, kind: input, shape index: {}]   ;;  %s1739_s2 = inlined_call_operand.vmem [shape: f32[1,128], index: 2, kind: input, shape index: {}]   ;;  %s1740_s3 = inlined_call_operand.vmem [shape: f32[1,128], index: 3, kind: input, shape index: {}]   ;;  %s1741_s4 = inlined_call_operand.vmem [shape: bf16[512,128], index: 4, kind: output, shape index: {}]  }
   0x1   :  { %s1569_s17 = smov 0  }
   0x2 LB: > { %s33_s18 = sadd.s32 1, %s1533_s16  ;;  %p1212_p0 = scmp.ge.s32.totalorder %s1537_s17, 1  ;;  %s1537_s17 = sphi %s1569_s17, %s14_s17   ;;  %s1533_s16 = sphi %s1567_s16, %s1743_s16   ;;  %s1529_s15 = sphi %s1565_s15, %s1742_s15  }
   0x3   : > { %p35_p1 = scmp.ge.s32.totalorder %s33_s18, 2  ;;  %p221_p2 = scmp.lt.s32.totalorder %s1537_s17, 3 }
   0x5   : > { %s1745_s18 = smov (%p35_p1, %s33_s18), 0  ;;  %p222_p3 = pnand %p1212_p0, %p221_p2 }
   0x6   : > { %v1497_v0 = vld [vmem:[%s1738_s1] sm:$0xff] (!%p222_p3)   ;;  %vm545_vm0 = vcmask (!%p222_p3), 1044480   ;;  %v1498_v1 = vld [vmem:[%s1738_s1 + $0x8] sm:$0x3f] (!%p222_p3)   ;;  %vm546_vm1 = vcmask (!%p222_p3), 1045504   ;;  %s1213_s23 = sshll.u32 (!%p222_p3), %s1529_s15, 5 }
   0x7   : > { %225 = sbr.rel (%p222_p3) target bundleno = 269 (0x10d), region = 36  ;;  %1432 = vmatprep.subr.bf16.mxu0 (!%p222_p3), %v1497_v0  ;;  %1468 = vmatprep.subr.bf16.mxu1 (!%p222_p3), %v1497_v0  ;;  %v1539_v2 = vmov (!%p222_p3), 65535   ;;  %p268_p4 = scmp.lt.s32.totalorder (!%p222_p3), %s1213_s23, 63  ;;  %vm496_vm2 = vcmask (!%p222_p3), 220160   ;;  %v1634_v22 = vld [vmem:[%s1739_s2] ss:$0 sm:$0xff] (!%p222_p3) }
   0x8   : > { %1433 = vmatpush3.bf16.msra.mxu0 (!%p222_p3), %v1497_v0  ;;  %1470 = vmatpush3.bf16.msra.mxu1 (!%p222_p3), %v1497_v0  ;;  %v547_v3 = vsel (!%p222_p3), %vm545_vm0, 4294967295, %v1539_v2  ;;  %v1639_v24 = vld [vmem:[%s1740_s3] ss:$0 sm:$0xff] (!%p222_p3) }
   0x9   : > { %v548_v4 = vsel (!%p222_p3), %vm546_vm1, %v547_v3, 0 }
   0xa   : > { %v550_v5 = vand.u32 (!%p222_p3), %v1498_v1, %v548_v4 }
   0xc   : > { %1434 = vmatprep.subr.bf16.mxu0 (!%p222_p3), %v550_v5  ;;  %1469 = vmatprep.subr.bf16.mxu1 (!%p222_p3), %v550_v5 }
   0xd   : > { %1435 = vmatpush3.bf16.msra.mxu0 (!%p222_p3), %v550_v5  ;;  %1471 = vmatpush3.bf16.msra.mxu1 (!%p222_p3), %v550_v5 }
   0xe   : > { %s1747_s23 = smov (!%p268_p4, %s1213_s23), 63 }
   0xf   : > { %s1214_s24 = sshll.u32 %s1747_s23, 2 }
  0x10   : > { %s1597_s27 = scalar_lea.vmem %s1737_s0, %s1214_s24  ;;  %s1662_s8 = scalar_lea.vmem %s1741_s4, %s1214_s24 }
  0x11   : > { %v1499_v6 = vld [vmem:[%s1597_s27] sm:$0xff]   ;;  %v1501_v8 = vld [vmem:[%s1597_s27 + $0x8] sm:$0xff]   ;;  %v1503_v10 = vld [vmem:[%s1597_s27 + $0x10] sm:$0xff]  }
  0x12   : > { %v1500_v7 = vld [vmem:[%s1597_s27 + $0x40] sm:$0xff]   ;;  %1436 = vmatprep.mubr.msk.bf16.mxu0 %vm496_vm2, %v1499_v6  ;;  %v1502_v9 = vld [vmem:[%s1597_s27 + $0x48] sm:$0xff]   ;;  %v1504_v11 = vld [vmem:[%s1597_s27 + $0x50] sm:$0xff]  }
  0x13   : > { %1452 = vmatprep.mubr.msk.bf16.mxu1 %vm496_vm2, %v1500_v7  ;;  %1437 = vmatmul.mubr.msk.bf16.vlgmr.msra.gmra.mrb[0].mxu0 %vm496_vm2, %v1501_v8  ;;  %v1505_v12 = vld [vmem:[%s1597_s27 + $0x18] sm:$0xff]   ;;  %v1507_v14 = vld [vmem:[%s1597_s27 + $0x20] sm:$0xff]   ;;  %v1509_v16 = vld [vmem:[%s1597_s27 + $0x28] sm:$0xff]  }
  0x14   : > { %1453 = vmatmul.mubr.msk.bf16.vlgmr.msra.gmra.mrb[0].mxu1 %vm496_vm2, %v1502_v9  ;;  %1440 = vmatprep.mubr.msk.bf16.mxu0 %vm496_vm2, %v1503_v10  ;;  %v1506_v13 = vld [vmem:[%s1597_s27 + $0x58] sm:$0xff]   ;;  %v1508_v15 = vld [vmem:[%s1597_s27 + $0x60] sm:$0xff]   ;;  %v1510_v17 = vld [vmem:[%s1597_s27 + $0x68] sm:$0xff]  }
  0x15   : > { %1456 = vmatprep.mubr.msk.bf16.mxu1 %vm496_vm2, %v1504_v11  ;;  %v1511_v18 = vld [vmem:[%s1597_s27 + $0x30] sm:$0xff]   ;;  %v1513_v20 = vld [vmem:[%s1597_s27 + $0x38] sm:$0xff]  }
  0x16   : > { %v1512_v19 = vld [vmem:[%s1597_s27 + $0x70] sm:$0xff]   ;;  %v1514_v21 = vld [vmem:[%s1597_s27 + $0x78] sm:$0xff]  }
  0x1b   : > { %1441 = vmatmul.mubr.msk.bf16.gmra.mrb[4].mxu0 %vm496_vm2, %v1505_v12 }
  0x1c   : > { %1457 = vmatmul.mubr.msk.bf16.gmra.mrb[4].mxu1 %vm496_vm2, %v1506_v13  ;;  %1444 = vmatprep.mubr.msk.bf16.mxu0 %vm496_vm2, %v1507_v14 }
  0x1d   : > { %1460 = vmatprep.mubr.msk.bf16.mxu1 %vm496_vm2, %v1508_v15 }
  0x23   : > { %1445 = vmatmul.mubr.msk.bf16.gmra.mrb[8].mxu0 %vm496_vm2, %v1509_v16 }
  0x24   : > { %1461 = vmatmul.mubr.msk.bf16.gmra.mrb[8].mxu1 %vm496_vm2, %v1510_v17  ;;  %1448 = vmatprep.mubr.msk.bf16.mxu0 %vm496_vm2, %v1511_v18 }
  0x25   : > { %1464 = vmatprep.mubr.msk.bf16.mxu1 %vm496_vm2, %v1512_v19 }
  0x2b   : > { %1449 = vmatmul.mubr.msk.bf16.gmra.mrb[12].mxu0 %vm496_vm2, %v1513_v20 }
  0x2c   : > { %1465 = vmatmul.mubr.msk.bf16.gmra.mrb[12].mxu1 %vm496_vm2, %v1514_v21 }
  0xe6   : > { %v1438_v23 = vpop.f32.mrb[0].mxu0 }
  0xe7   : > { %v821_v25 = vmul.f32 %v1438_v23, %v1634_v22  ;;  %v1454_v26 = vpop.f32.mrb[0].mxu1  ;;  %v586_v27 = vpop.f32.mrb[1].mxu0 }
  0xe8   : > { %v837_v28 = vmul.f32 %v1454_v26, %v1634_v22  ;;  %v819_v29 = vmul.f32 %v1634_v22, %v586_v27  ;;  %v650_v30 = vpop.f32.mrb[1].mxu1  ;;  %v1439_v31 = vpop.f32.mrb[2].mxu0 }
  0xe9   : > { %v860_v32 = vadd.f32 %v1639_v24, %v821_v25  ;;  %v835_v33 = vmul.f32 %v1634_v22, %v650_v30  ;;  %v822_v34 = vmul.f32 %v1439_v31, %v1634_v22  ;;  %v1455_v35 = vpop.f32.mrb[2].mxu1  ;;  %v589_v36 = vpop.f32.mrb[3].mxu0 }
  0xea   : > { %v876_v37 = vadd.f32 %v1639_v24, %v837_v28  ;;  %v858_v38 = vadd.f32 %v1639_v24, %v819_v29  ;;  %v838_v39 = vmul.f32 %v1455_v35, %v1634_v22  ;;  %v820_v40 = vmul.f32 %v1634_v22, %v589_v36  ;;  %v653_v41 = vpop.f32.mrb[3].mxu1 }
  0xeb   : > { %v874_v42 = vadd.f32 %v1639_v24, %v835_v33  ;;  %v861_v43 = vadd.f32 %v1639_v24, %v822_v34  ;;  %v836_v44 = vmul.f32 %v1634_v22, %v653_v41  ;;  %v892_v47 = vmax.f32 %v860_v32, 0.0 }
  0xec   : > { %v877_v45 = vadd.f32 %v1639_v24, %v838_v39  ;;  %v859_v46 = vadd.f32 %v1639_v24, %v820_v40  ;;  %v908_v50 = vmax.f32 %v876_v37, 0.0  ;;  %v890_v51 = vmax.f32 %v858_v38, 0.0 }
  0xed   : > { %v893_v48 = vmax.f32 %v861_v43, 0.0  ;;  %v875_v49 = vadd.f32 %v1639_v24, %v836_v44  ;;  %v906_v55 = vmax.f32 %v874_v42, 0.0 }
  0xee   : > { %v909_v52 = vmax.f32 %v877_v45, 0.0  ;;  %v891_v53 = vmax.f32 %v859_v46, 0.0  ;;  %v1442_v54 = vpop.f32.mrb[4].mxu0 }
  0xef   : > { %v1327_v56 = vpack.c.bf16 %v893_v48, %v892_v47  ;;  %v907_v57 = vmax.f32 %v875_v49, 0.0  ;;  %v825_v58 = vmul.f32 %v1442_v54, %v1634_v22  ;;  %v1458_v59 = vpop.f32.mrb[4].mxu1  ;;  %v602_v60 = vpop.f32.mrb[5].mxu0 }
  0xf0   : > { %v1367_v61 = vpack.c.bf16 %v909_v52, %v908_v50  ;;  %v1322_v62 = vpack.c.bf16 %v891_v53, %v890_v51  ;;  %v841_v63 = vmul.f32 %v1458_v59, %v1634_v22  ;;  %v823_v0 = vmul.f32 %v1634_v22, %v602_v60  ;;  %v666_v1 = vpop.f32.mrb[5].mxu1  ;;  %v1443_v2 = vpop.f32.mrb[6].mxu0 }
  0xf1   : > { %1399 = vst [vmem:[%s1662_s8 + $0x8] sm:$0xff] %v1327_v56   ;;  %v1362_v3 = vpack.c.bf16 %v907_v57, %v906_v55  ;;  %v864_v4 = vadd.f32 %v1639_v24, %v825_v58  ;;  %v839_v5 = vmul.f32 %v1634_v22, %v666_v1  ;;  %v826_v6 = vmul.f32 %v1443_v2, %v1634_v22  ;;  %v1459_v7 = vpop.f32.mrb[6].mxu1  ;;  %v605_v8 = vpop.f32.mrb[7].mxu0 }
  0xf2   : > { %1407 = vst [vmem:[%s1662_s8 + $0x48] sm:$0xff] %v1367_v61   ;;  %1323 = vst [vmem:[%s1662_s8] sm:$0xff] %v1322_v62   ;;  %v880_v9 = vadd.f32 %v1639_v24, %v841_v63  ;;  %v862_v10 = vadd.f32 %v1639_v24, %v823_v0  ;;  %v842_v11 = vmul.f32 %v1459_v7, %v1634_v22  ;;  %v669_v13 = vpop.f32.mrb[7].mxu1 }
  0xf3   : > { %v824_v12 = vmul.f32 %v1634_v22, %v605_v8  ;;  %1406 = vst [vmem:[%s1662_s8 + $0x40] sm:$0xff] %v1362_v3   ;;  %v878_v14 = vadd.f32 %v1639_v24, %v839_v5  ;;  %v865_v15 = vadd.f32 %v1639_v24, %v826_v6  ;;  %v840_v16 = vmul.f32 %v1634_v22, %v669_v13 }
  0xf4   : > { %v881_v17 = vadd.f32 %v1639_v24, %v842_v11  ;;  %v896_v19 = vmax.f32 %v864_v4, 0.0  ;;  %v912_v23 = vmax.f32 %v880_v9, 0.0  ;;  %v894_v25 = vmax.f32 %v862_v10, 0.0 }
  0xf5   : > { %v863_v18 = vadd.f32 %v1639_v24, %v824_v12  ;;  %v897_v20 = vmax.f32 %v865_v15, 0.0  ;;  %v879_v21 = vadd.f32 %v1639_v24, %v840_v16  ;;  %v910_v29 = vmax.f32 %v878_v14, 0.0 }
  0xf6   : > { %v913_v26 = vmax.f32 %v881_v17, 0.0  ;;  %v1446_v28 = vpop.f32.mrb[8].mxu0 }
  0xf7   : > { %v895_v27 = vmax.f32 %v863_v18, 0.0  ;;  %v1337_v30 = vpack.c.bf16 %v897_v20, %v896_v19  ;;  %v911_v31 = vmax.f32 %v879_v21, 0.0  ;;  %v829_v32 = vmul.f32 %v1446_v28, %v1634_v22  ;;  %v1462_v33 = vpop.f32.mrb[8].mxu1  ;;  %v618_v34 = vpop.f32.mrb[9].mxu0 }
  0xf8   : > { %v1377_v35 = vpack.c.bf16 %v913_v26, %v912_v23  ;;  %v845_v37 = vmul.f32 %v1462_v33, %v1634_v22  ;;  %v827_v38 = vmul.f32 %v1634_v22, %v618_v34  ;;  %v682_v39 = vpop.f32.mrb[9].mxu1  ;;  %v1447_v40 = vpop.f32.mrb[10].mxu0 }
  0xf9   : > { %v1332_v36 = vpack.c.bf16 %v895_v27, %v894_v25  ;;  %1401 = vst [vmem:[%s1662_s8 + $0x18] sm:$0xff] %v1337_v30   ;;  %v1372_v41 = vpack.c.bf16 %v911_v31, %v910_v29  ;;  %v868_v42 = vadd.f32 %v1639_v24, %v829_v32  ;;  %v843_v43 = vmul.f32 %v1634_v22, %v682_v39  ;;  %v1463_v45 = vpop.f32.mrb[10].mxu1  ;;  %v621_v46 = vpop.f32.mrb[11].mxu0 }
  0xfa   : > { %v830_v44 = vmul.f32 %v1447_v40, %v1634_v22  ;;  %1409 = vst [vmem:[%s1662_s8 + $0x58] sm:$0xff] %v1377_v35   ;;  %v884_v47 = vadd.f32 %v1639_v24, %v845_v37  ;;  %v866_v48 = vadd.f32 %v1639_v24, %v827_v38  ;;  %v846_v49 = vmul.f32 %v1463_v45, %v1634_v22  ;;  %v685_v51 = vpop.f32.mrb[11].mxu1 }
  0xfb   : > { %1400 = vst [vmem:[%s1662_s8 + $0x10] sm:$0xff] %v1332_v36   ;;  %v828_v50 = vmul.f32 %v1634_v22, %v621_v46  ;;  %1408 = vst [vmem:[%s1662_s8 + $0x50] sm:$0xff] %v1372_v41   ;;  %v882_v52 = vadd.f32 %v1639_v24, %v843_v43  ;;  %v844_v54 = vmul.f32 %v1634_v22, %v685_v51  ;;  %v900_v57 = vmax.f32 %v868_v42, 0.0 }
  0xfc   : > { %v869_v53 = vadd.f32 %v1639_v24, %v830_v44  ;;  %v885_v55 = vadd.f32 %v1639_v24, %v846_v49  ;;  %v916_v60 = vmax.f32 %v884_v47, 0.0  ;;  %v898_v61 = vmax.f32 %v866_v48, 0.0 }
  0xfd   : > { %v867_v56 = vadd.f32 %v1639_v24, %v828_v50  ;;  %v883_v59 = vadd.f32 %v1639_v24, %v844_v54  ;;  %v914_v1 = vmax.f32 %v882_v52, 0.0 }
  0xfe   : > { %v901_v58 = vmax.f32 %v869_v53, 0.0  ;;  %v917_v62 = vmax.f32 %v885_v55, 0.0  ;;  %v1450_v0 = vpop.f32.mrb[12].mxu0 }
  0xff   : > { %v899_v63 = vmax.f32 %v867_v56, 0.0  ;;  %v915_v3 = vmax.f32 %v883_v59, 0.0  ;;  %v833_v4 = vmul.f32 %v1450_v0, %v1634_v22  ;;  %v1466_v5 = vpop.f32.mrb[12].mxu1  ;;  %v634_v6 = vpop.f32.mrb[13].mxu0 }
 0x100   : > { %v1347_v2 = vpack.c.bf16 %v901_v58, %v900_v57  ;;  %v1387_v7 = vpack.c.bf16 %v917_v62, %v916_v60  ;;  %v849_v9 = vmul.f32 %v1466_v5, %v1634_v22  ;;  %v831_v10 = vmul.f32 %v1634_v22, %v634_v6  ;;  %v698_v11 = vpop.f32.mrb[13].mxu1  ;;  %v1451_v12 = vpop.f32.mrb[14].mxu0 }
 0x101   : > { %v1342_v8 = vpack.c.bf16 %v899_v63, %v898_v61  ;;  %v1382_v13 = vpack.c.bf16 %v915_v3, %v914_v1  ;;  %v872_v14 = vadd.f32 %v1639_v24, %v833_v4  ;;  %v847_v15 = vmul.f32 %v1634_v22, %v698_v11  ;;  %v1467_v17 = vpop.f32.mrb[14].mxu1  ;;  %v637_v18 = vpop.f32.mrb[15].mxu0 }
 0x102   : > { %1403 = vst [vmem:[%s1662_s8 + $0x28] sm:$0xff] %v1347_v2   ;;  %v834_v16 = vmul.f32 %v1451_v12, %v1634_v22  ;;  %1411 = vst [vmem:[%s1662_s8 + $0x68] sm:$0xff] %v1387_v7   ;;  %v888_v19 = vadd.f32 %v1639_v24, %v849_v9  ;;  %v870_v20 = vadd.f32 %v1639_v24, %v831_v10  ;;  %v701_v25 = vpop.f32.mrb[15].mxu1 }
 0x103   : > { %1402 = vst [vmem:[%s1662_s8 + $0x20] sm:$0xff] %v1342_v8   ;;  %v850_v21 = vmul.f32 %v1467_v17, %v1634_v22  ;;  %v832_v23 = vmul.f32 %v1634_v22, %v637_v18  ;;  %1410 = vst [vmem:[%s1662_s8 + $0x60] sm:$0xff] %v1382_v13   ;;  %v886_v26 = vadd.f32 %v1639_v24, %v847_v15  ;;  %v904_v31 = vmax.f32 %v872_v14, 0.0 }
 0x104   : > { %v873_v27 = vadd.f32 %v1639_v24, %v834_v16  ;;  %v848_v28 = vmul.f32 %v1634_v22, %v701_v25  ;;  %v920_v34 = vmax.f32 %v888_v19, 0.0  ;;  %v902_v35 = vmax.f32 %v870_v20, 0.0 }
 0x105   : > { %v889_v29 = vadd.f32 %v1639_v24, %v850_v21  ;;  %v871_v30 = vadd.f32 %v1639_v24, %v832_v23  ;;  %v918_v38 = vmax.f32 %v886_v26, 0.0 }
 0x106   : > { %v905_v32 = vmax.f32 %v873_v27, 0.0  ;;  %v887_v33 = vadd.f32 %v1639_v24, %v848_v28 }
 0x107   : > { %v921_v36 = vmax.f32 %v889_v29, 0.0  ;;  %v903_v37 = vmax.f32 %v871_v30, 0.0 }
 0x108   : > { %v1357_v39 = vpack.c.bf16 %v905_v32, %v904_v31  ;;  %v919_v40 = vmax.f32 %v887_v33, 0.0 }
 0x109   : > { %v1397_v41 = vpack.c.bf16 %v921_v36, %v920_v34  ;;  %v1352_v22 = vpack.c.bf16 %v903_v37, %v902_v35 }
 0x10a   : > { %1405 = vst [vmem:[%s1662_s8 + $0x38] sm:$0xff] %v1357_v39   ;;  %v1392_v42 = vpack.c.bf16 %v919_v40, %v918_v38 }
 0x10b   : > { %1413 = vst [vmem:[%s1662_s8 + $0x78] sm:$0xff] %v1397_v41   ;;  %1404 = vst [vmem:[%s1662_s8 + $0x30] sm:$0xff] %v1352_v22  }
 0x10c   : > { %1412 = vst [vmem:[%s1662_s8 + $0x70] sm:$0xff] %v1392_v42  }
 0x10d PF: > { %s14_s17 = sadd.s32 1, %s1537_s17   ;;  %s1742_s15 = smov %s1533_s16 }
 0x10e   : > { %p11_p5 = scmp.ge.s32.totalorder %s14_s17, 4   ;;  %s1743_s16 = smov %s1745_s18 }
 0x110   :  { %13 = sbr.rel (!%p11_p5) target bundleno = 2 (0x2), region = 83 }

// kernel: resnet_forward.14
= control target key start
LH: loop header
LB: loop body
LE: loop exit
PB: predicated region body
PF: predicated region fallthrough
CT: control target
= control target key end

     0   :  { %s2532_s15 = smov 0   ;;  %s2534_s16 = smov 0   ;;  %s2826_s0 = inlined_call_operand.vmem [shape: bf16[512,512], index: 0, kind: input, shape index: {}]   ;;  %s2827_s1 = inlined_call_operand.vmem [shape: bf16[512,128], index: 1, kind: input, shape index: {}]   ;;  %s2828_s2 = inlined_call_operand.vmem [shape: f32[1,128], index: 2, kind: input, shape index: {}]   ;;  %s2829_s3 = inlined_call_operand.vmem [shape: f32[1,128], index: 3, kind: input, shape index: {}]   ;;  %s2830_s4 = inlined_call_operand.vmem [shape: bf16[512,128], index: 4, kind: output, shape index: {}]  }
   0x1   :  { %s2536_s17 = smov 0  }
   0x2 LB: > { %s33_s18 = sadd.s32 1, %s2501_s16  ;;  %p1841_p0 = scmp.ge.s32.totalorder %s2505_s17, 1  ;;  %s2505_s17 = sphi %s2536_s17, %s14_s17   ;;  %s2501_s16 = sphi %s2534_s16, %s2832_s16   ;;  %s2497_s15 = sphi %s2532_s15, %s2831_s15  }
   0x3   : > { %p35_p1 = scmp.ge.s32.totalorder %s33_s18, 2  ;;  %p224_p2 = scmp.lt.s32.totalorder %s2505_s17, 3 }
   0x5   : > { %s2834_s18 = smov (%p35_p1, %s33_s18), 0  ;;  %p225_p3 = pnand %p1841_p0, %p224_p2 }
   0x6   : > { %v2355_v0 = vld [vmem:[%s2827_s1 + $0x40] sm:$0xff] (!%p225_p3)   ;;  %v2359_v4 = vld [vmem:[%s2827_s1 + $0x48] sm:$0xff] (!%p225_p3)   ;;  %v2363_v8 = vld [vmem:[%s2827_s1 + $0x50] sm:$0xff] (!%p225_p3)   ;;  %s1842_s29 = sshll.u32 (!%p225_p3), %s2497_s15, 5 }
   0x7   : > { %228 = sbr.rel (%p225_p3) target bundleno = 389 (0x185), region = 36  ;;  %v2356_v1 = vld [vmem:[%s2827_s1 + $0xc0] sm:$0xff] (!%p225_p3)   ;;  %2107 = vmatprep.subr.bf16.mxu0 (!%p225_p3), %v2355_v0  ;;  %v2360_v5 = vld [vmem:[%s2827_s1 + $0xc8] sm:$0xff] (!%p225_p3)   ;;  %v2364_v9 = vld [vmem:[%s2827_s1 + $0xd0] sm:$0xff] (!%p225_p3)   ;;  %p274_p4 = scmp.lt.s32.totalorder (!%p225_p3), %s1842_s29, 63 }
   0x8   : > { %v2357_v2 = vld [vmem:[%s2827_s1] sm:$0xff] (!%p225_p3)   ;;  %2219 = vmatprep.subr.bf16.mxu1 (!%p225_p3), %v2356_v1  ;;  %v2361_v6 = vld [vmem:[%s2827_s1 + $0x8] sm:$0xff] (!%p225_p3)   ;;  %v2365_v10 = vld [vmem:[%s2827_s1 + $0x10] sm:$0xff] (!%p225_p3)  }
   0x9   : > { %v2358_v3 = vld [vmem:[%s2827_s1 + $0x80] sm:$0xff] (!%p225_p3)   ;;  %2108 = vmatpush3.bf16.msra.mxu0 (!%p225_p3), %v2357_v2  ;;  %v2362_v7 = vld [vmem:[%s2827_s1 + $0x88] sm:$0xff] (!%p225_p3)   ;;  %v2366_v11 = vld [vmem:[%s2827_s1 + $0x90] sm:$0xff] (!%p225_p3)  }
   0xa   : > { %2220 = vmatpush3.bf16.msra.mxu1 (!%p225_p3), %v2358_v3  ;;  %2109 = vmatprep.subr.bf16.mxu0 (!%p225_p3), %v2359_v4  ;;  %v2367_v12 = vld [vmem:[%s2827_s1 + $0x58] sm:$0xff] (!%p225_p3)   ;;  %v2371_v16 = vld [vmem:[%s2827_s1 + $0x60] sm:$0xff] (!%p225_p3)   ;;  %v2375_v20 = vld [vmem:[%s2827_s1 + $0x68] sm:$0xff] (!%p225_p3)  }
   0xb   : > { %2221 = vmatprep.subr.bf16.mxu1 (!%p225_p3), %v2360_v5  ;;  %v2368_v13 = vld [vmem:[%s2827_s1 + $0xd8] sm:$0xff] (!%p225_p3)   ;;  %v2372_v17 = vld [vmem:[%s2827_s1 + $0xe0] sm:$0xff] (!%p225_p3)   ;;  %v2376_v21 = vld [vmem:[%s2827_s1 + $0xe8] sm:$0xff] (!%p225_p3)  }
   0xc   : > { %v2369_v14 = vld [vmem:[%s2827_s1 + $0x18] sm:$0xff] (!%p225_p3)   ;;  %v2373_v18 = vld [vmem:[%s2827_s1 + $0x20] sm:$0xff] (!%p225_p3)   ;;  %v2377_v22 = vld [vmem:[%s2827_s1 + $0x28] sm:$0xff] (!%p225_p3)  }
   0xd   : > { %2110 = vmatpush3.bf16.msra.mxu0 (!%p225_p3), %v2361_v6  ;;  %v2370_v15 = vld [vmem:[%s2827_s1 + $0x98] sm:$0xff] (!%p225_p3)   ;;  %v2374_v19 = vld [vmem:[%s2827_s1 + $0xa0] sm:$0xff] (!%p225_p3)   ;;  %v2378_v23 = vld [vmem:[%s2827_s1 + $0xa8] sm:$0xff] (!%p225_p3)  }
   0xe   : > { %2222 = vmatpush3.bf16.msra.mxu1 %v2362_v7  ;;  %2111 = vmatprep.subr.bf16.mxu0 %v2363_v8  ;;  %s2836_s29 = smov (!%p274_p4, %s1842_s29), 63  ;;  %v2379_v24 = vld [vmem:[%s2827_s1 + $0x70] sm:$0xff]   ;;  %v2383_v28 = vld [vmem:[%s2827_s1 + $0x78] sm:$0xff]  }
   0xf   : > { %2223 = vmatprep.subr.bf16.mxu1 %v2364_v9  ;;  %v2380_v25 = vld [vmem:[%s2827_s1 + $0xf0] sm:$0xff]   ;;  %s1979_s30 = sshll.u32 %s2836_s29, 4  ;;  %v2384_v29 = vld [vmem:[%s2827_s1 + $0xf8] sm:$0xff]   ;;  %s1846_s25 = sshll.u32 %s2836_s29, 2 }
  0x10   : > { %v2381_v26 = vld [vmem:[%s2827_s1 + $0x30] sm:$0xff]   ;;  %s2649_s12 = scalar_lea.vmem %s2826_s0, %s1979_s30  ;;  %v2385_v30 = vld [vmem:[%s2827_s1 + $0x38] sm:$0xff]   ;;  %s2739_s28 = scalar_lea.vmem %s2830_s4, %s1846_s25 }
  0x11   : > { %2112 = vmatpush3.bf16.msra.mxu0 %v2365_v10  ;;  %v2382_v27 = vld [vmem:[%s2827_s1 + $0xb0] sm:$0xff]   ;;  %v2386_v31 = vld [vmem:[%s2827_s1 + $0xb8] sm:$0xff]  }
  0x12   : > { %2224 = vmatpush3.bf16.msra.mxu1 %v2366_v11  ;;  %2113 = vmatprep.subr.bf16.mxu0 %v2367_v12  ;;  %v2387_v32 = vld [vmem:[%s2649_s12] ss:$16 sps:$4 sm:$0xff]   ;;  %v2389_v33 = vld [vmem:[%s2649_s12 + $0x4] ss:$16 sps:$4 sm:$0xff]   ;;  %v2390_v34 = vld [vmem:[%s2649_s12 + $0x8] ss:$16 sps:$4 sm:$0xff]  }
  0x13   : > { %2225 = vmatprep.subr.bf16.mxu1 %v2368_v13  ;;  %v2392_v35 = vld [vmem:[%s2649_s12 + $0xc] ss:$16 sps:$4 sm:$0xff]   ;;  %1049 = vmatprep.mubr.bf16.mxu0 %v2389_v33  ;;  %v2393_v36 = vld [vmem:[%s2649_s12 + $0x24] ss:$16 sps:$4 sm:$0xff]   ;;  %v2397_v38 = vld [vmem:[%s2649_s12 + $0x20] ss:$16 sps:$4 sm:$0xff]  }
  0x14   : > { %1210 = vmatprep.mubr.bf16.mxu1 %v2392_v35  ;;  %v2395_v37 = vld [vmem:[%s2649_s12 + $0x2c] ss:$16 sps:$4 sm:$0xff]   ;;  %v2398_v39 = vld [vmem:[%s2649_s12 + $0x28] ss:$16 sps:$4 sm:$0xff]   ;;  %v2399_v40 = vld [vmem:[%s2649_s12 + $0x44] ss:$16 sps:$4 sm:$0xff]  }
  0x15   : > { %2114 = vmatpush3.bf16.msra.mxu0 %v2369_v14  ;;  %v2401_v41 = vld [vmem:[%s2649_s12 + $0x4c] ss:$16 sps:$4 sm:$0xff]   ;;  %v2403_v42 = vld [vmem:[%s2649_s12 + $0x40] ss:$16 sps:$4 sm:$0xff]   ;;  %v2404_v43 = vld [vmem:[%s2649_s12 + $0x48] ss:$16 sps:$4 sm:$0xff]  }
  0x16   : > { %2226 = vmatpush3.bf16.msra.mxu1 %v2370_v15  ;;  %2115 = vmatprep.subr.bf16.mxu0 %v2371_v16  ;;  %v2405_v44 = vld [vmem:[%s2649_s12 + $0x64] ss:$16 sps:$4 sm:$0xff]   ;;  %v2407_v45 = vld [vmem:[%s2649_s12 + $0x6c] ss:$16 sps:$4 sm:$0xff]   ;;  %v2409_v46 = vld [vmem:[%s2649_s12 + $0x60] ss:$16 sps:$4 sm:$0xff]  }
  0x17   : > { %2227 = vmatprep.subr.bf16.mxu1 %v2372_v17  ;;  %v2410_v47 = vld [vmem:[%s2649_s12 + $0x68] ss:$16 sps:$4 sm:$0xff]   ;;  %v2411_v48 = vld [vmem:[%s2649_s12 + $0x84] ss:$16 sps:$4 sm:$0xff]   ;;  %v2413_v49 = vld [vmem:[%s2649_s12 + $0x8c] ss:$16 sps:$4 sm:$0xff]  }
  0x18   : > { %v2415_v50 = vld [vmem:[%s2649_s12 + $0x80] ss:$16 sps:$4 sm:$0xff]   ;;  %v2416_v51 = vld [vmem:[%s2649_s12 + $0x88] ss:$16 sps:$4 sm:$0xff]   ;;  %v2417_v52 = vld [vmem:[%s2649_s12 + $0xa4] ss:$16 sps:$4 sm:$0xff]  }
  0x19   : > { %2116 = vmatpush3.bf16.msra.mxu0 %v2373_v18  ;;  %v2419_v53 = vld [vmem:[%s2649_s12 + $0xac] ss:$16 sps:$4 sm:$0xff]   ;;  %v2421_v54 = vld [vmem:[%s2649_s12 + $0xa0] ss:$16 sps:$4 sm:$0xff]   ;;  %v2422_v55 = vld [vmem:[%s2649_s12 + $0xa8] ss:$16 sps:$4 sm:$0xff]  }
  0x1a   : > { %2228 = vmatpush3.bf16.msra.mxu1 %v2374_v19  ;;  %2117 = vmatprep.subr.bf16.mxu0 %v2375_v20  ;;  %v2423_v56 = vld [vmem:[%s2649_s12 + $0xc4] ss:$16 sps:$4 sm:$0xff]   ;;  %v2425_v57 = vld [vmem:[%s2649_s12 + $0xcc] ss:$16 sps:$4 sm:$0xff]   ;;  %v2427_v58 = vld [vmem:[%s2649_s12 + $0xc0] ss:$16 sps:$4 sm:$0xff]  }
  0x1b   : > { %2229 = vmatprep.subr.bf16.mxu1 %v2376_v21  ;;  %v2428_v59 = vld [vmem:[%s2649_s12 + $0xc8] ss:$16 sps:$4 sm:$0xff]   ;;  %v2429_v60 = vld [vmem:[%s2649_s12 + $0xe4] ss:$16 sps:$4 sm:$0xff]   ;;  %v2431_v61 = vld [vmem:[%s2649_s12 + $0xec] ss:$16 sps:$4 sm:$0xff]  }
  0x1c   : > { %v2433_v62 = vld [vmem:[%s2649_s12 + $0xe0] ss:$16 sps:$4 sm:$0xff]   ;;  %v2434_v63 = vld [vmem:[%s2649_s12 + $0xe8] ss:$16 sps:$4 sm:$0xff]   ;;  %v2435_v0 = vld [vmem:[%s2649_s12 + $0x104] ss:$16 sps:$4 sm:$0xff]  }
  0x1d   : > { %2118 = vmatpush3.bf16.msra.mxu0 %v2377_v22  ;;  %v2437_v1 = vld [vmem:[%s2649_s12 + $0x10c] ss:$16 sps:$4 sm:$0xff]   ;;  %v2439_v2 = vld [vmem:[%s2649_s12 + $0x100] ss:$16 sps:$4 sm:$0xff]   ;;  %v2440_v3 = vld [vmem:[%s2649_s12 + $0x108] ss:$16 sps:$4 sm:$0xff]  }
  0x1e   : > { %2230 = vmatpush3.bf16.msra.mxu1 %v2378_v23  ;;  %2119 = vmatprep.subr.bf16.mxu0 %v2379_v24  ;;  %v2441_v4 = vld [vmem:[%s2649_s12 + $0x124] ss:$16 sps:$4 sm:$0xff]   ;;  %v2443_v5 = vld [vmem:[%s2649_s12 + $0x12c] ss:$16 sps:$4 sm:$0xff]   ;;  %v2445_v6 = vld [vmem:[%s2649_s12 + $0x120] ss:$16 sps:$4 sm:$0xff]  }
  0x1f   : > { %2231 = vmatprep.subr.bf16.mxu1 %v2380_v25  ;;  %v2446_v7 = vld [vmem:[%s2649_s12 + $0x128] ss:$16 sps:$4 sm:$0xff]   ;;  %v2447_v8 = vld [vmem:[%s2649_s12 + $0x144] ss:$16 sps:$4 sm:$0xff]   ;;  %v2449_v9 = vld [vmem:[%s2649_s12 + $0x14c] ss:$16 sps:$4 sm:$0xff]  }
  0x20   : > { %v2451_v10 = vld [vmem:[%s2649_s12 + $0x140] ss:$16 sps:$4 sm:$0xff]   ;;  %v2452_v11 = vld [vmem:[%s2649_s12 + $0x148] ss:$16 sps:$4 sm:$0xff]   ;;  %v2453_v12 = vld [vmem:[%s2649_s12 + $0x164] ss:$16 sps:$4 sm:$0xff]  }
  0x21   : > { %2120 = vmatpush3.bf16.msra.mxu0 %v2381_v26  ;;  %v2455_v13 = vld [vmem:[%s2649_s12 + $0x16c] ss:$16 sps:$4 sm:$0xff]   ;;  %v2457_v14 = vld [vmem:[%s2649_s12 + $0x160] ss:$16 sps:$4 sm:$0xff]   ;;  %v2458_v15 = vld [vmem:[%s2649_s12 + $0x168] ss:$16 sps:$4 sm:$0xff]  }
  0x22   : > { %2232 = vmatpush3.bf16.msra.mxu1 %v2382_v27  ;;  %2121 = vmatprep.subr.bf16.mxu0 %v2383_v28  ;;  %v2459_v16 = vld [vmem:[%s2649_s12 + $0x184] ss:$16 sps:$4 sm:$0xff]   ;;  %v2461_v17 = vld [vmem:[%s2649_s12 + $0x18c] ss:$16 sps:$4 sm:$0xff]   ;;  %v2463_v18 = vld [vmem:[%s2649_s12 + $0x180] ss:$16 sps:$4 sm:$0xff]  }
  0x23   : > { %2233 = vmatprep.subr.bf16.mxu1 %v2384_v29  ;;  %v2464_v19 = vld [vmem:[%s2649_s12 + $0x188] ss:$16 sps:$4 sm:$0xff]   ;;  %v2465_v20 = vld [vmem:[%s2649_s12 + $0x1a4] ss:$16 sps:$4 sm:$0xff]   ;;  %v2467_v21 = vld [vmem:[%s2649_s12 + $0x1ac] ss:$16 sps:$4 sm:$0xff]  }
  0x24   : > { %v2469_v22 = vld [vmem:[%s2649_s12 + $0x1a0] ss:$16 sps:$4 sm:$0xff]   ;;  %v2470_v23 = vld [vmem:[%s2649_s12 + $0x1a8] ss:$16 sps:$4 sm:$0xff]   ;;  %v2471_v24 = vld [vmem:[%s2649_s12 + $0x1c4] ss:$16 sps:$4 sm:$0xff]  }
  0x25   : > { %2122 = vmatpush3.bf16.msra.mxu0 %v2385_v30  ;;  %v2473_v25 = vld [vmem:[%s2649_s12 + $0x1cc] ss:$16 sps:$4 sm:$0xff]   ;;  %v2475_v26 = vld [vmem:[%s2649_s12 + $0x1c0] ss:$16 sps:$4 sm:$0xff]   ;;  %v2476_v27 = vld [vmem:[%s2649_s12 + $0x1c8] ss:$16 sps:$4 sm:$0xff]  }
  0x26   : > { %2234 = vmatpush3.bf16.msra.mxu1 %v2386_v31  ;;  %v2477_v28 = vld [vmem:[%s2649_s12 + $0x1e4] ss:$16 sps:$4 sm:$0xff]   ;;  %v2479_v29 = vld [vmem:[%s2649_s12 + $0x1ec] ss:$16 sps:$4 sm:$0xff]   ;;  %v2481_v30 = vld [vmem:[%s2649_s12 + $0x1e0] ss:$16 sps:$4 sm:$0xff]  }
  0x27   : > { %v2482_v31 = vld [vmem:[%s2649_s12 + $0x1e8] ss:$16 sps:$4 sm:$0xff]  }
  0x28   : > { %1050 = vmatmul.mubr.bf16.vlgmr.msra.gmra.mrb[0].mxu0 %v2387_v32 }
  0x29   : > { %1211 = vmatmul.mubr.bf16.vlgmr.msra.gmra.mrb[0].mxu1 %v2390_v34  ;;  %1057 = vmatprep.mubr.bf16.mxu0 %v2393_v36 }
  0x2a   : > { %1218 = vmatprep.mubr.bf16.mxu1 %v2395_v37 }
  0x30   : > { %1058 = vmatmul.mubr.bf16.gmra.mrb[4].mxu0 %v2397_v38 }
  0x31   : > { %1219 = vmatmul.mubr.bf16.gmra.mrb[4].mxu1 %v2398_v39  ;;  %1065 = vmatprep.mubr.bf16.mxu0 %v2399_v40 }
  0x32   : > { %1226 = vmatprep.mubr.bf16.mxu1 %v2401_v41  ;;  %v2724_v41 = vld [vmem:[%s2828_s2] ss:$0 sm:$0xff] }
  0x38   : > { %1066 = vmatmul.mubr.bf16.gmra.mrb[8].mxu0 %v2403_v42 }
  0x39   : > { %1227 = vmatmul.mubr.bf16.gmra.mrb[8].mxu1 %v2404_v43  ;;  %1073 = vmatprep.mubr.bf16.mxu0 %v2405_v44 }
  0x3a   : > { %1234 = vmatprep.mubr.bf16.mxu1 %v2407_v45 }
  0x40   : > { %1074 = vmatmul.mubr.bf16.gmra.mrb[12].mxu0 %v2409_v46  ;;  %v2729_v46 = vld [vmem:[%s2829_s3] ss:$0 sm:$0xff] }
  0x41   : > { %1235 = vmatmul.mubr.bf16.gmra.mrb[12].mxu1 %v2410_v47  ;;  %1081 = vmatprep.mubr.bf16.mxu0 %v2411_v48 }
  0x42   : > { %1242 = vmatprep.mubr.bf16.mxu1 %v2413_v49 }
  0x48   : > { %1082 = vmatmul.mubr.bf16.gmra.mrb[16].mxu0 %v2415_v50 }
  0x49   : > { %1243 = vmatmul.mubr.bf16.gmra.mrb[16].mxu1 %v2416_v51  ;;  %1089 = vmatprep.mubr.bf16.mxu0 %v2417_v52 }
  0x4a   : > { %1250 = vmatprep.mubr.bf16.mxu1 %v2419_v53 }
  0x50   : > { %1090 = vmatmul.mubr.bf16.gmra.mrb[20].mxu0 %v2421_v54 }
  0x51   : > { %1251 = vmatmul.mubr.bf16.gmra.mrb[20].mxu1 %v2422_v55  ;;  %1097 = vmatprep.mubr.bf16.mxu0 %v2423_v56 }
  0x52   : > { %1258 = vmatprep.mubr.bf16.mxu1 %v2425_v57 }
  0x58   : > { %1098 = vmatmul.mubr.bf16.gmra.mrb[24].mxu0 %v2427_v58 }
  0x59   : > { %1259 = vmatmul.mubr.bf16.gmra.mrb[24].mxu1 %v2428_v59  ;;  %1105 = vmatprep.mubr.bf16.mxu0 %v2429_v60 }
  0x5a   : > { %1266 = vmatprep.mubr.bf16.mxu1 %v2431_v61 }
  0x60   : > { %1106 = vmatmul.mubr.bf16.gmra.mrb[28].mxu0 %v2433_v62 }
  0x61   : > { %1267 = vmatmul.mubr.bf16.gmra.mrb[28].mxu1 %v2434_v63  ;;  %1113 = vmatprep.mubr.bf16.mxu0 %v2435_v0 }
  0x62   : > { %1274 = vmatprep.mubr.bf16.mxu1 %v2437_v1 }
  0x68   : > { %1114 = vmatmul.mubr.bf16.gmra.mrb[32].mxu0 %v2439_v2 }
  0x69   : > { %1275 = vmatmul.mubr.bf16.gmra.mrb[32].mxu1 %v2440_v3  ;;  %1121 = vmatprep.mubr.bf16.mxu0 %v2441_v4 }
  0x6a   : > { %1282 = vmatprep.mubr.bf16.mxu1 %v2443_v5 }
  0x70   : > { %1122 = vmatmul.mubr.bf16.gmra.mrb[36].mxu0 %v2445_v6 }
  0x71   : > { %1283 = vmatmul.mubr.bf16.gmra.mrb[36].mxu1 %v2446_v7  ;;  %1129 = vmatprep.mubr.bf16.mxu0 %v2447_v8 }
  0x72   : > { %1290 = vmatprep.mubr.bf16.mxu1 %v2449_v9 }
  0x78   : > { %1130 = vmatmul.mubr.bf16.gmra.mrb[40].mxu0 %v2451_v10 }
  0x79   : > { %1291 = vmatmul.mubr.bf16.gmra.mrb[40].mxu1 %v2452_v11  ;;  %1137 = vmatprep.mubr.bf16.mxu0 %v2453_v12 }
  0x7a   : > { %1298 = vmatprep.mubr.bf16.mxu1 %v2455_v13 }
  0x80   : > { %1138 = vmatmul.mubr.bf16.gmra.mrb[44].mxu0 %v2457_v14 }
  0x81   : > { %1299 = vmatmul.mubr.bf16.gmra.mrb[44].mxu1 %v2458_v15  ;;  %1145 = vmatprep.mubr.bf16.mxu0 %v2459_v16 }
  0x82   : > { %1306 = vmatprep.mubr.bf16.mxu1 %v2461_v17 }
  0x88   : > { %1146 = vmatmul.mubr.bf16.gmra.mrb[48].mxu0 %v2463_v18 }
  0x89   : > { %1307 = vmatmul.mubr.bf16.gmra.mrb[48].mxu1 %v2464_v19  ;;  %1153 = vmatprep.mubr.bf16.mxu0 %v2465_v20 }
  0x8a   : > { %1314 = vmatprep.mubr.bf16.mxu1 %v2467_v21 }
  0x90   : > { %1154 = vmatmul.mubr.bf16.gmra.mrb[52].mxu0 %v2469_v22 }
  0x91   : > { %1315 = vmatmul.mubr.bf16.gmra.mrb[52].mxu1 %v2470_v23  ;;  %1161 = vmatprep.mubr.bf16.mxu0 %v2471_v24 }
  0x92   : > { %1322 = vmatprep.mubr.bf16.mxu1 %v2473_v25 }
  0x98   : > { %1162 = vmatmul.mubr.bf16.gmra.mrb[56].mxu0 %v2475_v26 }
  0x99   : > { %1323 = vmatmul.mubr.bf16.gmra.mrb[56].mxu1 %v2476_v27  ;;  %1169 = vmatprep.mubr.bf16.mxu0 %v2477_v28 }
  0x9a   : > { %1330 = vmatprep.mubr.bf16.mxu1 %v2479_v29 }
  0xa0   : > { %1170 = vmatmul.mubr.bf16.gmra.mrb[60].mxu0 %v2481_v30 }
  0xa1   : > { %1331 = vmatmul.mubr.bf16.gmra.mrb[60].mxu1 %v2482_v31 }
  0xfb   : > { %v2123_v32 = vpop.f32.mrb[0].mxu0 }
  0xfc   : > { %v2235_v33 = vpop.f32.mrb[0].mxu1  ;;  %v2124_v34 = vpop.f32.mrb[1].mxu0 }
  0xfd   : > { %v2125_v35 = vadd.f32 %v2124_v34, %v2123_v32  ;;  %v2236_v36 = vpop.f32.mrb[1].mxu1  ;;  %v2126_v37 = vpop.f32.mrb[2].mxu0 }
  0xfe   : > { %v2237_v38 = vadd.f32 %v2236_v36, %v2235_v33  ;;  %v2238_v39 = vpop.f32.mrb[2].mxu1  ;;  %v2127_v40 = vpop.f32.mrb[3].mxu0 }
  0xff   : > { %v2128_v42 = vadd.f32 %v2127_v40, %v2126_v37  ;;  %v2239_v43 = vpop.f32.mrb[3].mxu1 }
 0x100   : > { %v1213_v44 = vadd.f32 %v2237_v38, %v2125_v35  ;;  %v2240_v45 = vadd.f32 %v2239_v43, %v2238_v39 }
 0x102   : > { %v1445_v47 = vmul.f32 %v2724_v41, %v1213_v44  ;;  %v1216_v48 = vadd.f32 %v2240_v45, %v2128_v42 }
 0x103   : > { %v2129_v49 = vpop.f32.mrb[4].mxu0 }
 0x104   : > { %v1484_v50 = vadd.f32 %v2729_v46, %v1445_v47  ;;  %v1446_v51 = vmul.f32 %v2724_v41, %v1216_v48  ;;  %v2241_v52 = vpop.f32.mrb[4].mxu1  ;;  %v2130_v53 = vpop.f32.mrb[5].mxu0 }
 0x105   : > { %v2131_v54 = vadd.f32 %v2130_v53, %v2129_v49  ;;  %v2242_v55 = vpop.f32.mrb[5].mxu1  ;;  %v2132_v56 = vpop.f32.mrb[6].mxu0 }
 0x106   : > { %v1485_v57 = vadd.f32 %v2729_v46, %v1446_v51  ;;  %v2243_v58 = vadd.f32 %v2242_v55, %v2241_v52  ;;  %v2244_v59 = vpop.f32.mrb[6].mxu1  ;;  %v2133_v60 = vpop.f32.mrb[7].mxu0  ;;  %v1516_v63 = vmax.f32 %v1484_v50, 0.0 }
 0x107   : > { %v2134_v61 = vadd.f32 %v2133_v60, %v2132_v56  ;;  %v2245_v62 = vpop.f32.mrb[7].mxu1 }
 0x108   : > { %v1517_v0 = vmax.f32 %v1485_v57, 0.0  ;;  %v1221_v1 = vadd.f32 %v2243_v58, %v2131_v54  ;;  %v2246_v2 = vadd.f32 %v2245_v62, %v2244_v59 }
 0x10a   : > { %v2015_v3 = vpack.c.bf16 %v1517_v0, %v1516_v63  ;;  %v1447_v4 = vmul.f32 %v2724_v41, %v1221_v1  ;;  %v1224_v5 = vadd.f32 %v2246_v2, %v2134_v61 }
 0x10b   : > { %v2135_v6 = vpop.f32.mrb[8].mxu0 }
 0x10c   : > { %2016 = vst [vmem:[%s2739_s28] sm:$0xff] %v2015_v3   ;;  %v1486_v7 = vadd.f32 %v2729_v46, %v1447_v4  ;;  %v1448_v8 = vmul.f32 %v2724_v41, %v1224_v5  ;;  %v2247_v9 = vpop.f32.mrb[8].mxu1  ;;  %v2136_v10 = vpop.f32.mrb[9].mxu0 }
 0x10d   : > { %v2137_v11 = vadd.f32 %v2136_v10, %v2135_v6  ;;  %v2248_v12 = vpop.f32.mrb[9].mxu1  ;;  %v2138_v13 = vpop.f32.mrb[10].mxu0 }
 0x10e   : > { %v1487_v14 = vadd.f32 %v2729_v46, %v1448_v8  ;;  %v2249_v15 = vadd.f32 %v2248_v12, %v2247_v9  ;;  %v2250_v16 = vpop.f32.mrb[10].mxu1  ;;  %v2139_v17 = vpop.f32.mrb[11].mxu0  ;;  %v1518_v20 = vmax.f32 %v1486_v7, 0.0 }
 0x10f   : > { %v2140_v18 = vadd.f32 %v2139_v17, %v2138_v13  ;;  %v2251_v19 = vpop.f32.mrb[11].mxu1 }
 0x110   : > { %v1519_v21 = vmax.f32 %v1487_v14, 0.0  ;;  %v1229_v22 = vadd.f32 %v2249_v15, %v2137_v11  ;;  %v2252_v23 = vadd.f32 %v2251_v19, %v2250_v16 }
 0x112   : > { %v2020_v24 = vpack.c.bf16 %v1519_v21, %v1518_v20  ;;  %v1449_v25 = vmul.f32 %v2724_v41, %v1229_v22  ;;  %v1232_v26 = vadd.f32 %v2252_v23, %v2140_v18 }
 0x113   : > { %v2141_v27 = vpop.f32.mrb[12].mxu0 }
 0x114   : > { %2092 = vst [vmem:[%s2739_s28 + $0x8] sm:$0xff] %v2020_v24   ;;  %v1488_v28 = vadd.f32 %v2729_v46, %v1449_v25  ;;  %v1450_v29 = vmul.f32 %v2724_v41, %v1232_v26  ;;  %v2253_v30 = vpop.f32.mrb[12].mxu1  ;;  %v2142_v31 = vpop.f32.mrb[13].mxu0 }
 0x115   : > { %v2143_v32 = vadd.f32 %v2142_v31, %v2141_v27  ;;  %v2254_v33 = vpop.f32.mrb[13].mxu1  ;;  %v2144_v34 = vpop.f32.mrb[14].mxu0 }
 0x116   : > { %v1489_v35 = vadd.f32 %v2729_v46, %v1450_v29  ;;  %v2255_v36 = vadd.f32 %v2254_v33, %v2253_v30  ;;  %v2256_v37 = vpop.f32.mrb[14].mxu1  ;;  %v2145_v38 = vpop.f32.mrb[15].mxu0  ;;  %v1520_v42 = vmax.f32 %v1488_v28, 0.0 }
 0x117   : > { %v2146_v39 = vadd.f32 %v2145_v38, %v2144_v34  ;;  %v2257_v40 = vpop.f32.mrb[15].mxu1 }
 0x118   : > { %v1521_v43 = vmax.f32 %v1489_v35, 0.0  ;;  %v1237_v44 = vadd.f32 %v2255_v36, %v2143_v32  ;;  %v2258_v45 = vadd.f32 %v2257_v40, %v2256_v37 }
 0x11a   : > { %v2025_v47 = vpack.c.bf16 %v1521_v43, %v1520_v42  ;;  %v1451_v48 = vmul.f32 %v2724_v41, %v1237_v44  ;;  %v1240_v49 = vadd.f32 %v2258_v45, %v2146_v39 }
 0x11b   : > { %v2147_v50 = vpop.f32.mrb[16].mxu0 }
 0x11c   : > { %2093 = vst [vmem:[%s2739_s28 + $0x10] sm:$0xff] %v2025_v47   ;;  %v1490_v51 = vadd.f32 %v2729_v46, %v1451_v48  ;;  %v1452_v52 = vmul.f32 %v2724_v41, %v1240_v49  ;;  %v2259_v53 = vpop.f32.mrb[16].mxu1  ;;  %v2148_v54 = vpop.f32.mrb[17].mxu0 }
 0x11d   : > { %v2149_v55 = vadd.f32 %v2148_v54, %v2147_v50  ;;  %v2260_v56 = vpop.f32.mrb[17].mxu1  ;;  %v2150_v57 = vpop.f32.mrb[18].mxu0 }
 0x11e   : > { %v1491_v58 = vadd.f32 %v2729_v46, %v1452_v52  ;;  %v2261_v59 = vadd.f32 %v2260_v56, %v2259_v53  ;;  %v2262_v60 = vpop.f32.mrb[18].mxu1  ;;  %v2151_v61 = vpop.f32.mrb[19].mxu0  ;;  %v1522_v0 = vmax.f32 %v1490_v51, 0.0 }
 0x11f   : > { %v2152_v62 = vadd.f32 %v2151_v61, %v2150_v57  ;;  %v2263_v63 = vpop.f32.mrb[19].mxu1 }
 0x120   : > { %v1523_v1 = vmax.f32 %v1491_v58, 0.0  ;;  %v1245_v2 = vadd.f32 %v2261_v59, %v2149_v55  ;;  %v2264_v3 = vadd.f32 %v2263_v63, %v2262_v60 }
 0x122   : > { %v2030_v4 = vpack.c.bf16 %v1523_v1, %v1522_v0  ;;  %v1453_v5 = vmul.f32 %v2724_v41, %v1245_v2  ;;  %v1248_v6 = vadd.f32 %v2264_v3, %v2152_v62 }
 0x123   : > { %v2153_v7 = vpop.f32.mrb[20].mxu0 }
 0x124   : > { %2094 = vst [vmem:[%s2739_s28 + $0x18] sm:$0xff] %v2030_v4   ;;  %v1492_v8 = vadd.f32 %v2729_v46, %v1453_v5  ;;  %v1454_v9 = vmul.f32 %v2724_v41, %v1248_v6  ;;  %v2265_v10 = vpop.f32.mrb[20].mxu1  ;;  %v2154_v11 = vpop.f32.mrb[21].mxu0 }
 0x125   : > { %v2155_v12 = vadd.f32 %v2154_v11, %v2153_v7  ;;  %v2266_v13 = vpop.f32.mrb[21].mxu1  ;;  %v2156_v14 = vpop.f32.mrb[22].mxu0 }
 0x126   : > { %v1493_v15 = vadd.f32 %v2729_v46, %v1454_v9  ;;  %v2267_v16 = vadd.f32 %v2266_v13, %v2265_v10  ;;  %v2268_v17 = vpop.f32.mrb[22].mxu1  ;;  %v2157_v18 = vpop.f32.mrb[23].mxu0  ;;  %v1524_v21 = vmax.f32 %v1492_v8, 0.0 }
 0x127   : > { %v2158_v19 = vadd.f32 %v2157_v18, %v2156_v14  ;;  %v2269_v20 = vpop.f32.mrb[23].mxu1 }
 0x128   : > { %v1525_v22 = vmax.f32 %v1493_v15, 0.0  ;;  %v1253_v23 = vadd.f32 %v2267_v16, %v2155_v12  ;;  %v2270_v24 = vadd.f32 %v2269_v20, %v2268_v17 }
 0x12a   : > { %v2035_v25 = vpack.c.bf16 %v1525_v22, %v1524_v21  ;;  %v1455_v26 = vmul.f32 %v2724_v41, %v1253_v23  ;;  %v1256_v27 = vadd.f32 %v2270_v24, %v2158_v19 }
 0x12b   : > { %v2159_v28 = vpop.f32.mrb[24].mxu0 }
 0x12c   : > { %2095 = vst [vmem:[%s2739_s28 + $0x20] sm:$0xff] %v2035_v25   ;;  %v1494_v29 = vadd.f32 %v2729_v46, %v1455_v26  ;;  %v1456_v30 = vmul.f32 %v2724_v41, %v1256_v27  ;;  %v2271_v31 = vpop.f32.mrb[24].mxu1  ;;  %v2160_v32 = vpop.f32.mrb[25].mxu0 }
 0x12d   : > { %v2161_v33 = vadd.f32 %v2160_v32, %v2159_v28  ;;  %v2272_v34 = vpop.f32.mrb[25].mxu1  ;;  %v2162_v35 = vpop.f32.mrb[26].mxu0 }
 0x12e   : > { %v1495_v36 = vadd.f32 %v2729_v46, %v1456_v30  ;;  %v2273_v37 = vadd.f32 %v2272_v34, %v2271_v31  ;;  %v2274_v38 = vpop.f32.mrb[26].mxu1  ;;  %v2163_v39 = vpop.f32.mrb[27].mxu0  ;;  %v1526_v43 = vmax.f32 %v1494_v29, 0.0 }
 0x12f   : > { %v2164_v40 = vadd.f32 %v2163_v39, %v2162_v35  ;;  %v2275_v42 = vpop.f32.mrb[27].mxu1 }
 0x130   : > { %v1527_v44 = vmax.f32 %v1495_v36, 0.0  ;;  %v1261_v45 = vadd.f32 %v2273_v37, %v2161_v33  ;;  %v2276_v47 = vadd.f32 %v2275_v42, %v2274_v38 }
 0x132   : > { %v2040_v48 = vpack.c.bf16 %v1527_v44, %v1526_v43  ;;  %v1457_v49 = vmul.f32 %v2724_v41, %v1261_v45  ;;  %v1264_v50 = vadd.f32 %v2276_v47, %v2164_v40 }
 0x133   : > { %v2165_v51 = vpop.f32.mrb[28].mxu0 }
 0x134   : > { %2096 = vst [vmem:[%s2739_s28 + $0x28] sm:$0xff] %v2040_v48   ;;  %v1496_v52 = vadd.f32 %v2729_v46, %v1457_v49  ;;  %v1458_v53 = vmul.f32 %v2724_v41, %v1264_v50  ;;  %v2277_v54 = vpop.f32.mrb[28].mxu1  ;;  %v2166_v55 = vpop.f32.mrb[29].mxu0 }
 0x135   : > { %v2167_v56 = vadd.f32 %v2166_v55, %v2165_v51  ;;  %v2278_v57 = vpop.f32.mrb[29].mxu1  ;;  %v2168_v58 = vpop.f32.mrb[30].mxu0 }
 0x136   : > { %v1497_v59 = vadd.f32 %v2729_v46, %v1458_v53  ;;  %v2279_v60 = vadd.f32 %v2278_v57, %v2277_v54  ;;  %v2280_v61 = vpop.f32.mrb[30].mxu1  ;;  %v2169_v62 = vpop.f32.mrb[31].mxu0  ;;  %v1528_v1 = vmax.f32 %v1496_v52, 0.0 }
 0x137   : > { %v2170_v63 = vadd.f32 %v2169_v62, %v2168_v58  ;;  %v2281_v0 = vpop.f32.mrb[31].mxu1 }
 0x138   : > { %v1529_v2 = vmax.f32 %v1497_v59, 0.0  ;;  %v1269_v3 = vadd.f32 %v2279_v60, %v2167_v56  ;;  %v2282_v4 = vadd.f32 %v2281_v0, %v2280_v61 }
 0x13a   : > { %v2045_v5 = vpack.c.bf16 %v1529_v2, %v1528_v1  ;;  %v1459_v6 = vmul.f32 %v2724_v41, %v1269_v3  ;;  %v1272_v7 = vadd.f32 %v2282_v4, %v2170_v63 }
 0x13b   : > { %v2171_v8 = vpop.f32.mrb[32].mxu0 }
 0x13c   : > { %2097 = vst [vmem:[%s2739_s28 + $0x30] sm:$0xff] %v2045_v5   ;;  %v1498_v9 = vadd.f32 %v2729_v46, %v1459_v6  ;;  %v1460_v10 = vmul.f32 %v2724_v41, %v1272_v7  ;;  %v2283_v11 = vpop.f32.mrb[32].mxu1  ;;  %v2172_v12 = vpop.f32.mrb[33].mxu0 }
 0x13d   : > { %v2173_v13 = vadd.f32 %v2172_v12, %v2171_v8  ;;  %v2284_v14 = vpop.f32.mrb[33].mxu1  ;;  %v2174_v15 = vpop.f32.mrb[34].mxu0 }
 0x13e   : > { %v1499_v16 = vadd.f32 %v2729_v46, %v1460_v10  ;;  %v2285_v17 = vadd.f32 %v2284_v14, %v2283_v11  ;;  %v2286_v18 = vpop.f32.mrb[34].mxu1  ;;  %v2175_v19 = vpop.f32.mrb[35].mxu0  ;;  %v1530_v22 = vmax.f32 %v1498_v9, 0.0 }
 0x13f   : > { %v2176_v20 = vadd.f32 %v2175_v19, %v2174_v15  ;;  %v2287_v21 = vpop.f32.mrb[35].mxu1 }
 0x140   : > { %v1531_v23 = vmax.f32 %v1499_v16, 0.0  ;;  %v1277_v24 = vadd.f32 %v2285_v17, %v2173_v13  ;;  %v2288_v25 = vadd.f32 %v2287_v21, %v2286_v18 }
 0x142   : > { %v2050_v26 = vpack.c.bf16 %v1531_v23, %v1530_v22  ;;  %v1461_v27 = vmul.f32 %v2724_v41, %v1277_v24  ;;  %v1280_v28 = vadd.f32 %v2288_v25, %v2176_v20 }
 0x143   : > { %v2177_v29 = vpop.f32.mrb[36].mxu0 }
 0x144   : > { %2098 = vst [vmem:[%s2739_s28 + $0x38] sm:$0xff] %v2050_v26   ;;  %v1500_v30 = vadd.f32 %v2729_v46, %v1461_v27  ;;  %v1462_v31 = vmul.f32 %v2724_v41, %v1280_v28  ;;  %v2289_v32 = vpop.f32.mrb[36].mxu1  ;;  %v2178_v33 = vpop.f32.mrb[37].mxu0 }
 0x145   : > { %v2179_v34 = vadd.f32 %v2178_v33, %v2177_v29  ;;  %v2290_v35 = vpop.f32.mrb[37].mxu1  ;;  %v2180_v36 = vpop.f32.mrb[38].mxu0 }
 0x146   : > { %v1501_v37 = vadd.f32 %v2729_v46, %v1462_v31  ;;  %v2291_v38 = vadd.f32 %v2290_v35, %v2289_v32  ;;  %v2292_v39 = vpop.f32.mrb[38].mxu1  ;;  %v2181_v40 = vpop.f32.mrb[39].mxu0  ;;  %v1532_v44 = vmax.f32 %v1500_v30, 0.0 }
 0x147   : > { %v2182_v42 = vadd.f32 %v2181_v40, %v2180_v36  ;;  %v2293_v43 = vpop.f32.mrb[39].mxu1 }
 0x148   : > { %v1533_v45 = vmax.f32 %v1501_v37, 0.0  ;;  %v1285_v47 = vadd.f32 %v2291_v38, %v2179_v34  ;;  %v2294_v48 = vadd.f32 %v2293_v43, %v2292_v39 }
 0x14a   : > { %v2055_v49 = vpack.c.bf16 %v1533_v45, %v1532_v44  ;;  %v1463_v50 = vmul.f32 %v2724_v41, %v1285_v47  ;;  %v1288_v51 = vadd.f32 %v2294_v48, %v2182_v42 }
 0x14b   : > { %v2183_v52 = vpop.f32.mrb[40].mxu0 }
 0x14c   : > { %2099 = vst [vmem:[%s2739_s28 + $0x40] sm:$0xff] %v2055_v49   ;;  %v1502_v53 = vadd.f32 %v2729_v46, %v1463_v50  ;;  %v1464_v54 = vmul.f32 %v2724_v41, %v1288_v51  ;;  %v2295_v55 = vpop.f32.mrb[40].mxu1  ;;  %v2184_v56 = vpop.f32.mrb[41].mxu0 }
 0x14d   : > { %v2185_v57 = vadd.f32 %v2184_v56, %v2183_v52  ;;  %v2296_v58 = vpop.f32.mrb[41].mxu1  ;;  %v2186_v59 = vpop.f32.mrb[42].mxu0 }
 0x14e   : > { %v1503_v60 = vadd.f32 %v2729_v46, %v1464_v54  ;;  %v2297_v61 = vadd.f32 %v2296_v58, %v2295_v55  ;;  %v2298_v62 = vpop.f32.mrb[42].mxu1  ;;  %v2187_v63 = vpop.f32.mrb[43].mxu0  ;;  %v1534_v2 = vmax.f32 %v1502_v53, 0.0 }
 0x14f   : > { %v2188_v0 = vadd.f32 %v2187_v63, %v2186_v59  ;;  %v2299_v1 = vpop.f32.mrb[43].mxu1 }
 0x150   : > { %v1535_v3 = vmax.f32 %v1503_v60, 0.0  ;;  %v1293_v4 = vadd.f32 %v2297_v61, %v2185_v57  ;;  %v2300_v5 = vadd.f32 %v2299_v1, %v2298_v62 }
 0x152   : > { %v2060_v6 = vpack.c.bf16 %v1535_v3, %v1534_v2  ;;  %v1465_v7 = vmul.f32 %v2724_v41, %v1293_v4  ;;  %v1296_v8 = vadd.f32 %v2300_v5, %v2188_v0 }
 0x153   : > { %v2189_v9 = vpop.f32.mrb[44].mxu0 }
 0x154   : > { %2100 = vst [vmem:[%s2739_s28 + $0x48] sm:$0xff] %v2060_v6   ;;  %v1504_v10 = vadd.f32 %v2729_v46, %v1465_v7  ;;  %v1466_v11 = vmul.f32 %v2724_v41, %v1296_v8  ;;  %v2301_v12 = vpop.f32.mrb[44].mxu1  ;;  %v2190_v13 = vpop.f32.mrb[45].mxu0 }
 0x155   : > { %v2191_v14 = vadd.f32 %v2190_v13, %v2189_v9  ;;  %v2302_v15 = vpop.f32.mrb[45].mxu1  ;;  %v2192_v16 = vpop.f32.mrb[46].mxu0 }
 0x156   : > { %v1505_v17 = vadd.f32 %v2729_v46, %v1466_v11  ;;  %v2303_v18 = vadd.f32 %v2302_v15, %v2301_v12  ;;  %v2304_v19 = vpop.f32.mrb[46].mxu1  ;;  %v2193_v20 = vpop.f32.mrb[47].mxu0  ;;  %v1536_v23 = vmax.f32 %v1504_v10, 0.0 }
 0x157   : > { %v2194_v21 = vadd.f32 %v2193_v20, %v2192_v16  ;;  %v2305_v22 = vpop.f32.mrb[47].mxu1 }
 0x158   : > { %v1537_v24 = vmax.f32 %v1505_v17, 0.0  ;;  %v1301_v25 = vadd.f32 %v2303_v18, %v2191_v14  ;;  %v2306_v26 = vadd.f32 %v2305_v22, %v2304_v19 }
 0x15a   : > { %v2065_v27 = vpack.c.bf16 %v1537_v24, %v1536_v23  ;;  %v1467_v28 = vmul.f32 %v2724_v41, %v1301_v25  ;;  %v1304_v29 = vadd.f32 %v2306_v26, %v2194_v21 }
 0x15b   : > { %v2195_v30 = vpop.f32.mrb[48].mxu0 }
 0x15c   : > { %2101 = vst [vmem:[%s2739_s28 + $0x50] sm:$0xff] %v2065_v27   ;;  %v1506_v31 = vadd.f32 %v2729_v46, %v1467_v28  ;;  %v1468_v32 = vmul.f32 %v2724_v41, %v1304_v29  ;;  %v2307_v33 = vpop.f32.mrb[48].mxu1  ;;  %v2196_v34 = vpop.f32.mrb[49].mxu0 }
 0x15d   : > { %v2197_v35 = vadd.f32 %v2196_v34, %v2195_v30  ;;  %v2308_v36 = vpop.f32.mrb[49].mxu1  ;;  %v2198_v37 = vpop.f32.mrb[50].mxu0 }
 0x15e   : > { %v1507_v38 = vadd.f32 %v2729_v46, %v1468_v32  ;;  %v2309_v39 = vadd.f32 %v2308_v36, %v2307_v33  ;;  %v2310_v40 = vpop.f32.mrb[50].mxu1  ;;  %v2199_v42 = vpop.f32.mrb[51].mxu0  ;;  %v1538_v45 = vmax.f32 %v1506_v31, 0.0 }
 0x15f   : > { %v2200_v43 = vadd.f32 %v2199_v42, %v2198_v37  ;;  %v2311_v44 = vpop.f32.mrb[51].mxu1 }
 0x160   : > { %v1539_v47 = vmax.f32 %v1507_v38, 0.0  ;;  %v1309_v48 = vadd.f32 %v2309_v39, %v2197_v35  ;;  %v2312_v49 = vadd.f32 %v2311_v44, %v2310_v40 }
 0x162   : > { %v2070_v50 = vpack.c.bf16 %v1539_v47, %v1538_v45  ;;  %v1469_v51 = vmul.f32 %v2724_v41, %v1309_v48  ;;  %v1312_v52 = vadd.f32 %v2312_v49, %v2200_v43 }
 0x163   : > { %v2201_v53 = vpop.f32.mrb[52].mxu0 }
 0x164   : > { %2102 = vst [vmem:[%s2739_s28 + $0x58] sm:$0xff] %v2070_v50   ;;  %v1508_v54 = vadd.f32 %v2729_v46, %v1469_v51  ;;  %v1470_v55 = vmul.f32 %v2724_v41, %v1312_v52  ;;  %v2313_v56 = vpop.f32.mrb[52].mxu1  ;;  %v2202_v57 = vpop.f32.mrb[53].mxu0 }
 0x165   : > { %v2203_v58 = vadd.f32 %v2202_v57, %v2201_v53  ;;  %v2314_v59 = vpop.f32.mrb[53].mxu1  ;;  %v2204_v60 = vpop.f32.mrb[54].mxu0 }
 0x166   : > { %v1509_v61 = vadd.f32 %v2729_v46, %v1470_v55  ;;  %v2315_v62 = vadd.f32 %v2314_v59, %v2313_v56  ;;  %v2316_v63 = vpop.f32.mrb[54].mxu1  ;;  %v2205_v0 = vpop.f32.mrb[55].mxu0  ;;  %v1540_v3 = vmax.f32 %v1508_v54, 0.0 }
 0x167   : > { %v2206_v1 = vadd.f32 %v2205_v0, %v2204_v60  ;;  %v2317_v2 = vpop.f32.mrb[55].mxu1 }
 0x168   : > { %v1541_v4 = vmax.f32 %v1509_v61, 0.0  ;;  %v1317_v5 = vadd.f32 %v2315_v62, %v2203_v58  ;;  %v2318_v6 = vadd.f32 %v2317_v2, %v2316_v63 }
 0x16a   : > { %v2075_v7 = vpack.c.bf16 %v1541_v4, %v1540_v3  ;;  %v1471_v8 = vmul.f32 %v2724_v41, %v1317_v5  ;;  %v1320_v9 = vadd.f32 %v2318_v6, %v2206_v1 }
 0x16b   : > { %v2207_v10 = vpop.f32.mrb[56].mxu0 }
 0x16c   : > { %2103 = vst [vmem:[%s2739_s28 + $0x60] sm:$0xff] %v2075_v7   ;;  %v1510_v11 = vadd.f32 %v2729_v46, %v1471_v8  ;;  %v1472_v12 = vmul.f32 %v2724_v41, %v1320_v9  ;;  %v2319_v13 = vpop.f32.mrb[56].mxu1  ;;  %v2208_v14 = vpop.f32.mrb[57].mxu0 }
 0x16d   : > { %v2209_v15 = vadd.f32 %v2208_v14, %v2207_v10  ;;  %v2320_v16 = vpop.f32.mrb[57].mxu1  ;;  %v2210_v17 = vpop.f32.mrb[58].mxu0 }
 0x16e   : > { %v1511_v18 = vadd.f32 %v2729_v46, %v1472_v12  ;;  %v2321_v19 = vadd.f32 %v2320_v16, %v2319_v13  ;;  %v2322_v20 = vpop.f32.mrb[58].mxu1  ;;  %v2211_v21 = vpop.f32.mrb[59].mxu0  ;;  %v1542_v24 = vmax.f32 %v1510_v11, 0.0 }
 0x16f   : > { %v2212_v22 = vadd.f32 %v2211_v21, %v2210_v17  ;;  %v2323_v23 = vpop.f32.mrb[59].mxu1 }
 0x170   : > { %v1543_v25 = vmax.f32 %v1511_v18, 0.0  ;;  %v1325_v26 = vadd.f32 %v2321_v19, %v2209_v15  ;;  %v2324_v27 = vadd.f32 %v2323_v23, %v2322_v20 }
 0x172   : > { %v2080_v28 = vpack.c.bf16 %v1543_v25, %v1542_v24  ;;  %v1473_v29 = vmul.f32 %v2724_v41, %v1325_v26  ;;  %v1328_v30 = vadd.f32 %v2324_v27, %v2212_v22 }
 0x173   : > { %v2213_v31 = vpop.f32.mrb[60].mxu0 }
 0x174   : > { %2104 = vst [vmem:[%s2739_s28 + $0x68] sm:$0xff] %v2080_v28   ;;  %v1512_v32 = vadd.f32 %v2729_v46, %v1473_v29  ;;  %v1474_v33 = vmul.f32 %v2724_v41, %v1328_v30  ;;  %v2325_v34 = vpop.f32.mrb[60].mxu1  ;;  %v2214_v35 = vpop.f32.mrb[61].mxu0 }
 0x175   : > { %v2215_v36 = vadd.f32 %v2214_v35, %v2213_v31  ;;  %v2326_v37 = vpop.f32.mrb[61].mxu1  ;;  %v2216_v38 = vpop.f32.mrb[62].mxu0 }
 0x176   : > { %v1513_v39 = vadd.f32 %v2729_v46, %v1474_v33  ;;  %v2327_v40 = vadd.f32 %v2326_v37, %v2325_v34  ;;  %v2328_v42 = vpop.f32.mrb[62].mxu1  ;;  %v2217_v43 = vpop.f32.mrb[63].mxu0  ;;  %v1544_v47 = vmax.f32 %v1512_v32, 0.0 }
 0x177   : > { %v2218_v44 = vadd.f32 %v2217_v43, %v2216_v38  ;;  %v2329_v45 = vpop.f32.mrb[63].mxu1 }
 0x178   : > { %v1545_v48 = vmax.f32 %v1513_v39, 0.0  ;;  %v1333_v49 = vadd.f32 %v2327_v40, %v2215_v36  ;;  %v2330_v50 = vadd.f32 %v2329_v45, %v2328_v42 }
 0x17a   : > { %v2085_v51 = vpack.c.bf16 %v1545_v48, %v1544_v47  ;;  %v1475_v52 = vmul.f32 %v2724_v41, %v1333_v49  ;;  %v1336_v53 = vadd.f32 %v2330_v50, %v2218_v44 }
 0x17c   : > { %2105 = vst [vmem:[%s2739_s28 + $0x70] sm:$0xff] %v2085_v51   ;;  %v1514_v54 = vadd.f32 %v2729_v46, %v1475_v52  ;;  %v1476_v55 = vmul.f32 %v2724_v41, %v1336_v53 }
 0x17e   : > { %v1515_v56 = vadd.f32 %v2729_v46, %v1476_v55  ;;  %v1546_v57 = vmax.f32 %v1514_v54, 0.0 }
 0x180   : > { %v1547_v58 = vmax.f32 %v1515_v56, 0.0 }
 0x182   : > { %v2090_v59 = vpack.c.bf16 %v1547_v58, %v1546_v57 }
 0x184   : > { %2106 = vst [vmem:[%s2739_s28 + $0x78] sm:$0xff] %v2090_v59  }
 0x185 PF: > { %s14_s17 = sadd.s32 1, %s2505_s17   ;;  %s2831_s15 = smov %s2501_s16 }
 0x186   : > { %p11_p5 = scmp.ge.s32.totalorder %s14_s17, 4   ;;  %s2832_s16 = smov %s2834_s18 }
 0x188   :  { %13 = sbr.rel (!%p11_p5) target bundleno = 2 (0x2), region = 83 }

// kernel: resnet_forward.12
= control target key start
LH: loop header
LB: loop body
LE: loop exit
PB: predicated region body
PF: predicated region fallthrough
CT: control target
= control target key end

     0   :  { %s3251_s15 = smov 0   ;;  %s3253_s16 = smov 0   ;;  %s3958_s0 = inlined_call_operand.vmem [shape: bf16[512,128], index: 0, kind: input, shape index: {}]   ;;  %s3959_s1 = inlined_call_operand.vmem [shape: bf16[128,512], index: 1, kind: input, shape index: {}]   ;;  %s3960_s2 = inlined_call_operand.vmem [shape: f32[1,512], index: 2, kind: input, shape index: {}]   ;;  %s3961_s3 = inlined_call_operand.vmem [shape: f32[1,512], index: 3, kind: input, shape index: {}]   ;;  %s3962_s4 = inlined_call_operand.vmem [shape: bf16[512,512], index: 4, kind: output, shape index: {}]  }
   0x1   :  { %s3255_s17 = smov 0   ;;  %s3257_s18 = smov 0  }
   0x2   :  { %s3259_s19 = smov 0  }
   0x3 LB: > { %s29_s20 = sadd.s32 1, %s3219_s18  ;;  %s2876_s21 = sadd.s32 4294967295, %s3223_s19   ;;  %s3223_s19 = sphi %s3259_s19, %s14_s19   ;;  %s3219_s18 = sphi %s3257_s18, %s3967_s18   ;;  %s3215_s17 = sphi %s3255_s17, %s3966_s17   ;;  %s3211_s16 = sphi %s3253_s16, %s3965_s16   ;;  %s3207_s15 = sphi %s3251_s15, %s3964_s15  }
   0x4   : > { %p31_p0 = scmp.ge.s32.totalorder %s29_s20, 2  ;;  %p77_p1 = scmp.ne.s32.totalorder %s3211_s16, %s3207_s15 }
   0x5   : > { %p78_p2 = scmp.eq.s32.totalorder %s3223_s19, 0  ;;  %p161_p4 = scmp.eq.s32.totalorder %s2876_s21, 1 }
   0x6   : > { %s3969_s20 = smov (%p31_p0, %s29_s20), 0  ;;  %s70_s23 = sadd.s32 1, %s3211_s16 }
   0x7   : > { %p79_p3 = por %p78_p2, %p77_p1  ;;  %s66_s22 = ssub.s32 %s3219_s18, %s3969_s20 }
   0x8   : > { %p68_p5 = scmp.eq.s32.totalorder %s66_s22, 0  ;;  %p3286_p6 = por %p161_p4, %p77_p1 }
   0x9   : > { %p2880_p7 = scmp.ge.s32.totalorder %s3223_s19, 2 }
   0xa   : > { %s3291_s25 = scalar_select %p68_p5, %s3211_s16, %s70_s23  }
   0xb   : > { %195 = sbr.rel (%p2880_p7) target bundleno = 30 (0x1e), region = 20 }
  0x12   : > { %198 = sbr.rel (!%p79_p3) target bundleno = 30 (0x1e), region = 24  ;;  %s200_s26 = sand.u32 (%p79_p3), 1, %s3211_s16  }
  0x13   : > { %s3006_s27 = sshll.u32 (%p79_p3), %s3219_s18, 3  ;;  %s2881_s28 = sshll.u32 (%p79_p3), %s200_s26, 7 }
  0x14   : > { %s3299_s5 = scalar_lea.vmem (%p79_p3), %s3959_s1, %s3006_s27  ;;  %s202_s6 = scalar_lea.vmem (%p79_p3), [#allocation3], %s2881_s28 }
  0x15   : > { %v266_v0 = vld [vmem:[%s3299_s5] sm:$0xff] (%p79_p3)  ;;  %v268_v1 = vld [vmem:[%s3299_s5 + $0x10] sm:$0xff] (%p79_p3) }
  0x16   : > { %v270_v2 = vld [vmem:[%s3299_s5 + $0x20] sm:$0xff] (%p79_p3)  ;;  %267 = vst [vmem:[%s202_s6] sm:$0xff] (%p79_p3), %v266_v0  ;;  %269 = vst [vmem:[%s202_s6 + $0x8] sm:$0xff] (%p79_p3), %v268_v1  ;;  %v272_v3 = vld [vmem:[%s3299_s5 + $0x30] sm:$0xff] (%p79_p3) }
  0x17   : > { %271 = vst [vmem:[%s202_s6 + $0x10] sm:$0xff] (%p79_p3), %v270_v2  ;;  %v274_v4 = vld [vmem:[%s3299_s5 + $0x40] sm:$0xff] (%p79_p3)  ;;  %v276_v5 = vld [vmem:[%s3299_s5 + $0x50] sm:$0xff] (%p79_p3)  ;;  %273 = vst [vmem:[%s202_s6 + $0x18] sm:$0xff] (%p79_p3), %v272_v3 }
  0x18   : > { %275 = vst [vmem:[%s202_s6 + $0x20] sm:$0xff] (%p79_p3), %v274_v4  ;;  %277 = vst [vmem:[%s202_s6 + $0x28] sm:$0xff] (%p79_p3), %v276_v5  ;;  %v278_v6 = vld [vmem:[%s3299_s5 + $0x60] sm:$0xff] (%p79_p3)  ;;  %v280_v7 = vld [vmem:[%s3299_s5 + $0x70] sm:$0xff] (%p79_p3) }
  0x19   : > { %v282_v8 = vld [vmem:[%s3299_s5 + $0x80] sm:$0xff]  ;;  %279 = vst [vmem:[%s202_s6 + $0x30] sm:$0xff] %v278_v6  ;;  %281 = vst [vmem:[%s202_s6 + $0x38] sm:$0xff] %v280_v7  ;;  %v284_v9 = vld [vmem:[%s3299_s5 + $0x90] sm:$0xff] }
  0x1a   : > { %283 = vst [vmem:[%s202_s6 + $0x40] sm:$0xff] %v282_v8  ;;  %v286_v10 = vld [vmem:[%s3299_s5 + $0xa0] sm:$0xff]  ;;  %v288_v11 = vld [vmem:[%s3299_s5 + $0xb0] sm:$0xff]  ;;  %285 = vst [vmem:[%s202_s6 + $0x48] sm:$0xff] %v284_v9 }
  0x1b   : > { %287 = vst [vmem:[%s202_s6 + $0x50] sm:$0xff] %v286_v10  ;;  %289 = vst [vmem:[%s202_s6 + $0x58] sm:$0xff] %v288_v11  ;;  %v290_v12 = vld [vmem:[%s3299_s5 + $0xc0] sm:$0xff]  ;;  %v292_v13 = vld [vmem:[%s3299_s5 + $0xd0] sm:$0xff] }
  0x1c   : > { %v294_v14 = vld [vmem:[%s3299_s5 + $0xe0] sm:$0xff]  ;;  %291 = vst [vmem:[%s202_s6 + $0x60] sm:$0xff] %v290_v12  ;;  %293 = vst [vmem:[%s202_s6 + $0x68] sm:$0xff] %v292_v13  ;;  %v296_v15 = vld [vmem:[%s3299_s5 + $0xf0] sm:$0xff] }
  0x1d   : > { %295 = vst [vmem:[%s202_s6 + $0x70] sm:$0xff] %v294_v14  ;;  %297 = vst [vmem:[%s202_s6 + $0x78] sm:$0xff] %v296_v15 }
  0x1e PF: > { %p2884_p8 = scmp.ge.s32.totalorder %s3223_s19, 1  ;;  %p318_p9 = scmp.lt.s32.totalorder %s3223_s19, 3 }
  0x20   : > { %p319_p10 = pnand %p2884_p8, %p318_p9 }
  0x21   : > { %s325_s7 = sand.u32 (!%p319_p10), 1, %s3207_s15   ;;  %v3225_v16 = vmov (!%p319_p10), 0   ;;  %v3153_v33 = vld [vmem:[%s3958_s0] sm:$0xff] (!%p319_p10)   ;;  %v3155_v35 = vld [vmem:[%s3958_s0 + $0x8] sm:$0xff] (!%p319_p10)   ;;  %v3157_v37 = vld [vmem:[%s3958_s0 + $0x10] sm:$0xff] (!%p319_p10)   ;;  %s2887_s5 = sshll.u32 (!%p319_p10), %s3215_s17, 1  ;;  %v1743_v1 = vlaneseq (!%p319_p10) }
  0x22   : > { %322 = sbr.rel (%p319_p10) target bundleno = 433 (0x1b1), region = 70  ;;  %s2885_s8 = sshll.u32 (!%p319_p10), %s325_s7, 7  ;;  %1033 = vmatprep.mubr.bf16.mxu0 (!%p319_p10), %v3225_v16  ;;  %1193 = vmatprep.mubr.bf16.mxu1 (!%p319_p10), %v3225_v16  ;;  %v3154_v34 = vld [vmem:[%s3958_s0 + $0x80] sm:$0xff] (!%p319_p10)   ;;  %v3156_v36 = vld [vmem:[%s3958_s0 + $0x88] sm:$0xff] (!%p319_p10)   ;;  %v3158_v38 = vld [vmem:[%s3958_s0 + $0x90] sm:$0xff] (!%p319_p10)  }
  0x23   : > { %s3324_s9 = scalar_lea.vmem (!%p319_p10), [#allocation3], %s2885_s8  ;;  %v3159_v39 = vld [vmem:[%s3958_s0 + $0x18] sm:$0xff] (!%p319_p10)   ;;  %v3161_v41 = vld [vmem:[%s3958_s0 + $0x20] sm:$0xff] (!%p319_p10)   ;;  %v3163_v43 = vld [vmem:[%s3958_s0 + $0x28] sm:$0xff] (!%p319_p10)   ;;  %p377_p11 = scmp.lt.s32.totalorder (!%p319_p10), %s2887_s5, 3  ;;  %v1744_v2 = vshrl.u32 (!%p319_p10), %v1743_v1, 7 }
  0x24   : > { %v3129_v17 = vld [vmem:[%s3324_s9 + $0x4] ss:$8 sps:$4 sm:$0xff] (!%p319_p10)   ;;  %v3131_v18 = vld [vmem:[%s3324_s9] ss:$8 sps:$4 sm:$0xff] (!%p319_p10)   ;;  %v3132_v19 = vld [vmem:[%s3324_s9 + $0x14] ss:$8 sps:$4 sm:$0xff] (!%p319_p10)  }
  0x25   : > { %1001 = vmatprep.subr.bf16.mxu0 (!%p319_p10), %v3129_v17  ;;  %3072 = vmatprep.subr.bf16.mxu1 (!%p319_p10), %v3129_v17  ;;  %v3134_v20 = vld [vmem:[%s3324_s9 + $0x10] ss:$8 sps:$4 sm:$0xff] (!%p319_p10)   ;;  %v3135_v21 = vld [vmem:[%s3324_s9 + $0x24] ss:$8 sps:$4 sm:$0xff] (!%p319_p10)   ;;  %v3137_v22 = vld [vmem:[%s3324_s9 + $0x20] ss:$8 sps:$4 sm:$0xff] (!%p319_p10)  }
  0x26   : > { %1002 = vmatpush1.bf16.msra.mxu0 (!%p319_p10), %v3131_v18  ;;  %3080 = vmatpush1.bf16.msra.mxu1 (!%p319_p10), %v3131_v18  ;;  %v3138_v23 = vld [vmem:[%s3324_s9 + $0x34] ss:$8 sps:$4 sm:$0xff] (!%p319_p10)   ;;  %v3140_v24 = vld [vmem:[%s3324_s9 + $0x30] ss:$8 sps:$4 sm:$0xff] (!%p319_p10)   ;;  %v3141_v25 = vld [vmem:[%s3324_s9 + $0x44] ss:$8 sps:$4 sm:$0xff] (!%p319_p10)  }
  0x27   : > { %1003 = vmatprep.subr.bf16.mxu0 (!%p319_p10), %v3132_v19  ;;  %3073 = vmatprep.subr.bf16.mxu1 (!%p319_p10), %v3132_v19  ;;  %v3143_v26 = vld [vmem:[%s3324_s9 + $0x40] ss:$8 sps:$4 sm:$0xff] (!%p319_p10)   ;;  %v3144_v27 = vld [vmem:[%s3324_s9 + $0x54] ss:$8 sps:$4 sm:$0xff] (!%p319_p10)   ;;  %v3146_v28 = vld [vmem:[%s3324_s9 + $0x50] ss:$8 sps:$4 sm:$0xff] (!%p319_p10)  }
  0x28   : > { %v3147_v29 = vld [vmem:[%s3324_s9 + $0x64] ss:$8 sps:$4 sm:$0xff] (!%p319_p10)   ;;  %v3149_v30 = vld [vmem:[%s3324_s9 + $0x60] ss:$8 sps:$4 sm:$0xff] (!%p319_p10)   ;;  %v3150_v31 = vld [vmem:[%s3324_s9 + $0x74] ss:$8 sps:$4 sm:$0xff] (!%p319_p10)  }
  0x29   : > { %v3152_v32 = vld [vmem:[%s3324_s9 + $0x70] ss:$8 sps:$4 sm:$0xff]   ;;  %v3162_v42 = vld [vmem:[%s3958_s0 + $0xa0] sm:$0xff]   ;;  %v3164_v44 = vld [vmem:[%s3958_s0 + $0xa8] sm:$0xff]   ;;  %s3971_s5 = smov (!%p377_p11, %s2887_s5), 3  ;;  %v1745_v3 = vsub.s32 0, %v1744_v2 }
  0x2a   : > { %1004 = vmatpush1.bf16.msra.mxu0 %v3134_v20  ;;  %3081 = vmatpush1.bf16.msra.mxu1 %v3134_v20  ;;  %v3160_v40 = vld [vmem:[%s3958_s0 + $0x98] sm:$0xff]   ;;  %v3165_v45 = vld [vmem:[%s3958_s0 + $0x30] sm:$0xff]   ;;  %v3169_v49 = vld [vmem:[%s3958_s0 + $0x40] sm:$0xff]   ;;  %s379_s9 = scalar_lea.vmem %s3960_s2, %s3971_s5  ;;  %s384_s12 = scalar_lea.vmem %s3961_s3, %s3971_s5  ;;  %v1749_v5 = vsub.s32 1, %v1744_v2 }
  0x2b   : > { %1005 = vmatprep.subr.bf16.mxu0 %v3135_v21  ;;  %3074 = vmatprep.subr.bf16.mxu1 %v3135_v21  ;;  %v3166_v46 = vld [vmem:[%s3958_s0 + $0xb0] sm:$0xff]   ;;  %v3167_v47 = vld [vmem:[%s3958_s0 + $0x38] sm:$0xff]   ;;  %v3170_v50 = vld [vmem:[%s3958_s0 + $0xc0] sm:$0xff]   ;;  %s2886_s13 = sshll.u32 %s325_s7, 9  ;;  %s3071_s7 = sshll.u32 (%p3286_p6), %s3215_s17, 3 }
  0x2c   : > { %v3168_v48 = vld [vmem:[%s3958_s0 + $0xb8] sm:$0xff]   ;;  %v3171_v51 = vld [vmem:[%s3958_s0 + $0x48] sm:$0xff]   ;;  %v3173_v53 = vld [vmem:[%s3958_s0 + $0x50] sm:$0xff]   ;;  %s3501_s15 = scalar_lea.vmem [#allocation4], %s2886_s13  ;;  %s3816_s22 = scalar_lea.vmem (%p3286_p6), %s3962_s4, %s3071_s7 }
  0x2d   : > { %v3172_v52 = vld [vmem:[%s3958_s0 + $0xc8] sm:$0xff]   ;;  %v3174_v54 = vld [vmem:[%s3958_s0 + $0xd0] sm:$0xff]   ;;  %v3175_v55 = vld [vmem:[%s3958_s0 + $0x58] sm:$0xff]  }
  0x2e   : > { %1006 = vmatpush1.bf16.msra.mxu0 %v3137_v22  ;;  %3082 = vmatpush1.bf16.msra.mxu1 %v3137_v22  ;;  %v3176_v56 = vld [vmem:[%s3958_s0 + $0xd8] sm:$0xff]   ;;  %v3177_v57 = vld [vmem:[%s3958_s0 + $0x60] sm:$0xff]   ;;  %v3179_v59 = vld [vmem:[%s3958_s0 + $0x68] sm:$0xff]  }
  0x2f   : > { %1007 = vmatprep.subr.bf16.mxu0 %v3138_v23  ;;  %3075 = vmatprep.subr.bf16.mxu1 %v3138_v23  ;;  %v3178_v58 = vld [vmem:[%s3958_s0 + $0xe0] sm:$0xff]   ;;  %v3180_v60 = vld [vmem:[%s3958_s0 + $0xe8] sm:$0xff]   ;;  %v3181_v61 = vld [vmem:[%s3958_s0 + $0x70] sm:$0xff]  }
  0x30   : > { %v3182_v62 = vld [vmem:[%s3958_s0 + $0xf0] sm:$0xff]   ;;  %v3183_v63 = vld [vmem:[%s3958_s0 + $0x78] sm:$0xff]   ;;  %v1741_v4 = vld [vmem:[%s379_s9] sm:$0x3] }
  0x31   : > { %v3184_v0 = vld [vmem:[%s3958_s0 + $0xf8] sm:$0xff]   ;;  %v1881_v6 = vld [vmem:[%s384_s12] sm:$0x3]  ;;  %v3475_v7 = vrot.slane %v1741_v4, %v1745_v3  ;;  %v3477_v8 = vrot.slane %v1741_v4, %v1749_v5 }
  0x32   : > { %1008 = vmatpush1.bf16.msra.mxu0 %v3140_v24  ;;  %3083 = vmatpush1.bf16.msra.mxu1 %v3140_v24  ;;  %v3479_v9 = vrot.slane %v1881_v6, %v1745_v3  ;;  %v3481_v12 = vrot.slane %v1881_v6, %v1749_v5 }
  0x33   : > { %1009 = vmatprep.subr.bf16.mxu0 %v3141_v25  ;;  %3076 = vmatprep.subr.bf16.mxu1 %v3141_v25 }
  0x36   : > { %1010 = vmatpush1.bf16.msra.mxu0 %v3143_v26  ;;  %3084 = vmatpush1.bf16.msra.mxu1 %v3143_v26 }
  0x37   : > { %1011 = vmatprep.subr.bf16.mxu0 %v3144_v27  ;;  %3077 = vmatprep.subr.bf16.mxu1 %v3144_v27 }
  0x3a   : > { %1012 = vmatpush1.bf16.msra.mxu0 %v3146_v28  ;;  %3085 = vmatpush1.bf16.msra.mxu1 %v3146_v28 }
  0x3b   : > { %1013 = vmatprep.subr.bf16.mxu0 %v3147_v29  ;;  %3078 = vmatprep.subr.bf16.mxu1 %v3147_v29 }
  0x3e   : > { %1014 = vmatpush1.bf16.msra.mxu0 %v3149_v30  ;;  %3086 = vmatpush1.bf16.msra.mxu1 %v3149_v30 }
  0x3f   : > { %1015 = vmatprep.subr.bf16.mxu0 %v3150_v31  ;;  %3079 = vmatprep.subr.bf16.mxu1 %v3150_v31 }
  0x42   : > { %1016 = vmatpush1.bf16.msra.mxu0 %v3152_v32  ;;  %3087 = vmatpush1.bf16.msra.mxu1 %v3152_v32 }
  0x45   : > { %1034 = vmatmul.mubr.bf16.vlgmr.msra.gmra.mrb[0].mxu0 %v3153_v33  ;;  %1194 = vmatmul.mubr.bf16.vlgmr.msra.gmra.mrb[0].mxu1 %v3154_v34 }
  0x46   : > { %1043 = vmatprep.mubr.bf16.mxu0 %v3225_v16  ;;  %1203 = vmatprep.mubr.bf16.mxu1 %v3225_v16 }
  0x4d   : > { %1044 = vmatmul.mubr.bf16.gmra.mrb[4].mxu0 %v3155_v35  ;;  %1204 = vmatmul.mubr.bf16.gmra.mrb[4].mxu1 %v3156_v36 }
  0x4e   : > { %1053 = vmatprep.mubr.bf16.mxu0 %v3225_v16  ;;  %1213 = vmatprep.mubr.bf16.mxu1 %v3225_v16 }
  0x55   : > { %1054 = vmatmul.mubr.bf16.gmra.mrb[8].mxu0 %v3157_v37  ;;  %1214 = vmatmul.mubr.bf16.gmra.mrb[8].mxu1 %v3158_v38 }
  0x56   : > { %1063 = vmatprep.mubr.bf16.mxu0 %v3225_v16  ;;  %1223 = vmatprep.mubr.bf16.mxu1 %v3225_v16 }
  0x5d   : > { %1064 = vmatmul.mubr.bf16.gmra.mrb[12].mxu0 %v3159_v39  ;;  %1224 = vmatmul.mubr.bf16.gmra.mrb[12].mxu1 %v3160_v40 }
  0x5e   : > { %1073 = vmatprep.mubr.bf16.mxu0 %v3225_v16  ;;  %1233 = vmatprep.mubr.bf16.mxu1 %v3225_v16 }
  0x65   : > { %1074 = vmatmul.mubr.bf16.gmra.mrb[16].mxu0 %v3161_v41  ;;  %1234 = vmatmul.mubr.bf16.gmra.mrb[16].mxu1 %v3162_v42 }
  0x66   : > { %1083 = vmatprep.mubr.bf16.mxu0 %v3225_v16  ;;  %1243 = vmatprep.mubr.bf16.mxu1 %v3225_v16 }
  0x6d   : > { %1084 = vmatmul.mubr.bf16.gmra.mrb[20].mxu0 %v3163_v43  ;;  %1244 = vmatmul.mubr.bf16.gmra.mrb[20].mxu1 %v3164_v44 }
  0x6e   : > { %1093 = vmatprep.mubr.bf16.mxu0 %v3225_v16  ;;  %1253 = vmatprep.mubr.bf16.mxu1 %v3225_v16 }
  0x75   : > { %1094 = vmatmul.mubr.bf16.gmra.mrb[24].mxu0 %v3165_v45  ;;  %1254 = vmatmul.mubr.bf16.gmra.mrb[24].mxu1 %v3166_v46 }
  0x76   : > { %1103 = vmatprep.mubr.bf16.mxu0 %v3225_v16  ;;  %1263 = vmatprep.mubr.bf16.mxu1 %v3225_v16 }
  0x7d   : > { %1104 = vmatmul.mubr.bf16.gmra.mrb[28].mxu0 %v3167_v47  ;;  %1264 = vmatmul.mubr.bf16.gmra.mrb[28].mxu1 %v3168_v48 }
  0x7e   : > { %1113 = vmatprep.mubr.bf16.mxu0 %v3225_v16  ;;  %1273 = vmatprep.mubr.bf16.mxu1 %v3225_v16 }
  0x85   : > { %1114 = vmatmul.mubr.bf16.gmra.mrb[32].mxu0 %v3169_v49  ;;  %1274 = vmatmul.mubr.bf16.gmra.mrb[32].mxu1 %v3170_v50 }
  0x86   : > { %1123 = vmatprep.mubr.bf16.mxu0 %v3225_v16  ;;  %1283 = vmatprep.mubr.bf16.mxu1 %v3225_v16 }
  0x8d   : > { %1124 = vmatmul.mubr.bf16.gmra.mrb[36].mxu0 %v3171_v51  ;;  %1284 = vmatmul.mubr.bf16.gmra.mrb[36].mxu1 %v3172_v52 }
  0x8e   : > { %1133 = vmatprep.mubr.bf16.mxu0 %v3225_v16  ;;  %1293 = vmatprep.mubr.bf16.mxu1 %v3225_v16 }
  0x95   : > { %1134 = vmatmul.mubr.bf16.gmra.mrb[40].mxu0 %v3173_v53  ;;  %1294 = vmatmul.mubr.bf16.gmra.mrb[40].mxu1 %v3174_v54 }
  0x96   : > { %1143 = vmatprep.mubr.bf16.mxu0 %v3225_v16  ;;  %1303 = vmatprep.mubr.bf16.mxu1 %v3225_v16 }
  0x9d   : > { %1144 = vmatmul.mubr.bf16.gmra.mrb[44].mxu0 %v3175_v55  ;;  %1304 = vmatmul.mubr.bf16.gmra.mrb[44].mxu1 %v3176_v56 }
  0x9e   : > { %1153 = vmatprep.mubr.bf16.mxu0 %v3225_v16  ;;  %1313 = vmatprep.mubr.bf16.mxu1 %v3225_v16 }
  0xa5   : > { %1154 = vmatmul.mubr.bf16.gmra.mrb[48].mxu0 %v3177_v57  ;;  %1314 = vmatmul.mubr.bf16.gmra.mrb[48].mxu1 %v3178_v58 }
  0xa6   : > { %1163 = vmatprep.mubr.bf16.mxu0 %v3225_v16  ;;  %1323 = vmatprep.mubr.bf16.mxu1 %v3225_v16 }
  0xad   : > { %1164 = vmatmul.mubr.bf16.gmra.mrb[52].mxu0 %v3179_v59  ;;  %1324 = vmatmul.mubr.bf16.gmra.mrb[52].mxu1 %v3180_v60 }
  0xae   : > { %1173 = vmatprep.mubr.bf16.mxu0 %v3225_v16  ;;  %1333 = vmatprep.mubr.bf16.mxu1 %v3225_v16 }
  0xb5   : > { %1174 = vmatmul.mubr.bf16.gmra.mrb[56].mxu0 %v3181_v61  ;;  %1334 = vmatmul.mubr.bf16.gmra.mrb[56].mxu1 %v3182_v62 }
  0xb6   : > { %1183 = vmatprep.mubr.bf16.mxu0 %v3225_v16  ;;  %1343 = vmatprep.mubr.bf16.mxu1 %v3225_v16 }
  0xbd   : > { %1184 = vmatmul.mubr.bf16.gmra.mrb[60].mxu0 %v3183_v63  ;;  %1344 = vmatmul.mubr.bf16.gmra.mrb[60].mxu1 %v3184_v0 }
 0x118   : > { %v1035_v10 = vpop.f32.mrb[0].mxu0  ;;  %v1195_v11 = vpop.f32.mrb[0].mxu1 }
 0x119   : > { %v1753_v13 = vmul.f32 %v3475_v7, %v1035_v10  ;;  %v1817_v14 = vmul.f32 %v3475_v7, %v1195_v11  ;;  %v1037_v15 = vpop.f32.mrb[1].mxu0  ;;  %v1197_v16 = vpop.f32.mrb[1].mxu1 }
 0x11a   : > { %v1754_v17 = vmul.f32 %v3477_v8, %v1037_v15  ;;  %v1818_v18 = vmul.f32 %v3477_v8, %v1197_v16  ;;  %v1039_v19 = vpop.f32.mrb[2].mxu0  ;;  %v1199_v20 = vpop.f32.mrb[2].mxu1 }
 0x11b   : > { %v1893_v21 = vadd.f32 %v3479_v9, %v1753_v13  ;;  %v1957_v22 = vadd.f32 %v3479_v9, %v1817_v14  ;;  %v1755_v23 = vmul.f32 %v3475_v7, %v1039_v19  ;;  %v1819_v24 = vmul.f32 %v3475_v7, %v1199_v20  ;;  %v1041_v25 = vpop.f32.mrb[3].mxu0  ;;  %v1201_v26 = vpop.f32.mrb[3].mxu1 }
 0x11c   : > { %v1894_v27 = vadd.f32 %v3481_v12, %v1754_v17  ;;  %v1958_v28 = vadd.f32 %v3481_v12, %v1818_v18  ;;  %v1756_v29 = vmul.f32 %v3477_v8, %v1041_v25  ;;  %v1820_v30 = vmul.f32 %v3477_v8, %v1201_v26 }
 0x11d   : > { %v1895_v31 = vadd.f32 %v3479_v9, %v1755_v23  ;;  %v1959_v32 = vadd.f32 %v3479_v9, %v1819_v24 }
 0x11e   : > { %v3007_v33 = vpack.c.bf16 %v1894_v27, %v1893_v21  ;;  %v3039_v34 = vpack.c.bf16 %v1958_v28, %v1957_v22  ;;  %v1896_v35 = vadd.f32 %v3481_v12, %v1756_v29  ;;  %v1960_v36 = vadd.f32 %v3481_v12, %v1820_v30 }
 0x120   : > { %2405 = vst [vmem:[%s3501_s15] sm:$0xff] %v3007_v33  ;;  %2437 = vst [vmem:[%s3501_s15 + $0x100] sm:$0xff] %v3039_v34  ;;  %v3008_v37 = vpack.c.bf16 %v1896_v35, %v1895_v31  ;;  %v3040_v38 = vpack.c.bf16 %v1960_v36, %v1959_v32  ;;  %v1045_v39 = vpop.f32.mrb[4].mxu0  ;;  %v1205_v40 = vpop.f32.mrb[4].mxu1 }
 0x121   : > { %v1757_v41 = vmul.f32 %v3475_v7, %v1045_v39  ;;  %v1821_v42 = vmul.f32 %v3475_v7, %v1205_v40  ;;  %v1047_v43 = vpop.f32.mrb[5].mxu0  ;;  %v1207_v44 = vpop.f32.mrb[5].mxu1 }
 0x122   : > { %2406 = vst [vmem:[%s3501_s15 + $0x8] sm:$0xff] %v3008_v37  ;;  %2438 = vst [vmem:[%s3501_s15 + $0x108] sm:$0xff] %v3040_v38  ;;  %v1758_v45 = vmul.f32 %v3477_v8, %v1047_v43  ;;  %v1822_v46 = vmul.f32 %v3477_v8, %v1207_v44  ;;  %v1049_v47 = vpop.f32.mrb[6].mxu0  ;;  %v1209_v48 = vpop.f32.mrb[6].mxu1 }
 0x123   : > { %v1897_v49 = vadd.f32 %v3479_v9, %v1757_v41  ;;  %v1961_v50 = vadd.f32 %v3479_v9, %v1821_v42  ;;  %v1759_v51 = vmul.f32 %v3475_v7, %v1049_v47  ;;  %v1823_v52 = vmul.f32 %v3475_v7, %v1209_v48  ;;  %v1051_v53 = vpop.f32.mrb[7].mxu0  ;;  %v1211_v54 = vpop.f32.mrb[7].mxu1 }
 0x124   : > { %v1898_v55 = vadd.f32 %v3481_v12, %v1758_v45  ;;  %v1962_v56 = vadd.f32 %v3481_v12, %v1822_v46  ;;  %v1760_v57 = vmul.f32 %v3477_v8, %v1051_v53  ;;  %v1824_v58 = vmul.f32 %v3477_v8, %v1211_v54 }
 0x125   : > { %v1899_v59 = vadd.f32 %v3479_v9, %v1759_v51  ;;  %v1963_v60 = vadd.f32 %v3479_v9, %v1823_v52 }
 0x126   : > { %v3009_v61 = vpack.c.bf16 %v1898_v55, %v1897_v49  ;;  %v3041_v62 = vpack.c.bf16 %v1962_v56, %v1961_v50  ;;  %v1900_v63 = vadd.f32 %v3481_v12, %v1760_v57  ;;  %v1964_v0 = vadd.f32 %v3481_v12, %v1824_v58 }
 0x128   : > { %2407 = vst [vmem:[%s3501_s15 + $0x10] sm:$0xff] %v3009_v61  ;;  %2439 = vst [vmem:[%s3501_s15 + $0x110] sm:$0xff] %v3041_v62  ;;  %v3010_v1 = vpack.c.bf16 %v1900_v63, %v1899_v59  ;;  %v3042_v2 = vpack.c.bf16 %v1964_v0, %v1963_v60  ;;  %v1055_v3 = vpop.f32.mrb[8].mxu0  ;;  %v1215_v4 = vpop.f32.mrb[8].mxu1 }
 0x129   : > { %v1761_v5 = vmul.f32 %v3475_v7, %v1055_v3  ;;  %v1825_v6 = vmul.f32 %v3475_v7, %v1215_v4  ;;  %v1057_v10 = vpop.f32.mrb[9].mxu0  ;;  %v1217_v11 = vpop.f32.mrb[9].mxu1 }
 0x12a   : > { %2408 = vst [vmem:[%s3501_s15 + $0x18] sm:$0xff] %v3010_v1  ;;  %2440 = vst [vmem:[%s3501_s15 + $0x118] sm:$0xff] %v3042_v2  ;;  %v1762_v13 = vmul.f32 %v3477_v8, %v1057_v10  ;;  %v1826_v14 = vmul.f32 %v3477_v8, %v1217_v11  ;;  %v1059_v15 = vpop.f32.mrb[10].mxu0  ;;  %v1219_v16 = vpop.f32.mrb[10].mxu1 }
 0x12b   : > { %v1901_v17 = vadd.f32 %v3479_v9, %v1761_v5  ;;  %v1965_v18 = vadd.f32 %v3479_v9, %v1825_v6  ;;  %v1763_v19 = vmul.f32 %v3475_v7, %v1059_v15  ;;  %v1827_v20 = vmul.f32 %v3475_v7, %v1219_v16  ;;  %v1061_v21 = vpop.f32.mrb[11].mxu0  ;;  %v1221_v22 = vpop.f32.mrb[11].mxu1 }
 0x12c   : > { %v1902_v23 = vadd.f32 %v3481_v12, %v1762_v13  ;;  %v1966_v24 = vadd.f32 %v3481_v12, %v1826_v14  ;;  %v1764_v25 = vmul.f32 %v3477_v8, %v1061_v21  ;;  %v1828_v26 = vmul.f32 %v3477_v8, %v1221_v22 }
 0x12d   : > { %v1903_v27 = vadd.f32 %v3479_v9, %v1763_v19  ;;  %v1967_v28 = vadd.f32 %v3479_v9, %v1827_v20 }
 0x12e   : > { %v3011_v29 = vpack.c.bf16 %v1902_v23, %v1901_v17  ;;  %v3043_v30 = vpack.c.bf16 %v1966_v24, %v1965_v18  ;;  %v1904_v31 = vadd.f32 %v3481_v12, %v1764_v25  ;;  %v1968_v32 = vadd.f32 %v3481_v12, %v1828_v26 }
 0x130   : > { %2409 = vst [vmem:[%s3501_s15 + $0x20] sm:$0xff] %v3011_v29  ;;  %2441 = vst [vmem:[%s3501_s15 + $0x120] sm:$0xff] %v3043_v30  ;;  %v3012_v33 = vpack.c.bf16 %v1904_v31, %v1903_v27  ;;  %v3044_v34 = vpack.c.bf16 %v1968_v32, %v1967_v28  ;;  %v1065_v35 = vpop.f32.mrb[12].mxu0  ;;  %v1225_v36 = vpop.f32.mrb[12].mxu1 }
 0x131   : > { %v1765_v37 = vmul.f32 %v3475_v7, %v1065_v35  ;;  %v1829_v38 = vmul.f32 %v3475_v7, %v1225_v36  ;;  %v1067_v39 = vpop.f32.mrb[13].mxu0  ;;  %v1227_v40 = vpop.f32.mrb[13].mxu1 }
 0x132   : > { %2410 = vst [vmem:[%s3501_s15 + $0x28] sm:$0xff] %v3012_v33  ;;  %2442 = vst [vmem:[%s3501_s15 + $0x128] sm:$0xff] %v3044_v34  ;;  %v1766_v41 = vmul.f32 %v3477_v8, %v1067_v39  ;;  %v1830_v42 = vmul.f32 %v3477_v8, %v1227_v40  ;;  %v1069_v43 = vpop.f32.mrb[14].mxu0  ;;  %v1229_v44 = vpop.f32.mrb[14].mxu1 }
 0x133   : > { %v1905_v45 = vadd.f32 %v3479_v9, %v1765_v37  ;;  %v1969_v46 = vadd.f32 %v3479_v9, %v1829_v38  ;;  %v1767_v47 = vmul.f32 %v3475_v7, %v1069_v43  ;;  %v1831_v48 = vmul.f32 %v3475_v7, %v1229_v44  ;;  %v1071_v49 = vpop.f32.mrb[15].mxu0  ;;  %v1231_v50 = vpop.f32.mrb[15].mxu1 }
 0x134   : > { %v1906_v51 = vadd.f32 %v3481_v12, %v1766_v41  ;;  %v1970_v52 = vadd.f32 %v3481_v12, %v1830_v42  ;;  %v1768_v53 = vmul.f32 %v3477_v8, %v1071_v49  ;;  %v1832_v54 = vmul.f32 %v3477_v8, %v1231_v50 }
 0x135   : > { %v1907_v55 = vadd.f32 %v3479_v9, %v1767_v47  ;;  %v1971_v56 = vadd.f32 %v3479_v9, %v1831_v48 }
 0x136   : > { %v3013_v57 = vpack.c.bf16 %v1906_v51, %v1905_v45  ;;  %v3045_v58 = vpack.c.bf16 %v1970_v52, %v1969_v46  ;;  %v1908_v59 = vadd.f32 %v3481_v12, %v1768_v53  ;;  %v1972_v60 = vadd.f32 %v3481_v12, %v1832_v54 }
 0x138   : > { %2411 = vst [vmem:[%s3501_s15 + $0x30] sm:$0xff] %v3013_v57  ;;  %2443 = vst [vmem:[%s3501_s15 + $0x130] sm:$0xff] %v3045_v58  ;;  %v3014_v61 = vpack.c.bf16 %v1908_v59, %v1907_v55  ;;  %v3046_v62 = vpack.c.bf16 %v1972_v60, %v1971_v56  ;;  %v1075_v63 = vpop.f32.mrb[16].mxu0  ;;  %v1235_v0 = vpop.f32.mrb[16].mxu1 }
 0x139   : > { %v1769_v1 = vmul.f32 %v3475_v7, %v1075_v63  ;;  %v1833_v2 = vmul.f32 %v3475_v7, %v1235_v0  ;;  %v1077_v3 = vpop.f32.mrb[17].mxu0  ;;  %v1237_v4 = vpop.f32.mrb[17].mxu1 }
 0x13a   : > { %2412 = vst [vmem:[%s3501_s15 + $0x38] sm:$0xff] %v3014_v61  ;;  %2444 = vst [vmem:[%s3501_s15 + $0x138] sm:$0xff] %v3046_v62  ;;  %v1770_v5 = vmul.f32 %v3477_v8, %v1077_v3  ;;  %v1834_v6 = vmul.f32 %v3477_v8, %v1237_v4  ;;  %v1079_v10 = vpop.f32.mrb[18].mxu0  ;;  %v1239_v11 = vpop.f32.mrb[18].mxu1 }
 0x13b   : > { %v1909_v13 = vadd.f32 %v3479_v9, %v1769_v1  ;;  %v1973_v14 = vadd.f32 %v3479_v9, %v1833_v2  ;;  %v1771_v15 = vmul.f32 %v3475_v7, %v1079_v10  ;;  %v1835_v16 = vmul.f32 %v3475_v7, %v1239_v11  ;;  %v1081_v17 = vpop.f32.mrb[19].mxu0  ;;  %v1241_v18 = vpop.f32.mrb[19].mxu1 }
 0x13c   : > { %v1910_v19 = vadd.f32 %v3481_v12, %v1770_v5  ;;  %v1974_v20 = vadd.f32 %v3481_v12, %v1834_v6  ;;  %v1772_v21 = vmul.f32 %v3477_v8, %v1081_v17  ;;  %v1836_v22 = vmul.f32 %v3477_v8, %v1241_v18 }
 0x13d   : > { %v1911_v23 = vadd.f32 %v3479_v9, %v1771_v15  ;;  %v1975_v24 = vadd.f32 %v3479_v9, %v1835_v16 }
 0x13e   : > { %v3015_v25 = vpack.c.bf16 %v1910_v19, %v1909_v13  ;;  %v3047_v26 = vpack.c.bf16 %v1974_v20, %v1973_v14  ;;  %v1912_v27 = vadd.f32 %v3481_v12, %v1772_v21  ;;  %v1976_v28 = vadd.f32 %v3481_v12, %v1836_v22 }
 0x140   : > { %2413 = vst [vmem:[%s3501_s15 + $0x40] sm:$0xff] %v3015_v25  ;;  %2445 = vst [vmem:[%s3501_s15 + $0x140] sm:$0xff] %v3047_v26  ;;  %v3016_v29 = vpack.c.bf16 %v1912_v27, %v1911_v23  ;;  %v3048_v30 = vpack.c.bf16 %v1976_v28, %v1975_v24  ;;  %v1085_v31 = vpop.f32.mrb[20].mxu0  ;;  %v1245_v32 = vpop.f32.mrb[20].mxu1 }
 0x141   : > { %v1773_v33 = vmul.f32 %v3475_v7, %v1085_v31  ;;  %v1837_v34 = vmul.f32 %v3475_v7, %v1245_v32  ;;  %v1087_v35 = vpop.f32.mrb[21].mxu0  ;;  %v1247_v36 = vpop.f32.mrb[21].mxu1 }
 0x142   : > { %2414 = vst [vmem:[%s3501_s15 + $0x48] sm:$0xff] %v3016_v29  ;;  %2446 = vst [vmem:[%s3501_s15 + $0x148] sm:$0xff] %v3048_v30  ;;  %v1774_v37 = vmul.f32 %v3477_v8, %v1087_v35  ;;  %v1838_v38 = vmul.f32 %v3477_v8, %v1247_v36  ;;  %v1089_v39 = vpop.f32.mrb[22].mxu0  ;;  %v1249_v40 = vpop.f32.mrb[22].mxu1 }
 0x143   : > { %v1913_v41 = vadd.f32 %v3479_v9, %v1773_v33  ;;  %v1977_v42 = vadd.f32 %v3479_v9, %v1837_v34  ;;  %v1775_v43 = vmul.f32 %v3475_v7, %v1089_v39  ;;  %v1839_v44 = vmul.f32 %v3475_v7, %v1249_v40  ;;  %v1091_v45 = vpop.f32.mrb[23].mxu0  ;;  %v1251_v46 = vpop.f32.mrb[23].mxu1 }
 0x144   : > { %v1914_v47 = vadd.f32 %v3481_v12, %v1774_v37  ;;  %v1978_v48 = vadd.f32 %v3481_v12, %v1838_v38  ;;  %v1776_v49 = vmul.f32 %v3477_v8, %v1091_v45  ;;  %v1840_v50 = vmul.f32 %v3477_v8, %v1251_v46 }
 0x145   : > { %v1915_v51 = vadd.f32 %v3479_v9, %v1775_v43  ;;  %v1979_v52 = vadd.f32 %v3479_v9, %v1839_v44 }
 0x146   : > { %v3017_v53 = vpack.c.bf16 %v1914_v47, %v1913_v41  ;;  %v3049_v54 = vpack.c.bf16 %v1978_v48, %v1977_v42  ;;  %v1916_v55 = vadd.f32 %v3481_v12, %v1776_v49  ;;  %v1980_v56 = vadd.f32 %v3481_v12, %v1840_v50 }
 0x148   : > { %2415 = vst [vmem:[%s3501_s15 + $0x50] sm:$0xff] %v3017_v53  ;;  %2447 = vst [vmem:[%s3501_s15 + $0x150] sm:$0xff] %v3049_v54  ;;  %v3018_v57 = vpack.c.bf16 %v1916_v55, %v1915_v51  ;;  %v3050_v58 = vpack.c.bf16 %v1980_v56, %v1979_v52  ;;  %v1095_v59 = vpop.f32.mrb[24].mxu0  ;;  %v1255_v60 = vpop.f32.mrb[24].mxu1 }
 0x149   : > { %v1777_v61 = vmul.f32 %v3475_v7, %v1095_v59  ;;  %v1841_v62 = vmul.f32 %v3475_v7, %v1255_v60  ;;  %v1097_v63 = vpop.f32.mrb[25].mxu0  ;;  %v1257_v0 = vpop.f32.mrb[25].mxu1 }
 0x14a   : > { %2416 = vst [vmem:[%s3501_s15 + $0x58] sm:$0xff] %v3018_v57  ;;  %2448 = vst [vmem:[%s3501_s15 + $0x158] sm:$0xff] %v3050_v58  ;;  %v1778_v1 = vmul.f32 %v3477_v8, %v1097_v63  ;;  %v1842_v2 = vmul.f32 %v3477_v8, %v1257_v0  ;;  %v1099_v3 = vpop.f32.mrb[26].mxu0  ;;  %v1259_v4 = vpop.f32.mrb[26].mxu1 }
 0x14b   : > { %v1917_v5 = vadd.f32 %v3479_v9, %v1777_v61  ;;  %v1981_v6 = vadd.f32 %v3479_v9, %v1841_v62  ;;  %v1779_v10 = vmul.f32 %v3475_v7, %v1099_v3  ;;  %v1843_v11 = vmul.f32 %v3475_v7, %v1259_v4  ;;  %v1101_v13 = vpop.f32.mrb[27].mxu0  ;;  %v1261_v14 = vpop.f32.mrb[27].mxu1 }
 0x14c   : > { %v1918_v15 = vadd.f32 %v3481_v12, %v1778_v1  ;;  %v1982_v16 = vadd.f32 %v3481_v12, %v1842_v2  ;;  %v1780_v17 = vmul.f32 %v3477_v8, %v1101_v13  ;;  %v1844_v18 = vmul.f32 %v3477_v8, %v1261_v14 }
 0x14d   : > { %v1919_v19 = vadd.f32 %v3479_v9, %v1779_v10  ;;  %v1983_v20 = vadd.f32 %v3479_v9, %v1843_v11 }
 0x14e   : > { %v3019_v21 = vpack.c.bf16 %v1918_v15, %v1917_v5  ;;  %v3051_v22 = vpack.c.bf16 %v1982_v16, %v1981_v6  ;;  %v1920_v23 = vadd.f32 %v3481_v12, %v1780_v17  ;;  %v1984_v24 = vadd.f32 %v3481_v12, %v1844_v18 }
 0x150   : > { %2417 = vst [vmem:[%s3501_s15 + $0x60] sm:$0xff] %v3019_v21  ;;  %2449 = vst [vmem:[%s3501_s15 + $0x160] sm:$0xff] %v3051_v22  ;;  %v3020_v25 = vpack.c.bf16 %v1920_v23, %v1919_v19  ;;  %v3052_v26 = vpack.c.bf16 %v1984_v24, %v1983_v20  ;;  %v1105_v27 = vpop.f32.mrb[28].mxu0  ;;  %v1265_v28 = vpop.f32.mrb[28].mxu1 }
 0x151   : > { %v1781_v29 = vmul.f32 %v3475_v7, %v1105_v27  ;;  %v1845_v30 = vmul.f32 %v3475_v7, %v1265_v28  ;;  %v1107_v31 = vpop.f32.mrb[29].mxu0  ;;  %v1267_v32 = vpop.f32.mrb[29].mxu1 }
 0x152   : > { %2418 = vst [vmem:[%s3501_s15 + $0x68] sm:$0xff] %v3020_v25  ;;  %2450 = vst [vmem:[%s3501_s15 + $0x168] sm:$0xff] %v3052_v26  ;;  %v1782_v33 = vmul.f32 %v3477_v8, %v1107_v31  ;;  %v1846_v34 = vmul.f32 %v3477_v8, %v1267_v32  ;;  %v1109_v35 = vpop.f32.mrb[30].mxu0  ;;  %v1269_v36 = vpop.f32.mrb[30].mxu1 }
 0x153   : > { %v1921_v37 = vadd.f32 %v3479_v9, %v1781_v29  ;;  %v1985_v38 = vadd.f32 %v3479_v9, %v1845_v30  ;;  %v1783_v39 = vmul.f32 %v3475_v7, %v1109_v35  ;;  %v1847_v40 = vmul.f32 %v3475_v7, %v1269_v36  ;;  %v1111_v41 = vpop.f32.mrb[31].mxu0  ;;  %v1271_v42 = vpop.f32.mrb[31].mxu1 }
 0x154   : > { %v1922_v43 = vadd.f32 %v3481_v12, %v1782_v33  ;;  %v1986_v44 = vadd.f32 %v3481_v12, %v1846_v34  ;;  %v1784_v45 = vmul.f32 %v3477_v8, %v1111_v41  ;;  %v1848_v46 = vmul.f32 %v3477_v8, %v1271_v42 }
 0x155   : > { %v1923_v47 = vadd.f32 %v3479_v9, %v1783_v39  ;;  %v1987_v48 = vadd.f32 %v3479_v9, %v1847_v40 }
 0x156   : > { %v3021_v49 = vpack.c.bf16 %v1922_v43, %v1921_v37  ;;  %v3053_v50 = vpack.c.bf16 %v1986_v44, %v1985_v38  ;;  %v1924_v51 = vadd.f32 %v3481_v12, %v1784_v45  ;;  %v1988_v52 = vadd.f32 %v3481_v12, %v1848_v46 }
 0x158   : > { %2419 = vst [vmem:[%s3501_s15 + $0x70] sm:$0xff] %v3021_v49  ;;  %2451 = vst [vmem:[%s3501_s15 + $0x170] sm:$0xff] %v3053_v50  ;;  %v3022_v53 = vpack.c.bf16 %v1924_v51, %v1923_v47  ;;  %v3054_v54 = vpack.c.bf16 %v1988_v52, %v1987_v48  ;;  %v1115_v55 = vpop.f32.mrb[32].mxu0  ;;  %v1275_v56 = vpop.f32.mrb[32].mxu1 }
 0x159   : > { %v1785_v57 = vmul.f32 %v3475_v7, %v1115_v55  ;;  %v1849_v58 = vmul.f32 %v3475_v7, %v1275_v56  ;;  %v1117_v59 = vpop.f32.mrb[33].mxu0  ;;  %v1277_v60 = vpop.f32.mrb[33].mxu1 }
 0x15a   : > { %2420 = vst [vmem:[%s3501_s15 + $0x78] sm:$0xff] %v3022_v53  ;;  %2452 = vst [vmem:[%s3501_s15 + $0x178] sm:$0xff] %v3054_v54  ;;  %v1786_v61 = vmul.f32 %v3477_v8, %v1117_v59  ;;  %v1850_v62 = vmul.f32 %v3477_v8, %v1277_v60  ;;  %v1119_v63 = vpop.f32.mrb[34].mxu0  ;;  %v1279_v0 = vpop.f32.mrb[34].mxu1 }
 0x15b   : > { %v1925_v1 = vadd.f32 %v3479_v9, %v1785_v57  ;;  %v1989_v2 = vadd.f32 %v3479_v9, %v1849_v58  ;;  %v1787_v3 = vmul.f32 %v3475_v7, %v1119_v63  ;;  %v1851_v4 = vmul.f32 %v3475_v7, %v1279_v0  ;;  %v1121_v5 = vpop.f32.mrb[35].mxu0  ;;  %v1281_v6 = vpop.f32.mrb[35].mxu1 }
 0x15c   : > { %v1926_v10 = vadd.f32 %v3481_v12, %v1786_v61  ;;  %v1990_v11 = vadd.f32 %v3481_v12, %v1850_v62  ;;  %v1788_v13 = vmul.f32 %v3477_v8, %v1121_v5  ;;  %v1852_v14 = vmul.f32 %v3477_v8, %v1281_v6 }
 0x15d   : > { %v1927_v15 = vadd.f32 %v3479_v9, %v1787_v3  ;;  %v1991_v16 = vadd.f32 %v3479_v9, %v1851_v4 }
 0x15e   : > { %v3023_v17 = vpack.c.bf16 %v1926_v10, %v1925_v1  ;;  %v3055_v18 = vpack.c.bf16 %v1990_v11, %v1989_v2  ;;  %v1928_v19 = vadd.f32 %v3481_v12, %v1788_v13  ;;  %v1992_v20 = vadd.f32 %v3481_v12, %v1852_v14 }
 0x160   : > { %2421 = vst [vmem:[%s3501_s15 + $0x80] sm:$0xff] %v3023_v17  ;;  %2453 = vst [vmem:[%s3501_s15 + $0x180] sm:$0xff] %v3055_v18  ;;  %v3024_v21 = vpack.c.bf16 %v1928_v19, %v1927_v15  ;;  %v3056_v22 = vpack.c.bf16 %v1992_v20, %v1991_v16  ;;  %v1125_v23 = vpop.f32.mrb[36].mxu0  ;;  %v1285_v24 = vpop.f32.mrb[36].mxu1 }
 0x161   : > { %v1789_v25 = vmul.f32 %v3475_v7, %v1125_v23  ;;  %v1853_v26 = vmul.f32 %v3475_v7, %v1285_v24  ;;  %v1127_v27 = vpop.f32.mrb[37].mxu0  ;;  %v1287_v28 = vpop.f32.mrb[37].mxu1 }
 0x162   : > { %2422 = vst [vmem:[%s3501_s15 + $0x88] sm:$0xff] %v3024_v21  ;;  %2454 = vst [vmem:[%s3501_s15 + $0x188] sm:$0xff] %v3056_v22  ;;  %v1790_v29 = vmul.f32 %v3477_v8, %v1127_v27  ;;  %v1854_v30 = vmul.f32 %v3477_v8, %v1287_v28  ;;  %v1129_v31 = vpop.f32.mrb[38].mxu0  ;;  %v1289_v32 = vpop.f32.mrb[38].mxu1 }
 0x163   : > { %v1929_v33 = vadd.f32 %v3479_v9, %v1789_v25  ;;  %v1993_v34 = vadd.f32 %v3479_v9, %v1853_v26  ;;  %v1791_v35 = vmul.f32 %v3475_v7, %v1129_v31  ;;  %v1855_v36 = vmul.f32 %v3475_v7, %v1289_v32  ;;  %v1131_v37 = vpop.f32.mrb[39].mxu0  ;;  %v1291_v38 = vpop.f32.mrb[39].mxu1 }
 0x164   : > { %v1930_v39 = vadd.f32 %v3481_v12, %v1790_v29  ;;  %v1994_v40 = vadd.f32 %v3481_v12, %v1854_v30  ;;  %v1792_v41 = vmul.f32 %v3477_v8, %v1131_v37  ;;  %v1856_v42 = vmul.f32 %v3477_v8, %v1291_v38 }
 0x165   : > { %v1931_v43 = vadd.f32 %v3479_v9, %v1791_v35  ;;  %v1995_v44 = vadd.f32 %v3479_v9, %v1855_v36 }
 0x166   : > { %v3025_v45 = vpack.c.bf16 %v1930_v39, %v1929_v33  ;;  %v3057_v46 = vpack.c.bf16 %v1994_v40, %v1993_v34  ;;  %v1932_v47 = vadd.f32 %v3481_v12, %v1792_v41  ;;  %v1996_v48 = vadd.f32 %v3481_v12, %v1856_v42 }
 0x168   : > { %2423 = vst [vmem:[%s3501_s15 + $0x90] sm:$0xff] %v3025_v45  ;;  %2455 = vst [vmem:[%s3501_s15 + $0x190] sm:$0xff] %v3057_v46  ;;  %v3026_v49 = vpack.c.bf16 %v1932_v47, %v1931_v43  ;;  %v3058_v50 = vpack.c.bf16 %v1996_v48, %v1995_v44  ;;  %v1135_v51 = vpop.f32.mrb[40].mxu0  ;;  %v1295_v52 = vpop.f32.mrb[40].mxu1 }
 0x169   : > { %v1793_v53 = vmul.f32 %v3475_v7, %v1135_v51  ;;  %v1857_v54 = vmul.f32 %v3475_v7, %v1295_v52  ;;  %v1137_v55 = vpop.f32.mrb[41].mxu0  ;;  %v1297_v56 = vpop.f32.mrb[41].mxu1 }
 0x16a   : > { %2424 = vst [vmem:[%s3501_s15 + $0x98] sm:$0xff] %v3026_v49  ;;  %2456 = vst [vmem:[%s3501_s15 + $0x198] sm:$0xff] %v3058_v50  ;;  %v1794_v57 = vmul.f32 %v3477_v8, %v1137_v55  ;;  %v1858_v58 = vmul.f32 %v3477_v8, %v1297_v56  ;;  %v1139_v59 = vpop.f32.mrb[42].mxu0  ;;  %v1299_v60 = vpop.f32.mrb[42].mxu1 }
 0x16b   : > { %v1933_v61 = vadd.f32 %v3479_v9, %v1793_v53  ;;  %v1997_v62 = vadd.f32 %v3479_v9, %v1857_v54  ;;  %v1795_v63 = vmul.f32 %v3475_v7, %v1139_v59  ;;  %v1859_v0 = vmul.f32 %v3475_v7, %v1299_v60  ;;  %v1141_v1 = vpop.f32.mrb[43].mxu0  ;;  %v1301_v2 = vpop.f32.mrb[43].mxu1 }
 0x16c   : > { %v1934_v3 = vadd.f32 %v3481_v12, %v1794_v57  ;;  %v1998_v4 = vadd.f32 %v3481_v12, %v1858_v58  ;;  %v1796_v5 = vmul.f32 %v3477_v8, %v1141_v1  ;;  %v1860_v6 = vmul.f32 %v3477_v8, %v1301_v2 }
 0x16d   : > { %v1935_v10 = vadd.f32 %v3479_v9, %v1795_v63  ;;  %v1999_v11 = vadd.f32 %v3479_v9, %v1859_v0 }
 0x16e   : > { %v3027_v13 = vpack.c.bf16 %v1934_v3, %v1933_v61  ;;  %v3059_v14 = vpack.c.bf16 %v1998_v4, %v1997_v62  ;;  %v1936_v15 = vadd.f32 %v3481_v12, %v1796_v5  ;;  %v2000_v16 = vadd.f32 %v3481_v12, %v1860_v6 }
 0x170   : > { %2425 = vst [vmem:[%s3501_s15 + $0xa0] sm:$0xff] %v3027_v13  ;;  %2457 = vst [vmem:[%s3501_s15 + $0x1a0] sm:$0xff] %v3059_v14  ;;  %v3028_v17 = vpack.c.bf16 %v1936_v15, %v1935_v10  ;;  %v3060_v18 = vpack.c.bf16 %v2000_v16, %v1999_v11  ;;  %v1145_v19 = vpop.f32.mrb[44].mxu0  ;;  %v1305_v20 = vpop.f32.mrb[44].mxu1 }
 0x171   : > { %v1797_v21 = vmul.f32 %v3475_v7, %v1145_v19  ;;  %v1861_v22 = vmul.f32 %v3475_v7, %v1305_v20  ;;  %v1147_v23 = vpop.f32.mrb[45].mxu0  ;;  %v1307_v24 = vpop.f32.mrb[45].mxu1 }
 0x172   : > { %2426 = vst [vmem:[%s3501_s15 + $0xa8] sm:$0xff] %v3028_v17  ;;  %2458 = vst [vmem:[%s3501_s15 + $0x1a8] sm:$0xff] %v3060_v18  ;;  %v1798_v25 = vmul.f32 %v3477_v8, %v1147_v23  ;;  %v1862_v26 = vmul.f32 %v3477_v8, %v1307_v24  ;;  %v1149_v27 = vpop.f32.mrb[46].mxu0  ;;  %v1309_v28 = vpop.f32.mrb[46].mxu1 }
 0x173   : > { %v1937_v29 = vadd.f32 %v3479_v9, %v1797_v21  ;;  %v2001_v30 = vadd.f32 %v3479_v9, %v1861_v22  ;;  %v1799_v31 = vmul.f32 %v3475_v7, %v1149_v27  ;;  %v1863_v32 = vmul.f32 %v3475_v7, %v1309_v28  ;;  %v1151_v33 = vpop.f32.mrb[47].mxu0  ;;  %v1311_v34 = vpop.f32.mrb[47].mxu1 }
 0x174   : > { %v1938_v35 = vadd.f32 %v3481_v12, %v1798_v25  ;;  %v2002_v36 = vadd.f32 %v3481_v12, %v1862_v26  ;;  %v1800_v37 = vmul.f32 %v3477_v8, %v1151_v33  ;;  %v1864_v38 = vmul.f32 %v3477_v8, %v1311_v34 }
 0x175   : > { %v1939_v39 = vadd.f32 %v3479_v9, %v1799_v31  ;;  %v2003_v40 = vadd.f32 %v3479_v9, %v1863_v32 }
 0x176   : > { %v3029_v41 = vpack.c.bf16 %v1938_v35, %v1937_v29  ;;  %v3061_v42 = vpack.c.bf16 %v2002_v36, %v2001_v30  ;;  %v1940_v43 = vadd.f32 %v3481_v12, %v1800_v37  ;;  %v2004_v44 = vadd.f32 %v3481_v12, %v1864_v38 }
 0x178   : > { %2427 = vst [vmem:[%s3501_s15 + $0xb0] sm:$0xff] %v3029_v41  ;;  %2459 = vst [vmem:[%s3501_s15 + $0x1b0] sm:$0xff] %v3061_v42  ;;  %v3030_v45 = vpack.c.bf16 %v1940_v43, %v1939_v39  ;;  %v3062_v46 = vpack.c.bf16 %v2004_v44, %v2003_v40  ;;  %v1155_v47 = vpop.f32.mrb[48].mxu0  ;;  %v1315_v48 = vpop.f32.mrb[48].mxu1 }
 0x179   : > { %v1801_v49 = vmul.f32 %v3475_v7, %v1155_v47  ;;  %v1865_v50 = vmul.f32 %v3475_v7, %v1315_v48  ;;  %v1157_v51 = vpop.f32.mrb[49].mxu0  ;;  %v1317_v52 = vpop.f32.mrb[49].mxu1 }
 0x17a   : > { %2428 = vst [vmem:[%s3501_s15 + $0xb8] sm:$0xff] %v3030_v45  ;;  %2460 = vst [vmem:[%s3501_s15 + $0x1b8] sm:$0xff] %v3062_v46  ;;  %v1802_v53 = vmul.f32 %v3477_v8, %v1157_v51  ;;  %v1866_v54 = vmul.f32 %v3477_v8, %v1317_v52  ;;  %v1159_v55 = vpop.f32.mrb[50].mxu0  ;;  %v1319_v56 = vpop.f32.mrb[50].mxu1 }
 0x17b   : > { %v1941_v57 = vadd.f32 %v3479_v9, %v1801_v49  ;;  %v2005_v58 = vadd.f32 %v3479_v9, %v1865_v50  ;;  %v1803_v59 = vmul.f32 %v3475_v7, %v1159_v55  ;;  %v1867_v60 = vmul.f32 %v3475_v7, %v1319_v56  ;;  %v1161_v61 = vpop.f32.mrb[51].mxu0  ;;  %v1321_v62 = vpop.f32.mrb[51].mxu1 }
 0x17c   : > { %v1942_v63 = vadd.f32 %v3481_v12, %v1802_v53  ;;  %v2006_v0 = vadd.f32 %v3481_v12, %v1866_v54  ;;  %v1804_v1 = vmul.f32 %v3477_v8, %v1161_v61  ;;  %v1868_v2 = vmul.f32 %v3477_v8, %v1321_v62 }
 0x17d   : > { %v1943_v3 = vadd.f32 %v3479_v9, %v1803_v59  ;;  %v2007_v4 = vadd.f32 %v3479_v9, %v1867_v60 }
 0x17e   : > { %v3031_v5 = vpack.c.bf16 %v1942_v63, %v1941_v57  ;;  %v3063_v6 = vpack.c.bf16 %v2006_v0, %v2005_v58  ;;  %v1944_v10 = vadd.f32 %v3481_v12, %v1804_v1  ;;  %v2008_v11 = vadd.f32 %v3481_v12, %v1868_v2 }
 0x180   : > { %2429 = vst [vmem:[%s3501_s15 + $0xc0] sm:$0xff] %v3031_v5  ;;  %2461 = vst [vmem:[%s3501_s15 + $0x1c0] sm:$0xff] %v3063_v6  ;;  %v3032_v13 = vpack.c.bf16 %v1944_v10, %v1943_v3  ;;  %v3064_v14 = vpack.c.bf16 %v2008_v11, %v2007_v4  ;;  %v1165_v15 = vpop.f32.mrb[52].mxu0  ;;  %v1325_v16 = vpop.f32.mrb[52].mxu1 }
 0x181   : > { %v1805_v17 = vmul.f32 %v3475_v7, %v1165_v15  ;;  %v1869_v18 = vmul.f32 %v3475_v7, %v1325_v16  ;;  %v1167_v19 = vpop.f32.mrb[53].mxu0  ;;  %v1327_v20 = vpop.f32.mrb[53].mxu1 }
 0x182   : > { %2430 = vst [vmem:[%s3501_s15 + $0xc8] sm:$0xff] %v3032_v13  ;;  %2462 = vst [vmem:[%s3501_s15 + $0x1c8] sm:$0xff] %v3064_v14  ;;  %v1806_v21 = vmul.f32 %v3477_v8, %v1167_v19  ;;  %v1870_v22 = vmul.f32 %v3477_v8, %v1327_v20  ;;  %v1169_v23 = vpop.f32.mrb[54].mxu0  ;;  %v1329_v24 = vpop.f32.mrb[54].mxu1 }
 0x183   : > { %v1945_v25 = vadd.f32 %v3479_v9, %v1805_v17  ;;  %v2009_v26 = vadd.f32 %v3479_v9, %v1869_v18  ;;  %v1807_v27 = vmul.f32 %v3475_v7, %v1169_v23  ;;  %v1871_v28 = vmul.f32 %v3475_v7, %v1329_v24  ;;  %v1171_v29 = vpop.f32.mrb[55].mxu0  ;;  %v1331_v30 = vpop.f32.mrb[55].mxu1 }
 0x184   : > { %v1946_v31 = vadd.f32 %v3481_v12, %v1806_v21  ;;  %v2010_v32 = vadd.f32 %v3481_v12, %v1870_v22  ;;  %v1808_v33 = vmul.f32 %v3477_v8, %v1171_v29  ;;  %v1872_v34 = vmul.f32 %v3477_v8, %v1331_v30 }
 0x185   : > { %v1947_v35 = vadd.f32 %v3479_v9, %v1807_v27  ;;  %v2011_v36 = vadd.f32 %v3479_v9, %v1871_v28 }
 0x186   : > { %v3033_v37 = vpack.c.bf16 %v1946_v31, %v1945_v25  ;;  %v3065_v38 = vpack.c.bf16 %v2010_v32, %v2009_v26  ;;  %v1948_v39 = vadd.f32 %v3481_v12, %v1808_v33  ;;  %v2012_v40 = vadd.f32 %v3481_v12, %v1872_v34 }
 0x188   : > { %2431 = vst [vmem:[%s3501_s15 + $0xd0] sm:$0xff] %v3033_v37  ;;  %2463 = vst [vmem:[%s3501_s15 + $0x1d0] sm:$0xff] %v3065_v38  ;;  %v3034_v41 = vpack.c.bf16 %v1948_v39, %v1947_v35  ;;  %v3066_v42 = vpack.c.bf16 %v2012_v40, %v2011_v36  ;;  %v1175_v43 = vpop.f32.mrb[56].mxu0  ;;  %v1335_v44 = vpop.f32.mrb[56].mxu1  ;;  %v2641_v38 = vld [vmem:[%s3501_s15 + $0x18] sm:$0xff] (%p3286_p6)  ;;  %v2643_v39 = vld [vmem:[%s3501_s15 + $0x20] sm:$0xff] (%p3286_p6) }
 0x189   : > { %v1809_v45 = vmul.f32 %v3475_v7, %v1175_v43  ;;  %v1873_v46 = vmul.f32 %v3475_v7, %v1335_v44  ;;  %v1177_v47 = vpop.f32.mrb[57].mxu0  ;;  %v1337_v48 = vpop.f32.mrb[57].mxu1  ;;  %v2645_v40 = vld [vmem:[%s3501_s15 + $0x28] sm:$0xff] (%p3286_p6)  ;;  %2642 = vst [vmem:[%s3816_s22 + $0x30] sm:$0xff] (%p3286_p6), %v2641_v38  ;;  %2644 = vst [vmem:[%s3816_s22 + $0x40] sm:$0xff] (%p3286_p6), %v2643_v39  ;;  %v2651_v43 = vld [vmem:[%s3501_s15 + $0x40] sm:$0xff] (%p3286_p6) }
 0x18a   : > { %2432 = vst [vmem:[%s3501_s15 + $0xd8] sm:$0xff] %v3034_v41  ;;  %2464 = vst [vmem:[%s3501_s15 + $0x1d8] sm:$0xff] %v3066_v42  ;;  %v1810_v49 = vmul.f32 %v3477_v8, %v1177_v47  ;;  %v1874_v50 = vmul.f32 %v3477_v8, %v1337_v48  ;;  %v1179_v51 = vpop.f32.mrb[58].mxu0  ;;  %v1339_v52 = vpop.f32.mrb[58].mxu1  ;;  %v2647_v41 = vld [vmem:[%s3501_s15 + $0x30] sm:$0xff] (%p3286_p6)  ;;  %v2649_v42 = vld [vmem:[%s3501_s15 + $0x38] sm:$0xff] (%p3286_p6) }
 0x18b   : > { %v1949_v53 = vadd.f32 %v3479_v9, %v1809_v45  ;;  %v2013_v54 = vadd.f32 %v3479_v9, %v1873_v46  ;;  %v1811_v55 = vmul.f32 %v3475_v7, %v1179_v51  ;;  %v1875_v56 = vmul.f32 %v3475_v7, %v1339_v52  ;;  %v1181_v57 = vpop.f32.mrb[59].mxu0  ;;  %v1341_v58 = vpop.f32.mrb[59].mxu1  ;;  %2646 = vst [vmem:[%s3816_s22 + $0x50] sm:$0xff] (%p3286_p6), %v2645_v40  ;;  %v2653_v44 = vld [vmem:[%s3501_s15 + $0x48] sm:$0xff] (%p3286_p6)  ;;  %v2655_v45 = vld [vmem:[%s3501_s15 + $0x50] sm:$0xff] (%p3286_p6)  ;;  %v2657_v46 = vld [vmem:[%s3501_s15 + $0x58] sm:$0xff] (%p3286_p6) }
 0x18c   : > { %v1950_v59 = vadd.f32 %v3481_v12, %v1810_v49  ;;  %v2014_v60 = vadd.f32 %v3481_v12, %v1874_v50  ;;  %v1812_v61 = vmul.f32 %v3477_v8, %v1181_v57  ;;  %v1876_v62 = vmul.f32 %v3477_v8, %v1341_v58  ;;  %2648 = vst [vmem:[%s3816_s22 + $0x60] sm:$0xff] (%p3286_p6), %v2647_v41  ;;  %v2659_v47 = vld [vmem:[%s3501_s15 + $0x60] sm:$0xff] (%p3286_p6)  ;;  %v2661_v48 = vld [vmem:[%s3501_s15 + $0x68] sm:$0xff] (%p3286_p6)  ;;  %v2663_v49 = vld [vmem:[%s3501_s15 + $0x70] sm:$0xff] (%p3286_p6) }
 0x18d   : > { %v1951_v63 = vadd.f32 %v3479_v9, %v1811_v55  ;;  %v2015_v0 = vadd.f32 %v3479_v9, %v1875_v56  ;;  %2650 = vst [vmem:[%s3816_s22 + $0x70] sm:$0xff] (%p3286_p6), %v2649_v42  ;;  %2652 = vst [vmem:[%s3816_s22 + $0x80] sm:$0xff] (%p3286_p6), %v2651_v43  ;;  %v2665_v50 = vld [vmem:[%s3501_s15 + $0x78] sm:$0xff] (%p3286_p6)  ;;  %v2667_v51 = vld [vmem:[%s3501_s15 + $0x80] sm:$0xff] (%p3286_p6) }
 0x18e   : > { %v3035_v1 = vpack.c.bf16 %v1950_v59, %v1949_v53  ;;  %v3067_v2 = vpack.c.bf16 %v2014_v60, %v2013_v54  ;;  %v1952_v3 = vadd.f32 %v3481_v12, %v1812_v61  ;;  %v2016_v4 = vadd.f32 %v3481_v12, %v1876_v62  ;;  %2654 = vst [vmem:[%s3816_s22 + $0x90] sm:$0xff] (%p3286_p6), %v2653_v44  ;;  %v2669_v52 = vld [vmem:[%s3501_s15 + $0x88] sm:$0xff] (%p3286_p6)  ;;  %v2671_v53 = vld [vmem:[%s3501_s15 + $0x90] sm:$0xff] (%p3286_p6)  ;;  %v2673_v54 = vld [vmem:[%s3501_s15 + $0x98] sm:$0xff] (%p3286_p6) }
 0x18f   : > { %2656 = vst [vmem:[%s3816_s22 + $0xa0] sm:$0xff] (%p3286_p6), %v2655_v45  ;;  %2658 = vst [vmem:[%s3816_s22 + $0xb0] sm:$0xff] (%p3286_p6), %v2657_v46  ;;  %v2675_v55 = vld [vmem:[%s3501_s15 + $0xa0] sm:$0xff] (%p3286_p6)  ;;  %v2677_v56 = vld [vmem:[%s3501_s15 + $0xa8] sm:$0xff] (%p3286_p6) }
 0x190   : > { %2433 = vst [vmem:[%s3501_s15 + $0xe0] sm:$0xff] %v3035_v1  ;;  %2465 = vst [vmem:[%s3501_s15 + $0x1e0] sm:$0xff] %v3067_v2  ;;  %v3036_v5 = vpack.c.bf16 %v1952_v3, %v1951_v63  ;;  %v3068_v6 = vpack.c.bf16 %v2016_v4, %v2015_v0  ;;  %v1185_v10 = vpop.f32.mrb[60].mxu0  ;;  %v1345_v11 = vpop.f32.mrb[60].mxu1  ;;  %v2679_v57 = vld [vmem:[%s3501_s15 + $0xb0] sm:$0xff] (%p3286_p6)  ;;  %v2681_v58 = vld [vmem:[%s3501_s15 + $0xb8] sm:$0xff] (%p3286_p6) }
 0x191   : > { %v1813_v13 = vmul.f32 %v3475_v7, %v1185_v10  ;;  %v1877_v14 = vmul.f32 %v3475_v7, %v1345_v11  ;;  %v1187_v15 = vpop.f32.mrb[61].mxu0  ;;  %v1347_v16 = vpop.f32.mrb[61].mxu1  ;;  %2660 = vst [vmem:[%s3816_s22 + $0xc0] sm:$0xff] (%p3286_p6), %v2659_v47  ;;  %2662 = vst [vmem:[%s3816_s22 + $0xd0] sm:$0xff] (%p3286_p6), %v2661_v48  ;;  %v2683_v59 = vld [vmem:[%s3501_s15 + $0xc0] sm:$0xff] (%p3286_p6)  ;;  %v2685_v60 = vld [vmem:[%s3501_s15 + $0xc8] sm:$0xff] (%p3286_p6) }
 0x192   : > { %2434 = vst [vmem:[%s3501_s15 + $0xe8] sm:$0xff] %v3036_v5  ;;  %2466 = vst [vmem:[%s3501_s15 + $0x1e8] sm:$0xff] %v3068_v6  ;;  %v1814_v17 = vmul.f32 %v3477_v8, %v1187_v15  ;;  %v1878_v18 = vmul.f32 %v3477_v8, %v1347_v16  ;;  %v1189_v19 = vpop.f32.mrb[62].mxu0  ;;  %v1349_v20 = vpop.f32.mrb[62].mxu1  ;;  %v2687_v61 = vld [vmem:[%s3501_s15 + $0xd0] sm:$0xff] (%p3286_p6)  ;;  %v2689_v62 = vld [vmem:[%s3501_s15 + $0xd8] sm:$0xff] (%p3286_p6) }
 0x193   : > { %v1953_v21 = vadd.f32 %v3479_v9, %v1813_v13  ;;  %v2017_v22 = vadd.f32 %v3479_v9, %v1877_v14  ;;  %v1815_v23 = vmul.f32 %v3475_v7, %v1189_v19  ;;  %v1879_v24 = vmul.f32 %v3475_v7, %v1349_v20  ;;  %v1191_v25 = vpop.f32.mrb[63].mxu0  ;;  %v1351_v26 = vpop.f32.mrb[63].mxu1  ;;  %2664 = vst [vmem:[%s3816_s22 + $0xe0] sm:$0xff] (%p3286_p6), %v2663_v49  ;;  %v2699_v3 = vld [vmem:[%s3501_s15 + $0x100] sm:$0xff] (%p3286_p6)  ;;  %v2701_v4 = vld [vmem:[%s3501_s15 + $0x108] sm:$0xff] (%p3286_p6)  ;;  %v2703_v5 = vld [vmem:[%s3501_s15 + $0x110] sm:$0xff] (%p3286_p6) }
 0x194   : > { %v1954_v27 = vadd.f32 %v3481_v12, %v1814_v17  ;;  %v2018_v28 = vadd.f32 %v3481_v12, %v1878_v18  ;;  %v1816_v29 = vmul.f32 %v3477_v8, %v1191_v25  ;;  %v1880_v30 = vmul.f32 %v3477_v8, %v1351_v26  ;;  %2475 = sbr.rel (!%p3286_p6) target bundleno = 433 (0x1b1), region = 86  ;;  %v2635_v8 = vld [vmem:[%s3501_s15] sm:$0xff] (%p3286_p6)  ;;  %2666 = vst [vmem:[%s3816_s22 + $0xf0] sm:$0xff] (%p3286_p6), %v2665_v50  ;;  %v2705_v6 = vld [vmem:[%s3501_s15 + $0x118] sm:$0xff] (%p3286_p6)  ;;  %v2709_v11 = vld [vmem:[%s3501_s15 + $0x128] sm:$0xff] (%p3286_p6) }
 0x195   : > { %v1955_v31 = vadd.f32 %v3479_v9, %v1815_v23  ;;  %v2019_v32 = vadd.f32 %v3479_v9, %v1879_v24  ;;  %v2637_v9 = vld [vmem:[%s3501_s15 + $0x8] sm:$0xff] (%p3286_p6)  ;;  %2636 = vst [vmem:[%s3816_s22] sm:$0xff] (%p3286_p6), %v2635_v8  ;;  %2668 = vst [vmem:[%s3816_s22 + $0x100] sm:$0xff] (%p3286_p6), %v2667_v51  ;;  %v2707_v10 = vld [vmem:[%s3501_s15 + $0x120] sm:$0xff] (%p3286_p6) }
 0x196   : > { %v3037_v33 = vpack.c.bf16 %v1954_v27, %v1953_v21  ;;  %v3069_v34 = vpack.c.bf16 %v2018_v28, %v2017_v22  ;;  %v1956_v7 = vadd.f32 %v3481_v12, %v1816_v29  ;;  %v2020_v35 = vadd.f32 %v3481_v12, %v1880_v30  ;;  %v2639_v12 = vld [vmem:[%s3501_s15 + $0x10] sm:$0xff] (%p3286_p6)  ;;  %2638 = vst [vmem:[%s3816_s22 + $0x10] sm:$0xff] (%p3286_p6), %v2637_v9  ;;  %v2713_v14 = vld [vmem:[%s3501_s15 + $0x138] sm:$0xff] (%p3286_p6)  ;;  %v2715_v15 = vld [vmem:[%s3501_s15 + $0x140] sm:$0xff] (%p3286_p6) }
 0x197   : > { %2640 = vst [vmem:[%s3816_s22 + $0x20] sm:$0xff] (%p3286_p6), %v2639_v12  ;;  %2670 = vst [vmem:[%s3816_s22 + $0x110] sm:$0xff] (%p3286_p6), %v2669_v52  ;;  %v2691_v63 = vld [vmem:[%s3501_s15 + $0xe0] sm:$0xff] (%p3286_p6)  ;;  %v2711_v13 = vld [vmem:[%s3501_s15 + $0x130] sm:$0xff] (%p3286_p6) }
 0x198   : > { %2435 = vst [vmem:[%s3501_s15 + $0xf0] sm:$0xff] %v3037_v33  ;;  %2467 = vst [vmem:[%s3501_s15 + $0x1f0] sm:$0xff] %v3069_v34  ;;  %v3038_v36 = vpack.c.bf16 %v1956_v7, %v1955_v31  ;;  %v3070_v37 = vpack.c.bf16 %v2020_v35, %v2019_v32  ;;  %v2717_v16 = vld [vmem:[%s3501_s15 + $0x148] sm:$0xff] (%p3286_p6)  ;;  %v2719_v17 = vld [vmem:[%s3501_s15 + $0x150] sm:$0xff] (%p3286_p6) }
 0x199   : > { %2672 = vst [vmem:[%s3816_s22 + $0x120] sm:$0xff] (%p3286_p6), %v2671_v53  ;;  %2674 = vst [vmem:[%s3816_s22 + $0x130] sm:$0xff] (%p3286_p6), %v2673_v54  ;;  %v2693_v0 = vld [vmem:[%s3501_s15 + $0xe8] sm:$0xff] (%p3286_p6)  ;;  %v2721_v18 = vld [vmem:[%s3501_s15 + $0x158] sm:$0xff] (%p3286_p6) }
 0x19a   : > { %2436 = vst [vmem:[%s3501_s15 + $0xf8] sm:$0xff] %v3038_v36  ;;  %2468 = vst [vmem:[%s3501_s15 + $0x1f8] sm:$0xff] %v3070_v37  ;;  %v2723_v19 = vld [vmem:[%s3501_s15 + $0x160] sm:$0xff] (%p3286_p6)  ;;  %v2725_v20 = vld [vmem:[%s3501_s15 + $0x168] sm:$0xff] (%p3286_p6) }
 0x19b   : > { %2676 = vst [vmem:[%s3816_s22 + $0x140] sm:$0xff] %v2675_v55  ;;  %2678 = vst [vmem:[%s3816_s22 + $0x150] sm:$0xff] %v2677_v56  ;;  %v2727_v21 = vld [vmem:[%s3501_s15 + $0x170] sm:$0xff]  ;;  %v2729_v22 = vld [vmem:[%s3501_s15 + $0x178] sm:$0xff] }
 0x19c   : > { %2680 = vst [vmem:[%s3816_s22 + $0x160] sm:$0xff] %v2679_v57  ;;  %2682 = vst [vmem:[%s3816_s22 + $0x170] sm:$0xff] %v2681_v58  ;;  %v2731_v23 = vld [vmem:[%s3501_s15 + $0x180] sm:$0xff]  ;;  %v2733_v24 = vld [vmem:[%s3501_s15 + $0x188] sm:$0xff] }
 0x19d   : > { %2684 = vst [vmem:[%s3816_s22 + $0x180] sm:$0xff] %v2683_v59  ;;  %2686 = vst [vmem:[%s3816_s22 + $0x190] sm:$0xff] %v2685_v60  ;;  %v2735_v25 = vld [vmem:[%s3501_s15 + $0x190] sm:$0xff]  ;;  %v2737_v26 = vld [vmem:[%s3501_s15 + $0x198] sm:$0xff] }
 0x19e   : > { %2688 = vst [vmem:[%s3816_s22 + $0x1a0] sm:$0xff] %v2687_v61  ;;  %2690 = vst [vmem:[%s3816_s22 + $0x1b0] sm:$0xff] %v2689_v62  ;;  %v2739_v27 = vld [vmem:[%s3501_s15 + $0x1a0] sm:$0xff]  ;;  %v2741_v28 = vld [vmem:[%s3501_s15 + $0x1a8] sm:$0xff] }
 0x19f   : > { %2692 = vst [vmem:[%s3816_s22 + $0x1c0] sm:$0xff] %v2691_v63  ;;  %2694 = vst [vmem:[%s3816_s22 + $0x1d0] sm:$0xff] %v2693_v0  ;;  %v2695_v1 = vld [vmem:[%s3501_s15 + $0xf0] sm:$0xff]  ;;  %v2745_v30 = vld [vmem:[%s3501_s15 + $0x1b8] sm:$0xff] }
 0x1a0   : > { %2696 = vst [vmem:[%s3816_s22 + $0x1e0] sm:$0xff] %v2695_v1  ;;  %2700 = vst [vmem:[%s3816_s22 + $0x200] sm:$0xff] %v2699_v3  ;;  %v2743_v29 = vld [vmem:[%s3501_s15 + $0x1b0] sm:$0xff]  ;;  %v2747_v31 = vld [vmem:[%s3501_s15 + $0x1c0] sm:$0xff] }
 0x1a1   : > { %v2697_v2 = vld [vmem:[%s3501_s15 + $0xf8] sm:$0xff]  ;;  %2702 = vst [vmem:[%s3816_s22 + $0x210] sm:$0xff] %v2701_v4  ;;  %2704 = vst [vmem:[%s3816_s22 + $0x220] sm:$0xff] %v2703_v5  ;;  %v2749_v32 = vld [vmem:[%s3501_s15 + $0x1c8] sm:$0xff] }
 0x1a2   : > { %2698 = vst [vmem:[%s3816_s22 + $0x1f0] sm:$0xff] %v2697_v2  ;;  %2706 = vst [vmem:[%s3816_s22 + $0x230] sm:$0xff] %v2705_v6  ;;  %v2751_v33 = vld [vmem:[%s3501_s15 + $0x1d0] sm:$0xff]  ;;  %v2753_v34 = vld [vmem:[%s3501_s15 + $0x1d8] sm:$0xff] }
 0x1a3   : > { %2708 = vst [vmem:[%s3816_s22 + $0x240] sm:$0xff] %v2707_v10  ;;  %2710 = vst [vmem:[%s3816_s22 + $0x250] sm:$0xff] %v2709_v11  ;;  %v2755_v7 = vld [vmem:[%s3501_s15 + $0x1e0] sm:$0xff]  ;;  %v2757_v35 = vld [vmem:[%s3501_s15 + $0x1e8] sm:$0xff] }
 0x1a4   : > { %2712 = vst [vmem:[%s3816_s22 + $0x260] sm:$0xff] %v2711_v13  ;;  %2714 = vst [vmem:[%s3816_s22 + $0x270] sm:$0xff] %v2713_v14  ;;  %v2759_v36 = vld [vmem:[%s3501_s15 + $0x1f0] sm:$0xff]  ;;  %v2761_v37 = vld [vmem:[%s3501_s15 + $0x1f8] sm:$0xff] }
 0x1a5   : > { %2716 = vst [vmem:[%s3816_s22 + $0x280] sm:$0xff] %v2715_v15  ;;  %2718 = vst [vmem:[%s3816_s22 + $0x290] sm:$0xff] %v2717_v16 }
 0x1a6   : > { %2720 = vst [vmem:[%s3816_s22 + $0x2a0] sm:$0xff] %v2719_v17  ;;  %2722 = vst [vmem:[%s3816_s22 + $0x2b0] sm:$0xff] %v2721_v18 }
 0x1a7   : > { %2724 = vst [vmem:[%s3816_s22 + $0x2c0] sm:$0xff] %v2723_v19  ;;  %2726 = vst [vmem:[%s3816_s22 + $0x2d0] sm:$0xff] %v2725_v20 }
 0x1a8   : > { %2728 = vst [vmem:[%s3816_s22 + $0x2e0] sm:$0xff] %v2727_v21  ;;  %2730 = vst [vmem:[%s3816_s22 + $0x2f0] sm:$0xff] %v2729_v22 }
 0x1a9   : > { %2732 = vst [vmem:[%s3816_s22 + $0x300] sm:$0xff] %v2731_v23  ;;  %2734 = vst [vmem:[%s3816_s22 + $0x310] sm:$0xff] %v2733_v24 }
 0x1aa   : > { %2736 = vst [vmem:[%s3816_s22 + $0x320] sm:$0xff] %v2735_v25  ;;  %2738 = vst [vmem:[%s3816_s22 + $0x330] sm:$0xff] %v2737_v26 }
 0x1ab   : > { %2740 = vst [vmem:[%s3816_s22 + $0x340] sm:$0xff] %v2739_v27  ;;  %2742 = vst [vmem:[%s3816_s22 + $0x350] sm:$0xff] %v2741_v28 }
 0x1ac   : > { %2744 = vst [vmem:[%s3816_s22 + $0x360] sm:$0xff] %v2743_v29  ;;  %2746 = vst [vmem:[%s3816_s22 + $0x370] sm:$0xff] %v2745_v30 }
 0x1ad   : > { %2748 = vst [vmem:[%s3816_s22 + $0x380] sm:$0xff] %v2747_v31  ;;  %2750 = vst [vmem:[%s3816_s22 + $0x390] sm:$0xff] %v2749_v32 }
 0x1ae   : > { %2752 = vst [vmem:[%s3816_s22 + $0x3a0] sm:$0xff] %v2751_v33  ;;  %2754 = vst [vmem:[%s3816_s22 + $0x3b0] sm:$0xff] %v2753_v34 }
 0x1af   : > { %2756 = vst [vmem:[%s3816_s22 + $0x3c0] sm:$0xff] %v2755_v7  ;;  %2758 = vst [vmem:[%s3816_s22 + $0x3d0] sm:$0xff] %v2757_v35 }
 0x1b0   : > { %2760 = vst [vmem:[%s3816_s22 + $0x3e0] sm:$0xff] %v2759_v36  ;;  %2762 = vst [vmem:[%s3816_s22 + $0x3f0] sm:$0xff] %v2761_v37 }
 0x1b1 PF: > { %s14_s19 = sadd.s32 1, %s3223_s19   ;;  %s3964_s15 = smov %s3211_s16 }
 0x1b2   : > { %p11_p12 = scmp.ge.s32.totalorder %s14_s19, 4   ;;  %s3965_s16 = smov %s3291_s25 }
 0x1b3   : > { %s3966_s17 = smov %s3219_s18  ;;  %s3967_s18 = smov %s3969_s20 }
 0x1b4   :  { %13 = sbr.rel (!%p11_p12) target bundleno = 3 (0x3), region = 164 }

// kernel: resnet_forward.13
= control target key start
LH: loop header
LB: loop body
LE: loop exit
PB: predicated region body
PF: predicated region fallthrough
CT: control target
= control target key end

     0   :  { %s4073_s18 = smov 0   ;;  %s4075_s19 = smov 0   ;;  %s5563_s0 = inlined_call_operand.vmem [shape: bf16[512,128], index: 0, kind: input, shape index: {}]   ;;  %s5564_s1 = inlined_call_operand.vmem [shape: bf16[128,512], index: 1, kind: input, shape index: {}]   ;;  %s5565_s2 = inlined_call_operand.vmem [shape: f32[1,512], index: 2, kind: input, shape index: {}]   ;;  %s5566_s3 = inlined_call_operand.vmem [shape: f32[1,512], index: 3, kind: input, shape index: {}]   ;;  %s5567_s4 = inlined_call_operand.vmem [shape: bf16[512,512], index: 4, kind: input, shape index: {}]   ;;  %s5568_s5 = inlined_call_operand.vmem [shape: bf16[512,512], index: 5, kind: output, shape index: {}]  }
   0x1   :  { %s4077_s20 = smov 0   ;;  %s4079_s21 = smov 0  }
   0x2   :  { %s4081_s22 = smov 0  }
   0x3 LB: > { %s30_s23 = sadd.s32 1, %s4036_s21  ;;  %s3686_s24 = sadd.s32 4294967295, %s4040_s22   ;;  %s4040_s22 = sphi %s4081_s22, %s15_s22   ;;  %s4036_s21 = sphi %s4079_s21, %s5766_s21   ;;  %s4032_s20 = sphi %s4077_s20, %s5765_s20   ;;  %s4028_s19 = sphi %s4075_s19, %s5764_s19   ;;  %s4024_s18 = sphi %s4073_s18, %s5763_s18  }
   0x4   : > { %p32_p0 = scmp.ge.s32.totalorder %s30_s23, 2  ;;  %p78_p1 = scmp.ne.s32.totalorder %s4028_s19, %s4024_s18 }
   0x5   : > { %p79_p2 = scmp.eq.s32.totalorder %s4040_s22, 0  ;;  %p190_p4 = scmp.eq.s32.totalorder %s3686_s24, 1 }
   0x6   : > { %s5768_s23 = smov (%p32_p0, %s30_s23), 0  ;;  %s71_s27 = sadd.s32 1, %s4028_s19 }
   0x7   : > { %p4105_p3 = por %p79_p2, %p78_p1  ;;  %s67_s26 = ssub.s32 %s4036_s21, %s5768_s23 }
   0x8   : > { %p69_p5 = scmp.eq.s32.totalorder %s67_s26, 0  ;;  %p4112_p6 = por %p190_p4, %p78_p1 }
   0x9   : > { %p3690_p7 = scmp.ge.s32.totalorder %s4040_s22, 2 }
   0xa   : > { %s4117_s29 = scalar_select %p69_p5, %s4028_s19, %s71_s27  }
   0xb   : > { %224 = sbr.rel (%p3690_p7) target bundleno = 66 (0x42), region = 20 }
  0x12   : > { %227 = sbr.rel (!%p4105_p3) target bundleno = 30 (0x1e), region = 24  ;;  %s229_s30 = sand.u32 (%p4105_p3), 1, %s4028_s19  }
  0x13   : > { %s3820_s6 = sshll.u32 (%p4105_p3), %s4036_s21, 3  ;;  %s3691_s7 = sshll.u32 (%p4105_p3), %s229_s30, 7 }
  0x14   : > { %s4127_s10 = scalar_lea.vmem (%p4105_p3), %s5564_s1, %s3820_s6  ;;  %s231_s11 = scalar_lea.vmem (%p4105_p3), [#allocation3], %s3691_s7 }
  0x15   : > { %v295_v0 = vld [vmem:[%s4127_s10] sm:$0xff] (%p4105_p3)  ;;  %v297_v1 = vld [vmem:[%s4127_s10 + $0x10] sm:$0xff] (%p4105_p3) }
  0x16   : > { %v299_v2 = vld [vmem:[%s4127_s10 + $0x20] sm:$0xff] (%p4105_p3)  ;;  %296 = vst [vmem:[%s231_s11] sm:$0xff] (%p4105_p3), %v295_v0  ;;  %298 = vst [vmem:[%s231_s11 + $0x8] sm:$0xff] (%p4105_p3), %v297_v1  ;;  %v301_v3 = vld [vmem:[%s4127_s10 + $0x30] sm:$0xff] (%p4105_p3) }
  0x17   : > { %300 = vst [vmem:[%s231_s11 + $0x10] sm:$0xff] (%p4105_p3), %v299_v2  ;;  %v303_v4 = vld [vmem:[%s4127_s10 + $0x40] sm:$0xff] (%p4105_p3)  ;;  %v305_v5 = vld [vmem:[%s4127_s10 + $0x50] sm:$0xff] (%p4105_p3)  ;;  %302 = vst [vmem:[%s231_s11 + $0x18] sm:$0xff] (%p4105_p3), %v301_v3 }
  0x18   : > { %304 = vst [vmem:[%s231_s11 + $0x20] sm:$0xff] (%p4105_p3), %v303_v4  ;;  %306 = vst [vmem:[%s231_s11 + $0x28] sm:$0xff] (%p4105_p3), %v305_v5  ;;  %v307_v6 = vld [vmem:[%s4127_s10 + $0x60] sm:$0xff] (%p4105_p3)  ;;  %v309_v7 = vld [vmem:[%s4127_s10 + $0x70] sm:$0xff] (%p4105_p3) }
  0x19   : > { %v311_v8 = vld [vmem:[%s4127_s10 + $0x80] sm:$0xff]  ;;  %308 = vst [vmem:[%s231_s11 + $0x30] sm:$0xff] %v307_v6  ;;  %310 = vst [vmem:[%s231_s11 + $0x38] sm:$0xff] %v309_v7  ;;  %v313_v9 = vld [vmem:[%s4127_s10 + $0x90] sm:$0xff] }
  0x1a   : > { %312 = vst [vmem:[%s231_s11 + $0x40] sm:$0xff] %v311_v8  ;;  %v315_v10 = vld [vmem:[%s4127_s10 + $0xa0] sm:$0xff]  ;;  %v317_v11 = vld [vmem:[%s4127_s10 + $0xb0] sm:$0xff]  ;;  %314 = vst [vmem:[%s231_s11 + $0x48] sm:$0xff] %v313_v9 }
  0x1b   : > { %316 = vst [vmem:[%s231_s11 + $0x50] sm:$0xff] %v315_v10  ;;  %318 = vst [vmem:[%s231_s11 + $0x58] sm:$0xff] %v317_v11  ;;  %v319_v12 = vld [vmem:[%s4127_s10 + $0xc0] sm:$0xff]  ;;  %v321_v13 = vld [vmem:[%s4127_s10 + $0xd0] sm:$0xff] }
  0x1c   : > { %v323_v14 = vld [vmem:[%s4127_s10 + $0xe0] sm:$0xff]  ;;  %320 = vst [vmem:[%s231_s11 + $0x60] sm:$0xff] %v319_v12  ;;  %322 = vst [vmem:[%s231_s11 + $0x68] sm:$0xff] %v321_v13  ;;  %v325_v15 = vld [vmem:[%s4127_s10 + $0xf0] sm:$0xff] }
  0x1d   : > { %324 = vst [vmem:[%s231_s11 + $0x70] sm:$0xff] %v323_v14  ;;  %326 = vst [vmem:[%s231_s11 + $0x78] sm:$0xff] %v325_v15 }
  0x1e PF: > { %348 = sbr.rel (!%p4105_p3) target bundleno = 66 (0x42), region = 70  ;;  %s350_s12 = sand.u32 (%p4105_p3), 1, %s4028_s19  }
  0x1f   : > { %s3821_s13 = sshll.u32 (%p4105_p3), %s4036_s21, 3  ;;  %s3694_s14 = sshll.u32 (%p4105_p3), %s350_s12, 9 }
  0x20   : > { %s4152_s17 = scalar_lea.vmem (%p4105_p3), %s5567_s4, %s3821_s13  ;;  %s4157_s24 = scalar_lea.vmem (%p4105_p3), [#allocation4], %s3694_s14 }
  0x21   : > { %v512_v16 = vld [vmem:[%s4152_s17] sm:$0xff] (%p4105_p3)  ;;  %v514_v17 = vld [vmem:[%s4152_s17 + $0x10] sm:$0xff] (%p4105_p3) }
  0x22   : > { %v516_v18 = vld [vmem:[%s4152_s17 + $0x20] sm:$0xff] (%p4105_p3)  ;;  %513 = vst [vmem:[%s4157_s24] sm:$0xff] (%p4105_p3), %v512_v16  ;;  %515 = vst [vmem:[%s4157_s24 + $0x8] sm:$0xff] (%p4105_p3), %v514_v17  ;;  %v518_v19 = vld [vmem:[%s4152_s17 + $0x30] sm:$0xff] (%p4105_p3) }
  0x23   : > { %517 = vst [vmem:[%s4157_s24 + $0x10] sm:$0xff] (%p4105_p3), %v516_v18  ;;  %v520_v20 = vld [vmem:[%s4152_s17 + $0x40] sm:$0xff] (%p4105_p3)  ;;  %v522_v21 = vld [vmem:[%s4152_s17 + $0x50] sm:$0xff] (%p4105_p3)  ;;  %519 = vst [vmem:[%s4157_s24 + $0x18] sm:$0xff] (%p4105_p3), %v518_v19 }
  0x24   : > { %521 = vst [vmem:[%s4157_s24 + $0x20] sm:$0xff] (%p4105_p3), %v520_v20  ;;  %523 = vst [vmem:[%s4157_s24 + $0x28] sm:$0xff] (%p4105_p3), %v522_v21  ;;  %v524_v22 = vld [vmem:[%s4152_s17 + $0x60] sm:$0xff] (%p4105_p3)  ;;  %v526_v23 = vld [vmem:[%s4152_s17 + $0x70] sm:$0xff] (%p4105_p3) }
  0x25   : > { %v528_v24 = vld [vmem:[%s4152_s17 + $0x80] sm:$0xff]  ;;  %525 = vst [vmem:[%s4157_s24 + $0x30] sm:$0xff] %v524_v22  ;;  %527 = vst [vmem:[%s4157_s24 + $0x38] sm:$0xff] %v526_v23  ;;  %v530_v25 = vld [vmem:[%s4152_s17 + $0x90] sm:$0xff] }
  0x26   : > { %529 = vst [vmem:[%s4157_s24 + $0x40] sm:$0xff] %v528_v24  ;;  %v532_v26 = vld [vmem:[%s4152_s17 + $0xa0] sm:$0xff]  ;;  %v534_v27 = vld [vmem:[%s4152_s17 + $0xb0] sm:$0xff]  ;;  %531 = vst [vmem:[%s4157_s24 + $0x48] sm:$0xff] %v530_v25 }
  0x27   : > { %533 = vst [vmem:[%s4157_s24 + $0x50] sm:$0xff] %v532_v26  ;;  %535 = vst [vmem:[%s4157_s24 + $0x58] sm:$0xff] %v534_v27  ;;  %v536_v28 = vld [vmem:[%s4152_s17 + $0xc0] sm:$0xff]  ;;  %v538_v29 = vld [vmem:[%s4152_s17 + $0xd0] sm:$0xff] }
  0x28   : > { %v540_v30 = vld [vmem:[%s4152_s17 + $0xe0] sm:$0xff]  ;;  %537 = vst [vmem:[%s4157_s24 + $0x60] sm:$0xff] %v536_v28  ;;  %539 = vst [vmem:[%s4157_s24 + $0x68] sm:$0xff] %v538_v29  ;;  %v542_v31 = vld [vmem:[%s4152_s17 + $0xf0] sm:$0xff] }
  0x29   : > { %541 = vst [vmem:[%s4157_s24 + $0x70] sm:$0xff] %v540_v30  ;;  %v544_v32 = vld [vmem:[%s4152_s17 + $0x100] sm:$0xff]  ;;  %v546_v33 = vld [vmem:[%s4152_s17 + $0x110] sm:$0xff]  ;;  %543 = vst [vmem:[%s4157_s24 + $0x78] sm:$0xff] %v542_v31 }
  0x2a   : > { %545 = vst [vmem:[%s4157_s24 + $0x80] sm:$0xff] %v544_v32  ;;  %547 = vst [vmem:[%s4157_s24 + $0x88] sm:$0xff] %v546_v33  ;;  %v548_v34 = vld [vmem:[%s4152_s17 + $0x120] sm:$0xff]  ;;  %v550_v35 = vld [vmem:[%s4152_s17 + $0x130] sm:$0xff] }
  0x2b   : > { %v552_v36 = vld [vmem:[%s4152_s17 + $0x140] sm:$0xff]  ;;  %549 = vst [vmem:[%s4157_s24 + $0x90] sm:$0xff] %v548_v34  ;;  %551 = vst [vmem:[%s4157_s24 + $0x98] sm:$0xff] %v550_v35  ;;  %v554_v37 = vld [vmem:[%s4152_s17 + $0x150] sm:$0xff] }
  0x2c   : > { %553 = vst [vmem:[%s4157_s24 + $0xa0] sm:$0xff] %v552_v36  ;;  %v556_v38 = vld [vmem:[%s4152_s17 + $0x160] sm:$0xff]  ;;  %v558_v39 = vld [vmem:[%s4152_s17 + $0x170] sm:$0xff]  ;;  %555 = vst [vmem:[%s4157_s24 + $0xa8] sm:$0xff] %v554_v37 }
  0x2d   : > { %557 = vst [vmem:[%s4157_s24 + $0xb0] sm:$0xff] %v556_v38  ;;  %559 = vst [vmem:[%s4157_s24 + $0xb8] sm:$0xff] %v558_v39  ;;  %v560_v40 = vld [vmem:[%s4152_s17 + $0x180] sm:$0xff]  ;;  %v562_v41 = vld [vmem:[%s4152_s17 + $0x190] sm:$0xff] }
  0x2e   : > { %v564_v42 = vld [vmem:[%s4152_s17 + $0x1a0] sm:$0xff]  ;;  %561 = vst [vmem:[%s4157_s24 + $0xc0] sm:$0xff] %v560_v40  ;;  %563 = vst [vmem:[%s4157_s24 + $0xc8] sm:$0xff] %v562_v41  ;;  %v566_v43 = vld [vmem:[%s4152_s17 + $0x1b0] sm:$0xff] }
  0x2f   : > { %565 = vst [vmem:[%s4157_s24 + $0xd0] sm:$0xff] %v564_v42  ;;  %v568_v44 = vld [vmem:[%s4152_s17 + $0x1c0] sm:$0xff]  ;;  %v570_v45 = vld [vmem:[%s4152_s17 + $0x1d0] sm:$0xff]  ;;  %567 = vst [vmem:[%s4157_s24 + $0xd8] sm:$0xff] %v566_v43 }
  0x30   : > { %569 = vst [vmem:[%s4157_s24 + $0xe0] sm:$0xff] %v568_v44  ;;  %571 = vst [vmem:[%s4157_s24 + $0xe8] sm:$0xff] %v570_v45  ;;  %v572_v46 = vld [vmem:[%s4152_s17 + $0x1e0] sm:$0xff]  ;;  %v574_v47 = vld [vmem:[%s4152_s17 + $0x1f0] sm:$0xff] }
  0x31   : > { %v576_v48 = vld [vmem:[%s4152_s17 + $0x200] sm:$0xff]  ;;  %573 = vst [vmem:[%s4157_s24 + $0xf0] sm:$0xff] %v572_v46  ;;  %575 = vst [vmem:[%s4157_s24 + $0xf8] sm:$0xff] %v574_v47  ;;  %v578_v49 = vld [vmem:[%s4152_s17 + $0x210] sm:$0xff] }
  0x32   : > { %577 = vst [vmem:[%s4157_s24 + $0x100] sm:$0xff] %v576_v48  ;;  %v580_v50 = vld [vmem:[%s4152_s17 + $0x220] sm:$0xff]  ;;  %v582_v51 = vld [vmem:[%s4152_s17 + $0x230] sm:$0xff]  ;;  %579 = vst [vmem:[%s4157_s24 + $0x108] sm:$0xff] %v578_v49 }
  0x33   : > { %581 = vst [vmem:[%s4157_s24 + $0x110] sm:$0xff] %v580_v50  ;;  %583 = vst [vmem:[%s4157_s24 + $0x118] sm:$0xff] %v582_v51  ;;  %v584_v52 = vld [vmem:[%s4152_s17 + $0x240] sm:$0xff]  ;;  %v586_v53 = vld [vmem:[%s4152_s17 + $0x250] sm:$0xff] }
  0x34   : > { %v588_v54 = vld [vmem:[%s4152_s17 + $0x260] sm:$0xff]  ;;  %585 = vst [vmem:[%s4157_s24 + $0x120] sm:$0xff] %v584_v52  ;;  %587 = vst [vmem:[%s4157_s24 + $0x128] sm:$0xff] %v586_v53  ;;  %v590_v55 = vld [vmem:[%s4152_s17 + $0x270] sm:$0xff] }
  0x35   : > { %589 = vst [vmem:[%s4157_s24 + $0x130] sm:$0xff] %v588_v54  ;;  %v592_v56 = vld [vmem:[%s4152_s17 + $0x280] sm:$0xff]  ;;  %v594_v57 = vld [vmem:[%s4152_s17 + $0x290] sm:$0xff]  ;;  %591 = vst [vmem:[%s4157_s24 + $0x138] sm:$0xff] %v590_v55 }
  0x36   : > { %593 = vst [vmem:[%s4157_s24 + $0x140] sm:$0xff] %v592_v56  ;;  %595 = vst [vmem:[%s4157_s24 + $0x148] sm:$0xff] %v594_v57  ;;  %v596_v58 = vld [vmem:[%s4152_s17 + $0x2a0] sm:$0xff]  ;;  %v598_v59 = vld [vmem:[%s4152_s17 + $0x2b0] sm:$0xff] }
  0x37   : > { %v600_v60 = vld [vmem:[%s4152_s17 + $0x2c0] sm:$0xff]  ;;  %597 = vst [vmem:[%s4157_s24 + $0x150] sm:$0xff] %v596_v58  ;;  %599 = vst [vmem:[%s4157_s24 + $0x158] sm:$0xff] %v598_v59  ;;  %v602_v61 = vld [vmem:[%s4152_s17 + $0x2d0] sm:$0xff] }
  0x38   : > { %601 = vst [vmem:[%s4157_s24 + $0x160] sm:$0xff] %v600_v60  ;;  %v604_v62 = vld [vmem:[%s4152_s17 + $0x2e0] sm:$0xff]  ;;  %v606_v63 = vld [vmem:[%s4152_s17 + $0x2f0] sm:$0xff]  ;;  %603 = vst [vmem:[%s4157_s24 + $0x168] sm:$0xff] %v602_v61 }
  0x39   : > { %605 = vst [vmem:[%s4157_s24 + $0x170] sm:$0xff] %v604_v62  ;;  %607 = vst [vmem:[%s4157_s24 + $0x178] sm:$0xff] %v606_v63  ;;  %v608_v0 = vld [vmem:[%s4152_s17 + $0x300] sm:$0xff]  ;;  %v610_v1 = vld [vmem:[%s4152_s17 + $0x310] sm:$0xff] }
  0x3a   : > { %v612_v2 = vld [vmem:[%s4152_s17 + $0x320] sm:$0xff]  ;;  %609 = vst [vmem:[%s4157_s24 + $0x180] sm:$0xff] %v608_v0  ;;  %611 = vst [vmem:[%s4157_s24 + $0x188] sm:$0xff] %v610_v1  ;;  %v614_v3 = vld [vmem:[%s4152_s17 + $0x330] sm:$0xff] }
  0x3b   : > { %613 = vst [vmem:[%s4157_s24 + $0x190] sm:$0xff] %v612_v2  ;;  %v616_v4 = vld [vmem:[%s4152_s17 + $0x340] sm:$0xff]  ;;  %v618_v5 = vld [vmem:[%s4152_s17 + $0x350] sm:$0xff]  ;;  %615 = vst [vmem:[%s4157_s24 + $0x198] sm:$0xff] %v614_v3 }
  0x3c   : > { %617 = vst [vmem:[%s4157_s24 + $0x1a0] sm:$0xff] %v616_v4  ;;  %619 = vst [vmem:[%s4157_s24 + $0x1a8] sm:$0xff] %v618_v5  ;;  %v620_v6 = vld [vmem:[%s4152_s17 + $0x360] sm:$0xff]  ;;  %v622_v7 = vld [vmem:[%s4152_s17 + $0x370] sm:$0xff] }
  0x3d   : > { %v624_v8 = vld [vmem:[%s4152_s17 + $0x380] sm:$0xff]  ;;  %621 = vst [vmem:[%s4157_s24 + $0x1b0] sm:$0xff] %v620_v6  ;;  %623 = vst [vmem:[%s4157_s24 + $0x1b8] sm:$0xff] %v622_v7  ;;  %v626_v9 = vld [vmem:[%s4152_s17 + $0x390] sm:$0xff] }
  0x3e   : > { %625 = vst [vmem:[%s4157_s24 + $0x1c0] sm:$0xff] %v624_v8  ;;  %v628_v10 = vld [vmem:[%s4152_s17 + $0x3a0] sm:$0xff]  ;;  %v630_v11 = vld [vmem:[%s4152_s17 + $0x3b0] sm:$0xff]  ;;  %627 = vst [vmem:[%s4157_s24 + $0x1c8] sm:$0xff] %v626_v9 }
  0x3f   : > { %629 = vst [vmem:[%s4157_s24 + $0x1d0] sm:$0xff] %v628_v10  ;;  %631 = vst [vmem:[%s4157_s24 + $0x1d8] sm:$0xff] %v630_v11  ;;  %v632_v12 = vld [vmem:[%s4152_s17 + $0x3c0] sm:$0xff]  ;;  %v634_v13 = vld [vmem:[%s4152_s17 + $0x3d0] sm:$0xff] }
  0x40   : > { %v636_v14 = vld [vmem:[%s4152_s17 + $0x3e0] sm:$0xff]  ;;  %633 = vst [vmem:[%s4157_s24 + $0x1e0] sm:$0xff] %v632_v12  ;;  %635 = vst [vmem:[%s4157_s24 + $0x1e8] sm:$0xff] %v634_v13  ;;  %v638_v15 = vld [vmem:[%s4152_s17 + $0x3f0] sm:$0xff] }
  0x41   : > { %637 = vst [vmem:[%s4157_s24 + $0x1f0] sm:$0xff] %v636_v14  ;;  %639 = vst [vmem:[%s4157_s24 + $0x1f8] sm:$0xff] %v638_v15 }
  0x42 PF: > { %p3697_p8 = scmp.ge.s32.totalorder %s4040_s22, 1  ;;  %p644_p9 = scmp.lt.s32.totalorder %s4040_s22, 3 }
  0x44   : > { %p645_p10 = pnand %p3697_p8, %p644_p9 }
  0x46   : > { %648 = sbr.rel (%p645_p10) target bundleno = 526 (0x20e), region = 108 }
  0x4d   : > { %s651_s25 = sand.u32 1, %s4024_s18   ;;  %v4042_v16 = vmov 0   ;;  %v3968_v33 = vld [vmem:[%s5563_s0] sm:$0xff]   ;;  %v3970_v35 = vld [vmem:[%s5563_s0 + $0x8] sm:$0xff]   ;;  %v3972_v37 = vld [vmem:[%s5563_s0 + $0x10] sm:$0xff]   ;;  %s3701_s30 = sshll.u32 %s4032_s20, 1  ;;  %v2084_v1 = vlaneseq }
  0x4e   : > { %s3698_s26 = sshll.u32 %s651_s25, 7  ;;  %1374 = vmatprep.mubr.bf16.mxu0 %v4042_v16  ;;  %1534 = vmatprep.mubr.bf16.mxu1 %v4042_v16  ;;  %v3969_v34 = vld [vmem:[%s5563_s0 + $0x80] sm:$0xff]   ;;  %v3971_v36 = vld [vmem:[%s5563_s0 + $0x88] sm:$0xff]   ;;  %v3973_v38 = vld [vmem:[%s5563_s0 + $0x90] sm:$0xff]   ;;  %p716_p11 = scmp.lt.s32.totalorder %s3701_s30, 3 }
  0x4f   : > { %s4291_s27 = scalar_lea.vmem [#allocation3], %s3698_s26  ;;  %v3974_v39 = vld [vmem:[%s5563_s0 + $0x18] sm:$0xff]   ;;  %v3976_v41 = vld [vmem:[%s5563_s0 + $0x20] sm:$0xff]   ;;  %v3978_v43 = vld [vmem:[%s5563_s0 + $0x28] sm:$0xff]   ;;  %s4438_s6 = sshll.u32 %s651_s25, 9  ;;  %v2085_v2 = vshrl.u32 %v2084_v1, 7 }
  0x50   : > { %v3944_v17 = vld [vmem:[%s4291_s27 + $0x4] ss:$8 sps:$4 sm:$0xff]   ;;  %v3946_v18 = vld [vmem:[%s4291_s27] ss:$8 sps:$4 sm:$0xff]   ;;  %v3947_v19 = vld [vmem:[%s4291_s27 + $0x14] ss:$8 sps:$4 sm:$0xff]  }
  0x51   : > { %1342 = vmatprep.subr.bf16.mxu0 %v3944_v17  ;;  %3887 = vmatprep.subr.bf16.mxu1 %v3944_v17  ;;  %v3949_v20 = vld [vmem:[%s4291_s27 + $0x10] ss:$8 sps:$4 sm:$0xff]   ;;  %v3950_v21 = vld [vmem:[%s4291_s27 + $0x24] ss:$8 sps:$4 sm:$0xff]   ;;  %v3952_v22 = vld [vmem:[%s4291_s27 + $0x20] ss:$8 sps:$4 sm:$0xff]  }
  0x52   : > { %1343 = vmatpush1.bf16.msra.mxu0 %v3946_v18  ;;  %3895 = vmatpush1.bf16.msra.mxu1 %v3946_v18  ;;  %v3953_v23 = vld [vmem:[%s4291_s27 + $0x34] ss:$8 sps:$4 sm:$0xff]   ;;  %v3955_v24 = vld [vmem:[%s4291_s27 + $0x30] ss:$8 sps:$4 sm:$0xff]   ;;  %v3956_v25 = vld [vmem:[%s4291_s27 + $0x44] ss:$8 sps:$4 sm:$0xff]  }
  0x53   : > { %1344 = vmatprep.subr.bf16.mxu0 %v3947_v19  ;;  %3888 = vmatprep.subr.bf16.mxu1 %v3947_v19  ;;  %v3958_v26 = vld [vmem:[%s4291_s27 + $0x40] ss:$8 sps:$4 sm:$0xff]   ;;  %v3959_v27 = vld [vmem:[%s4291_s27 + $0x54] ss:$8 sps:$4 sm:$0xff]   ;;  %v3961_v28 = vld [vmem:[%s4291_s27 + $0x50] ss:$8 sps:$4 sm:$0xff]  }
  0x54   : > { %v3962_v29 = vld [vmem:[%s4291_s27 + $0x64] ss:$8 sps:$4 sm:$0xff]   ;;  %v3964_v30 = vld [vmem:[%s4291_s27 + $0x60] ss:$8 sps:$4 sm:$0xff]   ;;  %v3965_v31 = vld [vmem:[%s4291_s27 + $0x74] ss:$8 sps:$4 sm:$0xff]  }
  0x55   : > { %v3967_v32 = vld [vmem:[%s4291_s27 + $0x70] ss:$8 sps:$4 sm:$0xff]   ;;  %v3977_v42 = vld [vmem:[%s5563_s0 + $0xa0] sm:$0xff]   ;;  %v3979_v44 = vld [vmem:[%s5563_s0 + $0xa8] sm:$0xff]   ;;  %s5770_s30 = smov (!%p716_p11, %s3701_s30), 3  ;;  %v2086_v3 = vsub.s32 0, %v2085_v2 }
  0x56   : > { %1345 = vmatpush1.bf16.msra.mxu0 %v3949_v20  ;;  %3896 = vmatpush1.bf16.msra.mxu1 %v3949_v20  ;;  %v3975_v40 = vld [vmem:[%s5563_s0 + $0x98] sm:$0xff]   ;;  %v3980_v45 = vld [vmem:[%s5563_s0 + $0x30] sm:$0xff]   ;;  %v3984_v49 = vld [vmem:[%s5563_s0 + $0x40] sm:$0xff]   ;;  %s718_s9 = scalar_lea.vmem %s5565_s2, %s5770_s30  ;;  %s723_s12 = scalar_lea.vmem %s5566_s3, %s5770_s30  ;;  %v2090_v4 = vsub.s32 1, %v2085_v2 }
  0x57   : > { %1346 = vmatprep.subr.bf16.mxu0 %v3950_v21  ;;  %3889 = vmatprep.subr.bf16.mxu1 %v3950_v21  ;;  %v3981_v46 = vld [vmem:[%s5563_s0 + $0xb0] sm:$0xff]   ;;  %v3982_v47 = vld [vmem:[%s5563_s0 + $0x38] sm:$0xff]   ;;  %v3985_v50 = vld [vmem:[%s5563_s0 + $0xc0] sm:$0xff]   ;;  %s4447_s13 = scalar_lea.vmem [#allocation4], %s4438_s6  ;;  %s4784_s18 = scalar_lea.vmem [#allocation5], %s4438_s6 }
  0x58   : > { %v3983_v48 = vld [vmem:[%s5563_s0 + $0xb8] sm:$0xff]   ;;  %v3986_v51 = vld [vmem:[%s5563_s0 + $0x48] sm:$0xff]   ;;  %v3988_v53 = vld [vmem:[%s5563_s0 + $0x50] sm:$0xff]   ;;  %s3886_s25 = sshll.u32 (%p4112_p6), %s4032_s20, 3 }
  0x59   : > { %v3987_v52 = vld [vmem:[%s5563_s0 + $0xc8] sm:$0xff]   ;;  %v3989_v54 = vld [vmem:[%s5563_s0 + $0xd0] sm:$0xff]   ;;  %v3990_v55 = vld [vmem:[%s5563_s0 + $0x58] sm:$0xff]   ;;  %s5421_s16 = scalar_lea.vmem (%p4112_p6), %s5568_s5, %s3886_s25 }
  0x5a   : > { %1347 = vmatpush1.bf16.msra.mxu0 %v3952_v22  ;;  %3897 = vmatpush1.bf16.msra.mxu1 %v3952_v22  ;;  %v3991_v56 = vld [vmem:[%s5563_s0 + $0xd8] sm:$0xff]   ;;  %v3992_v57 = vld [vmem:[%s5563_s0 + $0x60] sm:$0xff]   ;;  %v3994_v59 = vld [vmem:[%s5563_s0 + $0x68] sm:$0xff]  }
  0x5b   : > { %1348 = vmatprep.subr.bf16.mxu0 %v3953_v23  ;;  %3890 = vmatprep.subr.bf16.mxu1 %v3953_v23  ;;  %v3993_v58 = vld [vmem:[%s5563_s0 + $0xe0] sm:$0xff]   ;;  %v3995_v60 = vld [vmem:[%s5563_s0 + $0xe8] sm:$0xff]   ;;  %v3996_v61 = vld [vmem:[%s5563_s0 + $0x70] sm:$0xff]  }
  0x5c   : > { %v3997_v62 = vld [vmem:[%s5563_s0 + $0xf0] sm:$0xff]   ;;  %v3998_v63 = vld [vmem:[%s5563_s0 + $0x78] sm:$0xff]   ;;  %v2082_v5 = vld [vmem:[%s718_s9] sm:$0x3] }
  0x5d   : > { %v3999_v0 = vld [vmem:[%s5563_s0 + $0xf8] sm:$0xff]   ;;  %v2222_v6 = vld [vmem:[%s723_s12] sm:$0x3]  ;;  %v4456_v9 = vld [vmem:[%s4447_s13 + $0x8] sm:$0xff]  ;;  %v4461_v11 = vrot.slane %v2082_v5, %v2086_v3  ;;  %v4463_v12 = vrot.slane %v2082_v5, %v2090_v4 }
  0x5e   : > { %1349 = vmatpush1.bf16.msra.mxu0 %v3955_v24  ;;  %3898 = vmatpush1.bf16.msra.mxu1 %v3955_v24  ;;  %v4450_v7 = vld [vmem:[%s4447_s13] sm:$0xff]  ;;  %v4459_v10 = vld [vmem:[%s4447_s13 + $0x108] sm:$0xff]  ;;  %v4466_v13 = vld [vmem:[%s4447_s13 + $0x10] sm:$0xff]  ;;  %v4471_v15 = vrot.slane %v2222_v6, %v2086_v3  ;;  %v4475_v18 = vrot.slane %v2222_v6, %v2090_v4 }
  0x5f   : > { %1350 = vmatprep.subr.bf16.mxu0 %v3956_v25  ;;  %3891 = vmatprep.subr.bf16.mxu1 %v3956_v25  ;;  %v4453_v8 = vld [vmem:[%s4447_s13 + $0x100] sm:$0xff]  ;;  %v4469_v14 = vld [vmem:[%s4447_s13 + $0x110] sm:$0xff]  ;;  %v4478_v19 = vld [vmem:[%s4447_s13 + $0x18] sm:$0xff] }
  0x60   : > { %v4481_v20 = vld [vmem:[%s4447_s13 + $0x118] sm:$0xff]  ;;  %v4488_v25 = vld [vmem:[%s4447_s13 + $0x20] sm:$0xff]  ;;  %v4578_v6 = vld [vmem:[%s4447_s13 + $0x68] sm:$0xff] }
  0x61   : > { %v4558_v3 = vld [vmem:[%s4447_s13 + $0x58] sm:$0xff]  ;;  %v4588_v1 = vld [vmem:[%s4447_s13 + $0x70] sm:$0xff]  ;;  %v4608_v5 = vld [vmem:[%s4447_s13 + $0x80] sm:$0xff] }
  0x62   : > { %1351 = vmatpush1.bf16.msra.mxu0 %v3958_v26  ;;  %3899 = vmatpush1.bf16.msra.mxu1 %v3958_v26  ;;  %v4491_v26 = vld [vmem:[%s4447_s13 + $0x120] sm:$0xff]  ;;  %v4561_v4 = vld [vmem:[%s4447_s13 + $0x158] sm:$0xff]  ;;  %v4618_v2 = vld [vmem:[%s4447_s13 + $0x88] sm:$0xff] }
  0x63   : > { %1352 = vmatprep.subr.bf16.mxu0 %v3959_v27  ;;  %3892 = vmatprep.subr.bf16.mxu1 %v3959_v27  ;;  %v4681_v27 = vld [vmem:[%s4447_s13 + $0x1b8] sm:$0xff]  ;;  %v4691_v23 = vld [vmem:[%s4447_s13 + $0x1c0] sm:$0xff]  ;;  %v4701_v21 = vld [vmem:[%s4447_s13 + $0x1c8] sm:$0xff] }
  0x64   : > { %5618 = vst [vmem:[#allocation15_spill] sm:$0xff] %v4681_v27  ;;  %5620 = vst [vmem:[#allocation17_spill] sm:$0xff] %v4691_v23  ;;  %v4721_v24 = vld [vmem:[%s4447_s13 + $0x1d8] sm:$0xff]  ;;  %v4740_v23 = vld [vmem:[%s4447_s13 + $0xe0] sm:$0xff] }
  0x65   : > { %5622 = vst [vmem:[#allocation19_spill] sm:$0xff] %v4701_v21  ;;  %5626 = vst [vmem:[#allocation23_spill] sm:$0xff] %v4721_v24 }
  0x66   : > { %1353 = vmatpush1.bf16.msra.mxu0 %v3961_v28  ;;  %3900 = vmatpush1.bf16.msra.mxu1 %v3961_v28  ;;  %5627 = vst [vmem:[#allocation24_spill] sm:$0xff] %v4740_v23  ;;  %v5631_v23 = vunpack.c.h.bf16 %v4450_v7 }
  0x67   : > { %1354 = vmatprep.subr.bf16.mxu0 %v3962_v29  ;;  %3893 = vmatprep.subr.bf16.mxu1 %v3962_v29  ;;  %v4671_v29 = vld [vmem:[%s4447_s13 + $0x1b0] sm:$0xff] }
  0x68   : > { %5616 = vst [vmem:[#allocation13_spill] sm:$0xff] %v4671_v29 }
  0x6a   : > { %1355 = vmatpush1.bf16.msra.mxu0 %v3964_v30  ;;  %3901 = vmatpush1.bf16.msra.mxu1 %v3964_v30 }
  0x6b   : > { %1356 = vmatprep.subr.bf16.mxu0 %v3965_v31  ;;  %3894 = vmatprep.subr.bf16.mxu1 %v3965_v31  ;;  %v4498_v31 = vld [vmem:[%s4447_s13 + $0x28] sm:$0xff] }
  0x6e   : > { %1357 = vmatpush1.bf16.msra.mxu0 %v3967_v32  ;;  %3902 = vmatpush1.bf16.msra.mxu1 %v3967_v32  ;;  %v4501_v32 = vld [vmem:[%s4447_s13 + $0x128] sm:$0xff] }
  0x71   : > { %1375 = vmatmul.mubr.bf16.vlgmr.msra.gmra.mrb[0].mxu0 %v3968_v33  ;;  %1535 = vmatmul.mubr.bf16.vlgmr.msra.gmra.mrb[0].mxu1 %v3969_v34  ;;  %v4661_v33 = vld [vmem:[%s4447_s13 + $0x1a8] sm:$0xff] }
  0x72   : > { %1384 = vmatprep.mubr.bf16.mxu0 %v4042_v16  ;;  %1544 = vmatprep.mubr.bf16.mxu1 %v4042_v16  ;;  %5614 = vst [vmem:[#allocation11_spill] sm:$0xff] %v4661_v33 }
  0x79   : > { %1385 = vmatmul.mubr.bf16.gmra.mrb[4].mxu0 %v3970_v35  ;;  %1545 = vmatmul.mubr.bf16.gmra.mrb[4].mxu1 %v3971_v36  ;;  %v4651_v35 = vld [vmem:[%s4447_s13 + $0x1a0] sm:$0xff]  ;;  %v4711_v36 = vld [vmem:[%s4447_s13 + $0x1d0] sm:$0xff] }
  0x7a   : > { %1394 = vmatprep.mubr.bf16.mxu0 %v4042_v16  ;;  %1554 = vmatprep.mubr.bf16.mxu1 %v4042_v16  ;;  %5612 = vst [vmem:[#allocation9_spill] sm:$0xff] %v4651_v35  ;;  %5624 = vst [vmem:[#allocation21_spill] sm:$0xff] %v4711_v36  ;;  %v4718_v35 = vld [vmem:[%s4447_s13 + $0xd8] sm:$0xff] }
  0x7b   : > { %5625 = vst [vmem:[#allocation22_spill] sm:$0xff] %v4718_v35 }
  0x81   : > { %1395 = vmatmul.mubr.bf16.gmra.mrb[8].mxu0 %v3972_v37  ;;  %1555 = vmatmul.mubr.bf16.gmra.mrb[8].mxu1 %v3973_v38  ;;  %v4508_v37 = vld [vmem:[%s4447_s13 + $0x30] sm:$0xff] }
  0x82   : > { %1404 = vmatprep.mubr.bf16.mxu0 %v4042_v16  ;;  %1564 = vmatprep.mubr.bf16.mxu1 %v4042_v16  ;;  %v4511_v38 = vld [vmem:[%s4447_s13 + $0x130] sm:$0xff] }
  0x89   : > { %1405 = vmatmul.mubr.bf16.gmra.mrb[12].mxu0 %v3974_v39  ;;  %1565 = vmatmul.mubr.bf16.gmra.mrb[12].mxu1 %v3975_v40  ;;  %v4641_v39 = vld [vmem:[%s4447_s13 + $0x198] sm:$0xff]  ;;  %v4698_v40 = vld [vmem:[%s4447_s13 + $0xc8] sm:$0xff] }
  0x8a   : > { %1414 = vmatprep.mubr.bf16.mxu0 %v4042_v16  ;;  %1574 = vmatprep.mubr.bf16.mxu1 %v4042_v16  ;;  %5610 = vst [vmem:[#allocation7_spill] sm:$0xff] %v4641_v39  ;;  %5621 = vst [vmem:[#allocation18_spill] sm:$0xff] %v4698_v40 }
  0x91   : > { %1415 = vmatmul.mubr.bf16.gmra.mrb[16].mxu0 %v3976_v41  ;;  %1575 = vmatmul.mubr.bf16.gmra.mrb[16].mxu1 %v3977_v42  ;;  %v4631_v41 = vld [vmem:[%s4447_s13 + $0x190] sm:$0xff]  ;;  %v4688_v42 = vld [vmem:[%s4447_s13 + $0xc0] sm:$0xff] }
  0x92   : > { %1424 = vmatprep.mubr.bf16.mxu0 %v4042_v16  ;;  %1584 = vmatprep.mubr.bf16.mxu1 %v4042_v16  ;;  %5619 = vst [vmem:[#allocation16_spill] sm:$0xff] %v4688_v42  ;;  %v4743_v42 = vld [vmem:[%s4447_s13 + $0x1e0] sm:$0xff] }
  0x93   : > { %5628 = vst [vmem:[#allocation25_spill] sm:$0xff] %v4743_v42 }
  0x99   : > { %1425 = vmatmul.mubr.bf16.gmra.mrb[20].mxu0 %v3978_v43  ;;  %1585 = vmatmul.mubr.bf16.gmra.mrb[20].mxu1 %v3979_v44  ;;  %v4518_v43 = vld [vmem:[%s4447_s13 + $0x38] sm:$0xff] }
  0x9a   : > { %1434 = vmatprep.mubr.bf16.mxu0 %v4042_v16  ;;  %1594 = vmatprep.mubr.bf16.mxu1 %v4042_v16  ;;  %v4521_v44 = vld [vmem:[%s4447_s13 + $0x138] sm:$0xff] }
  0xa1   : > { %1435 = vmatmul.mubr.bf16.gmra.mrb[24].mxu0 %v3980_v45  ;;  %1595 = vmatmul.mubr.bf16.gmra.mrb[24].mxu1 %v3981_v46  ;;  %v4621_v45 = vld [vmem:[%s4447_s13 + $0x188] sm:$0xff]  ;;  %v4678_v46 = vld [vmem:[%s4447_s13 + $0xb8] sm:$0xff] }
  0xa2   : > { %1444 = vmatprep.mubr.bf16.mxu0 %v4042_v16  ;;  %1604 = vmatprep.mubr.bf16.mxu1 %v4042_v16  ;;  %5617 = vst [vmem:[#allocation14_spill] sm:$0xff] %v4678_v46 }
  0xa9   : > { %1445 = vmatmul.mubr.bf16.gmra.mrb[28].mxu0 %v3982_v47  ;;  %1605 = vmatmul.mubr.bf16.gmra.mrb[28].mxu1 %v3983_v48  ;;  %v4611_v47 = vld [vmem:[%s4447_s13 + $0x180] sm:$0xff]  ;;  %v4668_v48 = vld [vmem:[%s4447_s13 + $0xb0] sm:$0xff] }
  0xaa   : > { %1454 = vmatprep.mubr.bf16.mxu0 %v4042_v16  ;;  %1614 = vmatprep.mubr.bf16.mxu1 %v4042_v16  ;;  %5615 = vst [vmem:[#allocation12_spill] sm:$0xff] %v4668_v48 }
  0xb1   : > { %1455 = vmatmul.mubr.bf16.gmra.mrb[32].mxu0 %v3984_v49  ;;  %1615 = vmatmul.mubr.bf16.gmra.mrb[32].mxu1 %v3985_v50  ;;  %v4528_v49 = vld [vmem:[%s4447_s13 + $0x40] sm:$0xff] }
  0xb2   : > { %1464 = vmatprep.mubr.bf16.mxu0 %v4042_v16  ;;  %1624 = vmatprep.mubr.bf16.mxu1 %v4042_v16  ;;  %v4531_v50 = vld [vmem:[%s4447_s13 + $0x140] sm:$0xff] }
  0xb9   : > { %1465 = vmatmul.mubr.bf16.gmra.mrb[36].mxu0 %v3986_v51  ;;  %1625 = vmatmul.mubr.bf16.gmra.mrb[36].mxu1 %v3987_v52  ;;  %v4601_v51 = vld [vmem:[%s4447_s13 + $0x178] sm:$0xff]  ;;  %v4658_v52 = vld [vmem:[%s4447_s13 + $0xa8] sm:$0xff] }
  0xba   : > { %1474 = vmatprep.mubr.bf16.mxu0 %v4042_v16  ;;  %1634 = vmatprep.mubr.bf16.mxu1 %v4042_v16  ;;  %5613 = vst [vmem:[#allocation10_spill] sm:$0xff] %v4658_v52 }
  0xc1   : > { %1475 = vmatmul.mubr.bf16.gmra.mrb[40].mxu0 %v3988_v53  ;;  %1635 = vmatmul.mubr.bf16.gmra.mrb[40].mxu1 %v3989_v54  ;;  %v4591_v53 = vld [vmem:[%s4447_s13 + $0x170] sm:$0xff]  ;;  %v4648_v54 = vld [vmem:[%s4447_s13 + $0xa0] sm:$0xff] }
  0xc2   : > { %1484 = vmatprep.mubr.bf16.mxu0 %v4042_v16  ;;  %1644 = vmatprep.mubr.bf16.mxu1 %v4042_v16  ;;  %5611 = vst [vmem:[#allocation8_spill] sm:$0xff] %v4648_v54 }
  0xc9   : > { %1485 = vmatmul.mubr.bf16.gmra.mrb[44].mxu0 %v3990_v55  ;;  %1645 = vmatmul.mubr.bf16.gmra.mrb[44].mxu1 %v3991_v56  ;;  %v4538_v55 = vld [vmem:[%s4447_s13 + $0x48] sm:$0xff] }
  0xca   : > { %1494 = vmatprep.mubr.bf16.mxu0 %v4042_v16  ;;  %1654 = vmatprep.mubr.bf16.mxu1 %v4042_v16  ;;  %v4541_v56 = vld [vmem:[%s4447_s13 + $0x148] sm:$0xff] }
  0xd1   : > { %1495 = vmatmul.mubr.bf16.gmra.mrb[48].mxu0 %v3992_v57  ;;  %1655 = vmatmul.mubr.bf16.gmra.mrb[48].mxu1 %v3993_v58  ;;  %v4581_v57 = vld [vmem:[%s4447_s13 + $0x168] sm:$0xff]  ;;  %v4638_v58 = vld [vmem:[%s4447_s13 + $0x98] sm:$0xff] }
  0xd2   : > { %1504 = vmatprep.mubr.bf16.mxu0 %v4042_v16  ;;  %1664 = vmatprep.mubr.bf16.mxu1 %v4042_v16  ;;  %5609 = vst [vmem:[#allocation6_spill] sm:$0xff] %v4638_v58 }
  0xd9   : > { %1505 = vmatmul.mubr.bf16.gmra.mrb[52].mxu0 %v3994_v59  ;;  %1665 = vmatmul.mubr.bf16.gmra.mrb[52].mxu1 %v3995_v60  ;;  %v4571_v59 = vld [vmem:[%s4447_s13 + $0x160] sm:$0xff]  ;;  %v4628_v60 = vld [vmem:[%s4447_s13 + $0x90] sm:$0xff] }
  0xda   : > { %1514 = vmatprep.mubr.bf16.mxu0 %v4042_v16  ;;  %1674 = vmatprep.mubr.bf16.mxu1 %v4042_v16 }
  0xe1   : > { %1515 = vmatmul.mubr.bf16.gmra.mrb[56].mxu0 %v3996_v61  ;;  %1675 = vmatmul.mubr.bf16.gmra.mrb[56].mxu1 %v3997_v62  ;;  %v4548_v61 = vld [vmem:[%s4447_s13 + $0x50] sm:$0xff] }
  0xe2   : > { %1524 = vmatprep.mubr.bf16.mxu0 %v4042_v16  ;;  %1684 = vmatprep.mubr.bf16.mxu1 %v4042_v16  ;;  %v4551_v62 = vld [vmem:[%s4447_s13 + $0x150] sm:$0xff] }
  0xe3   : > { %v4708_v16 = vld [vmem:[%s4447_s13 + $0xd0] sm:$0xff] }
  0xe4   : > { %5623 = vst [vmem:[#allocation20_spill] sm:$0xff] %v4708_v16 }
  0xe9   : > { %1525 = vmatmul.mubr.bf16.gmra.mrb[60].mxu0 %v3998_v63  ;;  %1685 = vmatmul.mubr.bf16.gmra.mrb[60].mxu1 %v3999_v0  ;;  %v4568_v0 = vld [vmem:[%s4447_s13 + $0x60] sm:$0xff]  ;;  %v4598_v63 = vld [vmem:[%s4447_s13 + $0x78] sm:$0xff] }
 0x144   : > { %v1376_v27 = vpop.f32.mrb[0].mxu0  ;;  %v1536_v46 = vpop.f32.mrb[0].mxu1 }
 0x145   : > { %v2094_v30 = vmul.f32 %v4461_v11, %v1376_v27  ;;  %v2158_v40 = vmul.f32 %v4461_v11, %v1536_v46  ;;  %v1378_v22 = vpop.f32.mrb[1].mxu0  ;;  %v1538_v21 = vpop.f32.mrb[1].mxu1  ;;  %v5629_v46 = vunpack.c.l.bf16 %v4450_v7  ;;  %v5635_v7 = vunpack.c.h.bf16 %v4456_v9 }
 0x146   : > { %v2095_v28 = vmul.f32 %v4463_v12, %v1378_v22  ;;  %v2159_v34 = vmul.f32 %v4463_v12, %v1538_v21  ;;  %v1380_v17 = vpop.f32.mrb[2].mxu0  ;;  %v1540_v29 = vpop.f32.mrb[2].mxu1 }
 0x147   : > { %v2234_v36 = vadd.f32 %v4471_v15, %v2094_v30  ;;  %v2298_v52 = vadd.f32 %v4471_v15, %v2158_v40  ;;  %v2096_v33 = vmul.f32 %v4461_v11, %v1380_v17  ;;  %v2160_v24 = vmul.f32 %v4461_v11, %v1540_v29  ;;  %v1382_v35 = vpop.f32.mrb[3].mxu0  ;;  %v1542_v16 = vpop.f32.mrb[3].mxu1 }
 0x148   : > { %v2235_v22 = vadd.f32 %v4475_v18, %v2095_v28  ;;  %v2299_v21 = vadd.f32 %v4475_v18, %v2159_v34  ;;  %v2097_v48 = vmul.f32 %v4463_v12, %v1382_v35  ;;  %v2161_v27 = vmul.f32 %v4463_v12, %v1542_v16 }
 0x149   : > { %v2554_v42 = vadd.f32 %v5629_v46, %v2234_v36  ;;  %v5630_v30 = vunpack.c.l.bf16 %v4453_v8  ;;  %v2236_v17 = vadd.f32 %v4471_v15, %v2096_v33  ;;  %v2300_v29 = vadd.f32 %v4471_v15, %v2160_v24 }
 0x14a   : > { %v2555_v54 = vadd.f32 %v5631_v23, %v2235_v22  ;;  %v5632_v28 = vunpack.c.h.bf16 %v4453_v8  ;;  %v2237_v35 = vadd.f32 %v4475_v18, %v2097_v48  ;;  %v2301_v16 = vadd.f32 %v4475_v18, %v2161_v27 }
 0x14b   : > { %v2618_v40 = vadd.f32 %v5630_v30, %v2298_v52  ;;  %v2682_v39 = vmax.f32 %v2554_v42, 0.0  ;;  %v5633_v36 = vunpack.c.l.bf16 %v4456_v9  ;;  %v5634_v52 = vunpack.c.l.bf16 %v4459_v10 }
 0x14c   : > { %v2619_v34 = vadd.f32 %v5632_v28, %v2299_v21  ;;  %v2683_v30 = vmax.f32 %v2555_v54, 0.0  ;;  %v2557_v23 = vadd.f32 %v5635_v7, %v2237_v35  ;;  %v5636_v8 = vunpack.c.h.bf16 %v4459_v10  ;;  %v1386_v21 = vpop.f32.mrb[4].mxu0  ;;  %v1546_v48 = vpop.f32.mrb[4].mxu1 }
 0x14d   : > { %v2746_v58 = vmax.f32 %v2618_v40, 0.0  ;;  %v2556_v46 = vadd.f32 %v5633_v36, %v2236_v17  ;;  %v2620_v33 = vadd.f32 %v5634_v52, %v2300_v29  ;;  %v2098_v42 = vmul.f32 %v4461_v11, %v1386_v21  ;;  %v1388_v17 = vpop.f32.mrb[5].mxu0  ;;  %v1548_v36 = vpop.f32.mrb[5].mxu1 }
 0x14e   : > { %v2747_v24 = vmax.f32 %v2619_v34, 0.0  ;;  %v2621_v22 = vadd.f32 %v5636_v8, %v2301_v16  ;;  %v2162_v40 = vmul.f32 %v4461_v11, %v1546_v48  ;;  %v3822_v29 = vpack.c.bf16 %v2683_v30, %v2682_v39  ;;  %v1390_v9 = vpop.f32.mrb[6].mxu0  ;;  %v1550_v35 = vpop.f32.mrb[6].mxu1 }
 0x14f   : > { %v2684_v28 = vmax.f32 %v2556_v46, 0.0  ;;  %v2748_v27 = vmax.f32 %v2620_v33, 0.0  ;;  %v2685_v34 = vmax.f32 %v2557_v23, 0.0  ;;  %v2238_v10 = vadd.f32 %v4471_v15, %v2098_v42  ;;  %v1392_v7 = vpop.f32.mrb[7].mxu0  ;;  %v1552_v8 = vpop.f32.mrb[7].mxu1 }
 0x150   : > { %v3854_v54 = vpack.c.bf16 %v2747_v24, %v2746_v58  ;;  %v2749_v52 = vmax.f32 %v2621_v22, 0.0  ;;  %v2302_v16 = vadd.f32 %v4471_v15, %v2162_v40  ;;  %v2099_v46 = vmul.f32 %v4463_v12, %v1388_v17  ;;  %3194 = vst [vmem:[%s4784_s18] sm:$0xff] %v3822_v29 }
 0x151   : > { %v2163_v33 = vmul.f32 %v4463_v12, %v1548_v36  ;;  %v3823_v39 = vpack.c.bf16 %v2685_v34, %v2684_v28  ;;  %v2100_v30 = vmul.f32 %v4461_v11, %v1390_v9  ;;  %v2164_v24 = vmul.f32 %v4461_v11, %v1550_v35 }
 0x152   : > { %3226 = vst [vmem:[%s4784_s18 + $0x100] sm:$0xff] %v3854_v54  ;;  %v3855_v58 = vpack.c.bf16 %v2749_v52, %v2748_v27  ;;  %v5637_v23 = vunpack.c.l.bf16 %v4466_v13  ;;  %v5638_v21 = vunpack.c.l.bf16 %v4469_v14  ;;  %v2239_v42 = vadd.f32 %v4475_v18, %v2099_v46 }
 0x153   : > { %v2303_v40 = vadd.f32 %v4475_v18, %v2163_v33  ;;  %3195 = vst [vmem:[%s4784_s18 + $0x8] sm:$0xff] %v3823_v39  ;;  %v2240_v17 = vadd.f32 %v4471_v15, %v2100_v30  ;;  %v2304_v28 = vadd.f32 %v4471_v15, %v2164_v24  ;;  %v2101_v27 = vmul.f32 %v4463_v12, %v1392_v7 }
 0x154   : > { %v2558_v22 = vadd.f32 %v5637_v23, %v2238_v10  ;;  %v2622_v48 = vadd.f32 %v5638_v21, %v2302_v16  ;;  %3227 = vst [vmem:[%s4784_s18 + $0x108] sm:$0xff] %v3855_v58  ;;  %v2165_v36 = vmul.f32 %v4463_v12, %v1552_v8  ;;  %v5639_v34 = vunpack.c.h.bf16 %v4466_v13  ;;  %v1396_v58 = vpop.f32.mrb[8].mxu0  ;;  %v1556_v8 = vpop.f32.mrb[8].mxu1 }
 0x155   : > { %v5640_v9 = vunpack.c.h.bf16 %v4469_v14  ;;  %v5641_v10 = vunpack.c.l.bf16 %v4478_v19  ;;  %v5642_v46 = vunpack.c.l.bf16 %v4481_v20  ;;  %v2241_v39 = vadd.f32 %v4475_v18, %v2101_v27  ;;  %v1398_v14 = vpop.f32.mrb[9].mxu0 }
 0x156   : > { %v2686_v29 = vmax.f32 %v2558_v22, 0.0  ;;  %v2750_v54 = vmax.f32 %v2622_v48, 0.0  ;;  %v2559_v52 = vadd.f32 %v5639_v34, %v2239_v42  ;;  %v2305_v7 = vadd.f32 %v4475_v18, %v2165_v36  ;;  %v1558_v22 = vpop.f32.mrb[9].mxu1  ;;  %v1400_v27 = vpop.f32.mrb[10].mxu0 }
 0x157   : > { %v2623_v35 = vadd.f32 %v5640_v9, %v2303_v40  ;;  %v2560_v16 = vadd.f32 %v5641_v10, %v2240_v17  ;;  %v2624_v33 = vadd.f32 %v5642_v46, %v2304_v28  ;;  %v2102_v13 = vmul.f32 %v4461_v11, %v1396_v58  ;;  %v1560_v36 = vpop.f32.mrb[10].mxu1  ;;  %v1402_v10 = vpop.f32.mrb[11].mxu0 }
 0x158   : > { %v2687_v30 = vmax.f32 %v2559_v52, 0.0  ;;  %v2166_v23 = vmul.f32 %v4461_v11, %v1556_v8  ;;  %v5643_v42 = vunpack.c.h.bf16 %v4478_v19  ;;  %v5644_v17 = vunpack.c.h.bf16 %v4481_v20  ;;  %v1562_v46 = vpop.f32.mrb[11].mxu1 }
 0x159   : > { %v2751_v24 = vmax.f32 %v2623_v35, 0.0  ;;  %v2688_v21 = vmax.f32 %v2560_v16, 0.0  ;;  %v2752_v48 = vmax.f32 %v2624_v33, 0.0  ;;  %v2242_v9 = vadd.f32 %v4471_v15, %v2102_v13 }
 0x15a   : > { %v2561_v40 = vadd.f32 %v5643_v42, %v2241_v39  ;;  %v2625_v28 = vadd.f32 %v5644_v17, %v2305_v7  ;;  %v3824_v34 = vpack.c.bf16 %v2687_v30, %v2686_v29  ;;  %v2306_v35 = vadd.f32 %v4471_v15, %v2166_v23 }
 0x15b   : > { %v3856_v52 = vpack.c.bf16 %v2751_v24, %v2750_v54  ;;  %v2103_v33 = vmul.f32 %v4463_v12, %v1398_v14  ;;  %v2167_v19 = vmul.f32 %v4463_v12, %v1558_v22  ;;  %v5645_v20 = vunpack.c.l.bf16 %v4488_v25 }
 0x15c   : > { %v2689_v16 = vmax.f32 %v2561_v40, 0.0  ;;  %v2753_v58 = vmax.f32 %v2625_v28, 0.0  ;;  %3196 = vst [vmem:[%s4784_s18 + $0x10] sm:$0xff] %v3824_v34  ;;  %v5646_v54 = vunpack.c.l.bf16 %v4491_v26  ;;  %v2104_v7 = vmul.f32 %v4461_v11, %v1400_v27  ;;  %v1406_v34 = vpop.f32.mrb[12].mxu0 }
 0x15d   : > { %3228 = vst [vmem:[%s4784_s18 + $0x110] sm:$0xff] %v3856_v52  ;;  %v2562_v29 = vadd.f32 %v5645_v20, %v2242_v9  ;;  %v2168_v8 = vmul.f32 %v4461_v11, %v1560_v36  ;;  %v2243_v13 = vadd.f32 %v4475_v18, %v2103_v33  ;;  %v2307_v23 = vadd.f32 %v4475_v18, %v2167_v19  ;;  %v1566_v52 = vpop.f32.mrb[12].mxu1  ;;  %v1408_v19 = vpop.f32.mrb[13].mxu0 }
 0x15e   : > { %v2626_v39 = vadd.f32 %v5646_v54, %v2306_v35  ;;  %v3825_v30 = vpack.c.bf16 %v2689_v16, %v2688_v21  ;;  %v3857_v24 = vpack.c.bf16 %v2753_v58, %v2752_v48  ;;  %v2244_v42 = vadd.f32 %v4471_v15, %v2104_v7  ;;  %v1568_v20 = vpop.f32.mrb[13].mxu1  ;;  %v1410_v54 = vpop.f32.mrb[14].mxu0 }
 0x15f   : > { %v2690_v14 = vmax.f32 %v2562_v29, 0.0  ;;  %v2308_v40 = vadd.f32 %v4471_v15, %v2168_v8  ;;  %v5647_v17 = vunpack.c.h.bf16 %v4488_v25  ;;  %v5648_v27 = vunpack.c.h.bf16 %v4491_v26 }
 0x160   : > { %v2754_v22 = vmax.f32 %v2626_v39, 0.0  ;;  %3197 = vst [vmem:[%s4784_s18 + $0x18] sm:$0xff] %v3825_v30  ;;  %3229 = vst [vmem:[%s4784_s18 + $0x118] sm:$0xff] %v3857_v24  ;;  %v2105_v21 = vmul.f32 %v4463_v12, %v1402_v10  ;;  %v2169_v48 = vmul.f32 %v4463_v12, %v1562_v46  ;;  %v5649_v9 = vunpack.c.l.bf16 %v4498_v31  ;;  %v1570_v39 = vpop.f32.mrb[14].mxu1 }
 0x161   : > { %v2563_v28 = vadd.f32 %v5647_v17, %v2243_v13  ;;  %v2627_v36 = vadd.f32 %v5648_v27, %v2307_v23  ;;  %v5650_v16 = vunpack.c.l.bf16 %v4501_v32  ;;  %v2106_v33 = vmul.f32 %v4461_v11, %v1406_v34  ;;  %v1412_v13 = vpop.f32.mrb[15].mxu0  ;;  %v1572_v23 = vpop.f32.mrb[15].mxu1 }
 0x162   : > { %v2564_v35 = vadd.f32 %v5649_v9, %v2244_v42  ;;  %v2170_v25 = vmul.f32 %v4461_v11, %v1566_v52  ;;  %v2245_v10 = vadd.f32 %v4475_v18, %v2105_v21  ;;  %v2309_v46 = vadd.f32 %v4475_v18, %v2169_v48 }
 0x163   : > { %v2628_v58 = vadd.f32 %v5650_v16, %v2308_v40  ;;  %v2691_v26 = vmax.f32 %v2563_v28, 0.0  ;;  %v2755_v29 = vmax.f32 %v2627_v36, 0.0  ;;  %v2246_v30 = vadd.f32 %v4471_v15, %v2106_v33 }
 0x164   : > { %v2692_v7 = vmax.f32 %v2564_v35, 0.0  ;;  %v2310_v24 = vadd.f32 %v4471_v15, %v2170_v25  ;;  %v5651_v17 = vunpack.c.h.bf16 %v4498_v31  ;;  %v5652_v27 = vunpack.c.h.bf16 %v4501_v32 }
 0x165   : > { %v2756_v8 = vmax.f32 %v2628_v58, 0.0  ;;  %v3826_v42 = vpack.c.bf16 %v2691_v26, %v2690_v14  ;;  %v3858_v40 = vpack.c.bf16 %v2755_v29, %v2754_v22  ;;  %v5653_v21 = vunpack.c.l.bf16 %v4508_v37 }
 0x166   : > { %v2565_v28 = vadd.f32 %v5651_v17, %v2245_v10  ;;  %v2629_v36 = vadd.f32 %v5652_v27, %v2309_v46  ;;  %v5654_v34 = vunpack.c.l.bf16 %v4511_v38  ;;  %v2107_v9 = vmul.f32 %v4463_v12, %v1408_v19  ;;  %v1416_v10 = vpop.f32.mrb[16].mxu0  ;;  %v1576_v46 = vpop.f32.mrb[16].mxu1 }
 0x167   : > { %v2566_v48 = vadd.f32 %v5653_v21, %v2246_v30  ;;  %v2171_v35 = vmul.f32 %v4463_v12, %v1568_v20  ;;  %3198 = vst [vmem:[%s4784_s18 + $0x20] sm:$0xff] %v3826_v42  ;;  %3230 = vst [vmem:[%s4784_s18 + $0x120] sm:$0xff] %v3858_v40  ;;  %v2108_v31 = vmul.f32 %v4461_v11, %v1410_v54  ;;  %v5655_v54 = vunpack.c.h.bf16 %v4508_v37  ;;  %v1418_v17 = vpop.f32.mrb[17].mxu0 }
 0x168   : > { %v2630_v52 = vadd.f32 %v5654_v34, %v2310_v24  ;;  %v2693_v14 = vmax.f32 %v2565_v28, 0.0  ;;  %v2757_v22 = vmax.f32 %v2629_v36, 0.0  ;;  %v2172_v16 = vmul.f32 %v4461_v11, %v1570_v39  ;;  %v1578_v28 = vpop.f32.mrb[17].mxu1 }
 0x169   : > { %v2694_v32 = vmax.f32 %v2566_v48, 0.0  ;;  %v2247_v33 = vadd.f32 %v4475_v18, %v2107_v9  ;;  %v2311_v25 = vadd.f32 %v4475_v18, %v2171_v35  ;;  %v2248_v20 = vadd.f32 %v4471_v15, %v2108_v31  ;;  %v1580_v48 = vpop.f32.mrb[18].mxu1 }
 0x16a   : > { %v2758_v58 = vmax.f32 %v2630_v52, 0.0  ;;  %v3827_v26 = vpack.c.bf16 %v2693_v14, %v2692_v7  ;;  %v3859_v19 = vpack.c.bf16 %v2757_v22, %v2756_v8  ;;  %v2312_v29 = vadd.f32 %v4471_v15, %v2172_v16  ;;  %v1582_v35 = vpop.f32.mrb[19].mxu1 }
 0x16b   : > { %v2567_v30 = vadd.f32 %v5655_v54, %v2247_v33  ;;  %v5656_v39 = vunpack.c.h.bf16 %v4511_v38  ;;  %v2109_v42 = vmul.f32 %v4463_v12, %v1412_v13  ;;  %v2173_v40 = vmul.f32 %v4463_v12, %v1572_v23  ;;  %v1420_v38 = vpop.f32.mrb[18].mxu0 }
 0x16c   : > { %3199 = vst [vmem:[%s4784_s18 + $0x28] sm:$0xff] %v3827_v26  ;;  %3231 = vst [vmem:[%s4784_s18 + $0x128] sm:$0xff] %v3859_v19  ;;  %v5657_v7 = vunpack.c.l.bf16 %v4518_v43  ;;  %v5658_v27 = vunpack.c.l.bf16 %v4521_v44  ;;  %v2110_v37 = vmul.f32 %v4461_v11, %v1416_v10  ;;  %v2174_v21 = vmul.f32 %v4461_v11, %v1576_v46  ;;  %v1422_v9 = vpop.f32.mrb[19].mxu0 }
 0x16d   : > { %v2631_v24 = vadd.f32 %v5656_v39, %v2311_v25  ;;  %v2695_v34 = vmax.f32 %v2567_v30, 0.0  ;;  %v2249_v23 = vadd.f32 %v4475_v18, %v2109_v42  ;;  %v2313_v52 = vadd.f32 %v4475_v18, %v2173_v40 }
 0x16e   : > { %v2568_v8 = vadd.f32 %v5657_v7, %v2248_v20  ;;  %v2632_v36 = vadd.f32 %v5658_v27, %v2312_v29  ;;  %v2250_v31 = vadd.f32 %v4471_v15, %v2110_v37  ;;  %v2314_v16 = vadd.f32 %v4471_v15, %v2174_v21  ;;  %v1426_v27 = vpop.f32.mrb[20].mxu0 }
 0x16f   : > { %v2759_v13 = vmax.f32 %v2631_v24, 0.0  ;;  %v3828_v33 = vpack.c.bf16 %v2695_v34, %v2694_v32  ;;  %v5659_v26 = vunpack.c.h.bf16 %v4518_v43  ;;  %v5660_v20 = vunpack.c.h.bf16 %v4521_v44  ;;  %v1428_v34 = vpop.f32.mrb[21].mxu0 }
 0x170   : > { %v2696_v14 = vmax.f32 %v2568_v8, 0.0  ;;  %v2760_v22 = vmax.f32 %v2632_v36, 0.0  ;;  %v5661_v10 = vunpack.c.l.bf16 %v4528_v49  ;;  %v5662_v54 = vunpack.c.l.bf16 %v4531_v50 }
 0x171   : > { %v3860_v25 = vpack.c.bf16 %v2759_v13, %v2758_v58  ;;  %v2569_v19 = vadd.f32 %v5659_v26, %v2249_v23  ;;  %v2633_v29 = vadd.f32 %v5660_v20, %v2313_v52  ;;  %v2111_v39 = vmul.f32 %v4463_v12, %v1418_v17  ;;  %3200 = vst [vmem:[%s4784_s18 + $0x30] sm:$0xff] %v3828_v33  ;;  %v1586_v17 = vpop.f32.mrb[20].mxu1  ;;  %v1430_v33 = vpop.f32.mrb[22].mxu0 }
 0x172   : > { %v2570_v46 = vadd.f32 %v5661_v10, %v2250_v31  ;;  %v2634_v30 = vadd.f32 %v5662_v54, %v2314_v16  ;;  %v2175_v24 = vmul.f32 %v4463_v12, %v1578_v28  ;;  %v2112_v43 = vmul.f32 %v4461_v11, %v1420_v38  ;;  %v1588_v38 = vpop.f32.mrb[21].mxu1 }
 0x173   : > { %3232 = vst [vmem:[%s4784_s18 + $0x130] sm:$0xff] %v3860_v25  ;;  %v2697_v32 = vmax.f32 %v2569_v19, 0.0  ;;  %v2761_v58 = vmax.f32 %v2633_v29, 0.0  ;;  %v2176_v42 = vmul.f32 %v4461_v11, %v1580_v48  ;;  %v2251_v7 = vadd.f32 %v4475_v18, %v2111_v39  ;;  %v1590_v25 = vpop.f32.mrb[22].mxu1 }
 0x174   : > { %v2698_v44 = vmax.f32 %v2570_v46, 0.0  ;;  %v2762_v40 = vmax.f32 %v2634_v30, 0.0  ;;  %v2315_v8 = vadd.f32 %v4475_v18, %v2175_v24  ;;  %v2252_v37 = vadd.f32 %v4471_v15, %v2112_v43  ;;  %v1592_v29 = vpop.f32.mrb[23].mxu1 }
 0x175   : > { %v3829_v36 = vpack.c.bf16 %v2697_v32, %v2696_v14  ;;  %v3861_v28 = vpack.c.bf16 %v2761_v58, %v2760_v22  ;;  %v2316_v21 = vadd.f32 %v4471_v15, %v2176_v42  ;;  %v5663_v48 = vunpack.c.h.bf16 %v4528_v49 }
 0x176   : > { %v5664_v23 = vunpack.c.h.bf16 %v4531_v50  ;;  %v2113_v31 = vmul.f32 %v4463_v12, %v1422_v9  ;;  %v2177_v16 = vmul.f32 %v4463_v12, %v1582_v35  ;;  %v5665_v14 = vunpack.c.l.bf16 %v4538_v55  ;;  %v1432_v50 = vpop.f32.mrb[23].mxu0 }
 0x177   : > { %v2571_v13 = vadd.f32 %v5663_v48, %v2251_v7  ;;  %3201 = vst [vmem:[%s4784_s18 + $0x38] sm:$0xff] %v3829_v36  ;;  %3233 = vst [vmem:[%s4784_s18 + $0x138] sm:$0xff] %v3861_v28  ;;  %v5666_v26 = vunpack.c.l.bf16 %v4541_v56  ;;  %v2114_v49 = vmul.f32 %v4461_v11, %v1426_v27  ;;  %v2178_v20 = vmul.f32 %v4461_v11, %v1586_v17 }
 0x178   : > { %v2635_v52 = vadd.f32 %v5664_v23, %v2315_v8  ;;  %v2572_v22 = vadd.f32 %v5665_v14, %v2252_v37  ;;  %v2253_v35 = vadd.f32 %v4475_v18, %v2113_v31  ;;  %v2317_v46 = vadd.f32 %v4475_v18, %v2177_v16 }
 0x179   : > { %v2636_v19 = vadd.f32 %v5666_v26, %v2316_v21  ;;  %v2699_v10 = vmax.f32 %v2571_v13, 0.0  ;;  %v2254_v39 = vadd.f32 %v4471_v15, %v2114_v49  ;;  %v2318_v24 = vadd.f32 %v4471_v15, %v2178_v20  ;;  %v1596_v13 = vpop.f32.mrb[24].mxu1 }
 0x17a   : > { %v2763_v9 = vmax.f32 %v2635_v52, 0.0  ;;  %v2700_v54 = vmax.f32 %v2572_v22, 0.0  ;;  %v5667_v43 = vunpack.c.h.bf16 %v4538_v55  ;;  %v5668_v7 = vunpack.c.h.bf16 %v4541_v56  ;;  %v1436_v56 = vpop.f32.mrb[24].mxu0 }
 0x17b   : > { %v2764_v30 = vmax.f32 %v2636_v19, 0.0  ;;  %v3830_v32 = vpack.c.bf16 %v2699_v10, %v2698_v44  ;;  %v5669_v27 = vunpack.c.l.bf16 %v4548_v61  ;;  %v5670_v36 = vunpack.c.l.bf16 %v4551_v62 }
 0x17c   : > { %v3862_v58 = vpack.c.bf16 %v2763_v9, %v2762_v40  ;;  %v2573_v42 = vadd.f32 %v5667_v43, %v2253_v35  ;;  %v2637_v8 = vadd.f32 %v5668_v7, %v2317_v46  ;;  %v2115_v37 = vmul.f32 %v4463_v12, %v1428_v34  ;;  %v1438_v34 = vpop.f32.mrb[25].mxu0 }
 0x17d   : > { %v2574_v17 = vadd.f32 %v5669_v27, %v2254_v39  ;;  %v2638_v28 = vadd.f32 %v5670_v36, %v2318_v24  ;;  %v2179_v21 = vmul.f32 %v4463_v12, %v1588_v38  ;;  %3202 = vst [vmem:[%s4784_s18 + $0x40] sm:$0xff] %v3830_v32  ;;  %v2116_v55 = vmul.f32 %v4461_v11, %v1430_v33  ;;  %v1598_v38 = vpop.f32.mrb[25].mxu1  ;;  %v1440_v19 = vpop.f32.mrb[26].mxu0 }
 0x17e   : > { %3234 = vst [vmem:[%s4784_s18 + $0x140] sm:$0xff] %v3862_v58  ;;  %v2701_v44 = vmax.f32 %v2573_v42, 0.0  ;;  %v2765_v40 = vmax.f32 %v2637_v8, 0.0  ;;  %v2180_v48 = vmul.f32 %v4461_v11, %v1590_v25  ;;  %v2255_v31 = vadd.f32 %v4475_v18, %v2115_v37  ;;  %v1600_v25 = vpop.f32.mrb[26].mxu1  ;;  %v1442_v39 = vpop.f32.mrb[27].mxu0 }
 0x17f   : > { %v2702_v23 = vmax.f32 %v2574_v17, 0.0  ;;  %v2766_v52 = vmax.f32 %v2638_v28, 0.0  ;;  %v2319_v16 = vadd.f32 %v4475_v18, %v2179_v21  ;;  %v2256_v26 = vadd.f32 %v4471_v15, %v2116_v55  ;;  %v1602_v24 = vpop.f32.mrb[27].mxu1 }
 0x180   : > { %v3831_v14 = vpack.c.bf16 %v2701_v44, %v2700_v54  ;;  %v3863_v22 = vpack.c.bf16 %v2765_v40, %v2764_v30  ;;  %v2320_v33 = vadd.f32 %v4471_v15, %v2180_v48  ;;  %v5671_v49 = vunpack.c.h.bf16 %v4548_v61 }
 0x181   : > { %v5672_v10 = vunpack.c.h.bf16 %v4551_v62  ;;  %v2117_v35 = vmul.f32 %v4463_v12, %v1432_v50  ;;  %v2181_v46 = vmul.f32 %v4463_v12, %v1592_v29  ;;  %v5673_v54 = vunpack.c.l.bf16 %v4558_v3 }
 0x182   : > { %v2575_v20 = vadd.f32 %v5671_v49, %v2255_v31  ;;  %3203 = vst [vmem:[%s4784_s18 + $0x48] sm:$0xff] %v3831_v14  ;;  %3235 = vst [vmem:[%s4784_s18 + $0x148] sm:$0xff] %v3863_v22  ;;  %v5674_v32 = vunpack.c.l.bf16 %v4561_v4  ;;  %v2118_v61 = vmul.f32 %v4461_v11, %v1436_v56  ;;  %v2182_v43 = vmul.f32 %v4461_v11, %v1596_v13  ;;  %v1446_v14 = vpop.f32.mrb[28].mxu0  ;;  %v1606_v22 = vpop.f32.mrb[28].mxu1 }
 0x183   : > { %v2639_v9 = vadd.f32 %v5672_v10, %v2319_v16  ;;  %v2576_v30 = vadd.f32 %v5673_v54, %v2256_v26  ;;  %v2257_v50 = vadd.f32 %v4475_v18, %v2117_v35  ;;  %v2321_v29 = vadd.f32 %v4475_v18, %v2181_v46  ;;  %v1448_v26 = vpop.f32.mrb[29].mxu0 }
 0x184   : > { %v2640_v58 = vadd.f32 %v5674_v32, %v2320_v33  ;;  %v2703_v62 = vmax.f32 %v2575_v20, 0.0  ;;  %v2258_v27 = vadd.f32 %v4471_v15, %v2118_v61  ;;  %v2322_v17 = vadd.f32 %v4471_v15, %v2182_v43  ;;  %v1608_v33 = vpop.f32.mrb[29].mxu1  ;;  %v1450_v10 = vpop.f32.mrb[30].mxu0 }
 0x185   : > { %v2767_v42 = vmax.f32 %v2639_v9, 0.0  ;;  %v2704_v7 = vmax.f32 %v2576_v30, 0.0  ;;  %v5675_v37 = vunpack.c.h.bf16 %v4558_v3  ;;  %v5676_v44 = vunpack.c.h.bf16 %v4561_v4  ;;  %v1610_v9 = vpop.f32.mrb[30].mxu1  ;;  %v1452_v30 = vpop.f32.mrb[31].mxu0 }
 0x186   : > { %v2768_v8 = vmax.f32 %v2640_v58, 0.0  ;;  %v3832_v36 = vpack.c.bf16 %v2703_v62, %v2702_v23  ;;  %v5677_v55 = vunpack.c.l.bf16 %v4568_v0  ;;  %v5678_v56 = vunpack.c.l.bf16 %v4571_v59 }
 0x187   : > { %v3864_v28 = vpack.c.bf16 %v2767_v42, %v2766_v52  ;;  %v2577_v21 = vadd.f32 %v5675_v37, %v2257_v50  ;;  %v2641_v40 = vadd.f32 %v5676_v44, %v2321_v29  ;;  %v2119_v31 = vmul.f32 %v4463_v12, %v1438_v34 }
 0x188   : > { %v2578_v48 = vadd.f32 %v5677_v55, %v2258_v27  ;;  %v2642_v13 = vadd.f32 %v5678_v56, %v2322_v17  ;;  %v2183_v16 = vmul.f32 %v4463_v12, %v1598_v38  ;;  %3204 = vst [vmem:[%s4784_s18 + $0x50] sm:$0xff] %v3832_v36  ;;  %v2120_v52 = vmul.f32 %v4461_v11, %v1440_v19 }
 0x189   : > { %3236 = vst [vmem:[%s4784_s18 + $0x150] sm:$0xff] %v3864_v28  ;;  %v2705_v23 = vmax.f32 %v2577_v21, 0.0  ;;  %v2769_v3 = vmax.f32 %v2641_v40, 0.0  ;;  %v2184_v4 = vmul.f32 %v4461_v11, %v1600_v25  ;;  %v2259_v34 = vadd.f32 %v4475_v18, %v2119_v31  ;;  %v1612_v25 = vpop.f32.mrb[31].mxu1  ;;  %v1456_v31 = vpop.f32.mrb[32].mxu0 }
 0x18a   : > { %v2706_v49 = vmax.f32 %v2578_v48, 0.0  ;;  %v2770_v20 = vmax.f32 %v2642_v13, 0.0  ;;  %v2323_v38 = vadd.f32 %v4475_v18, %v2183_v16  ;;  %v2260_v54 = vadd.f32 %v4471_v15, %v2120_v52  ;;  %v1616_v16 = vpop.f32.mrb[32].mxu1 }
 0x18b   : > { %v3833_v35 = vpack.c.bf16 %v2705_v23, %v2704_v7  ;;  %v3865_v46 = vpack.c.bf16 %v2769_v3, %v2768_v8  ;;  %v2324_v19 = vadd.f32 %v4471_v15, %v2184_v4  ;;  %v5679_v32 = vunpack.c.h.bf16 %v4568_v0 }
 0x18c   : > { %v5680_v61 = vunpack.c.h.bf16 %v4571_v59  ;;  %v2121_v62 = vmul.f32 %v4463_v12, %v1442_v39  ;;  %v2185_v42 = vmul.f32 %v4463_v12, %v1602_v24  ;;  %v5681_v50 = vunpack.c.l.bf16 %v4578_v6 }
 0x18d   : > { %v2579_v58 = vadd.f32 %v5679_v32, %v2259_v34  ;;  %3205 = vst [vmem:[%s4784_s18 + $0x58] sm:$0xff] %v3833_v35  ;;  %3237 = vst [vmem:[%s4784_s18 + $0x158] sm:$0xff] %v3865_v46  ;;  %v5682_v7 = vunpack.c.l.bf16 %v4581_v57  ;;  %v2122_v27 = vmul.f32 %v4461_v11, %v1446_v14  ;;  %v2186_v0 = vmul.f32 %v4461_v11, %v1606_v22 }
 0x18e   : > { %v2643_v43 = vadd.f32 %v5680_v61, %v2323_v38  ;;  %v2580_v29 = vadd.f32 %v5681_v50, %v2260_v54  ;;  %v2261_v59 = vadd.f32 %v4475_v18, %v2121_v62  ;;  %v2325_v39 = vadd.f32 %v4475_v18, %v2185_v42 }
 0x18f   : > { %v2644_v8 = vadd.f32 %v5682_v7, %v2324_v19  ;;  %v2707_v17 = vmax.f32 %v2579_v58, 0.0  ;;  %v2262_v37 = vadd.f32 %v4471_v15, %v2122_v27  ;;  %v2326_v21 = vadd.f32 %v4471_v15, %v2186_v0 }
 0x190   : > { %v2771_v36 = vmax.f32 %v2643_v43, 0.0  ;;  %v2708_v28 = vmax.f32 %v2580_v29, 0.0  ;;  %v5683_v55 = vunpack.c.h.bf16 %v4578_v6  ;;  %v5684_v56 = vunpack.c.h.bf16 %v4581_v57 }
 0x191   : > { %v2772_v24 = vmax.f32 %v2644_v8, 0.0  ;;  %v3834_v44 = vpack.c.bf16 %v2707_v17, %v2706_v49  ;;  %v5685_v14 = vunpack.c.l.bf16 %v4588_v1  ;;  %v5686_v23 = vunpack.c.l.bf16 %v4591_v53  ;;  %v1458_v49 = vpop.f32.mrb[33].mxu0 }
 0x192   : > { %v3866_v40 = vpack.c.bf16 %v2771_v36, %v2770_v20  ;;  %v2581_v48 = vadd.f32 %v5683_v55, %v2261_v59  ;;  %v2645_v13 = vadd.f32 %v5684_v56, %v2325_v39  ;;  %v2123_v52 = vmul.f32 %v4463_v12, %v1448_v26  ;;  %v1618_v20 = vpop.f32.mrb[33].mxu1  ;;  %v1460_v35 = vpop.f32.mrb[34].mxu0 }
 0x193   : > { %v2582_v22 = vadd.f32 %v5685_v14, %v2262_v37  ;;  %v2646_v3 = vadd.f32 %v5686_v23, %v2326_v21  ;;  %v2187_v4 = vmul.f32 %v4463_v12, %v1608_v33  ;;  %3206 = vst [vmem:[%s4784_s18 + $0x60] sm:$0xff] %v3834_v44  ;;  %v2124_v57 = vmul.f32 %v4461_v11, %v1450_v10  ;;  %v1620_v46 = vpop.f32.mrb[34].mxu1  ;;  %v1462_v32 = vpop.f32.mrb[35].mxu0 }
 0x194   : > { %3238 = vst [vmem:[%s4784_s18 + $0x160] sm:$0xff] %v3866_v40  ;;  %v2709_v6 = vmax.f32 %v2581_v48, 0.0  ;;  %v2773_v34 = vmax.f32 %v2645_v13, 0.0  ;;  %v2188_v38 = vmul.f32 %v4461_v11, %v1610_v9  ;;  %v2263_v26 = vadd.f32 %v4475_v18, %v2123_v52  ;;  %v1622_v58 = vpop.f32.mrb[35].mxu1  ;;  %v1466_v44 = vpop.f32.mrb[36].mxu0 }
 0x195   : > { %v2710_v54 = vmax.f32 %v2582_v22, 0.0  ;;  %v2774_v19 = vmax.f32 %v2646_v3, 0.0  ;;  %v2327_v33 = vadd.f32 %v4475_v18, %v2187_v4  ;;  %v2264_v62 = vadd.f32 %v4471_v15, %v2124_v57  ;;  %v1626_v40 = vpop.f32.mrb[36].mxu1  ;;  %v1468_v14 = vpop.f32.mrb[37].mxu0 }
 0x196   : > { %v3835_v61 = vpack.c.bf16 %v2709_v6, %v2708_v28  ;;  %v3867_v43 = vpack.c.bf16 %v2773_v34, %v2772_v24  ;;  %v2328_v10 = vadd.f32 %v4471_v15, %v2188_v38  ;;  %v5687_v9 = vunpack.c.h.bf16 %v4588_v1  ;;  %v1628_v22 = vpop.f32.mrb[37].mxu1  ;;  %v1470_v57 = vpop.f32.mrb[38].mxu0 }
 0x197   : > { %v5688_v50 = vunpack.c.h.bf16 %v4591_v53  ;;  %v2125_v7 = vmul.f32 %v4463_v12, %v1452_v30  ;;  %v2189_v8 = vmul.f32 %v4463_v12, %v1612_v25  ;;  %v5689_v27 = vunpack.c.l.bf16 %v4598_v63  ;;  %v1630_v38 = vpop.f32.mrb[38].mxu1 }
 0x198   : > { %v2583_v42 = vadd.f32 %v5687_v9, %v2263_v26  ;;  %3207 = vst [vmem:[%s4784_s18 + $0x68] sm:$0xff] %v3835_v61  ;;  %3239 = vst [vmem:[%s4784_s18 + $0x168] sm:$0xff] %v3867_v43  ;;  %v5690_v17 = vunpack.c.l.bf16 %v4601_v51  ;;  %v2126_v59 = vmul.f32 %v4461_v11, %v1456_v31  ;;  %v2190_v1 = vmul.f32 %v4461_v11, %v1616_v16  ;;  %v1472_v26 = vpop.f32.mrb[39].mxu0 }
 0x199   : > { %v2647_v29 = vadd.f32 %v5688_v50, %v2327_v33  ;;  %v2584_v0 = vadd.f32 %v5689_v27, %v2264_v62  ;;  %v2265_v53 = vadd.f32 %v4475_v18, %v2125_v7  ;;  %v2329_v30 = vadd.f32 %v4475_v18, %v2189_v8  ;;  %v1632_v33 = vpop.f32.mrb[39].mxu1 }
 0x19a   : > { %v2648_v36 = vadd.f32 %v5690_v17, %v2328_v10  ;;  %v2711_v39 = vmax.f32 %v2583_v42, 0.0  ;;  %v2266_v37 = vadd.f32 %v4471_v15, %v2126_v59  ;;  %v2330_v21 = vadd.f32 %v4471_v15, %v2190_v1 }
 0x19b   : > { %v2775_v28 = vmax.f32 %v2647_v29, 0.0  ;;  %v2712_v24 = vmax.f32 %v2584_v0, 0.0  ;;  %v5691_v56 = vunpack.c.h.bf16 %v4598_v63  ;;  %v5692_v31 = vunpack.c.h.bf16 %v4601_v51 }
 0x19c   : > { %v2776_v25 = vmax.f32 %v2648_v36, 0.0  ;;  %v3836_v55 = vpack.c.bf16 %v2711_v39, %v2710_v54  ;;  %v5693_v23 = vunpack.c.l.bf16 %v4608_v5  ;;  %v5694_v52 = vunpack.c.l.bf16 %v4611_v47 }
 0x19d   : > { %v3868_v48 = vpack.c.bf16 %v2775_v28, %v2774_v19  ;;  %v2585_v13 = vadd.f32 %v5691_v56, %v2265_v53  ;;  %v2649_v16 = vadd.f32 %v5692_v31, %v2329_v30  ;;  %v2127_v6 = vmul.f32 %v4463_v12, %v1458_v49  ;;  %v1476_v28 = vpop.f32.mrb[40].mxu0 }
 0x19e   : > { %v2586_v3 = vadd.f32 %v5693_v23, %v2266_v37  ;;  %v2650_v4 = vadd.f32 %v5694_v52, %v2330_v21  ;;  %v2191_v34 = vmul.f32 %v4463_v12, %v1618_v20  ;;  %3208 = vst [vmem:[%s4784_s18 + $0x70] sm:$0xff] %v3836_v55  ;;  %v2128_v51 = vmul.f32 %v4461_v11, %v1460_v35  ;;  %v1478_v37 = vpop.f32.mrb[41].mxu0 }
 0x19f   : > { %3240 = vst [vmem:[%s4784_s18 + $0x170] sm:$0xff] %v3868_v48  ;;  %v2713_v63 = vmax.f32 %v2585_v13, 0.0  ;;  %v2777_v54 = vmax.f32 %v2649_v16, 0.0  ;;  %v2192_v19 = vmul.f32 %v4461_v11, %v1620_v46  ;;  %v2267_v49 = vadd.f32 %v4475_v18, %v2127_v6  ;;  %v1480_v31 = vpop.f32.mrb[42].mxu0 }
 0x1a0   : > { %v2714_v61 = vmax.f32 %v2586_v3, 0.0  ;;  %v2778_v43 = vmax.f32 %v2650_v4, 0.0  ;;  %v2331_v20 = vadd.f32 %v4475_v18, %v2191_v34  ;;  %v2268_v9 = vadd.f32 %v4471_v15, %v2128_v51 }
 0x1a1   : > { %v3837_v62 = vpack.c.bf16 %v2713_v63, %v2712_v24  ;;  %v3869_v10 = vpack.c.bf16 %v2777_v54, %v2776_v25  ;;  %v2332_v42 = vadd.f32 %v4471_v15, %v2192_v19  ;;  %v5695_v35 = vunpack.c.h.bf16 %v4608_v5  ;;  %v5078_v63 = vpop.f32.mrb[43].mxu0 }
 0x1a2   : > { %v5696_v46 = vunpack.c.h.bf16 %v4611_v47  ;;  %v2129_v7 = vmul.f32 %v4463_v12, %v1462_v32  ;;  %v2193_v8 = vmul.f32 %v4463_v12, %v1622_v58  ;;  %v5697_v27 = vunpack.c.l.bf16 %v4618_v2  ;;  %v1636_v58 = vpop.f32.mrb[40].mxu1 }
 0x1a3   : > { %v2587_v50 = vadd.f32 %v5695_v35, %v2267_v49  ;;  %3209 = vst [vmem:[%s4784_s18 + $0x78] sm:$0xff] %v3837_v62  ;;  %3241 = vst [vmem:[%s4784_s18 + $0x178] sm:$0xff] %v3869_v10  ;;  %v5698_v17 = vunpack.c.l.bf16 %v4621_v45  ;;  %v2130_v59 = vmul.f32 %v4461_v11, %v1466_v44  ;;  %v2194_v5 = vmul.f32 %v4461_v11, %v1626_v40  ;;  %v1638_v21 = vpop.f32.mrb[41].mxu1 }
 0x1a4   : > { %v2651_v29 = vadd.f32 %v5696_v46, %v2331_v20  ;;  %v2588_v0 = vadd.f32 %v5697_v27, %v2268_v9  ;;  %v2269_v47 = vadd.f32 %v4475_v18, %v2129_v7  ;;  %v2333_v32 = vadd.f32 %v4475_v18, %v2193_v8  ;;  %v1640_v16 = vpop.f32.mrb[42].mxu1  ;;  %v5705_v46 = vld [vmem:[#allocation6_spill] sm:$0xff]  ;;  %v5707_v8 = vld [vmem:[#allocation7_spill] sm:$0xff] }
 0x1a5   : > { %v2652_v36 = vadd.f32 %v5698_v17, %v2332_v42  ;;  %v2715_v1 = vmax.f32 %v2587_v50, 0.0  ;;  %v2270_v24 = vadd.f32 %v4471_v15, %v2130_v59  ;;  %v2334_v25 = vadd.f32 %v4471_v15, %v2194_v5  ;;  %v5080_v54 = vpop.f32.mrb[43].mxu1 }
 0x1a6   : > { %v2779_v39 = vmax.f32 %v2651_v29, 0.0  ;;  %v2716_v53 = vmax.f32 %v2588_v0, 0.0  ;;  %v5699_v55 = vunpack.c.h.bf16 %v4618_v2  ;;  %v5700_v56 = vunpack.c.h.bf16 %v4621_v45  ;;  %v1646_v59 = vpop.f32.mrb[44].mxu1 }
 0x1a7   : > { %v2780_v30 = vmax.f32 %v2652_v36, 0.0  ;;  %v3838_v44 = vpack.c.bf16 %v2715_v1, %v2714_v61  ;;  %v5701_v23 = vunpack.c.l.bf16 %v4628_v60  ;;  %v5702_v52 = vunpack.c.l.bf16 %v4631_v41  ;;  %v1486_v36 = vpop.f32.mrb[44].mxu0 }
 0x1a8   : > { %v3870_v40 = vpack.c.bf16 %v2779_v39, %v2778_v43  ;;  %v2589_v48 = vadd.f32 %v5699_v55, %v2269_v47  ;;  %v2653_v13 = vadd.f32 %v5700_v56, %v2333_v32  ;;  %v2131_v6 = vmul.f32 %v4463_v12, %v1468_v14  ;;  %v5106_v1 = vpop.f32.mrb[45].mxu0  ;;  %v5108_v39 = vpop.f32.mrb[45].mxu1 }
 0x1a9   : > { %v2590_v3 = vadd.f32 %v5701_v23, %v2270_v24  ;;  %v2654_v4 = vadd.f32 %v5702_v52, %v2334_v25  ;;  %v2195_v34 = vmul.f32 %v4463_v12, %v1628_v22  ;;  %3210 = vst [vmem:[%s4784_s18 + $0x80] sm:$0xff] %v3838_v44  ;;  %v2132_v51 = vmul.f32 %v4461_v11, %v1470_v57  ;;  %v5711_v23 = vld [vmem:[#allocation8_spill] sm:$0xff] }
 0x1aa   : > { %3242 = vst [vmem:[%s4784_s18 + $0x180] sm:$0xff] %v3870_v40  ;;  %v2717_v45 = vmax.f32 %v2589_v48, 0.0  ;;  %v2781_v2 = vmax.f32 %v2653_v13, 0.0  ;;  %v2196_v19 = vmul.f32 %v4461_v11, %v1630_v38  ;;  %v2271_v14 = vadd.f32 %v4475_v18, %v2131_v6 }
 0x1ab   : > { %v2718_v61 = vmax.f32 %v2590_v3, 0.0  ;;  %v2782_v43 = vmax.f32 %v2654_v4, 0.0  ;;  %v2335_v22 = vadd.f32 %v4475_v18, %v2195_v34  ;;  %v2272_v62 = vadd.f32 %v4471_v15, %v2132_v51  ;;  %v5713_v4 = vld [vmem:[#allocation9_spill] sm:$0xff] }
 0x1ac   : > { %v3839_v49 = vpack.c.bf16 %v2717_v45, %v2716_v53  ;;  %v3871_v20 = vpack.c.bf16 %v2781_v2, %v2780_v30  ;;  %v2336_v10 = vadd.f32 %v4471_v15, %v2196_v19  ;;  %v5703_v9 = vunpack.c.h.bf16 %v4628_v60  ;;  %v5112_v53 = vpop.f32.mrb[46].mxu0  ;;  %v5114_v30 = vpop.f32.mrb[46].mxu1 }
 0x1ad   : > { %v5704_v35 = vunpack.c.h.bf16 %v4631_v41  ;;  %v2133_v38 = vmul.f32 %v4463_v12, %v1472_v26  ;;  %v2197_v50 = vmul.f32 %v4463_v12, %v1632_v33  ;;  %v5706_v29 = vunpack.c.l.bf16 %v5705_v46  ;;  %v5120_v56 = vpop.f32.mrb[47].mxu0  ;;  %v5122_v13 = vpop.f32.mrb[47].mxu1 }
 0x1ae   : > { %v2591_v42 = vadd.f32 %v5703_v9, %v2271_v14  ;;  %3211 = vst [vmem:[%s4784_s18 + $0x88] sm:$0xff] %v3839_v49  ;;  %3243 = vst [vmem:[%s4784_s18 + $0x188] sm:$0xff] %v3871_v20  ;;  %v5708_v27 = vunpack.c.l.bf16 %v5707_v8  ;;  %v2134_v17 = vmul.f32 %v4461_v11, %v1476_v28  ;;  %v2198_v60 = vmul.f32 %v4461_v11, %v1636_v58 }
 0x1af   : > { %v2655_v57 = vadd.f32 %v5704_v35, %v2335_v22  ;;  %v2592_v7 = vadd.f32 %v5706_v29, %v2272_v62  ;;  %v2273_v26 = vadd.f32 %v4475_v18, %v2133_v38  ;;  %v2337_v33 = vadd.f32 %v4475_v18, %v2197_v50  ;;  %v1496_v38 = vpop.f32.mrb[48].mxu0  ;;  %v1656_v50 = vpop.f32.mrb[48].mxu1 }
 0x1b0   : > { %v2656_v0 = vadd.f32 %v5708_v27, %v2336_v10  ;;  %v2719_v41 = vmax.f32 %v2591_v42, 0.0  ;;  %v2274_v28 = vadd.f32 %v4471_v15, %v2134_v17  ;;  %v2338_v58 = vadd.f32 %v4471_v15, %v2198_v60 }
 0x1b1   : > { %v2783_v5 = vmax.f32 %v2655_v57, 0.0  ;;  %v2720_v47 = vmax.f32 %v2592_v7, 0.0  ;;  %v5709_v44 = vunpack.c.h.bf16 %v5705_v46  ;;  %v5710_v55 = vunpack.c.h.bf16 %v5707_v8  ;;  %v5717_v46 = vld [vmem:[#allocation10_spill] sm:$0xff]  ;;  %v5719_v8 = vld [vmem:[#allocation11_spill] sm:$0xff] }
 0x1b2   : > { %v2784_v32 = vmax.f32 %v2656_v0, 0.0  ;;  %v3840_v24 = vpack.c.bf16 %v2719_v41, %v2718_v61  ;;  %v5712_v3 = vunpack.c.l.bf16 %v5711_v23  ;;  %v5714_v6 = vunpack.c.l.bf16 %v5713_v4  ;;  %v5154_v41 = vpop.f32.mrb[49].mxu0 }
 0x1b3   : > { %v3872_v25 = vpack.c.bf16 %v2783_v5, %v2782_v43  ;;  %v2593_v40 = vadd.f32 %v5709_v44, %v2273_v26  ;;  %v2657_v48 = vadd.f32 %v5710_v55, %v2337_v33  ;;  %v2135_v45 = vmul.f32 %v4463_v12, %v1478_v37 }
 0x1b4   : > { %v2594_v52 = vadd.f32 %v5712_v3, %v2274_v28  ;;  %v2658_v34 = vadd.f32 %v5714_v6, %v2338_v58  ;;  %v2199_v2 = vmul.f32 %v4463_v12, %v1638_v21  ;;  %3212 = vst [vmem:[%s4784_s18 + $0x90] sm:$0xff] %v3840_v24  ;;  %v2136_v61 = vmul.f32 %v4461_v11, %v1480_v31 }
 0x1b5   : > { %3244 = vst [vmem:[%s4784_s18 + $0x190] sm:$0xff] %v3872_v25  ;;  %v2721_v51 = vmax.f32 %v2593_v40, 0.0  ;;  %v2785_v19 = vmax.f32 %v2657_v48, 0.0  ;;  %v2200_v43 = vmul.f32 %v4461_v11, %v1640_v16  ;;  %v2275_v49 = vadd.f32 %v4475_v18, %v2135_v45 }
 0x1b6   : > { %v2722_v14 = vmax.f32 %v2594_v52, 0.0  ;;  %v2786_v22 = vmax.f32 %v2658_v34, 0.0  ;;  %v2339_v20 = vadd.f32 %v4475_v18, %v2199_v2  ;;  %v2276_v21 = vadd.f32 %v4471_v15, %v2136_v61  ;;  %v5723_v52 = vld [vmem:[#allocation12_spill] sm:$0xff]  ;;  %v5725_v34 = vld [vmem:[#allocation13_spill] sm:$0xff] }
 0x1b7   : > { %v3841_v62 = vpack.c.bf16 %v2721_v51, %v2720_v47  ;;  %v3873_v37 = vpack.c.bf16 %v2785_v19, %v2784_v32  ;;  %v2340_v10 = vadd.f32 %v4471_v15, %v2200_v43  ;;  %v5715_v9 = vunpack.c.h.bf16 %v5711_v23  ;;  %v5160_v47 = vpop.f32.mrb[50].mxu0 }
 0x1b8   : > { %v5716_v31 = vunpack.c.h.bf16 %v5713_v4  ;;  %v2137_v16 = vmul.f32 %v4463_v12, %v5078_v63  ;;  %v2201_v57 = vmul.f32 %v4463_v12, %v5080_v54  ;;  %v5718_v29 = vunpack.c.l.bf16 %v5717_v46  ;;  %v5156_v63 = vpop.f32.mrb[49].mxu1  ;;  %v5166_v24 = vpop.f32.mrb[51].mxu0 }
 0x1b9   : > { %v2595_v42 = vadd.f32 %v5715_v9, %v2275_v49  ;;  %3213 = vst [vmem:[%s4784_s18 + $0x98] sm:$0xff] %v3841_v62  ;;  %3245 = vst [vmem:[%s4784_s18 + $0x198] sm:$0xff] %v3873_v37  ;;  %v5720_v27 = vunpack.c.l.bf16 %v5719_v8  ;;  %v2138_v17 = vmul.f32 %v4461_v11, %v1486_v36  ;;  %v2202_v60 = vmul.f32 %v4461_v11, %v1646_v59  ;;  %v5162_v32 = vpop.f32.mrb[50].mxu1  ;;  %v1506_v9 = vpop.f32.mrb[52].mxu0 }
 0x1ba   : > { %v2659_v35 = vadd.f32 %v5716_v31, %v2339_v20  ;;  %v2596_v7 = vadd.f32 %v5718_v29, %v2276_v21  ;;  %v2277_v26 = vadd.f32 %v4475_v18, %v2137_v16  ;;  %v2341_v33 = vadd.f32 %v4475_v18, %v2201_v57  ;;  %v5168_v25 = vpop.f32.mrb[51].mxu1 }
 0x1bb   : > { %v2660_v0 = vadd.f32 %v5720_v27, %v2340_v10  ;;  %v2723_v5 = vmax.f32 %v2595_v42, 0.0  ;;  %v2278_v59 = vadd.f32 %v4471_v15, %v2138_v17  ;;  %v2342_v58 = vadd.f32 %v4471_v15, %v2202_v60  ;;  %v1666_v42 = vpop.f32.mrb[52].mxu1 }
 0x1bc   : > { %v2787_v54 = vmax.f32 %v2659_v35, 0.0  ;;  %v2724_v28 = vmax.f32 %v2596_v7, 0.0  ;;  %v5721_v55 = vunpack.c.h.bf16 %v5717_v46  ;;  %v5722_v23 = vunpack.c.h.bf16 %v5719_v8  ;;  %v5200_v46 = vpop.f32.mrb[53].mxu0  ;;  %v5202_v29 = vpop.f32.mrb[53].mxu1  ;;  %v5729_v7 = vld [vmem:[#allocation14_spill] sm:$0xff] }
 0x1bd   : > { %v2788_v36 = vmax.f32 %v2660_v0, 0.0  ;;  %v3842_v44 = vpack.c.bf16 %v2723_v5, %v2722_v14  ;;  %v5724_v4 = vunpack.c.l.bf16 %v5723_v52  ;;  %v5726_v45 = vunpack.c.l.bf16 %v5725_v34  ;;  %v5731_v0 = vld [vmem:[#allocation15_spill] sm:$0xff] }
 0x1be   : > { %v3874_v40 = vpack.c.bf16 %v2787_v54, %v2786_v22  ;;  %v2597_v48 = vadd.f32 %v5721_v55, %v2277_v26  ;;  %v2661_v3 = vadd.f32 %v5722_v23, %v2341_v33  ;;  %v2139_v51 = vmul.f32 %v4463_v12, %v5106_v1  ;;  %v5214_v26 = vpop.f32.mrb[54].mxu1 }
 0x1bf   : > { %v2598_v6 = vadd.f32 %v5724_v4, %v2278_v59  ;;  %v2662_v2 = vadd.f32 %v5726_v45, %v2342_v58  ;;  %v2203_v19 = vmul.f32 %v4463_v12, %v5108_v39  ;;  %3214 = vst [vmem:[%s4784_s18 + $0xa0] sm:$0xff] %v3842_v44  ;;  %v2140_v14 = vmul.f32 %v4461_v11, %v5112_v53  ;;  %v5220_v58 = vpop.f32.mrb[55].mxu1 }
 0x1c0   : > { %3246 = vst [vmem:[%s4784_s18 + $0x1a0] sm:$0xff] %v3874_v40  ;;  %v2725_v61 = vmax.f32 %v2597_v48, 0.0  ;;  %v2789_v43 = vmax.f32 %v2661_v3, 0.0  ;;  %v2204_v22 = vmul.f32 %v4461_v11, %v5114_v30  ;;  %v2279_v62 = vadd.f32 %v4475_v18, %v2139_v51 }
 0x1c1   : > { %v2726_v49 = vmax.f32 %v2598_v6, 0.0  ;;  %v2790_v20 = vmax.f32 %v2662_v2, 0.0  ;;  %v2343_v1 = vadd.f32 %v4475_v18, %v2203_v19  ;;  %v2280_v21 = vadd.f32 %v4471_v15, %v2140_v14  ;;  %v5735_v6 = vld [vmem:[#allocation16_spill] sm:$0xff]  ;;  %v5737_v2 = vld [vmem:[#allocation17_spill] sm:$0xff] }
 0x1c2   : > { %v3843_v37 = vpack.c.bf16 %v2725_v61, %v2724_v28  ;;  %v3875_v39 = vpack.c.bf16 %v2789_v43, %v2788_v36  ;;  %v2344_v10 = vadd.f32 %v4471_v15, %v2204_v22  ;;  %v5727_v53 = vunpack.c.h.bf16 %v5723_v52 }
 0x1c3   : > { %v5728_v30 = vunpack.c.h.bf16 %v5725_v34  ;;  %v2141_v16 = vmul.f32 %v4463_v12, %v5120_v56  ;;  %v2205_v57 = vmul.f32 %v4463_v12, %v5122_v13  ;;  %v5730_v8 = vunpack.c.l.bf16 %v5729_v7  ;;  %v5212_v56 = vpop.f32.mrb[54].mxu0 }
 0x1c4   : > { %v2599_v31 = vadd.f32 %v5727_v53, %v2279_v62  ;;  %3215 = vst [vmem:[%s4784_s18 + $0xa8] sm:$0xff] %v3843_v37  ;;  %3247 = vst [vmem:[%s4784_s18 + $0x1a8] sm:$0xff] %v3875_v39  ;;  %v5732_v17 = vunpack.c.l.bf16 %v5731_v0  ;;  %v2142_v5 = vmul.f32 %v4461_v11, %v1496_v38  ;;  %v2206_v54 = vmul.f32 %v4461_v11, %v1656_v50  ;;  %v5218_v59 = vpop.f32.mrb[55].mxu0 }
 0x1c5   : > { %v2663_v35 = vadd.f32 %v5728_v30, %v2343_v1  ;;  %v2600_v27 = vadd.f32 %v5730_v8, %v2280_v21  ;;  %v2281_v28 = vadd.f32 %v4475_v18, %v2141_v16  ;;  %v2345_v36 = vadd.f32 %v4475_v18, %v2205_v57  ;;  %v5244_v39 = vpop.f32.mrb[56].mxu0 }
 0x1c6   : > { %v2664_v60 = vadd.f32 %v5732_v17, %v2344_v10  ;;  %v2727_v13 = vmax.f32 %v2599_v31, 0.0  ;;  %v2282_v50 = vadd.f32 %v4471_v15, %v2142_v5  ;;  %v2346_v40 = vadd.f32 %v4471_v15, %v2206_v54  ;;  %v5250_v31 = vpop.f32.mrb[57].mxu0  ;;  %v5741_v17 = vld [vmem:[#allocation18_spill] sm:$0xff]  ;;  %v5743_v54 = vld [vmem:[#allocation19_spill] sm:$0xff] }
 0x1c7   : > { %v2791_v33 = vmax.f32 %v2663_v35, 0.0  ;;  %v2728_v44 = vmax.f32 %v2600_v27, 0.0  ;;  %v5733_v23 = vunpack.c.h.bf16 %v5729_v7  ;;  %v5734_v52 = vunpack.c.h.bf16 %v5731_v0  ;;  %v5262_v27 = vpop.f32.mrb[58].mxu0 }
 0x1c8   : > { %v2792_v38 = vmax.f32 %v2664_v60, 0.0  ;;  %v3844_v55 = vpack.c.bf16 %v2727_v13, %v2726_v49  ;;  %v5736_v34 = vunpack.c.l.bf16 %v5735_v6  ;;  %v5738_v51 = vunpack.c.l.bf16 %v5737_v2 }
 0x1c9   : > { %v3876_v48 = vpack.c.bf16 %v2791_v33, %v2790_v20  ;;  %v2601_v3 = vadd.f32 %v5733_v23, %v2281_v28  ;;  %v2665_v4 = vadd.f32 %v5734_v52, %v2345_v36  ;;  %v2143_v61 = vmul.f32 %v4463_v12, %v5154_v41 }
 0x1ca   : > { %v2602_v45 = vadd.f32 %v5736_v34, %v2282_v50  ;;  %v2666_v19 = vadd.f32 %v5738_v51, %v2346_v40  ;;  %v2207_v43 = vmul.f32 %v4463_v12, %v5156_v63  ;;  %3216 = vst [vmem:[%s4784_s18 + $0xb0] sm:$0xff] %v3844_v55  ;;  %v2144_v49 = vmul.f32 %v4461_v11, %v5160_v47  ;;  %v5246_v63 = vpop.f32.mrb[56].mxu1 }
 0x1cb   : > { %3248 = vst [vmem:[%s4784_s18 + $0x1b0] sm:$0xff] %v3876_v48  ;;  %v2729_v14 = vmax.f32 %v2601_v3, 0.0  ;;  %v2793_v22 = vmax.f32 %v2665_v4, 0.0  ;;  %v2208_v20 = vmul.f32 %v4461_v11, %v5162_v32  ;;  %v2283_v37 = vadd.f32 %v4475_v18, %v2143_v61  ;;  %v5252_v32 = vpop.f32.mrb[57].mxu1 }
 0x1cc   : > { %v2730_v62 = vmax.f32 %v2602_v45, 0.0  ;;  %v2794_v1 = vmax.f32 %v2666_v19, 0.0  ;;  %v2347_v41 = vadd.f32 %v4475_v18, %v2207_v43  ;;  %v2284_v53 = vadd.f32 %v4471_v15, %v2144_v49  ;;  %v5264_v0 = vpop.f32.mrb[58].mxu1  ;;  %v5747_v45 = vld [vmem:[#allocation20_spill] sm:$0xff]  ;;  %v5749_v19 = vld [vmem:[#allocation21_spill] sm:$0xff] }
 0x1cd   : > { %v3845_v21 = vpack.c.bf16 %v2729_v14, %v2728_v44  ;;  %v3877_v10 = vpack.c.bf16 %v2793_v22, %v2792_v38  ;;  %v2348_v47 = vadd.f32 %v4471_v15, %v2208_v20  ;;  %v5739_v30 = vunpack.c.h.bf16 %v5735_v6  ;;  %v5276_v44 = vpop.f32.mrb[59].mxu1 }
 0x1ce   : > { %v5740_v16 = vunpack.c.h.bf16 %v5737_v2  ;;  %v2145_v7 = vmul.f32 %v4463_v12, %v5166_v24  ;;  %v2209_v8 = vmul.f32 %v4463_v12, %v5168_v25  ;;  %v5742_v60 = vunpack.c.l.bf16 %v5741_v17  ;;  %v5274_v24 = vpop.f32.mrb[59].mxu0 }
 0x1cf   : > { %v2603_v35 = vadd.f32 %v5739_v30, %v2283_v37  ;;  %3217 = vst [vmem:[%s4784_s18 + $0xb8] sm:$0xff] %v3845_v21  ;;  %3249 = vst [vmem:[%s4784_s18 + $0x1b8] sm:$0xff] %v3877_v10  ;;  %v5744_v13 = vunpack.c.l.bf16 %v5743_v54  ;;  %v2146_v28 = vmul.f32 %v4461_v11, %v1506_v9  ;;  %v2210_v36 = vmul.f32 %v4461_v11, %v1666_v42  ;;  %v5300_v37 = vpop.f32.mrb[60].mxu0 }
 0x1d0   : > { %v2667_v57 = vadd.f32 %v5740_v16, %v2347_v41  ;;  %v2604_v5 = vadd.f32 %v5742_v60, %v2284_v53  ;;  %v2285_v50 = vadd.f32 %v4475_v18, %v2145_v7  ;;  %v2349_v40 = vadd.f32 %v4475_v18, %v2209_v8  ;;  %v5302_v41 = vpop.f32.mrb[60].mxu1  ;;  %v5306_v53 = vpop.f32.mrb[61].mxu0 }
 0x1d1   : > { %v2668_v33 = vadd.f32 %v5744_v13, %v2348_v47  ;;  %v2731_v25 = vmax.f32 %v2603_v35, 0.0  ;;  %v2286_v23 = vadd.f32 %v4471_v15, %v2146_v28  ;;  %v2350_v9 = vadd.f32 %v4471_v15, %v2210_v36  ;;  %v5308_v47 = vpop.f32.mrb[61].mxu1  ;;  %v5312_v16 = vpop.f32.mrb[62].mxu0  ;;  %v5753_v28 = vld [vmem:[#allocation22_spill] sm:$0xff] }
 0x1d2   : > { %v2795_v38 = vmax.f32 %v2667_v57, 0.0  ;;  %v2732_v55 = vmax.f32 %v2604_v5, 0.0  ;;  %v5745_v52 = vunpack.c.h.bf16 %v5741_v17  ;;  %v5746_v6 = vunpack.c.h.bf16 %v5743_v54  ;;  %v5314_v57 = vpop.f32.mrb[62].mxu1  ;;  %v5324_v13 = vpop.f32.mrb[63].mxu0 }
 0x1d3   : > { %v2796_v48 = vmax.f32 %v2668_v33, 0.0  ;;  %v3846_v3 = vpack.c.bf16 %v2731_v25, %v2730_v62  ;;  %v5748_v2 = vunpack.c.l.bf16 %v5747_v45  ;;  %v5750_v61 = vunpack.c.l.bf16 %v5749_v19  ;;  %v5326_v33 = vpop.f32.mrb[63].mxu1 }
 0x1d4   : > { %v3878_v42 = vpack.c.bf16 %v2795_v38, %v2794_v1  ;;  %v2605_v4 = vadd.f32 %v5745_v52, %v2285_v50  ;;  %v2669_v34 = vadd.f32 %v5746_v6, %v2349_v40  ;;  %v2147_v14 = vmul.f32 %v4463_v12, %v5200_v46  ;;  %v5755_v38 = vld [vmem:[#allocation23_spill] sm:$0xff] }
 0x1d5   : > { %v2606_v51 = vadd.f32 %v5748_v2, %v2286_v23  ;;  %v2670_v43 = vadd.f32 %v5750_v61, %v2350_v9  ;;  %v2211_v22 = vmul.f32 %v4463_v12, %v5202_v29  ;;  %3218 = vst [vmem:[%s4784_s18 + $0xc0] sm:$0xff] %v3846_v3  ;;  %v2148_v62 = vmul.f32 %v4461_v11, %v5212_v56 }
 0x1d6   : > { %3250 = vst [vmem:[%s4784_s18 + $0x1c0] sm:$0xff] %v3878_v42  ;;  %v2733_v49 = vmax.f32 %v2605_v4, 0.0  ;;  %v2797_v20 = vmax.f32 %v2669_v34, 0.0  ;;  %v2212_v1 = vmul.f32 %v4461_v11, %v5214_v26  ;;  %v2287_v46 = vadd.f32 %v4475_v18, %v2147_v14 }
 0x1d7   : > { %v2734_v21 = vmax.f32 %v2606_v51, 0.0  ;;  %v2798_v10 = vmax.f32 %v2670_v43, 0.0  ;;  %v2351_v29 = vadd.f32 %v4475_v18, %v2211_v22  ;;  %v2288_v26 = vadd.f32 %v4471_v15, %v2148_v62  ;;  %v5759_v51 = vld [vmem:[#allocation24_spill] sm:$0xff]  ;;  %v5761_v43 = vld [vmem:[#allocation25_spill] sm:$0xff] }
 0x1d8   : > { %v3847_v56 = vpack.c.bf16 %v2733_v49, %v2732_v55  ;;  %v3879_v30 = vpack.c.bf16 %v2797_v20, %v2796_v48  ;;  %v2352_v35 = vadd.f32 %v4471_v15, %v2212_v1  ;;  %v5751_v7 = vunpack.c.h.bf16 %v5747_v45  ;;  %v4000_v20 = vld [vmem:[%s4447_s13 + $0xe0] sm:$0xff]  ;;  %v2391_v1 = vld [vmem:[%s4447_s13 + $0xe8] sm:$0xff] }
 0x1d9   : > { %v5752_v17 = vunpack.c.h.bf16 %v5749_v19  ;;  %v2149_v5 = vmul.f32 %v4463_v12, %v5218_v59  ;;  %v2213_v54 = vmul.f32 %v4463_v12, %v5220_v58  ;;  %v5754_v36 = vunpack.c.l.bf16 %v5753_v28 }
 0x1da   : > { %v2607_v8 = vadd.f32 %v5751_v7, %v2287_v46  ;;  %3219 = vst [vmem:[%s4784_s18 + $0xc8] sm:$0xff] %v3847_v56  ;;  %3251 = vst [vmem:[%s4784_s18 + $0x1c8] sm:$0xff] %v3879_v30  ;;  %v5756_v50 = vunpack.c.l.bf16 %v5755_v38  ;;  %v2150_v55 = vmul.f32 %v4461_v11, %v5244_v39  ;;  %v2214_v59 = vmul.f32 %v4461_v11, %v5246_v63  ;;  %v2423_v30 = vld [vmem:[%s4447_s13 + $0x1e8] sm:$0xff] }
 0x1db   : > { %v2671_v60 = vadd.f32 %v5752_v17, %v2351_v29  ;;  %v2608_v25 = vadd.f32 %v5754_v36, %v2288_v26  ;;  %v2289_v23 = vadd.f32 %v4475_v18, %v2149_v5  ;;  %v2353_v9 = vadd.f32 %v4475_v18, %v2213_v54  ;;  %v4001_v29 = vld [vmem:[%s4447_s13 + $0x1e0] sm:$0xff] }
 0x1dc   : > { %v2672_v40 = vadd.f32 %v5756_v50, %v2352_v35  ;;  %v2735_v58 = vmax.f32 %v2607_v8, 0.0  ;;  %v2290_v52 = vadd.f32 %v4471_v15, %v2150_v55  ;;  %v2354_v4 = vadd.f32 %v4471_v15, %v2214_v59 }
 0x1dd   : > { %v2799_v48 = vmax.f32 %v2671_v60, 0.0  ;;  %v2736_v3 = vmax.f32 %v2608_v25, 0.0  ;;  %v5757_v63 = vunpack.c.h.bf16 %v5753_v28  ;;  %v5758_v45 = vunpack.c.h.bf16 %v5755_v38 }
 0x1de   : > { %v2800_v42 = vmax.f32 %v2672_v40, 0.0  ;;  %v3848_v39 = vpack.c.bf16 %v2735_v58, %v2734_v21  ;;  %v5760_v19 = vunpack.c.l.bf16 %v5759_v51  ;;  %v5762_v14 = vunpack.c.l.bf16 %v5761_v43  ;;  %v2392_v40 = vld [vmem:[%s4447_s13 + $0xf0] sm:$0xff] }
 0x1df   : > { %v3880_v6 = vpack.c.bf16 %v2799_v48, %v2798_v10  ;;  %v2609_v34 = vadd.f32 %v5757_v63, %v2289_v23  ;;  %v2673_v2 = vadd.f32 %v5758_v45, %v2353_v9  ;;  %v2151_v49 = vmul.f32 %v4463_v12, %v5250_v31 }
 0x1e0   : > { %v2610_v61 = vadd.f32 %v5760_v19, %v2290_v52  ;;  %v2674_v22 = vadd.f32 %v5762_v14, %v2354_v4  ;;  %v2483_v62 = vunpack.c.h.bf16 %v4000_v20  ;;  %3220 = vst [vmem:[%s4784_s18 + $0xd0] sm:$0xff] %v3848_v39  ;;  %v2215_v46 = vmul.f32 %v4463_v12, %v5252_v32 }
 0x1e1   : > { %3252 = vst [vmem:[%s4784_s18 + $0x1d0] sm:$0xff] %v3880_v6  ;;  %v2737_v21 = vmax.f32 %v2609_v34, 0.0  ;;  %v2801_v10 = vmax.f32 %v2673_v2, 0.0  ;;  %v2547_v56 = vunpack.c.h.bf16 %v4001_v29  ;;  %v2291_v7 = vadd.f32 %v4475_v18, %v2151_v49 }
 0x1e2   : > { %v2738_v26 = vmax.f32 %v2610_v61, 0.0  ;;  %v2802_v35 = vmax.f32 %v2674_v22, 0.0  ;;  %v2152_v31 = vmul.f32 %v4461_v11, %v5262_v27  ;;  %v2355_v60 = vadd.f32 %v4475_v18, %v2215_v46  ;;  %v2393_v22 = vld [vmem:[%s4447_s13 + $0xf8] sm:$0xff] }
 0x1e3   : > { %v3849_v8 = vpack.c.bf16 %v2737_v21, %v2736_v3  ;;  %v3881_v17 = vpack.c.bf16 %v2801_v10, %v2800_v42  ;;  %v2484_v5 = vunpack.c.l.bf16 %v2391_v1  ;;  %v2611_v54 = vadd.f32 %v2483_v62, %v2291_v7  ;;  %v2424_v3 = vld [vmem:[%s4447_s13 + $0x1f0] sm:$0xff] }
 0x1e4   : > { %v2292_v32 = vadd.f32 %v4471_v15, %v2152_v31  ;;  %v2216_v28 = vmul.f32 %v4461_v11, %v5264_v0  ;;  %v2548_v36 = vunpack.c.l.bf16 %v2423_v30  ;;  %v2675_v25 = vadd.f32 %v2547_v56, %v2355_v60 }
 0x1e5   : > { %3221 = vst [vmem:[%s4784_s18 + $0xd8] sm:$0xff] %v3849_v8  ;;  %3253 = vst [vmem:[%s4784_s18 + $0x1d8] sm:$0xff] %v3881_v17  ;;  %v2153_v38 = vmul.f32 %v4463_v12, %v5274_v24  ;;  %v2485_v27 = vunpack.c.h.bf16 %v2391_v1  ;;  %v2217_v50 = vmul.f32 %v4463_v12, %v5276_v44  ;;  %v2739_v55 = vmax.f32 %v2611_v54, 0.0  ;;  %v2425_v1 = vld [vmem:[%s4447_s13 + $0x1f8] sm:$0xff] }
 0x1e6   : > { %v2612_v59 = vadd.f32 %v2484_v5, %v2292_v32  ;;  %v2356_v58 = vadd.f32 %v4471_v15, %v2216_v28  ;;  %v2549_v48 = vunpack.c.h.bf16 %v2423_v30  ;;  %v2803_v0 = vmax.f32 %v2675_v25, 0.0 }
 0x1e7   : > { %v2293_v23 = vadd.f32 %v4475_v18, %v2153_v38  ;;  %v2357_v9 = vadd.f32 %v4475_v18, %v2217_v50  ;;  %v2154_v24 = vmul.f32 %v4461_v11, %v5300_v37  ;;  %v3850_v42 = vpack.c.bf16 %v2739_v55, %v2738_v26 }
 0x1e8   : > { %v2740_v52 = vmax.f32 %v2612_v59, 0.0  ;;  %v2676_v44 = vadd.f32 %v2548_v36, %v2356_v58  ;;  %v2486_v4 = vunpack.c.l.bf16 %v2392_v40  ;;  %v3882_v39 = vpack.c.bf16 %v2803_v0, %v2802_v35  ;;  %v3430_v0 = vld [vmem:[%s4784_s18 + $0x18] sm:$0xff] (%p4112_p6) }
 0x1e9   : > { %v2613_v6 = vadd.f32 %v2485_v27, %v2293_v23  ;;  %v2677_v63 = vadd.f32 %v2549_v48, %v2357_v9  ;;  %v2294_v34 = vadd.f32 %v4471_v15, %v2154_v24  ;;  %3222 = vst [vmem:[%s4784_s18 + $0xe0] sm:$0xff] %v3850_v42  ;;  %v2218_v2 = vmul.f32 %v4461_v11, %v5302_v41  ;;  %v3428_v48 = vld [vmem:[%s4784_s18 + $0x10] sm:$0xff] (%p4112_p6)  ;;  %v3432_v23 = vld [vmem:[%s4784_s18 + $0x20] sm:$0xff] (%p4112_p6)  ;;  %v3434_v9 = vld [vmem:[%s4784_s18 + $0x28] sm:$0xff] (%p4112_p6) }
 0x1ea   : > { %v2804_v45 = vmax.f32 %v2676_v44, 0.0  ;;  %v2550_v51 = vunpack.c.l.bf16 %v2424_v3  ;;  %v2155_v37 = vmul.f32 %v4463_v12, %v5306_v53  ;;  %3254 = vst [vmem:[%s4784_s18 + $0x1e0] sm:$0xff] %v3882_v39  ;;  %v2487_v14 = vunpack.c.h.bf16 %v2392_v40  ;;  %3429 = vst [vmem:[%s5421_s16 + $0x20] sm:$0xff] (%p4112_p6), %v3428_v48  ;;  %v3436_v24 = vld [vmem:[%s4784_s18 + $0x30] sm:$0xff] (%p4112_p6)  ;;  %v3440_v42 = vld [vmem:[%s4784_s18 + $0x40] sm:$0xff] (%p4112_p6) }
 0x1eb   : > { %v2741_v19 = vmax.f32 %v2613_v6, 0.0  ;;  %v2805_v61 = vmax.f32 %v2677_v63, 0.0  ;;  %v2614_v43 = vadd.f32 %v2486_v4, %v2294_v34  ;;  %v2358_v49 = vadd.f32 %v4471_v15, %v2218_v2  ;;  %3431 = vst [vmem:[%s5421_s16 + $0x30] sm:$0xff] (%p4112_p6), %v3430_v0  ;;  %3433 = vst [vmem:[%s5421_s16 + $0x40] sm:$0xff] (%p4112_p6), %v3432_v23  ;;  %v3444_v44 = vld [vmem:[%s4784_s18 + $0x50] sm:$0xff] (%p4112_p6)  ;;  %v3446_v4 = vld [vmem:[%s4784_s18 + $0x58] sm:$0xff] (%p4112_p6) }
 0x1ec   : > { %v2295_v20 = vadd.f32 %v4475_v18, %v2155_v37  ;;  %v2219_v62 = vmul.f32 %v4463_v12, %v5308_v47  ;;  %v2551_v41 = vunpack.c.h.bf16 %v2424_v3  ;;  %v2156_v46 = vmul.f32 %v4461_v11, %v5312_v16  ;;  %3435 = vst [vmem:[%s5421_s16 + $0x50] sm:$0xff] (%p4112_p6), %v3434_v9  ;;  %v3438_v3 = vld [vmem:[%s4784_s18 + $0x38] sm:$0xff] (%p4112_p6)  ;;  %3437 = vst [vmem:[%s5421_s16 + $0x60] sm:$0xff] (%p4112_p6), %v3436_v24  ;;  %v3448_v39 = vld [vmem:[%s4784_s18 + $0x60] sm:$0xff] (%p4112_p6) }
 0x1ed   : > { %v3851_v21 = vpack.c.bf16 %v2741_v19, %v2740_v52  ;;  %v3883_v10 = vpack.c.bf16 %v2805_v61, %v2804_v45  ;;  %v2742_v53 = vmax.f32 %v2614_v43, 0.0  ;;  %v2678_v29 = vadd.f32 %v2550_v51, %v2358_v49  ;;  %3439 = vst [vmem:[%s5421_s16 + $0x70] sm:$0xff] (%p4112_p6), %v3438_v3  ;;  %3441 = vst [vmem:[%s5421_s16 + $0x80] sm:$0xff] (%p4112_p6), %v3440_v42  ;;  %v3442_v52 = vld [vmem:[%s4784_s18 + $0x48] sm:$0xff] (%p4112_p6)  ;;  %v3452_v63 = vld [vmem:[%s4784_s18 + $0x70] sm:$0xff] (%p4112_p6) }
 0x1ee   : > { %v2615_v56 = vadd.f32 %v2487_v14, %v2295_v20  ;;  %v2359_v30 = vadd.f32 %v4475_v18, %v2219_v62  ;;  %v2488_v26 = vunpack.c.l.bf16 %v2393_v22  ;;  %v2296_v35 = vadd.f32 %v4471_v15, %v2156_v46  ;;  %3443 = vst [vmem:[%s5421_s16 + $0x90] sm:$0xff] (%p4112_p6), %v3442_v52  ;;  %3445 = vst [vmem:[%s5421_s16 + $0xa0] sm:$0xff] (%p4112_p6), %v3444_v44  ;;  %v3450_v6 = vld [vmem:[%s4784_s18 + $0x68] sm:$0xff] (%p4112_p6)  ;;  %v3454_v34 = vld [vmem:[%s4784_s18 + $0x78] sm:$0xff] (%p4112_p6) }
 0x1ef   : > { %3223 = vst [vmem:[%s4784_s18 + $0xe8] sm:$0xff] %v3851_v21  ;;  %3255 = vst [vmem:[%s4784_s18 + $0x1e8] sm:$0xff] %v3883_v10  ;;  %v2220_v47 = vmul.f32 %v4461_v11, %v5314_v57  ;;  %v2552_v7 = vunpack.c.l.bf16 %v2425_v1  ;;  %v2157_v31 = vmul.f32 %v4463_v12, %v5324_v13  ;;  %v2806_v8 = vmax.f32 %v2678_v29, 0.0  ;;  %v3456_v45 = vld [vmem:[%s4784_s18 + $0x80] sm:$0xff] (%p4112_p6)  ;;  %v3458_v2 = vld [vmem:[%s4784_s18 + $0x88] sm:$0xff] (%p4112_p6) }
 0x1f0   : > { %v2743_v17 = vmax.f32 %v2615_v56, 0.0  ;;  %v2679_v16 = vadd.f32 %v2551_v41, %v2359_v30  ;;  %v2489_v60 = vunpack.c.h.bf16 %v2393_v22  ;;  %v2616_v5 = vadd.f32 %v2488_v26, %v2296_v35  ;;  %3447 = vst [vmem:[%s5421_s16 + $0xb0] sm:$0xff] (%p4112_p6), %v3446_v4  ;;  %3449 = vst [vmem:[%s5421_s16 + $0xc0] sm:$0xff] (%p4112_p6), %v3448_v39  ;;  %v3460_v51 = vld [vmem:[%s4784_s18 + $0x90] sm:$0xff] (%p4112_p6)  ;;  %v3462_v37 = vld [vmem:[%s4784_s18 + $0x98] sm:$0xff] (%p4112_p6) }
 0x1f1   : > { %v2360_v54 = vadd.f32 %v4471_v15, %v2220_v47  ;;  %v2297_v32 = vadd.f32 %v4475_v18, %v2157_v31  ;;  %v2221_v28 = vmul.f32 %v4463_v12, %v5326_v33  ;;  %v2553_v36 = vunpack.c.h.bf16 %v2425_v1  ;;  %v3426_v33 = vld [vmem:[%s4784_s18 + $0x8] sm:$0xff] (%p4112_p6)  ;;  %3451 = vst [vmem:[%s5421_s16 + $0xd0] sm:$0xff] (%p4112_p6), %v3450_v6  ;;  %3453 = vst [vmem:[%s5421_s16 + $0xe0] sm:$0xff] (%p4112_p6), %v3452_v63  ;;  %v3464_v19 = vld [vmem:[%s4784_s18 + $0xa0] sm:$0xff] (%p4112_p6) }
 0x1f2   : > { %v3852_v11 = vpack.c.bf16 %v2743_v17, %v2742_v53  ;;  %v2807_v57 = vmax.f32 %v2679_v16, 0.0  ;;  %v2744_v13 = vmax.f32 %v2616_v5, 0.0  ;;  %3427 = vst [vmem:[%s5421_s16 + $0x10] sm:$0xff] (%p4112_p6), %v3426_v33  ;;  %3455 = vst [vmem:[%s5421_s16 + $0xf0] sm:$0xff] (%p4112_p6), %v3454_v34  ;;  %v3466_v61 = vld [vmem:[%s4784_s18 + $0xa8] sm:$0xff] (%p4112_p6)  ;;  %v3468_v43 = vld [vmem:[%s4784_s18 + $0xb0] sm:$0xff] (%p4112_p6) }
 0x1f3   : > { %v2680_v25 = vadd.f32 %v2552_v7, %v2360_v54  ;;  %v2617_v38 = vadd.f32 %v2489_v60, %v2297_v32  ;;  %v2361_v27 = vadd.f32 %v4475_v18, %v2221_v28  ;;  %v3424_v18 = vld [vmem:[%s4784_s18] sm:$0xff] (%p4112_p6)  ;;  %3457 = vst [vmem:[%s5421_s16 + $0x100] sm:$0xff] (%p4112_p6), %v3456_v45  ;;  %3459 = vst [vmem:[%s5421_s16 + $0x110] sm:$0xff] (%p4112_p6), %v3458_v2  ;;  %v3470_v14 = vld [vmem:[%s4784_s18 + $0xb8] sm:$0xff] (%p4112_p6) }
 0x1f4   : > { %3224 = vst [vmem:[%s4784_s18 + $0xf0] sm:$0xff] %v3852_v11  ;;  %v3884_v50 = vpack.c.bf16 %v2807_v57, %v2806_v8  ;;  %3425 = vst [vmem:[%s5421_s16] sm:$0xff] (%p4112_p6), %v3424_v18  ;;  %v3472_v22 = vld [vmem:[%s4784_s18 + $0xc0] sm:$0xff] (%p4112_p6)  ;;  %v3474_v49 = vld [vmem:[%s4784_s18 + $0xc8] sm:$0xff] (%p4112_p6) }
 0x1f5   : > { %v2808_v40 = vmax.f32 %v2680_v25, 0.0  ;;  %v2745_v55 = vmax.f32 %v2617_v38, 0.0  ;;  %v2681_v15 = vadd.f32 %v2553_v36, %v2361_v27  ;;  %3264 = sbr.rel (!%p4112_p6) target bundleno = 526 (0x20e), region = 128  ;;  %3461 = vst [vmem:[%s5421_s16 + $0x120] sm:$0xff] (%p4112_p6), %v3460_v51  ;;  %3463 = vst [vmem:[%s5421_s16 + $0x130] sm:$0xff] (%p4112_p6), %v3462_v37  ;;  %v3476_v20 = vld [vmem:[%s4784_s18 + $0xd0] sm:$0xff] (%p4112_p6) }
 0x1f6   : > { %3256 = vst [vmem:[%s4784_s18 + $0x1f0] sm:$0xff] %v3884_v50  ;;  %3465 = vst [vmem:[%s5421_s16 + $0x140] sm:$0xff] (%p4112_p6), %v3464_v19  ;;  %v3478_v62 = vld [vmem:[%s4784_s18 + $0xd8] sm:$0xff] (%p4112_p6)  ;;  %v3480_v41 = vld [vmem:[%s4784_s18 + $0xe0] sm:$0xff] (%p4112_p6) }
 0x1f7   : > { %v3853_v59 = vpack.c.bf16 %v2745_v55, %v2744_v13  ;;  %v2809_v58 = vmax.f32 %v2681_v15, 0.0  ;;  %3467 = vst [vmem:[%s5421_s16 + $0x150] sm:$0xff] (%p4112_p6), %v3466_v61  ;;  %3469 = vst [vmem:[%s5421_s16 + $0x160] sm:$0xff] (%p4112_p6), %v3468_v43  ;;  %v3482_v1 = vld [vmem:[%s4784_s18 + $0xe8] sm:$0xff] (%p4112_p6)  ;;  %v3488_v53 = vld [vmem:[%s4784_s18 + $0x100] sm:$0xff] (%p4112_p6) }
 0x1f8   : > { %3471 = vst [vmem:[%s5421_s16 + $0x170] sm:$0xff] (%p4112_p6), %v3470_v14  ;;  %3473 = vst [vmem:[%s5421_s16 + $0x180] sm:$0xff] (%p4112_p6), %v3472_v22  ;;  %v3490_v46 = vld [vmem:[%s4784_s18 + $0x108] sm:$0xff] (%p4112_p6)  ;;  %v3492_v29 = vld [vmem:[%s4784_s18 + $0x110] sm:$0xff] (%p4112_p6) }
 0x1f9   : > { %3225 = vst [vmem:[%s4784_s18 + $0xf8] sm:$0xff] %v3853_v59  ;;  %v3885_v12 = vpack.c.bf16 %v2809_v58, %v2808_v40  ;;  %3475 = vst [vmem:[%s5421_s16 + $0x190] sm:$0xff] (%p4112_p6), %v3474_v49  ;;  %v3494_v56 = vld [vmem:[%s4784_s18 + $0x118] sm:$0xff] (%p4112_p6)  ;;  %v3496_v30 = vld [vmem:[%s4784_s18 + $0x120] sm:$0xff] (%p4112_p6) }
 0x1fa   : > { %3477 = vst [vmem:[%s5421_s16 + $0x1a0] sm:$0xff] (%p4112_p6), %v3476_v20  ;;  %3479 = vst [vmem:[%s5421_s16 + $0x1b0] sm:$0xff] (%p4112_p6), %v3478_v62  ;;  %v3498_v26 = vld [vmem:[%s4784_s18 + $0x128] sm:$0xff] (%p4112_p6)  ;;  %v3500_v35 = vld [vmem:[%s4784_s18 + $0x130] sm:$0xff] (%p4112_p6) }
 0x1fb   : > { %3257 = vst [vmem:[%s4784_s18 + $0x1f8] sm:$0xff] %v3885_v12  ;;  %3481 = vst [vmem:[%s5421_s16 + $0x1c0] sm:$0xff] (%p4112_p6), %v3480_v41  ;;  %v3484_v21 = vld [vmem:[%s4784_s18 + $0xf0] sm:$0xff] (%p4112_p6)  ;;  %v3502_v47 = vld [vmem:[%s4784_s18 + $0x138] sm:$0xff] (%p4112_p6) }
 0x1fc   : > { %3483 = vst [vmem:[%s5421_s16 + $0x1d0] sm:$0xff] %v3482_v1  ;;  %3485 = vst [vmem:[%s5421_s16 + $0x1e0] sm:$0xff] %v3484_v21  ;;  %v3504_v7 = vld [vmem:[%s4784_s18 + $0x140] sm:$0xff]  ;;  %v3506_v31 = vld [vmem:[%s4784_s18 + $0x148] sm:$0xff] }
 0x1fd   : > { %3489 = vst [vmem:[%s5421_s16 + $0x200] sm:$0xff] %v3488_v53  ;;  %3491 = vst [vmem:[%s5421_s16 + $0x210] sm:$0xff] %v3490_v46  ;;  %v3508_v8 = vld [vmem:[%s4784_s18 + $0x150] sm:$0xff]  ;;  %v3510_v17 = vld [vmem:[%s4784_s18 + $0x158] sm:$0xff] }
 0x1fe   : > { %3493 = vst [vmem:[%s5421_s16 + $0x220] sm:$0xff] %v3492_v29  ;;  %3495 = vst [vmem:[%s5421_s16 + $0x230] sm:$0xff] %v3494_v56  ;;  %v3512_v16 = vld [vmem:[%s4784_s18 + $0x160] sm:$0xff]  ;;  %v3514_v60 = vld [vmem:[%s4784_s18 + $0x168] sm:$0xff] }
 0x1ff   : > { %3497 = vst [vmem:[%s5421_s16 + $0x240] sm:$0xff] %v3496_v30  ;;  %3499 = vst [vmem:[%s5421_s16 + $0x250] sm:$0xff] %v3498_v26  ;;  %v3516_v5 = vld [vmem:[%s4784_s18 + $0x170] sm:$0xff]  ;;  %v3518_v54 = vld [vmem:[%s4784_s18 + $0x178] sm:$0xff] }
 0x200   : > { %v3486_v10 = vld [vmem:[%s4784_s18 + $0xf8] sm:$0xff]  ;;  %3501 = vst [vmem:[%s5421_s16 + $0x260] sm:$0xff] %v3500_v35  ;;  %3503 = vst [vmem:[%s5421_s16 + $0x270] sm:$0xff] %v3502_v47  ;;  %v3520_v32 = vld [vmem:[%s4784_s18 + $0x180] sm:$0xff] }
 0x201   : > { %3487 = vst [vmem:[%s5421_s16 + $0x1f0] sm:$0xff] %v3486_v10  ;;  %3505 = vst [vmem:[%s5421_s16 + $0x280] sm:$0xff] %v3504_v7  ;;  %v3522_v28 = vld [vmem:[%s4784_s18 + $0x188] sm:$0xff]  ;;  %v3524_v11 = vld [vmem:[%s4784_s18 + $0x190] sm:$0xff] }
 0x202   : > { %3507 = vst [vmem:[%s5421_s16 + $0x290] sm:$0xff] %v3506_v31  ;;  %3509 = vst [vmem:[%s5421_s16 + $0x2a0] sm:$0xff] %v3508_v8  ;;  %v3526_v57 = vld [vmem:[%s4784_s18 + $0x198] sm:$0xff]  ;;  %v3528_v36 = vld [vmem:[%s4784_s18 + $0x1a0] sm:$0xff] }
 0x203   : > { %3511 = vst [vmem:[%s5421_s16 + $0x2b0] sm:$0xff] %v3510_v17  ;;  %3513 = vst [vmem:[%s5421_s16 + $0x2c0] sm:$0xff] %v3512_v16  ;;  %v3530_v13 = vld [vmem:[%s4784_s18 + $0x1a8] sm:$0xff]  ;;  %v3532_v25 = vld [vmem:[%s4784_s18 + $0x1b0] sm:$0xff] }
 0x204   : > { %3515 = vst [vmem:[%s5421_s16 + $0x2d0] sm:$0xff] %v3514_v60  ;;  %3517 = vst [vmem:[%s5421_s16 + $0x2e0] sm:$0xff] %v3516_v5  ;;  %v3534_v38 = vld [vmem:[%s4784_s18 + $0x1b8] sm:$0xff]  ;;  %v3536_v27 = vld [vmem:[%s4784_s18 + $0x1c0] sm:$0xff] }
 0x205   : > { %3519 = vst [vmem:[%s5421_s16 + $0x2f0] sm:$0xff] %v3518_v54  ;;  %3521 = vst [vmem:[%s5421_s16 + $0x300] sm:$0xff] %v3520_v32  ;;  %v3538_v50 = vld [vmem:[%s4784_s18 + $0x1c8] sm:$0xff]  ;;  %v3540_v40 = vld [vmem:[%s4784_s18 + $0x1d0] sm:$0xff] }
 0x206   : > { %3523 = vst [vmem:[%s5421_s16 + $0x310] sm:$0xff] %v3522_v28  ;;  %3525 = vst [vmem:[%s5421_s16 + $0x320] sm:$0xff] %v3524_v11  ;;  %v3542_v55 = vld [vmem:[%s4784_s18 + $0x1d8] sm:$0xff]  ;;  %v3544_v15 = vld [vmem:[%s4784_s18 + $0x1e0] sm:$0xff] }
 0x207   : > { %3527 = vst [vmem:[%s5421_s16 + $0x330] sm:$0xff] %v3526_v57  ;;  %3529 = vst [vmem:[%s5421_s16 + $0x340] sm:$0xff] %v3528_v36  ;;  %v3546_v59 = vld [vmem:[%s4784_s18 + $0x1e8] sm:$0xff]  ;;  %v3548_v58 = vld [vmem:[%s4784_s18 + $0x1f0] sm:$0xff] }
 0x208   : > { %3531 = vst [vmem:[%s5421_s16 + $0x350] sm:$0xff] %v3530_v13  ;;  %3533 = vst [vmem:[%s5421_s16 + $0x360] sm:$0xff] %v3532_v25  ;;  %v3550_v12 = vld [vmem:[%s4784_s18 + $0x1f8] sm:$0xff] }
 0x209   : > { %3535 = vst [vmem:[%s5421_s16 + $0x370] sm:$0xff] %v3534_v38  ;;  %3537 = vst [vmem:[%s5421_s16 + $0x380] sm:$0xff] %v3536_v27 }
 0x20a   : > { %3539 = vst [vmem:[%s5421_s16 + $0x390] sm:$0xff] %v3538_v50  ;;  %3541 = vst [vmem:[%s5421_s16 + $0x3a0] sm:$0xff] %v3540_v40 }
 0x20b   : > { %3543 = vst [vmem:[%s5421_s16 + $0x3b0] sm:$0xff] %v3542_v55  ;;  %3545 = vst [vmem:[%s5421_s16 + $0x3c0] sm:$0xff] %v3544_v15 }
 0x20c   : > { %3547 = vst [vmem:[%s5421_s16 + $0x3d0] sm:$0xff] %v3546_v59  ;;  %3549 = vst [vmem:[%s5421_s16 + $0x3e0] sm:$0xff] %v3548_v58 }
 0x20d   : > { %3551 = vst [vmem:[%s5421_s16 + $0x3f0] sm:$0xff] %v3550_v12 }
 0x20e PF: > { %s15_s22 = sadd.s32 1, %s4040_s22   ;;  %s5763_s18 = smov %s4028_s19 }
 0x20f   : > { %p12_p12 = scmp.ge.s32.totalorder %s15_s22, 4   ;;  %s5764_s19 = smov %s4117_s29 }
 0x210   : > { %s5765_s20 = smov %s4036_s21  ;;  %s5766_s21 = smov %s5768_s23 }
 0x211   :  { %14 = sbr.rel (!%p12_p12) target bundleno = 3 (0x3), region = 214 }

// kernel: resnet_forward.11
= control target key start
LH: loop header
LB: loop body
LE: loop exit
PB: predicated region body
PF: predicated region fallthrough
CT: control target
= control target key end

     0   :  { %s7972_s15 = smov 0   ;;  %s7974_s16 = smov 0   ;;  %s10214_s0 = inlined_call_operand.vmem [shape: bf16[2,1,18,18,128], index: 0, kind: input, shape index: {}]   ;;  %s10215_s1 = inlined_call_operand.vmem [shape: bf16[3,3,128,128], index: 1, kind: input, shape index: {}]   ;;  %s10216_s2 = inlined_call_operand.vmem [shape: f32[1,128], index: 2, kind: input, shape index: {}]   ;;  %s10217_s3 = inlined_call_operand.vmem [shape: f32[1,128], index: 3, kind: input, shape index: {}]   ;;  %s10218_s4 = inlined_call_operand.vmem [shape: bf16[2,16,16,128], index: 4, kind: output, shape index: {}]  }
   0x1   :  { %s7976_s17 = smov 0  }
   0x2 LB: > { %s40_s18 = sadd.s32 1, %s7941_s16  ;;  %p6094_p0 = scmp.ge.s32.totalorder %s7945_s17, 1  ;;  %s7945_s17 = sphi %s7976_s17, %s14_s17   ;;  %s7941_s16 = sphi %s7974_s16, %s10390_s16   ;;  %s7937_s15 = sphi %s7972_s15, %s10389_s15  }
   0x3   : > { %p42_p1 = scmp.ge.s32.totalorder %s40_s18, 2  ;;  %p235_p2 = scmp.lt.s32.totalorder %s7945_s17, 3 }
   0x5   : > { %s10392_s18 = smov (%p42_p1, %s40_s18), 0  ;;  %p236_p3 = pnand %p6094_p0, %p235_p2 }
   0x7   : > { %239 = sbr.rel (%p236_p3) target bundleno = 575 (0x23f), region = 36 }
   0xe   : > { %v7695_v0 = vld [vmem:[%s10215_s1] sm:$0xff]   ;;  %v7697_v2 = vld [vmem:[%s10215_s1 + $0x8] sm:$0xff]   ;;  %p290_p4 = scmp.lt.s32.totalorder %s7937_s15, 1  ;;  %v7699_v4 = vld [vmem:[%s10215_s1 + $0x10] sm:$0xff]   ;;  %vm833_vm0 = vsmask.f32 3328 }
   0xf   : > { %v7696_v1 = vld [vmem:[%s10215_s1 + $0x100] sm:$0xff]   ;;  %6966 = vmatprep.subr.bf16.mxu1 %v7695_v0  ;;  %v7698_v3 = vld [vmem:[%s10215_s1 + $0x108] sm:$0xff]   ;;  %v7700_v5 = vld [vmem:[%s10215_s1 + $0x110] sm:$0xff]   ;;  %vm834_vm1 = vsmask.f32 7440  ;;  %vm1622_vm3 = vcmask 1042432  }
  0x10   : > { %7158 = vmatprep.subr.bf16.mxu0 %v7696_v1  ;;  %6967 = vmatpush3.bf16.msra.mxu1 %v7695_v0  ;;  %s10394_s15 = smov (!%p290_p4, %s7937_s15), 1  ;;  %v7701_v6 = vld [vmem:[%s10215_s1 + $0x18] sm:$0xff]   ;;  %v7703_v8 = vld [vmem:[%s10215_s1 + $0x20] sm:$0xff]   ;;  %v7705_v10 = vld [vmem:[%s10215_s1 + $0x28] sm:$0xff]   ;;  %vm1623_vm4 = vcmask 1046532  }
  0x11   : > { %7159 = vmatpush3.bf16.msra.mxu0 %v7696_v1  ;;  %6968 = vmatprep.subr.bf16.mxu1 %v7697_v2  ;;  %v7702_v7 = vld [vmem:[%s10215_s1 + $0x118] sm:$0xff]   ;;  %s7670_s9 = smul.u32 216, %s10394_s15  ;;  %v7704_v9 = vld [vmem:[%s10215_s1 + $0x120] sm:$0xff]   ;;  %v7706_v13 = vld [vmem:[%s10215_s1 + $0x128] sm:$0xff]   ;;  %s6622_s12 = sshll.u32 %s10394_s15, 7 }
  0x12   : > { %7160 = vmatprep.subr.bf16.mxu0 %v7698_v3  ;;  %v7707_v19 = vld [vmem:[%s10215_s1 + $0x30] sm:$0xff]   ;;  %v7709_v38 = vld [vmem:[%s10215_s1 + $0x38] sm:$0xff]   ;;  %vm8100_vm2 = vmor %vm833_vm0, %vm834_vm1  ;;  %s10126_s19 = scalar_lea.vmem %s10218_s4, %s6622_s12 }
  0x13   : > { %s8026_s20 = scalar_lea.vmem %s10214_s0, %s7670_s9  ;;  %v7708_v22 = vld [vmem:[%s10215_s1 + $0x130] sm:$0xff]   ;;  %v7710_v44 = vld [vmem:[%s10215_s1 + $0x138] sm:$0xff]   ;;  %vm8213_vm5 = vmor %vm1622_vm3, %vm1623_vm4 }
  0x14   : > { %6969 = vmatpush3.bf16.msra.mxu1 %v7697_v2  ;;  %v8032_v11 = vld [vmem:[%s8026_s20] sm:$0xf]  ;;  %v8035_v12 = vld [vmem:[%s8026_s20 + $0x4] sm:$0xf]  ;;  %v8046_v18 = vld [vmem:[%s8026_s20 + $0xc] sm:$0xf] }
  0x15   : > { %7161 = vmatpush3.bf16.msra.mxu0 %v7698_v3  ;;  %6970 = vmatprep.subr.bf16.mxu1 %v7699_v4  ;;  %10243 = vst [vmem:[#allocation3_spill] sm:$0xff] %v8035_v12  ;;  %v6098_v14 = vcombine.low %v8032_v11, %v8035_v12  ;;  %v837_v15 = vshrl.u32 %v8032_v11, 16  ;;  %v840_v16 = vshll.u32 %v8032_v11, 16  ;;  %v846_v17 = vshll.u32 %v8035_v12, 16  ;;  %v8062_v26 = vld [vmem:[%s8026_s20 + $0x10] sm:$0xf] }
  0x16   : > { %7162 = vmatprep.subr.bf16.mxu0 %v7700_v5  ;;  %v850_v20 = vshrl.u32 %v8035_v12, 16  ;;  %v6162_v21 = vrot.slane %v8032_v11, 9  ;;  %v10219_v25 = vrot.slane %v8035_v12, 5  ;;  %v2591_v27 = vshrl.u32 %v8046_v18, 16  ;;  %v8068_v29 = vld [vmem:[%s8026_s20 + $0x14] sm:$0x1] }
  0x17   : > { %6982 = vmatprep.mubr.bf16.mxu1 %v6098_v14  ;;  %v8056_v23 = vrot.slane %v837_v15, 4  ;;  %v8058_v24 = vrot.slane %v840_v16, 5  ;;  %v8065_v28 = vrot.slane %v846_v17, 5  ;;  %v2594_v30 = vshll.u32 %v8046_v18, 16  ;;  %v8078_v37 = vld [vmem:[%s8026_s20 + $0xc] sm:$0xf] }
  0x18   : > { %6971 = vmatpush3.bf16.msra.mxu1 %v7699_v4  ;;  %v2600_v31 = vshll.u32 %v8062_v26, 16  ;;  %v2604_v32 = vshrl.u32 %v8062_v26, 16  ;;  %v8073_v33 = vrot.slane %v850_v20, 4  ;;  %v2593_v34 = vrot.slane %v2591_v27, 4  ;;  %v8084_v42 = vld [vmem:[%s8026_s20 + $0x10] sm:$0xf] }
  0x19   : > { %7163 = vmatpush3.bf16.msra.mxu0 %v7700_v5  ;;  %6972 = vmatprep.subr.bf16.mxu1 %v7701_v6  ;;  %v2610_v35 = vshll.u32 %v8068_v29, 16  ;;  %v2596_v39 = vrot.slane %v2594_v30, 5  ;;  %v861_v43 = vshrl.u32 %v8078_v37, 16  ;;  %v6099_v46 = vcombine.low %v8078_v37, %v8084_v42  ;;  %v8096_v53 = vld [vmem:[%s8026_s20 + $0x18] sm:$0xf]  ;;  %v8134_v16 = vld [vmem:[%s10215_s1 + $0x140] sm:$0xff]  }
  0x1a   : > { %7164 = vmatprep.subr.bf16.mxu0 %v7702_v7  ;;  %v2602_v40 = vrot.slane %v2600_v31, 5  ;;  %v2606_v41 = vrot.slane %v2604_v32, 4  ;;  %v864_v47 = vshll.u32 %v8078_v37, 16  ;;  %v870_v48 = vshll.u32 %v8084_v42, 16  ;;  %v8109_v59 = vld [vmem:[%s8026_s20 + $0x1c] sm:$0xf] }
  0x1b   : > { %v2612_v45 = vrot.slane %v2610_v35, 5  ;;  %v2597_v49 = vor.u32 %v2596_v39, %v2593_v34  ;;  %v863_v51 = vrot.slane %v861_v43, 4  ;;  %v874_v52 = vshrl.u32 %v8084_v42, 16  ;;  %v8112_v63 = vld [vmem:[%s8026_s20 + $0x20] sm:$0x1] }
  0x1c   : > { %6973 = vmatpush3.bf16.msra.mxu1 %v7701_v6  ;;  %v2607_v50 = vor.u32 %v2606_v41, %v2602_v40  ;;  %v866_v55 = vrot.slane %v864_v47, 5  ;;  %v8104_v56 = vrot.slane %v870_v48, 5  ;;  %v1634_v58 = vrot.slane %v8084_v42, 5  ;;  %v8142_v27 = vld [vmem:[%s8026_s20 + $0x18] sm:$0xf] }
  0x1d   : > { %7165 = vmatpush3.bf16.msra.mxu0 %v7702_v7  ;;  %6974 = vmatprep.subr.bf16.mxu1 %v7703_v8  ;;  %v2598_v60 = vrot.slane %v2597_v49, 4  ;;  %v876_v62 = vrot.slane %v874_v52, 4  ;;  %v2615_v0 = vshrl.u32 %v8096_v53, 16  ;;  %v2618_v3 = vshll.u32 %v8096_v53, 16  ;;  %v8145_v31 = vld [vmem:[%s8026_s20 + $0x1c] sm:$0xf] }
  0x1e   : > { %7166 = vmatprep.subr.bf16.mxu0 %v7704_v9  ;;  %v2608_v61 = vrot.slane %v2607_v50, 4  ;;  %v867_v1 = vor.u32 %v866_v55, %v863_v51  ;;  %v8117_v2 = vrot.slane %v1634_v58, 4  ;;  %v2624_v4 = vshll.u32 %v8109_v59, 16  ;;  %v8150_v35 = vld [vmem:[%s8026_s20 + $0x24] sm:$0xf] }
  0x1f   : > { %v2603_v5 = vsel %vm8100_vm2, %v2598_v60, %v2602_v40  ;;  %v877_v7 = vor.u32 %v876_v62, %v8104_v56  ;;  %v2620_v14 = vrot.slane %v2618_v3, 5  ;;  %v2634_v20 = vshll.u32 %v8112_v63, 16  ;;  %v8156_v43 = vld [vmem:[%s8026_s20 + $0x28] sm:$0xf]  ;;  %v8174_v60 = vld [vmem:[%s8026_s20 + $0x24] sm:$0xf] }
  0x20   : > { %6975 = vmatpush3.bf16.msra.mxu1 %v7703_v8  ;;  %10246 = vst [vmem:[#allocation4_spill] sm:$0xff] %v8117_v2  ;;  %v2613_v6 = vsel %vm8100_vm2, %v2608_v61, %v2612_v45  ;;  %v7713_v8 = vld [vmem:[%s10215_s1 + $0x40] sm:$0xff]   ;;  %v2626_v15 = vrot.slane %v2624_v4, 5  ;;  %v7718_v45 = vld [vmem:[%s10215_s1 + $0x48] sm:$0xff]   ;;  %v2639_v48 = vshrl.u32 %v8150_v35, 16  ;;  %v2642_v49 = vshll.u32 %v8150_v35, 16 }
  0x21   : > { %7167 = vmatpush3.bf16.msra.mxu0 %v7704_v9  ;;  %6976 = vmatprep.subr.bf16.mxu1 %v7705_v10  ;;  %v2617_v9 = vrot.slane %v2615_v0, 4  ;;  %v8136_v17 = vrot.slane %v877_v7, 4  ;;  %v2636_v40 = vrot.slane %v2634_v20, 5  ;;  %v2648_v50 = vshll.u32 %v8156_v43, 16  ;;  %v8177_v61 = vld [vmem:[%s8026_s20 + $0x28] sm:$0xf] }
  0x22   : > { %7168 = vmatprep.subr.bf16.mxu0 %v7706_v13  ;;  %v2652_v52 = vshrl.u32 %v8156_v43, 16  ;;  %v2641_v0 = vrot.slane %v2639_v48, 4  ;;  %v7723_v7 = vld [vmem:[%s10215_s1 + $0x50] sm:$0xff]   ;;  %v8282_v41 = vld [vmem:[%s8026_s20 + $0x48] sm:$0xf] }
  0x23   : > { %v2621_v30 = vor.u32 %v2620_v14, %v2617_v9  ;;  %v2650_v3 = vrot.slane %v2648_v50, 5  ;;  %v8270_v14 = vld [vmem:[%s8026_s20 + $0x40] sm:$0xf]  ;;  %v8331_v42 = vld [vmem:[%s8026_s20 + $0x58] sm:$0xf] }
  0x24   : > { %6977 = vmatpush3.bf16.msra.mxu1 %v7705_v10  ;;  %v6322_v10 = vcombine.low %v2603_v5, %v2613_v6  ;;  %v2654_v4 = vrot.slane %v2652_v52, 4  ;;  %v6101_v6 = vcombine.low %v8174_v60, %v8177_v61  ;;  %10250 = vst [vmem:[#allocation6_spill] sm:$0xff] %v8270_v14  ;;  %v8361_v12 = vld [vmem:[%s8026_s20 + $0x64] sm:$0xf] }
  0x25   : > { %7169 = vmatpush3.bf16.msra.mxu0 %v7706_v13  ;;  %6978 = vmatprep.subr.bf16.mxu1 %v7707_v19  ;;  %v8129_v13 = vrot.slane %v867_v1, 4  ;;  %v2622_v47 = vrot.slane %v2621_v30, 4  ;;  %v2644_v1 = vrot.slane %v2642_v49, 5 }
  0x26   : > { %7170 = vmatprep.subr.bf16.mxu0 %v7708_v22  ;;  %7174 = vmatprep.mubr.bf16.mxu0 %v6322_v10  ;;  %v2655_v30 = vor.u32 %v2654_v4, %v2650_v3 }
  0x27   : > { %v2627_v62 = vsel %vm8100_vm2, %v2622_v47, %v2626_v15  ;;  %v2645_v9 = vor.u32 %v2644_v1, %v2641_v0 }
  0x28   : > { %6979 = vmatpush3.bf16.msra.mxu1 %v7707_v19  ;;  %v2628_v19 = vshrl.u32 %v8109_v59, 16 }
  0x29   : > { %7171 = vmatpush3.bf16.msra.mxu0 %v7708_v22  ;;  %6980 = vmatprep.subr.bf16.mxu1 %v7709_v38  ;;  %v2646_v50 = vrot.slane %v2645_v9, 4 }
  0x2a   : > { %7172 = vmatprep.subr.bf16.mxu0 %v7710_v44  ;;  %v2630_v39 = vrot.slane %v2628_v19, 4  ;;  %v8193_v19 = vld [vmem:[%s8026_s20 + $0x30] sm:$0xf] }
  0x2b   : > { %v2663_v47 = vshrl.u32 %v8193_v19, 16  ;;  %v2666_v48 = vshll.u32 %v8193_v19, 16 }
  0x2c   : > { %6981 = vmatpush3.bf16.msra.mxu1 %v7709_v38  ;;  %v6100_v38 = vcombine.low %v8142_v27, %v8145_v31  ;;  %v2631_v51 = vor.u32 %v2630_v39, %v2626_v15  ;;  %v8198_v39 = vld [vmem:[%s8026_s20 + $0x34] sm:$0xf] }
  0x2d   : > { %7173 = vmatpush3.bf16.msra.mxu0 %v7710_v44  ;;  %7014 = vmatprep.subr.bf16.mxu1 %v7713_v8  ;;  %v8163_v44 = vld [vmem:[%s8026_s20 + $0x2c] sm:$0x1]  ;;  %v2676_v52 = vshrl.u32 %v8198_v39, 16  ;;  %v2665_v0 = vrot.slane %v2663_v47, 4  ;;  %v2668_v1 = vrot.slane %v2666_v48, 5 }
  0x2e   : > { %7206 = vmatprep.subr.bf16.mxu0 %v8134_v16  ;;  %v2658_v55 = vshll.u32 %v8163_v44, 16 }
  0x2f   : > { %6983 = vmatmul.mubr.bf16.vlgmr.msra.gmra.mrb[0].mxu1 %v6099_v46  ;;  %v2632_v46 = vrot.slane %v2631_v51, 4  ;;  %v2672_v51 = vshll.u32 %v8198_v39, 16  ;;  %v2678_v9 = vrot.slane %v2676_v52, 4  ;;  %v2669_v47 = vor.u32 %v2668_v1, %v2665_v0 }
  0x30   : > { %7015 = vmatpush3.bf16.msra.mxu1 %v7713_v8  ;;  %6986 = vmatprep.mubr.bf16.mxu1 %v6100_v38  ;;  %v2660_v5 = vrot.slane %v2658_v55, 5  ;;  %v7715_v8 = vld [vmem:[%s10215_s1 + $0x148] sm:$0xff]   ;;  %v8201_v38 = vld [vmem:[%s8026_s20 + $0x38] sm:$0x1]  ;;  %v2656_v55 = vrot.slane %v2655_v30, 4  ;;  %v8230_v30 = vsel %vm8213_vm5, %v6162_v21, %v10219_v25 }
  0x31   : > { %7016 = vmatprep.subr.bf16.mxu1 %v7718_v45  ;;  %v2637_v20 = vsel %vm8100_vm2, %v2632_v46, %v2636_v40  ;;  %v7728_v40 = vld [vmem:[%s10215_s1 + $0x58] sm:$0xff]   ;;  %v2682_v46 = vshll.u32 %v8201_v38, 16  ;;  %v2674_v4 = vrot.slane %v2672_v51, 5  ;;  %10249 = vst [vmem:[#allocation5_spill] sm:$0xff] %v8230_v30 }
  0x32   : > { %v6323_v49 = vcombine.low %v2627_v62, %v2637_v20  ;;  %v8222_v20 = vld [vmem:[%s10215_s1 + $0x150] sm:$0xff]   ;;  %v8246_v25 = vld [vmem:[%s8026_s20 + $0x3c] sm:$0xf] }
  0x33   : > { %v2684_v48 = vrot.slane %v2682_v46, 5  ;;  %v2679_v52 = vor.u32 %v2678_v9, %v2674_v4  ;;  %v8257_v46 = vld [vmem:[%s8026_s20 + $0x44] sm:$0x1] }
  0x34   : > { %7017 = vmatpush3.bf16.msra.mxu1 %v7718_v45  ;;  %7175 = vmatmul.mubr.bf16.vlgmr.msra.gmra.mrb[0].mxu0 %v6323_v49  ;;  %v2651_v45 = vsel %vm8100_vm2, %v2646_v50, %v2650_v3  ;;  %v2661_v3 = vsel %vm8100_vm2, %v2656_v55, %v2660_v5  ;;  %v8236_v49 = vld [vmem:[%s8026_s20 + $0x30] sm:$0xf]  ;;  %v8239_v50 = vld [vmem:[%s8026_s20 + $0x34] sm:$0xf]  ;;  %v8249_v5 = vld [vmem:[%s8026_s20 + $0x40] sm:$0xf] }
  0x35   : > { %7018 = vmatprep.subr.bf16.mxu1 %v7723_v7  ;;  %7207 = vmatpush3.bf16.msra.mxu0 %v8134_v16  ;;  %v6324_v51 = vcombine.low %v2651_v45, %v2661_v3  ;;  %v6102_v21 = vcombine.low %v8236_v49, %v8239_v50  ;;  %v2670_v55 = vrot.slane %v2669_v47, 4  ;;  %v2687_v45 = vshrl.u32 %v8246_v25, 16  ;;  %v8264_v47 = vld [vmem:[%s8026_s20 + $0x3c] sm:$0xf] }
  0x36   : > { %7208 = vmatprep.subr.bf16.mxu0 %v7715_v8  ;;  %v2680_v9 = vrot.slane %v2679_v52, 4  ;;  %v2696_v3 = vshll.u32 %v8249_v5, 16  ;;  %v2700_v16 = vshrl.u32 %v8249_v5, 16  ;;  %v2706_v15 = vshll.u32 %v8257_v46, 16 }
  0x37   : > { %6987 = vmatmul.mubr.bf16.gmra.mrb[4].mxu1 %v6101_v6  ;;  %v7733_v6 = vld [vmem:[%s10215_s1 + $0x60] sm:$0xff]   ;;  %7178 = vmatprep.mubr.bf16.mxu0 %v6324_v51  ;;  %v2675_v1 = vsel %vm8100_vm2, %v2670_v55, %v2674_v4  ;;  %v2689_v0 = vrot.slane %v2687_v45, 4  ;;  %v6103_v51 = vcombine.low %v8264_v47, %v8270_v14 }
  0x38   : > { %7019 = vmatpush3.bf16.msra.mxu1 %v7723_v7  ;;  %6990 = vmatprep.mubr.bf16.mxu1 %v6102_v21  ;;  %v2690_v7 = vshll.u32 %v8246_v25, 16  ;;  %v2685_v52 = vsel %vm8100_vm2, %v2680_v9, %v2684_v48  ;;  %v2698_v4 = vrot.slane %v2696_v3, 5  ;;  %v2702_v55 = vrot.slane %v2700_v16, 4  ;;  %v7737_v48 = vld [vmem:[%s10215_s1 + $0x68] sm:$0xff]   ;;  %v8292_v16 = vld [vmem:[%s8026_s20 + $0x50] sm:$0x1] }
  0x39   : > { %7020 = vmatprep.subr.bf16.mxu1 %v7728_v40  ;;  %7209 = vmatpush3.bf16.msra.mxu0 %v7715_v8  ;;  %v7720_v8 = vld [vmem:[%s10215_s1 + $0x158] sm:$0xff]   ;;  %v6325_v45 = vcombine.low %v2675_v1, %v2685_v52  ;;  %v2708_v10 = vrot.slane %v2706_v15, 5  ;;  %v2711_v15 = vshrl.u32 %v8282_v41, 16  ;;  %v2730_v52 = vshll.u32 %v8292_v16, 16  ;;  %v8389_v14 = vld [vmem:[%s8026_s20 + $0x60] sm:$0xf] }
  0x3a   : > { %7210 = vmatprep.subr.bf16.mxu0 %v8222_v20  ;;  %v2692_v21 = vrot.slane %v2690_v7, 5  ;;  %v2703_v34 = vor.u32 %v2702_v55, %v2698_v4  ;;  %v8289_v7 = vld [vmem:[%s8026_s20 + $0x4c] sm:$0xf] }
  0x3b   : > { %v2720_v1 = vshll.u32 %v8289_v7, 16  ;;  %v2724_v3 = vshrl.u32 %v8289_v7, 16  ;;  %v2732_v11 = vrot.slane %v2730_v52, 5  ;;  %v8328_v52 = vld [vmem:[%s8026_s20 + $0x54] sm:$0xf] }
  0x3c   : > { %7021 = vmatpush3.bf16.msra.mxu1 %v7728_v40  ;;  %v2693_v9 = vor.u32 %v2692_v21, %v2689_v0  ;;  %7179 = vmatmul.mubr.bf16.gmra.mrb[4].mxu0 %v6325_v45  ;;  %v2714_v40 = vshll.u32 %v8282_v41, 16  ;;  %v7724_v0 = vld [vmem:[%s10215_s1 + $0x160] sm:$0xff]   ;;  %v2704_v55 = vrot.slane %v2703_v34, 4  ;;  %v2713_v45 = vrot.slane %v2711_v15, 4  ;;  %v8309_v34 = vld [vmem:[%s8026_s20 + $0x48] sm:$0xf] }
  0x3d   : > { %7022 = vmatprep.subr.bf16.mxu1 %v7733_v6  ;;  %7211 = vmatpush3.bf16.msra.mxu0 %v8222_v20  ;;  %v2722_v22 = vrot.slane %v2720_v1, 5  ;;  %v2726_v36 = vrot.slane %v2724_v3, 4  ;;  %10251 = vst [vmem:[#allocation7_spill] sm:$0xff] %v8309_v34 }
  0x3e   : > { %v2694_v21 = vrot.slane %v2693_v9, 4  ;;  %7212 = vmatprep.subr.bf16.mxu0 %v7720_v8  ;;  %v2716_v32 = vrot.slane %v2714_v40, 5  ;;  %v2709_v20 = vsel %vm8100_vm2, %v2704_v55, %v2708_v10  ;;  %v8312_v9 = vld [vmem:[%s8026_s20 + $0x4c] sm:$0xf] }
  0x3f   : > { %6991 = vmatmul.mubr.bf16.gmra.mrb[8].mxu1 %v6103_v51  ;;  %10252 = vst [vmem:[#allocation8_spill] sm:$0xff] %v8312_v9  ;;  %v2727_v3 = vor.u32 %v2726_v36, %v2722_v22  ;;  %v7725_v10 = vld [vmem:[%s10215_s1 + $0x168] sm:$0xff]   ;;  %v2735_v36 = vshrl.u32 %v8328_v52, 16 }
  0x40   : > { %7023 = vmatpush3.bf16.msra.mxu1 %v7733_v6  ;;  %v2699_v57 = vsel %vm8100_vm2, %v2694_v21, %v2698_v4  ;;  %v10253_v6 = vrot.slane %v8078_v37, 9  ;;  %v2717_v1 = vor.u32 %v2716_v32, %v2713_v45  ;;  %v6104_v4 = vcombine.low %v8309_v34, %v8312_v9  ;;  %v8334_v37 = vld [vmem:[%s8026_s20 + $0x5c] sm:$0x1]  ;;  %v8340_v32 = vld [vmem:[%s8026_s20 + $0x54] sm:$0xf] }
  0x41   : > { %7024 = vmatprep.subr.bf16.mxu1 %v7737_v48  ;;  %v6326_v40 = vcombine.low %v2699_v57, %v2709_v20  ;;  %7213 = vmatpush3.bf16.msra.mxu0 %v7720_v8  ;;  %10255 = vst [vmem:[#allocation10_spill] sm:$0xff] %v8340_v32  ;;  %v3378_v21 = vrot.slane %v8062_v26, 5  ;;  %v2728_v45 = vrot.slane %v2727_v3, 4  ;;  %v2738_v20 = vshll.u32 %v8328_v52, 16 }
  0x42   : > { %v8320_v15 = vsel %vm8213_vm5, %v10253_v6, %v1634_v58  ;;  %v2718_v55 = vrot.slane %v2717_v1, 4  ;;  %7214 = vmatprep.subr.bf16.mxu0 %v7724_v0  ;;  %v2744_v8 = vshll.u32 %v8331_v42, 16  ;;  %v8346_v6 = vld [vmem:[%s8026_s20 + $0x58] sm:$0xf]  ;;  %6994 = vmatprep.mubr.bf16.mxu1 %v6104_v4  ;;  %v2737_v57 = vrot.slane %v2735_v36, 4 }
  0x43   : > { %10254 = vst [vmem:[#allocation9_spill] sm:$0xff] %v8320_v15  ;;  %7182 = vmatprep.mubr.bf16.mxu0 %v6326_v40  ;;  %v2748_v58 = vshrl.u32 %v8331_v42, 16  ;;  %v2754_v51 = vshll.u32 %v8334_v37, 16  ;;  %v6105_v26 = vcombine.low %v8340_v32, %v8346_v6  ;;  %v2733_v40 = vsel %vm8100_vm2, %v2728_v45, %v2732_v11  ;;  %v8357_v15 = vld [vmem:[%s8026_s20 + $0x60] sm:$0xf] }
  0x44   : > { %7025 = vmatpush3.bf16.msra.mxu1 %v7737_v48  ;;  %v2723_v48 = vsel %vm8100_vm2, %v2718_v55, %v2722_v22  ;;  %v2740_v1 = vrot.slane %v2738_v20, 5  ;;  %v2746_v3 = vrot.slane %v2744_v8, 5  ;;  %v7741_v22 = vld [vmem:[%s10215_s1 + $0x70] sm:$0xff]   ;;  %v8369_v20 = vld [vmem:[%s8026_s20 + $0x68] sm:$0x1]  ;;  %v2762_v8 = vshll.u32 %v8357_v15, 16 }
  0x45   : > { %v6327_v4 = vcombine.low %v2723_v48, %v2733_v40  ;;  %7215 = vmatpush3.bf16.msra.mxu0 %v7724_v0  ;;  %v2750_v2 = vrot.slane %v2748_v58, 4  ;;  %v2756_v30 = vrot.slane %v2754_v51, 5  ;;  %v2759_v0 = vshrl.u32 %v8357_v15, 16  ;;  %v7729_v51 = vld [vmem:[%s10215_s1 + $0x170] sm:$0xff]   ;;  %7026 = vmatprep.subr.bf16.mxu1 %v7741_v22  ;;  %v7745_v48 = vld [vmem:[%s10215_s1 + $0x78] sm:$0xff]  }
  0x46   : > { %7216 = vmatprep.subr.bf16.mxu0 %v7725_v10  ;;  %v2741_v11 = vor.u32 %v2740_v1, %v2737_v57  ;;  %v2772_v57 = vshrl.u32 %v8361_v12, 16  ;;  %v2778_v45 = vshll.u32 %v8369_v20, 16  ;;  %v2764_v36 = vrot.slane %v2762_v8, 5 }
  0x47   : > { %6995 = vmatmul.mubr.bf16.gmra.mrb[12].mxu1 %v6105_v26  ;;  %7183 = vmatmul.mubr.bf16.gmra.mrb[8].mxu0 %v6327_v4  ;;  %v2751_v58 = vor.u32 %v2750_v2, %v2746_v3  ;;  %v2768_v26 = vshll.u32 %v8361_v12, 16  ;;  %v2761_v1 = vrot.slane %v2759_v0, 4  ;;  %v7730_v2 = vld [vmem:[%s10215_s1 + $0x178] sm:$0xff]   ;;  %v3380_v4 = vrot.slane %v3378_v21, 4 }
  0x48   : > { %v2742_v40 = vrot.slane %v2741_v11, 4  ;;  %7027 = vmatpush3.bf16.msra.mxu1 %v7741_v22  ;;  %v2774_v9 = vrot.slane %v2772_v57, 4  ;;  %v2780_v34 = vrot.slane %v2778_v45, 5  ;;  %v10256_v22 = vrot.slane %v8046_v18, 9  ;;  %v8398_v57 = vld [vmem:[%s8026_s20 + $0x64] sm:$0xf] }
  0x49   : > { %7217 = vmatpush3.bf16.msra.mxu0 %v7725_v10  ;;  %v2752_v55 = vrot.slane %v2751_v58, 4  ;;  %v2770_v32 = vrot.slane %v2768_v26, 5  ;;  %7028 = vmatprep.subr.bf16.mxu1 %v7745_v48  ;;  %v2765_v8 = vor.u32 %v2764_v36, %v2761_v1  ;;  %v6106_v18 = vcombine.low %v8389_v14, %v8398_v57  ;;  %v6244_v1 = vld [vmem:[%s8026_s20 + $0x74] sm:$0x1] }
  0x4a   : > { %v2747_v11 = vsel %vm8100_vm2, %v2742_v40, %v2746_v3  ;;  %7218 = vmatprep.subr.bf16.mxu0 %v7729_v51  ;;  %v3379_v10 = vsel %vm8213_vm5, %v10256_v22, %v3378_v21  ;;  %v10257_v3 = vrot.slane %v8068_v29, 5  ;;  %v8405_v40 = vld [vmem:[%s8026_s20 + $0x6c] sm:$0xf]  ;;  %v8411_v22 = vld [vmem:[%s8026_s20 + $0x70] sm:$0xf] }
  0x4b   : > { %v2757_v58 = vsel %vm8100_vm2, %v2752_v55, %v2756_v30  ;;  %v2775_v26 = vor.u32 %v2774_v9, %v2770_v32  ;;  %v6347_v30 = vrot.slane %v8096_v53, 9  ;;  %v2766_v9 = vrot.slane %v2765_v8, 4  ;;  %6998 = vmatprep.mubr.bf16.mxu1 %v6106_v18  ;;  %v8449_v18 = vld [vmem:[%s10215_s1 + $0x80] sm:$0xff]   ;;  %v8572_v21 = vld [vmem:[%s8026_s20 + $0x14] sm:$0x1] }
  0x4c   : > { %v3382_v45 = vsel %vm8213_vm5, %v3380_v4, %v10257_v3  ;;  %v6328_v0 = vcombine.low %v2747_v11, %v2757_v58  ;;  %7029 = vmatpush3.bf16.msra.mxu1 %v7745_v48  ;;  %v6107_v36 = vcombine.low %v8405_v40, %v8411_v22  ;;  %v3385_v53 = vrot.slane %v8109_v59, 5  ;;  %v8422_v48 = vld [vmem:[%s10215_s1 + $0x180] sm:$0xff]   ;;  %v8432_v58 = vld [vmem:[%s8026_s20 + $0x7c] sm:$0xf] }
  0x4d   : > { %v2776_v29 = vrot.slane %v2775_v26, 4  ;;  %7219 = vmatpush3.bf16.msra.mxu0 %v7729_v51  ;;  %v6378_v4 = vcombine.low %v3379_v10, %v3382_v45  ;;  %v2771_v51 = vsel %vm8100_vm2, %v2766_v9, %v2770_v32  ;;  %v6348_v10 = vrot.slane %v8150_v35, 9  ;;  %v8441_v45 = vld [vmem:[%s8026_s20 + $0x84] sm:$0xf]  ;;  %7062 = vmatprep.subr.bf16.mxu1 %v8449_v18  ;;  %v6243_v35 = vld [vmem:[%s8026_s20 + $0x70] sm:$0xf] }
  0x4e   : > { %7186 = vmatprep.mubr.bf16.mxu0 %v6328_v0  ;;  %7220 = vmatprep.subr.bf16.mxu0 %v7730_v2  ;;  %v8429_v0 = vld [vmem:[%s8026_s20 + $0x78] sm:$0xf]  ;;  %v3392_v59 = vrot.slane %v8156_v43, 5  ;;  %v3386_v26 = vsel %vm8213_vm5, %v6347_v30, %v3385_v53  ;;  %v3387_v3 = vrot.slane %v3385_v53, 4  ;;  %v6242_v43 = vld [vmem:[%s8026_s20 + $0x6c] sm:$0xf] }
  0x4f   : > { %v2781_v11 = vsel %vm8100_vm2, %v2776_v29, %v2780_v34  ;;  %6999 = vmatmul.mubr.bf16.gmra.mrb[16].mxu1 %v6107_v36  ;;  %v6108_v32 = vcombine.low %v8429_v0, %v8432_v58  ;;  %v8444_v34 = vld [vmem:[%s8026_s20 + $0x88] sm:$0xf]  ;;  %v10258_v29 = vrot.slane %v8112_v63, 5  ;;  %v8494_v63 = vld [vmem:[%s8026_s20 + $0x9c] sm:$0xf]  ;;  %v3434_v55 = vrot.slane %v6243_v35, 5 }
  0x50   : > { %v6329_v8 = vcombine.low %v2771_v51, %v2781_v11  ;;  %v3394_v53 = vrot.slane %v3392_v59, 4  ;;  %v3395_v51 = vrot.slane %v8163_v44, 5  ;;  %v6109_v9 = vcombine.low %v8441_v45, %v8444_v34 }
  0x51   : > { %7221 = vmatpush3.bf16.msra.mxu0 %v7730_v2  ;;  %v3389_v36 = vsel %vm8213_vm5, %v3387_v3, %v10258_v29  ;;  %v3393_v2 = vsel %vm8213_vm5, %v6348_v10, %v3392_v59  ;;  %7002 = vmatprep.mubr.bf16.mxu1 %v6108_v32  ;;  %v3399_v44 = vrot.slane %v8198_v39, 5  ;;  %v6349_v32 = vrot.slane %v8193_v19, 9  ;;  %v7738_v39 = vld [vmem:[%s10215_s1 + $0x188] sm:$0xff]  }
  0x52   : > { %7187 = vmatmul.mubr.bf16.gmra.mrb[12].mxu0 %v6329_v8  ;;  %7254 = vmatprep.subr.bf16.mxu0 %v8422_v48  ;;  %v6379_v11 = vcombine.low %v3386_v26, %v3389_v36  ;;  %v3396_v3 = vsel %vm8213_vm5, %v3394_v53, %v3395_v51  ;;  %v3402_v36 = vrot.slane %v8201_v38, 5  ;;  %v8480_v53 = vld [vmem:[%s8026_s20 + $0x94] sm:$0xf]  ;;  %v3406_v38 = vrot.slane %v8249_v5, 5  ;;  %v8497_v8 = vld [vmem:[%s8026_s20 + $0xa0] sm:$0xf] }
  0x53   : > { %7222 = vmatprep.mubr.bf16.mxu0 %v6378_v4  ;;  %v8473_v4 = vld [vmem:[%s8026_s20 + $0x90] sm:$0xf]  ;;  %v6380_v59 = vcombine.low %v3393_v2, %v3396_v3  ;;  %v3401_v51 = vrot.slane %v3399_v44, 4  ;;  %v6350_v2 = vrot.slane %v8246_v25, 9  ;;  %v3409_v26 = vrot.slane %v8257_v46, 5 }
  0x54   : > { %v6110_v10 = vcombine.low %v8473_v4, %v8480_v53  ;;  %v843_v29 = vor.u32 %v8058_v24, %v8056_v23  ;;  %v853_v25 = vor.u32 %v8073_v33, %v8065_v28  ;;  %v3400_v19 = vsel %vm8213_vm5, %v6349_v32, %v3399_v44  ;;  %v8513_v24 = vld [vmem:[%s8026_s20 + $0xa8] sm:$0xf]  ;;  %v8516_v33 = vld [vmem:[%s8026_s20 + $0xac] sm:$0xf] }
  0x55   : > { %v3403_v5 = vsel %vm8213_vm5, %v3401_v51, %v3402_v36  ;;  %v3408_v46 = vrot.slane %v3406_v38, 4  ;;  %v3407_v3 = vsel %vm8213_vm5, %v6350_v2, %v3406_v38  ;;  %v6351_v44 = vrot.slane %v8282_v41, 9  ;;  %v7742_v36 = vld [vmem:[%s10215_s1 + $0x190] sm:$0xff]  }
  0x56   : > { %v3416_v32 = vrot.slane %v8292_v16, 5  ;;  %v6381_v51 = vcombine.low %v3400_v19, %v3403_v5  ;;  %v6352_v2 = vrot.slane %v8328_v52, 9  ;;  %v8535_v38 = vld [vmem:[%s8026_s20 + $0xb4] sm:$0xf]  ;;  %v6112_v41 = vcombine.low %v8513_v24, %v8516_v33  ;;  %v8555_v5 = vld [vmem:[%s8026_s20 + $0x8] sm:$0x1] }
  0x57   : > { %7003 = vmatmul.mubr.bf16.gmra.mrb[20].mxu1 %v6109_v9  ;;  %v3413_v9 = vrot.slane %v8289_v7, 5  ;;  %v3410_v7 = vsel %vm8213_vm5, %v3408_v46, %v3409_v26  ;;  %v3420_v46 = vrot.slane %v8331_v42, 5  ;;  %v3423_v52 = vrot.slane %v8334_v37, 5 }
  0x58   : > { %7006 = vmatprep.mubr.bf16.mxu1 %v6110_v10  ;;  %v873_v10 = vsel %vm8100_vm2, %v8129_v13, %v8104_v56  ;;  %v6382_v26 = vcombine.low %v3407_v3, %v3410_v7  ;;  %v7746_v3 = vld [vmem:[%s10215_s1 + $0x198] sm:$0xff]   ;;  %v6353_v16 = vrot.slane %v8357_v15, 9  ;;  %v3427_v19 = vrot.slane %v8361_v12, 5 }
  0x59   : > { %v3422_v7 = vrot.slane %v3420_v46, 4  ;;  %v3430_v37 = vrot.slane %v8369_v20, 5  ;;  %v844_v23 = vrot.slane %v843_v29, 4  ;;  %v854_v30 = vrot.slane %v853_v25, 4 }
  0x5a   : > { %7223 = vmatmul.mubr.bf16.vlgmr.msra.gmra.mrb[0].mxu0 %v6379_v11  ;;  %v8542_v11 = vld [vmem:[%s8026_s20 + $0xb8] sm:$0xf]  ;;  %v3414_v42 = vsel %vm8213_vm5, %v6351_v44, %v3413_v9  ;;  %v3429_v12 = vrot.slane %v3427_v19, 4  ;;  %v3437_v44 = vrot.slane %v6244_v1, 5  ;;  %v7748_v1 = vld [vmem:[%s10215_s1 + $0x1a0] sm:$0xff]   ;;  %v10262_v56 = vshll.u32 %v8142_v27, 16 }
  0x5b   : > { %7255 = vmatpush3.bf16.msra.mxu0 %v8422_v48  ;;  %7226 = vmatprep.mubr.bf16.mxu0 %v6380_v59  ;;  %v6111_v48 = vcombine.low %v8494_v63, %v8497_v8  ;;  %v3415_v59 = vrot.slane %v3413_v9, 4  ;;  %v6113_v20 = vcombine.low %v8535_v38, %v8542_v11  ;;  %v849_v29 = vsel %vm8100_vm2, %v844_v23, %v8065_v28 }
  0x5c   : > { %7256 = vmatprep.subr.bf16.mxu0 %v7738_v39  ;;  %v3421_v9 = vsel %vm8213_vm5, %v6352_v2, %v3420_v46  ;;  %v8581_v28 = vsel %vm8213_vm5, %v6353_v16, %v3427_v19  ;;  %v8585_v35 = vsel %vm8213_vm5, %v3429_v12, %v3430_v37  ;;  %v8605_v46 = vld [vmem:[%s8026_s20 + $0x7c] sm:$0xf]  ;;  %v6247_v19 = vld [vmem:[%s8026_s20 + $0x80] sm:$0x1]  ;;  %v890_v13 = vrot.slane %v10262_v56, 5 }
  0x5d   : > { %v3417_v15 = vsel %vm8213_vm5, %v3415_v59, %v3416_v32  ;;  %v880_v32 = vshll.u32 %v8572_v21, 16  ;;  %10260 = vst [vmem:[#allocation12_spill] sm:$0xff] %v8605_v46  ;;  %v6251_v37 = vld [vmem:[%s8026_s20 + $0x90] sm:$0xf] }
  0x5e   : > { %v6383_v16 = vcombine.low %v3414_v42, %v3417_v15  ;;  %v8615_v42 = vld [vmem:[%s8026_s20 + $0x20] sm:$0x1]  ;;  %v8684_v15 = vld [vmem:[%s8026_s20 + $0x38] sm:$0x1] }
  0x5f   : > { %7257 = vmatpush3.bf16.msra.mxu0 %v7738_v39  ;;  %7007 = vmatmul.mubr.bf16.gmra.mrb[24].mxu1 %v6111_v48  ;;  %v856_v39 = vshll.u32 %v8555_v5, 16  ;;  %v6354_v48 = vrot.slane %v6242_v43, 9  ;;  %v3424_v43 = vsel %vm8213_vm5, %v3422_v7, %v3423_v52  ;;  %v6385_v7 = vcombine.low %v8581_v28, %v8585_v35 }
  0x60   : > { %7258 = vmatprep.subr.bf16.mxu0 %v7742_v36  ;;  %7010 = vmatprep.mubr.bf16.mxu1 %v6112_v41  ;;  %v8598_v41 = vld [vmem:[%s8026_s20 + $0x78] sm:$0xf]  ;;  %v6384_v52 = vcombine.low %v3421_v9, %v3424_v43  ;;  %v10261_v9 = vshrl.u32 %v8142_v27, 16  ;;  %v10269_v35 = vshll.u32 %v8236_v49, 16 }
  0x61   : > { %v858_v25 = vrot.slane %v856_v39, 5  ;;  %v8595_v2 = vsel %vm8213_vm5, %v6354_v48, %v3434_v55  ;;  %10259 = vst [vmem:[#allocation11_spill] sm:$0xff] %v8598_v41  ;;  %v6248_v39 = vld [vmem:[%s8026_s20 + $0x84] sm:$0xf]  ;;  %v6249_v48 = vld [vmem:[%s8026_s20 + $0x88] sm:$0xf] }
  0x62   : > { %7227 = vmatmul.mubr.bf16.gmra.mrb[4].mxu0 %v6381_v51  ;;  %v887_v43 = vrot.slane %v10261_v9, 4  ;;  %v918_v51 = vshll.u32 %v8177_v61, 16 }
  0x63   : > { %7230 = vmatprep.mubr.bf16.mxu0 %v6382_v26  ;;  %7259 = vmatpush3.bf16.msra.mxu0 %v7742_v36  ;;  %v859_v23 = vsel %vm8100_vm2, %v854_v30, %v858_v25  ;;  %v3436_v36 = vrot.slane %v3434_v55, 4  ;;  %v882_v26 = vrot.slane %v880_v32, 5  ;;  %v3444_v25 = vrot.slane %v6247_v19, 5  ;;  %v7752_v19 = vld [vmem:[%s10215_s1 + $0x1b0] sm:$0xff]  }
  0x64   : > { %7260 = vmatprep.subr.bf16.mxu0 %v7746_v3  ;;  %v6138_v59 = vcombine.low %v849_v29, %v859_v23  ;;  %v3441_v29 = vrot.slane %v8605_v46, 5  ;;  %v10263_v32 = vshrl.u32 %v8145_v31, 16 }
  0x65   : > { %v8602_v30 = vsel %vm8213_vm5, %v3436_v36, %v3437_v44  ;;  %v883_v55 = vsel %vm8100_vm2, %v8136_v17, %v882_v26  ;;  %v6355_v17 = vrot.slane %v8598_v41, 9  ;;  %v894_v44 = vshll.u32 %v8145_v31, 16  ;;  %v8642_v26 = vld [vmem:[%s8026_s20 + $0x2c] sm:$0x1]  ;;  %v7822_v41 = vld [vmem:[%s8026_s20 + $0x40] sm:$0xf] }
  0x66   : > { %v900_v23 = vrot.slane %v10263_v32, 4  ;;  %v904_v36 = vshll.u32 %v8615_v42, 16  ;;  %v891_v31 = vor.u32 %v890_v13, %v887_v43  ;;  %v10264_v32 = vshrl.u32 %v8174_v60, 16  ;;  %v6252_v43 = vld [vmem:[%s8026_s20 + $0x94] sm:$0xf] }
  0x67   : > { %7261 = vmatpush3.bf16.msra.mxu0 %v7746_v3  ;;  %7011 = vmatmul.mubr.bf16.gmra.mrb[28].mxu1 %v6113_v20  ;;  %v6139_v3 = vcombine.low %v873_v10, %v883_v55  ;;  %v7750_v20 = vld [vmem:[%s10215_s1 + $0x1a8] sm:$0xff]   ;;  %v8649_v27 = vsel %vm8213_vm5, %v6355_v17, %v3441_v29  ;;  %v3448_v55 = vrot.slane %v6249_v48, 5  ;;  %v896_v9 = vrot.slane %v894_v44, 5  ;;  %v6253_v13 = vld [vmem:[%s8026_s20 + $0x98] sm:$0x1] }
  0x68   : > { %7262 = vmatprep.subr.bf16.mxu0 %v7748_v1  ;;  %7030 = vmatprep.mubr.bf16.mxu1 %v6138_v59  ;;  %v6250_v10 = vld [vmem:[%s8026_s20 + $0x8c] sm:$0x1]  ;;  %v6356_v59 = vrot.slane %v6248_v39, 9  ;;  %v906_v56 = vrot.slane %v904_v36, 5  ;;  %v911_v12 = vrot.slane %v10264_v32, 4  ;;  %v10265_v36 = vshll.u32 %v8174_v60, 16 }
  0x69   : > { %v3451_v39 = vrot.slane %v6250_v10, 5  ;;  %v3450_v48 = vrot.slane %v3448_v55, 4  ;;  %v901_v44 = vor.u32 %v900_v23, %v896_v9  ;;  %v920_v10 = vrot.slane %v918_v51, 5  ;;  %v6254_v51 = vld [vmem:[%s8026_s20 + $0x9c] sm:$0xf] }
  0x6a   : > { %7231 = vmatmul.mubr.bf16.gmra.mrb[8].mxu0 %v6383_v16  ;;  %v3443_v16 = vrot.slane %v3441_v29, 4  ;;  %v892_v29 = vrot.slane %v891_v31, 4  ;;  %v914_v32 = vrot.slane %v10265_v36, 5 }
  0x6b   : > { %7234 = vmatprep.mubr.bf16.mxu0 %v6384_v52  ;;  %7263 = vmatpush3.bf16.msra.mxu0 %v7748_v1  ;;  %v7749_v52 = vld [vmem:[%s10215_s1 + $0x88] sm:$0xff]   ;;  %v8663_v1 = vsel %vm8213_vm5, %v6356_v59, %v3448_v55  ;;  %v8676_v59 = vsel %vm8213_vm5, %v3450_v48, %v3451_v39  ;;  %v928_v55 = vshll.u32 %v8642_v26, 16  ;;  %v902_v23 = vrot.slane %v901_v44, 4 }
  0x6c   : > { %7264 = vmatprep.subr.bf16.mxu0 %v7750_v20  ;;  %v8659_v17 = vsel %vm8213_vm5, %v3443_v16, %v3444_v25  ;;  %v897_v25 = vsel %vm8100_vm2, %v892_v29, %v896_v9  ;;  %v10266_v16 = vshrl.u32 %v8177_v61, 16  ;;  %v6388_v60 = vcombine.low %v8663_v1, %v8676_v59  ;;  %v8689_v9 = vld [vmem:[%s10215_s1 + $0x90] sm:$0xff]   ;;  %v7754_v61 = vld [vmem:[%s10215_s1 + $0x1b8] sm:$0xff]  }
  0x6d   : > { %v915_v36 = vor.u32 %v914_v32, %v911_v12  ;;  %v3455_v39 = vrot.slane %v6252_v43, 5  ;;  %v3458_v12 = vrot.slane %v6253_v13, 5  ;;  %v907_v29 = vsel %vm8100_vm2, %v902_v23, %v906_v56  ;;  %v6255_v56 = vld [vmem:[%s8026_s20 + $0xa0] sm:$0xf]  ;;  %v6261_v1 = vld [vmem:[%s8026_s20 + $0xb8] sm:$0xf] }
  0x6e   : > { %v924_v31 = vrot.slane %v10266_v16, 4  ;;  %v10267_v32 = vshrl.u32 %v8236_v49, 16  ;;  %v6140_v43 = vcombine.low %v897_v25, %v907_v29  ;;  %v6256_v25 = vld [vmem:[%s8026_s20 + $0xa4] sm:$0x1]  ;;  %v3462_v29 = vrot.slane %v6255_v56, 5 }
  0x6f   : > { %7265 = vmatpush3.bf16.msra.mxu0 %v7750_v20  ;;  %7031 = vmatmul.mubr.bf16.vlgmr.msra.gmra.mrb[0].mxu1 %v6139_v3  ;;  %v930_v3 = vrot.slane %v928_v55, 5  ;;  %v6357_v20 = vrot.slane %v6251_v37, 9  ;;  %v916_v48 = vrot.slane %v915_v36, 4  ;;  %v10268_v37 = vcombine.low %v8595_v2, %v8602_v30  ;;  %v8722_v23 = vld [vmem:[%s10215_s1 + $0x1c0] sm:$0xff]   ;;  %v6259_v56 = vld [vmem:[%s8026_s20 + $0xb0] sm:$0x1] }
  0x70   : > { %7266 = vmatprep.subr.bf16.mxu0 %v7752_v19  ;;  %7063 = vmatpush3.bf16.msra.mxu1 %v8449_v18  ;;  %v925_v44 = vor.u32 %v924_v31, %v920_v10  ;;  %v935_v18 = vrot.slane %v10267_v32, 4  ;;  %v3457_v28 = vrot.slane %v3455_v39, 4  ;;  %v942_v55 = vshll.u32 %v8239_v50, 16 }
  0x71   : > { %7064 = vmatprep.subr.bf16.mxu1 %v7749_v52  ;;  %v8708_v13 = vsel %vm8213_vm5, %v6357_v20, %v3455_v39  ;;  %v921_v16 = vsel %vm8100_vm2, %v916_v48, %v920_v10  ;;  %v10270_v2 = vshrl.u32 %v8239_v50, 16  ;;  %7034 = vmatprep.mubr.bf16.mxu1 %v6140_v43  ;;  %v952_v10 = vshll.u32 %v8684_v15, 16  ;;  %v8734_v48 = vld [vmem:[%s8026_s20 + $0x44] sm:$0x1] }
  0x72   : > { %7235 = vmatmul.mubr.bf16.gmra.mrb[12].mxu0 %v6385_v7  ;;  %v938_v7 = vrot.slane %v10269_v35, 5  ;;  %v926_v31 = vrot.slane %v925_v44, 4  ;;  %v8726_v49 = vsel %vm8213_vm5, %v3457_v28, %v3458_v12  ;;  %v6358_v36 = vrot.slane %v6254_v51, 9 }
  0x73   : > { %7238 = vmatprep.mubr.bf16.mxu0 %v10268_v37  ;;  %7267 = vmatpush3.bf16.msra.mxu0 %v7752_v19  ;;  %v948_v30 = vrot.slane %v10270_v2, 4  ;;  %v6389_v20 = vcombine.low %v8708_v13, %v8726_v49  ;;  %v944_v39 = vrot.slane %v942_v55, 5  ;;  %v954_v44 = vrot.slane %v952_v10, 5  ;;  %v10273_v55 = vld [vmem:[#allocation6_spill] sm:$0xff] }
  0x74   : > { %7268 = vmatprep.subr.bf16.mxu0 %v7754_v61  ;;  %7065 = vmatpush3.bf16.msra.mxu1 %v7749_v52  ;;  %v939_v19 = vor.u32 %v938_v7, %v935_v18  ;;  %v931_v50 = vsel %vm8100_vm2, %v926_v31, %v930_v3  ;;  %v3465_v32 = vrot.slane %v6256_v25, 5  ;;  %v6257_v18 = vld [vmem:[%s8026_s20 + $0xa8] sm:$0xf]  ;;  %v7753_v3 = vld [vmem:[%s10215_s1 + $0x98] sm:$0xff]   ;;  %v8743_v37 = vsel %vm8213_vm5, %v6358_v36, %v3462_v29  ;;  %v6258_v7 = vld [vmem:[%s8026_s20 + $0xac] sm:$0xf] }
  0x75   : > { %7066 = vmatprep.subr.bf16.mxu1 %v8689_v9  ;;  %v6141_v12 = vcombine.low %v921_v16, %v931_v50  ;;  %v949_v51 = vor.u32 %v948_v30, %v944_v39  ;;  %v3464_v43 = vrot.slane %v3462_v29, 4  ;;  %v10271_v28 = vshrl.u32 %v8264_v47, 16 }
  0x76   : > { %v940_v52 = vrot.slane %v939_v19, 4  ;;  %v10272_v31 = vshll.u32 %v8264_v47, 16  ;;  %v966_v2 = vshll.u32 %v10273_v55, 16  ;;  %v10274_v30 = vshrl.u32 %v10273_v55, 16 }
  0x77   : > { %7269 = vmatpush3.bf16.msra.mxu0 %v7754_v61  ;;  %v959_v35 = vrot.slane %v10271_v28, 4  ;;  %7035 = vmatmul.mubr.bf16.gmra.mrb[4].mxu1 %v6141_v12  ;;  %v10275_v19 = vcombine.low %v8649_v27, %v8659_v17  ;;  %v950_v10 = vrot.slane %v949_v51, 4  ;;  %v3466_v36 = vsel %vm8213_vm5, %v3464_v43, %v3465_v32  ;;  %v6260_v32 = vld [vmem:[%s8026_s20 + $0xb4] sm:$0xf]  ;;  %v10276_v43 = vld [vmem:[#allocation7_spill] sm:$0xff] }
  0x78   : > { %7302 = vmatprep.subr.bf16.mxu0 %v8722_v23  ;;  %v945_v16 = vsel %vm8100_vm2, %v940_v52, %v944_v39  ;;  %v962_v61 = vrot.slane %v10272_v31, 5  ;;  %v972_v25 = vrot.slane %v10274_v30, 4  ;;  %v976_v50 = vshll.u32 %v8734_v48, 16  ;;  %7067 = vmatpush3.bf16.msra.mxu1 %v8689_v9  ;;  %v7756_v39 = vld [vmem:[%s10215_s1 + $0xa0] sm:$0xff]   ;;  %v8772_v52 = vld [vmem:[%s8026_s20 + $0x50] sm:$0x1] }
  0x79   : > { %v6359_v47 = vrot.slane %v6257_v18, 9  ;;  %v6390_v27 = vcombine.low %v8743_v37, %v3466_v36  ;;  %v968_v29 = vrot.slane %v966_v2, 5  ;;  %v3469_v12 = vrot.slane %v6258_v7, 5  ;;  %7068 = vmatprep.subr.bf16.mxu1 %v7753_v3  ;;  %v10279_v2 = vld [vmem:[#allocation8_spill] sm:$0xff] }
  0x7a   : > { %7239 = vmatmul.mubr.bf16.gmra.mrb[16].mxu0 %v10275_v19  ;;  %v963_v17 = vor.u32 %v962_v61, %v959_v35  ;;  %v955_v9 = vsel %vm8100_vm2, %v950_v10, %v954_v44  ;;  %v978_v18 = vrot.slane %v976_v50, 5  ;;  %v3472_v51 = vrot.slane %v6259_v56, 5  ;;  %v6262_v19 = vld [vmem:[%s8026_s20 + $0xbc] sm:$0x1]  ;;  %v7760_v50 = vld [vmem:[%s10215_s1 + $0xa8] sm:$0xff]  }
  0x7b   : > { %7242 = vmatprep.mubr.bf16.mxu0 %v6388_v60  ;;  %v10277_v28 = vshrl.u32 %v10276_v43, 16  ;;  %v6142_v59 = vcombine.low %v945_v16, %v955_v9  ;;  %v973_v37 = vor.u32 %v972_v25, %v968_v29  ;;  %v8782_v35 = vsel %vm8213_vm5, %v6359_v47, %v3469_v12  ;;  %v8799_v9 = vld [vmem:[%s8026_s20 + $0x5c] sm:$0x1] }
  0x7c   : > { %v964_v60 = vrot.slane %v963_v17, 4  ;;  %v3471_v7 = vrot.slane %v3469_v12, 4  ;;  %v10278_v61 = vshll.u32 %v10276_v43, 16  ;;  %v990_v44 = vshll.u32 %v10279_v2, 16  ;;  %7069 = vmatpush3.bf16.msra.mxu1 %v7753_v3 }
  0x7d   : > { %v983_v31 = vrot.slane %v10277_v28, 4  ;;  %v10280_v56 = vshrl.u32 %v10279_v2, 16  ;;  %7038 = vmatprep.mubr.bf16.mxu1 %v6142_v59  ;;  %v974_v25 = vrot.slane %v973_v37, 4  ;;  %v1000_v10 = vshll.u32 %v8772_v52, 16  ;;  %7070 = vmatprep.subr.bf16.mxu1 %v7756_v39 }
  0x7e   : > { %v986_v55 = vrot.slane %v10278_v61, 5  ;;  %v969_v16 = vsel %vm8100_vm2, %v964_v60, %v968_v29  ;;  %v6360_v36 = vrot.slane %v6260_v32, 9  ;;  %v3473_v47 = vsel %vm8213_vm5, %v3471_v7, %v3472_v51  ;;  %v6263_v29 = vld [vmem:[%s8026_s20 + $0xc0] sm:$0xf]  ;;  %v6265_v7 = vld [vmem:[%s8026_s20 + $0xc8] sm:$0x1] }
  0x7f   : > { %v996_v30 = vrot.slane %v10280_v56, 4  ;;  %v992_v3 = vrot.slane %v990_v44, 5  ;;  %v3476_v12 = vrot.slane %v6261_v1, 5  ;;  %v979_v43 = vsel %vm8100_vm2, %v974_v25, %v978_v18  ;;  %v6264_v1 = vld [vmem:[%s8026_s20 + $0xc4] sm:$0xf]  ;;  %v7764_v18 = vld [vmem:[%s10215_s1 + $0xb0] sm:$0xff]  }
  0x80   : > { %v987_v17 = vor.u32 %v986_v55, %v983_v31  ;;  %v6391_v32 = vcombine.low %v8782_v35, %v3473_v47  ;;  %v1002_v28 = vrot.slane %v1000_v10, 5  ;;  %v3479_v59 = vrot.slane %v6262_v19, 5  ;;  %7071 = vmatpush3.bf16.msra.mxu1 %v7756_v39  ;;  %v10281_v61 = vld [vmem:[#allocation10_spill] sm:$0xff] }
  0x81   : > { %v6143_v60 = vcombine.low %v969_v16, %v979_v43  ;;  %v997_v37 = vor.u32 %v996_v30, %v992_v3  ;;  %v3477_v31 = vsel %vm8213_vm5, %v6360_v36, %v3476_v12  ;;  %v3478_v35 = vrot.slane %v3476_v12, 4  ;;  %7072 = vmatprep.subr.bf16.mxu1 %v7760_v50  ;;  %v7768_v36 = vld [vmem:[%s10215_s1 + $0xb8] sm:$0xff]   ;;  %v8833_v12 = vld [vmem:[%s8026_s20 + $0x68] sm:$0x1] }
  0x82   : > { %7243 = vmatmul.mubr.bf16.gmra.mrb[20].mxu0 %v6389_v20  ;;  %v988_v51 = vrot.slane %v987_v17, 4  ;;  %v10282_v55 = vshrl.u32 %v10281_v61, 16  ;;  %v10283_v13 = vshll.u32 %v10281_v61, 16  ;;  %v1014_v20 = vshll.u32 %v8346_v6, 16  ;;  %v8836_v43 = vld [vmem:[%s8026_s20 + $0x18] sm:$0xf] }
  0x83   : > { %7246 = vmatprep.mubr.bf16.mxu0 %v6390_v27  ;;  %7039 = vmatmul.mubr.bf16.gmra.mrb[8].mxu1 %v6143_v60  ;;  %v998_v44 = vrot.slane %v997_v37, 4  ;;  %v10284_v56 = vshrl.u32 %v8346_v6, 16  ;;  %v1024_v30 = vshll.u32 %v8799_v9, 16  ;;  %v3480_v19 = vsel %vm8213_vm5, %v3478_v35, %v3479_v59 }
  0x84   : > { %v1007_v2 = vrot.slane %v10282_v55, 4  ;;  %v1010_v49 = vrot.slane %v10283_v13, 5  ;;  %v993_v39 = vsel %vm8100_vm2, %v988_v51, %v992_v3  ;;  %v1016_v25 = vrot.slane %v1014_v20, 5  ;;  %7073 = vmatpush3.bf16.msra.mxu1 %v7760_v50  ;;  %v8845_v55 = vld [vmem:[%s8026_s20 + $0x1c] sm:$0xf] }
  0x85   : > { %v1020_v27 = vrot.slane %v10284_v56, 4  ;;  %v6361_v10 = vrot.slane %v6263_v29, 9  ;;  %v1003_v47 = vsel %vm8100_vm2, %v998_v44, %v1002_v28  ;;  %v6392_v17 = vcombine.low %v3477_v31, %v3480_v19  ;;  %7074 = vmatprep.subr.bf16.mxu1 %v7764_v18 }
  0x86   : > { %v1011_v16 = vor.u32 %v1010_v49, %v1007_v2  ;;  %v1026_v3 = vrot.slane %v1024_v30, 5  ;;  %v3483_v6 = vrot.slane %v6264_v1, 5  ;;  %v6144_v59 = vcombine.low %v993_v39, %v1003_v47  ;;  %v8871_v47 = vld [vmem:[%s10215_s1 + $0xc0] sm:$0xff]  }
  0x87   : > { %v1021_v51 = vor.u32 %v1020_v27, %v1016_v25  ;;  %v3486_v29 = vrot.slane %v6265_v7, 5  ;;  %v10285_v28 = vshrl.u32 %v8389_v14, 16  ;;  %v10286_v31 = vshll.u32 %v8389_v14, 16 }
  0x88   : > { %v1012_v60 = vrot.slane %v1011_v16, 4  ;;  %v3484_v37 = vsel %vm8213_vm5, %v6361_v10, %v3483_v6  ;;  %v3485_v35 = vrot.slane %v3483_v6, 4  ;;  %7042 = vmatprep.mubr.bf16.mxu1 %v6144_v59  ;;  %v1038_v7 = vshll.u32 %v8398_v57, 16  ;;  %7075 = vmatpush3.bf16.msra.mxu1 %v7764_v18  ;;  %v8866_v10 = vld [vmem:[%s8026_s20 + $0x24] sm:$0xf] }
  0x89   : > { %v1031_v61 = vrot.slane %v10285_v28, 4  ;;  %v1034_v1 = vrot.slane %v10286_v31, 5  ;;  %v1022_v2 = vrot.slane %v1021_v51, 4  ;;  %v10287_v13 = vshrl.u32 %v8398_v57, 16  ;;  %7076 = vmatprep.subr.bf16.mxu1 %v7768_v36  ;;  %v9168_v18 = vld [vmem:[%s8026_s20 + $0xb4] sm:$0xf] }
  0x8a   : > { %v1017_v50 = vsel %vm8100_vm2, %v1012_v60, %v1016_v25  ;;  %7247 = vmatmul.mubr.bf16.gmra.mrb[24].mxu0 %v6391_v32  ;;  %v3487_v14 = vsel %vm8213_vm5, %v3485_v35, %v3486_v29  ;;  %v1048_v44 = vshll.u32 %v8833_v12, 16  ;;  %v1040_v57 = vrot.slane %v1038_v7, 5  ;;  %v8862_v32 = vld [vmem:[%s8026_s20 + $0x74] sm:$0x1]  ;;  %v8878_v29 = vld [vmem:[%s8026_s20 + $0x28] sm:$0xf] }
  0x8b   : > { %v1044_v49 = vrot.slane %v10287_v13, 4  ;;  %v1035_v39 = vor.u32 %v1034_v1, %v1031_v61  ;;  %7250 = vmatprep.mubr.bf16.mxu0 %v6392_v17  ;;  %v1027_v27 = vsel %vm8100_vm2, %v1022_v2, %v1026_v3  ;;  %v6466_v30 = vcombine.low %v8836_v43, %v8845_v55  ;;  %v8886_v1 = vld [vmem:[%s8026_s20 + $0x80] sm:$0x1]  ;;  %v8892_v13 = vld [vmem:[%s8026_s20 + $0x30] sm:$0xf] }
  0x8c   : > { %v6145_v19 = vcombine.low %v1017_v50, %v1027_v27  ;;  %v6393_v16 = vcombine.low %v3484_v37, %v3487_v14  ;;  %v1050_v3 = vrot.slane %v1048_v44, 5  ;;  %v10288_v6 = vshrl.u32 %v8405_v40, 16  ;;  %7077 = vmatpush3.bf16.msra.mxu1 %v7768_v36  ;;  %v8898_v44 = vld [vmem:[%s8026_s20 + $0x34] sm:$0xf]  ;;  %v9059_v2 = vld [vmem:[%s8026_s20 + $0x7c] sm:$0xf] }
  0x8d   : > { %v1036_v25 = vrot.slane %v1035_v39, 4  ;;  %v1045_v17 = vor.u32 %v1044_v49, %v1040_v57  ;;  %v10289_v60 = vshll.u32 %v8405_v40, 16  ;;  %v1062_v35 = vshll.u32 %v8411_v22, 16  ;;  %7110 = vmatprep.subr.bf16.mxu1 %v8871_v47 }
  0x8e   : > { %v1055_v59 = vrot.slane %v10288_v6, 4  ;;  %7043 = vmatmul.mubr.bf16.gmra.mrb[12].mxu1 %v6145_v19  ;;  %v10290_v28 = vshrl.u32 %v8411_v22, 16  ;;  %v1072_v31 = vshll.u32 %v8862_v32, 16  ;;  %v6467_v22 = vcombine.low %v8866_v10, %v8878_v29 }
  0x8f   : > { %v1058_v51 = vrot.slane %v10289_v60, 5  ;;  %v1041_v50 = vsel %vm8100_vm2, %v1036_v25, %v1040_v57  ;;  %v1046_v40 = vrot.slane %v1045_v17, 4  ;;  %v1064_v49 = vrot.slane %v1062_v35, 5 }
  0x90   : > { %v1068_v61 = vrot.slane %v10290_v28, 4  ;;  %v1074_v14 = vrot.slane %v1072_v31, 5  ;;  %v10291_v19 = vshrl.u32 %v8429_v0, 16  ;;  %v10292_v36 = vshll.u32 %v8429_v0, 16 }
  0x91   : > { %v1059_v7 = vor.u32 %v1058_v51, %v1055_v59  ;;  %v1051_v27 = vsel %vm8100_vm2, %v1046_v40, %v1050_v3  ;;  %v1086_v60 = vshll.u32 %v8432_v58, 16  ;;  %v10293_v51 = vshrl.u32 %v8432_v58, 16  ;;  %v8918_v58 = vld [vmem:[%s8026_s20 + $0x8c] sm:$0x1] }
  0x92   : > { %v1079_v25 = vrot.slane %v10291_v19, 4  ;;  %v1082_v17 = vrot.slane %v10292_v36, 5  ;;  %7251 = vmatmul.mubr.bf16.gmra.mrb[28].mxu0 %v6393_v16  ;;  %v6146_v6 = vcombine.low %v1041_v50, %v1051_v27  ;;  %v1069_v59 = vor.u32 %v1068_v61, %v1064_v49  ;;  %v8954_v19 = vld [vmem:[%s8026_s20 + $0x4c] sm:$0xf] }
  0x93   : > { %v1060_v57 = vrot.slane %v1059_v7, 4  ;;  %v1092_v35 = vrot.slane %v10293_v51, 4  ;;  %7270 = vmatprep.mubr.bf16.mxu0 %v6466_v30  ;;  %v1096_v40 = vshll.u32 %v8886_v1, 16  ;;  %v1088_v61 = vrot.slane %v1086_v60, 5  ;;  %v8921_v30 = vld [vmem:[%s8026_s20 + $0x3c] sm:$0xf] }
  0x94   : > { %v1083_v31 = vor.u32 %v1082_v17, %v1079_v25  ;;  %7046 = vmatprep.mubr.bf16.mxu1 %v6146_v6  ;;  %v1070_v16 = vrot.slane %v1069_v59, 4  ;;  %v6468_v50 = vcombine.low %v8892_v13, %v8898_v44  ;;  %v10294_v25 = vshrl.u32 %v8441_v45, 16  ;;  %v8932_v60 = vld [vmem:[%s8026_s20 + $0x40] sm:$0xf] }
  0x95   : > { %v1065_v0 = vsel %vm8100_vm2, %v1060_v57, %v1064_v49  ;;  %v1098_v27 = vrot.slane %v1096_v40, 5  ;;  %v1093_v57 = vor.u32 %v1092_v35, %v1088_v61  ;;  %v10295_v17 = vshll.u32 %v8441_v45, 16  ;;  %v8942_v35 = vld [vmem:[%s8026_s20 + $0x98] sm:$0x1] }
  0x96   : > { %v1084_v7 = vrot.slane %v1083_v31, 4  ;;  %v1103_v36 = vrot.slane %v10294_v25, 4  ;;  %v1075_v49 = vsel %vm8100_vm2, %v1070_v16, %v1074_v14  ;;  %v1110_v59 = vshll.u32 %v8444_v34, 16  ;;  %v7762_v14 = vld [vmem:[%s10215_s1 + $0x1c8] sm:$0xff]  }
  0x97   : > { %v1106_v6 = vrot.slane %v10295_v17, 5  ;;  %v6147_v51 = vcombine.low %v1065_v0, %v1075_v49  ;;  %v10296_v40 = vshrl.u32 %v8444_v34, 16  ;;  %v1120_v25 = vshll.u32 %v8918_v58, 16  ;;  %v8947_v49 = vld [vmem:[%s8026_s20 + $0x48] sm:$0xf] }
  0x98   : > { %v1089_v45 = vsel %vm8100_vm2, %v1084_v7, %v1088_v61  ;;  %v1094_v16 = vrot.slane %v1093_v57, 4  ;;  %v1112_v0 = vrot.slane %v1110_v59, 5  ;;  %v6469_v56 = vcombine.low %v8921_v30, %v8932_v60 }
  0x99   : > { %v1116_v20 = vrot.slane %v10296_v40, 4  ;;  %v1107_v17 = vor.u32 %v1106_v6, %v1103_v36  ;;  %7047 = vmatmul.mubr.bf16.gmra.mrb[16].mxu1 %v6147_v51  ;;  %v1122_v40 = vrot.slane %v1120_v25, 5  ;;  %v10297_v57 = vshrl.u32 %v8473_v4, 16 }
  0x9a   : > { %7271 = vmatmul.mubr.bf16.vlgmr.msra.gmra.mrb[0].mxu0 %v6467_v22  ;;  %v1099_v61 = vsel %vm8100_vm2, %v1094_v16, %v1098_v27  ;;  %v10298_v51 = vshll.u32 %v8473_v4, 16  ;;  %v1134_v31 = vshll.u32 %v8480_v53, 16  ;;  %v10299_v22 = vshrl.u32 %v8480_v53, 16 }
  0x9b   : > { %v1108_v7 = vrot.slane %v1107_v17, 4  ;;  %v1117_v36 = vor.u32 %v1116_v20, %v1112_v0  ;;  %v1127_v6 = vrot.slane %v10297_v57, 4  ;;  %7303 = vmatpush3.bf16.msra.mxu0 %v8722_v23  ;;  %v6148_v59 = vcombine.low %v1089_v45, %v1099_v61  ;;  %7274 = vmatprep.mubr.bf16.mxu0 %v6468_v50  ;;  %v7766_v50 = vld [vmem:[%s10215_s1 + $0x1d0] sm:$0xff]  }
  0x9c   : > { %v1130_v25 = vrot.slane %v10298_v51, 5  ;;  %v1140_v34 = vrot.slane %v10299_v22, 4  ;;  %7304 = vmatprep.subr.bf16.mxu0 %v7762_v14  ;;  %v1144_v23 = vshll.u32 %v8942_v35, 16  ;;  %v1136_v53 = vrot.slane %v1134_v31, 5  ;;  %v7770_v31 = vld [vmem:[%s10215_s1 + $0x1d8] sm:$0xff]  }
  0x9d   : > { %v1113_v27 = vsel %vm8100_vm2, %v1108_v7, %v1112_v0  ;;  %v1118_v20 = vrot.slane %v1117_v36, 4  ;;  %7050 = vmatprep.mubr.bf16.mxu1 %v6148_v59  ;;  %v6470_v17 = vcombine.low %v8947_v49, %v8954_v19  ;;  %v8977_v0 = vld [vmem:[%s8026_s20 + $0xa4] sm:$0x1]  ;;  %v10300_v57 = vshrl.u32 %v8494_v63, 16 }
  0x9e   : > { %v1131_v45 = vor.u32 %v1130_v25, %v1127_v6  ;;  %v1146_v7 = vrot.slane %v1144_v23, 5  ;;  %v1141_v25 = vor.u32 %v1140_v34, %v1136_v53  ;;  %v10301_v22 = vshll.u32 %v8494_v63, 16  ;;  %v9010_v23 = vld [vmem:[%s8026_s20 + $0x64] sm:$0xf] }
  0x9f   : > { %v1123_v61 = vsel %vm8100_vm2, %v1118_v20, %v1122_v40  ;;  %v1151_v59 = vrot.slane %v10300_v57, 4  ;;  %7305 = vmatpush3.bf16.msra.mxu0 %v7762_v14  ;;  %v8990_v20 = vld [vmem:[%s8026_s20 + $0x54] sm:$0xf]  ;;  %v1158_v36 = vshll.u32 %v8497_v8, 16  ;;  %v10302_v57 = vshrl.u32 %v8497_v8, 16 }
  0xa0   : > { %v6149_v6 = vcombine.low %v1113_v27, %v1123_v61  ;;  %v1132_v51 = vrot.slane %v1131_v45, 4  ;;  %v1154_v40 = vrot.slane %v10301_v22, 5  ;;  %v1168_v16 = vshll.u32 %v8977_v0, 16  ;;  %v8998_v27 = vld [vmem:[%s8026_s20 + $0x58] sm:$0xf]  ;;  %7306 = vmatprep.subr.bf16.mxu0 %v7766_v50 }
  0xa1   : > { %v1164_v4 = vrot.slane %v10302_v57, 4  ;;  %v9001_v14 = vld [vmem:[%s8026_s20 + $0xb0] sm:$0x1]  ;;  %v1142_v34 = vrot.slane %v1141_v25, 4  ;;  %v9007_v22 = vld [vmem:[%s8026_s20 + $0x60] sm:$0xf] }
  0xa2   : > { %7051 = vmatmul.mubr.bf16.gmra.mrb[20].mxu1 %v6149_v6  ;;  %v1137_v63 = vsel %vm8100_vm2, %v1132_v51, %v1136_v53  ;;  %v1155_v61 = vor.u32 %v1154_v40, %v1151_v59  ;;  %7275 = vmatmul.mubr.bf16.gmra.mrb[4].mxu0 %v6469_v56  ;;  %v1160_v8 = vrot.slane %v1158_v36, 5  ;;  %v1170_v57 = vrot.slane %v1168_v16, 5 }
  0xa3   : > { %v1147_v6 = vsel %vm8100_vm2, %v1142_v34, %v1146_v7  ;;  %7278 = vmatprep.mubr.bf16.mxu0 %v6470_v17  ;;  %7307 = vmatpush3.bf16.msra.mxu0 %v7766_v50  ;;  %v10303_v51 = vshrl.u32 %v8513_v24, 16  ;;  %v10304_v25 = vshll.u32 %v8513_v24, 16  ;;  %v1182_v36 = vshll.u32 %v8516_v33, 16  ;;  %v7774_v50 = vld [vmem:[%s10215_s1 + $0x1e0] sm:$0xff]   ;;  %v9044_v24 = vld [vmem:[%s8026_s20 + $0x70] sm:$0xf] }
  0xa4   : > { %v1156_v53 = vrot.slane %v1155_v61, 4  ;;  %v6150_v56 = vcombine.low %v1137_v63, %v1147_v6  ;;  %v1165_v16 = vor.u32 %v1164_v4, %v1160_v8  ;;  %v10305_v3 = vshrl.u32 %v8516_v33, 16  ;;  %7308 = vmatprep.subr.bf16.mxu0 %v7770_v31  ;;  %v9035_v61 = vld [vmem:[%s8026_s20 + $0xbc] sm:$0x1]  ;;  %v9038_v6 = vld [vmem:[%s8026_s20 + $0x6c] sm:$0xf] }
  0xa5   : > { %v1175_v59 = vrot.slane %v10303_v51, 4  ;;  %v1178_v40 = vrot.slane %v10304_v25, 5  ;;  %v6471_v17 = vcombine.low %v8990_v20, %v8998_v27  ;;  %v1192_v63 = vshll.u32 %v9001_v14, 16 }
  0xa6   : > { %v1188_v28 = vrot.slane %v10305_v3, 4  ;;  %7054 = vmatprep.mubr.bf16.mxu1 %v6150_v56  ;;  %v1161_v4 = vsel %vm8100_vm2, %v1156_v53, %v1160_v8  ;;  %v1166_v33 = vrot.slane %v1165_v16, 4  ;;  %v1184_v3 = vrot.slane %v1182_v36, 5 }
  0xa7   : > { %v1179_v7 = vor.u32 %v1178_v40, %v1175_v59  ;;  %v6472_v34 = vcombine.low %v9007_v22, %v9010_v23  ;;  %v1194_v25 = vrot.slane %v1192_v63, 5  ;;  %v10306_v40 = vshrl.u32 %v8535_v38, 16  ;;  %7309 = vmatpush3.bf16.msra.mxu0 %v7770_v31  ;;  %v9056_v31 = vld [vmem:[%s8026_s20 + $0x78] sm:$0xf]  ;;  %v9071_v63 = vld [vmem:[%s8026_s20 + $0x84] sm:$0xf] }
  0xa8   : > { %v1171_v8 = vsel %vm8100_vm2, %v1166_v33, %v1170_v57  ;;  %v1189_v53 = vor.u32 %v1188_v28, %v1184_v3  ;;  %v10307_v16 = vshll.u32 %v8535_v38, 16  ;;  %v1206_v45 = vshll.u32 %v8542_v11, 16  ;;  %7310 = vmatprep.subr.bf16.mxu0 %v7774_v50  ;;  %v7778_v38 = vld [vmem:[%s10215_s1 + $0x1e8] sm:$0xff]  }
  0xa9   : > { %v1180_v51 = vrot.slane %v1179_v7, 4  ;;  %v1199_v56 = vrot.slane %v10306_v40, 4  ;;  %v6151_v7 = vcombine.low %v1161_v4, %v1171_v8  ;;  %v10308_v59 = vshrl.u32 %v8542_v11, 16 }
  0xaa   : > { %v1202_v36 = vrot.slane %v10307_v16, 5  ;;  %v1216_v40 = vshll.u32 %v9035_v61, 16  ;;  %7279 = vmatmul.mubr.bf16.gmra.mrb[8].mxu0 %v6471_v17  ;;  %v1190_v57 = vrot.slane %v1189_v53, 4  ;;  %v1208_v11 = vrot.slane %v1206_v45, 5  ;;  %v9078_v53 = vld [vmem:[%s8026_s20 + $0x88] sm:$0xf] }
  0xab   : > { %v1212_v39 = vrot.slane %v10308_v59, 4  ;;  %v1185_v28 = vsel %vm8100_vm2, %v1180_v51, %v1184_v3  ;;  %7055 = vmatmul.mubr.bf16.gmra.mrb[24].mxu1 %v6151_v7  ;;  %7282 = vmatprep.mubr.bf16.mxu0 %v6472_v34  ;;  %v6473_v8 = vcombine.low %v9038_v6, %v9044_v24  ;;  %v10309_v51 = vld [vmem:[#allocation3_spill] sm:$0xff]  ;;  %v9134_v16 = vld [vmem:[%s8026_s20 + $0xa8] sm:$0xf]  ;;  %v1658_v33 = vrot.slane %v8684_v15, 5 }
  0xac   : > { %v1203_v4 = vor.u32 %v1202_v36, %v1199_v56  ;;  %v1218_v59 = vrot.slane %v1216_v40, 5  ;;  %v1195_v17 = vsel %vm8100_vm2, %v1190_v57, %v1194_v25  ;;  %v10310_v56 = vrot.slane %v10309_v51, 5  ;;  %7311 = vmatpush3.bf16.msra.mxu0 %v7774_v50  ;;  %v7782_v25 = vld [vmem:[%s10215_s1 + $0x1f0] sm:$0xff]   ;;  %10316 = vst [vmem:[#allocation8_spill] sm:$0xff] %v9134_v16 }
  0xad   : > { %v1213_v3 = vor.u32 %v1212_v39, %v1208_v11  ;;  %v6152_v34 = vcombine.low %v1185_v28, %v1195_v17  ;;  %v1630_v40 = vrot.slane %v8555_v5, 5  ;;  %7312 = vmatprep.subr.bf16.mxu0 %v7778_v38  ;;  %v6474_v50 = vcombine.low %v9056_v31, %v9059_v2  ;;  %v9116_v28 = vld [vmem:[%s8026_s20 + $0x94] sm:$0xf] }
  0xae   : > { %v1204_v37 = vrot.slane %v1203_v4, 4  ;;  %v1629_v45 = vrot.slane %v10310_v56, 4  ;;  %10314 = vst [vmem:[#allocation7_spill] sm:$0xff] %v9116_v28  ;;  %v7820_v36 = vld [vmem:[%s8026_s20 + $0x34] sm:$0xf]  ;;  %v1679_v46 = vrot.slane %v8799_v9, 5 }
  0xaf   : > { %v1214_v57 = vrot.slane %v1213_v3, 4  ;;  %7058 = vmatprep.mubr.bf16.mxu1 %v6152_v34  ;;  %v10311_v3 = vld [vmem:[#allocation5_spill] sm:$0xff]  ;;  %v9119_v34 = vld [vmem:[%s8026_s20 + $0x9c] sm:$0xf]  ;;  %v9182_v56 = vld [vmem:[%s8026_s20 + $0xc0] sm:$0xf] }
  0xb0   : > { %v1209_v39 = vsel %vm8100_vm2, %v1204_v37, %v1208_v11  ;;  %v1631_v5 = vsel %vm8213_vm5, %v1629_v45, %v1630_v40  ;;  %v1637_v37 = vrot.slane %v8572_v21, 5  ;;  %v9103_v45 = vld [vmem:[%s8026_s20 + $0x90] sm:$0xf]  ;;  %7313 = vmatpush3.bf16.msra.mxu0 %v7778_v38  ;;  %v7786_v40 = vld [vmem:[%s10215_s1 + $0x1f8] sm:$0xff]   ;;  %v10313_v21 = vld [vmem:[#allocation4_spill] sm:$0xff] }
  0xb1   : > { %v1219_v11 = vsel %vm8100_vm2, %v1214_v57, %v1218_v59  ;;  %v6194_v51 = vcombine.low %v10311_v3, %v1631_v5  ;;  %10312 = vst [vmem:[#allocation6_spill] sm:$0xff] %v9103_v45  ;;  %v7815_v59 = vld [vmem:[%s8026_s20 + $0x18] sm:$0xf]  ;;  %v7816_v5 = vld [vmem:[%s8026_s20 + $0x1c] sm:$0xf]  ;;  %7314 = vmatprep.subr.bf16.mxu0 %v7782_v25 }
  0xb2   : > { %v6153_v17 = vcombine.low %v1209_v39, %v1219_v11  ;;  %v9111_v4 = vsel %vm8213_vm5, %v10313_v21, %v1637_v37  ;;  %v6164_v57 = vrot.slane %v7815_v59, 9  ;;  %v1641_v3 = vrot.slane %v7816_v5, 5  ;;  %v9122_v38 = vld [vmem:[%s8026_s20 + $0xa0] sm:$0xf]  ;;  %7283 = vmatmul.mubr.bf16.gmra.mrb[12].mxu0 %v6473_v8  ;;  %v10315_v39 = vld [vmem:[#allocation9_spill] sm:$0xff] }
  0xb3   : > { %v6195_v11 = vcombine.low %v10315_v39, %v9111_v4  ;;  %v1644_v59 = vrot.slane %v8615_v42, 5  ;;  %7286 = vmatprep.mubr.bf16.mxu0 %v6474_v50  ;;  %v7817_v39 = vld [vmem:[%s8026_s20 + $0x24] sm:$0xf]  ;;  %v7818_v42 = vld [vmem:[%s8026_s20 + $0x28] sm:$0xf]  ;;  %v1651_v50 = vrot.slane %v8642_v26, 5 }
  0xb4   : > { %7059 = vmatmul.mubr.bf16.gmra.mrb[28].mxu1 %v6153_v17  ;;  %v1642_v5 = vsel %vm8213_vm5, %v6164_v57, %v1641_v3  ;;  %v1643_v7 = vrot.slane %v1641_v3, 4  ;;  %v6165_v21 = vrot.slane %v7817_v39, 9  ;;  %v1648_v17 = vrot.slane %v7818_v42, 5  ;;  %7315 = vmatpush3.bf16.msra.mxu0 %v7782_v25  ;;  %v9146_v4 = vld [vmem:[%s8026_s20 + $0xac] sm:$0xf]  ;;  %v9151_v26 = vld [vmem:[%s10215_s1 + $0x200] sm:$0xff]  }
  0xb5   : > { %7078 = vmatprep.mubr.bf16.mxu1 %v6194_v51  ;;  %10317 = vst [vmem:[#allocation10_spill] sm:$0xff] %v9146_v4  ;;  %7316 = vmatprep.subr.bf16.mxu0 %v7786_v40  ;;  %v6476_v25 = vcombine.low %v9103_v45, %v9116_v28  ;;  %v7819_v39 = vld [vmem:[%s8026_s20 + $0x30] sm:$0xf]  ;;  %v7776_v3 = vld [vmem:[%s10215_s1 + $0xc8] sm:$0xff]   ;;  %v1655_v37 = vrot.slane %v7820_v36, 5  ;;  %v1665_v36 = vrot.slane %v8734_v48, 5 }
  0xb6   : > { %v1645_v57 = vsel %vm8213_vm5, %v1643_v7, %v1644_v59  ;;  %v1650_v7 = vrot.slane %v1648_v17, 4  ;;  %v6166_v42 = vrot.slane %v7819_v39, 9  ;;  %v9160_v8 = vsel %vm8213_vm5, %v6165_v21, %v1648_v17  ;;  %v9171_v59 = vld [vmem:[%s8026_s20 + $0xb8] sm:$0xf]  ;;  %v9227_v48 = vld [vmem:[%s8026_s20 + $0xd0] sm:$0xf] }
  0xb7   : > { %v6196_v51 = vcombine.low %v1642_v5, %v1645_v57  ;;  %v7821_v57 = vld [vmem:[%s8026_s20 + $0x3c] sm:$0xf]  ;;  %v1657_v15 = vrot.slane %v1655_v37, 4  ;;  %v1686_v21 = vrot.slane %v8833_v12, 5  ;;  %v10324_v12 = vshrl.u32 %v8845_v55, 16 }
  0xb8   : > { %v9175_v5 = vsel %vm8213_vm5, %v1650_v7, %v1651_v50  ;;  %v6167_v39 = vrot.slane %v7821_v57, 9  ;;  %7317 = vmatpush3.bf16.msra.mxu0 %v7786_v40  ;;  %v1662_v50 = vrot.slane %v7822_v41, 5  ;;  %v10318_v7 = vcombine.low %v9071_v63, %v9078_v53  ;;  %v9199_v41 = vld [vmem:[%s8026_s20 + $0xc4] sm:$0xf] }
  0xb9   : > { %7350 = vmatprep.subr.bf16.mxu0 %v9151_v26  ;;  %v6197_v57 = vcombine.low %v9160_v8, %v9175_v5  ;;  %v1656_v40 = vsel %vm8213_vm5, %v6166_v42, %v1655_v37  ;;  %v9209_v42 = vld [vmem:[%s8026_s20 + $0xcc] sm:$0xf]  ;;  %v7826_v37 = vld [vmem:[%s8026_s20 + $0x58] sm:$0xf] }
  0xba   : > { %7287 = vmatmul.mubr.bf16.gmra.mrb[16].mxu0 %v10318_v7  ;;  %v1659_v7 = vsel %vm8213_vm5, %v1657_v15, %v1658_v33  ;;  %v9205_v17 = vsel %vm8213_vm5, %v6167_v39, %v1662_v50  ;;  %v1664_v8 = vrot.slane %v1662_v50, 4  ;;  %v7824_v5 = vld [vmem:[%s8026_s20 + $0x4c] sm:$0xf]  ;;  %v1672_v39 = vrot.slane %v8772_v52, 5 }
  0xbb   : > { %7290 = vmatprep.mubr.bf16.mxu0 %v6476_v25  ;;  %v1669_v33 = vrot.slane %v7824_v5, 5  ;;  %v6198_v15 = vcombine.low %v1656_v40, %v1659_v7  ;;  %v7825_v5 = vld [vmem:[%s8026_s20 + $0x54] sm:$0xf]  ;;  %v10320_v7 = vcombine.low %v9119_v34, %v9122_v38 }
  0xbc   : > { %7079 = vmatmul.mubr.bf16.vlgmr.msra.gmra.mrb[0].mxu1 %v6195_v11  ;;  %v7823_v11 = vld [vmem:[%s8026_s20 + $0x48] sm:$0xf]  ;;  %v9218_v50 = vsel %vm8213_vm5, %v1664_v8, %v1665_v36 }
  0xbd   : > { %7111 = vmatpush3.bf16.msra.mxu1 %v8871_v47  ;;  %7082 = vmatprep.mubr.bf16.mxu1 %v6196_v51  ;;  %v6168_v25 = vrot.slane %v7823_v11, 9  ;;  %v7780_v47 = vld [vmem:[%s10215_s1 + $0xd0] sm:$0xff]   ;;  %v1671_v40 = vrot.slane %v1669_v33, 4  ;;  %v6169_v51 = vrot.slane %v7825_v5, 9  ;;  %v1676_v11 = vrot.slane %v7826_v37, 5 }
  0xbe   : > { %7112 = vmatprep.subr.bf16.mxu1 %v7776_v3 }
  0xbf   : > { %v9235_v8 = vsel %vm8213_vm5, %v6168_v25, %v1669_v33  ;;  %v9242_v52 = vsel %vm8213_vm5, %v1671_v40, %v1672_v39  ;;  %v9249_v33 = vld [vmem:[%s8026_s20 + $0x20] sm:$0x1]  ;;  %v9253_v37 = vsel %vm8213_vm5, %v6169_v51, %v1676_v11  ;;  %v1678_v9 = vrot.slane %v1676_v11, 4  ;;  %v7828_v25 = vld [vmem:[%s8026_s20 + $0x64] sm:$0xf] }
  0xc0   : > { %10319 = vst [vmem:[#allocation3_spill] sm:$0xff] %v9249_v33  ;;  %v7827_v40 = vld [vmem:[%s8026_s20 + $0x60] sm:$0xf]  ;;  %v1683_v36 = vrot.slane %v7828_v25, 5  ;;  %v10321_v51 = vshrl.u32 %v8836_v43, 16  ;;  %v10322_v11 = vshll.u32 %v8836_v43, 16  ;;  %v10323_v39 = vcombine.low %v9134_v16, %v9146_v4 }
  0xc1   : > { %7113 = vmatpush3.bf16.msra.mxu1 %v7776_v3  ;;  %v7784_v3 = vld [vmem:[%s10215_s1 + $0xd8] sm:$0xff]   ;;  %v6170_v5 = vrot.slane %v7827_v40, 9  ;;  %v4351_v25 = vshll.u32 %v8845_v55, 16  ;;  %v4357_v40 = vrot.slane %v10324_v12, 4  ;;  %v6200_v43 = vcombine.low %v9235_v8, %v9242_v52 }
  0xc2   : > { %7114 = vmatprep.subr.bf16.mxu1 %v7780_v47  ;;  %7291 = vmatmul.mubr.bf16.gmra.mrb[20].mxu0 %v10320_v7  ;;  %v4344_v28 = vrot.slane %v10321_v51, 4  ;;  %v4347_v45 = vrot.slane %v10322_v11, 5  ;;  %v9274_v7 = vsel %vm8213_vm5, %v1678_v9, %v1679_v46  ;;  %v4361_v51 = vshll.u32 %v9249_v33, 16  ;;  %v7829_v11 = vld [vmem:[%s8026_s20 + $0x6c] sm:$0xf] }
  0xc3   : > { %7294 = vmatprep.mubr.bf16.mxu0 %v10323_v39  ;;  %v1685_v39 = vrot.slane %v1683_v36, 4  ;;  %v4353_v55 = vrot.slane %v4351_v25, 5  ;;  %v6171_v12 = vrot.slane %v7829_v11, 9  ;;  %v7830_v33 = vld [vmem:[%s8026_s20 + $0x70] sm:$0xf]  ;;  %v10327_v4 = vshrl.u32 %v8878_v29, 16 }
  0xc4   : > { %7083 = vmatmul.mubr.bf16.gmra.mrb[4].mxu1 %v6197_v57  ;;  %v9284_v57 = vsel %vm8213_vm5, %v6170_v5, %v1683_v36  ;;  %v4348_v46 = vor.u32 %v4347_v45, %v4344_v28  ;;  %v1693_v28 = vrot.slane %v8862_v32, 5  ;;  %v9299_v45 = vld [vmem:[%s8026_s20 + $0x2c] sm:$0x1]  ;;  %v10325_v36 = vshrl.u32 %v8866_v10, 16 }
  0xc5   : > { %7086 = vmatprep.mubr.bf16.mxu1 %v6198_v15  ;;  %7115 = vmatpush3.bf16.msra.mxu1 %v7780_v47  ;;  %v1690_v15 = vrot.slane %v7830_v33, 5  ;;  %v7787_v47 = vld [vmem:[%s10215_s1 + $0xe0] sm:$0xff]   ;;  %v9295_v52 = vsel %vm8213_vm5, %v1685_v39, %v1686_v21  ;;  %v4358_v25 = vor.u32 %v4357_v40, %v4353_v55  ;;  %v4363_v11 = vrot.slane %v4361_v51, 5  ;;  %v7831_v51 = vld [vmem:[%s8026_s20 + $0x78] sm:$0xf] }
  0xc6   : > { %7116 = vmatprep.subr.bf16.mxu1 %v7784_v3  ;;  %v4349_v8 = vrot.slane %v4348_v46, 4  ;;  %v4368_v5 = vrot.slane %v10325_v36, 4  ;;  %v10326_v32 = vshll.u32 %v8866_v10, 16  ;;  %v4375_v46 = vshll.u32 %v8878_v29, 16  ;;  %v7789_v10 = vld [vmem:[%s10215_s1 + $0xe8] sm:$0xff]  }
  0xc7   : > { %v1692_v9 = vrot.slane %v1690_v15, 4  ;;  %v9307_v21 = vsel %vm8213_vm5, %v6171_v12, %v1690_v15  ;;  %v4381_v36 = vrot.slane %v10327_v4, 4  ;;  %v4359_v16 = vrot.slane %v4358_v25, 4 }
  0xc8   : > { %v4371_v39 = vrot.slane %v10326_v32, 5  ;;  %v6172_v12 = vrot.slane %v7831_v51, 9  ;;  %v10328_v15 = vcombine.low %v9168_v18, %v9171_v59  ;;  %v4354_v29 = vsel %vm8100_vm2, %v4349_v8, %v4353_v55  ;;  %v9341_v8 = vld [vmem:[%s8026_s20 + $0x38] sm:$0x1] }
  0xc9   : > { %7117 = vmatpush3.bf16.msra.mxu1 %v7784_v3  ;;  %v9316_v40 = vsel %vm8213_vm5, %v1692_v9, %v1693_v28  ;;  %v4385_v3 = vshll.u32 %v9299_v45, 16  ;;  %v4377_v9 = vrot.slane %v4375_v46, 5  ;;  %v7832_v28 = vld [vmem:[%s8026_s20 + $0x7c] sm:$0xf]  ;;  %v10329_v32 = vcombine.low %v9205_v17, %v9218_v50  ;;  %10331 = vst [vmem:[#allocation5_spill] sm:$0xff] %v9341_v8 }
  0xca   : > { %7118 = vmatprep.subr.bf16.mxu1 %v7787_v47  ;;  %7295 = vmatmul.mubr.bf16.gmra.mrb[24].mxu0 %v10328_v15  ;;  %v4372_v4 = vor.u32 %v4371_v39, %v4368_v5  ;;  %v1697_v25 = vrot.slane %v7832_v28, 5  ;;  %v10330_v51 = vcombine.low %v9182_v56, %v9199_v41  ;;  %v4364_v33 = vsel %vm8100_vm2, %v4359_v16, %v4363_v11  ;;  %v7834_v15 = vld [vmem:[%s8026_s20 + $0x84] sm:$0xf] }
  0xcb   : > { %v1700_v55 = vrot.slane %v8886_v1, 5  ;;  %v10332_v5 = vshrl.u32 %v8892_v13, 16  ;;  %v4382_v50 = vor.u32 %v4381_v36, %v4377_v9  ;;  %v4387_v46 = vrot.slane %v4385_v3, 5 }
  0xcc   : > { %7087 = vmatmul.mubr.bf16.gmra.mrb[8].mxu1 %v10329_v32  ;;  %7298 = vmatprep.mubr.bf16.mxu0 %v10330_v51  ;;  %v4373_v17 = vrot.slane %v4372_v4, 4  ;;  %v9347_v28 = vsel %vm8213_vm5, %v6172_v12, %v1697_v25  ;;  %v1699_v16 = vrot.slane %v1697_v25, 4  ;;  %v10333_v11 = vshll.u32 %v8892_v13, 16  ;;  %v7833_v25 = vld [vmem:[%s8026_s20 + $0x88] sm:$0xf] }
  0xcd   : > { %v4392_v39 = vrot.slane %v10332_v5, 4  ;;  %7090 = vmatprep.mubr.bf16.mxu1 %v6200_v43  ;;  %7119 = vmatpush3.bf16.msra.mxu1 %v7787_v47  ;;  %v4399_v1 = vshll.u32 %v8898_v44, 16  ;;  %v10334_v51 = vshrl.u32 %v8898_v44, 16  ;;  %v7791_v43 = vld [vmem:[%s10215_s1 + $0xf0] sm:$0xff]   ;;  %v6506_v47 = vcombine.low %v4354_v29, %v4364_v33 }
  0xce   : > { %v4395_v32 = vrot.slane %v10333_v11, 5  ;;  %7120 = vmatprep.subr.bf16.mxu1 %v7789_v10  ;;  %v4378_v36 = vsel %vm8100_vm2, %v4373_v17, %v4377_v9  ;;  %v4383_v3 = vrot.slane %v4382_v50, 4  ;;  %v4409_v13 = vshll.u32 %v9341_v8, 16  ;;  %v9371_v17 = vld [vmem:[%s8026_s20 + $0x44] sm:$0x1] }
  0xcf   : > { %v4405_v5 = vrot.slane %v10334_v51, 4  ;;  %v9362_v12 = vsel %vm8213_vm5, %v1699_v16, %v1700_v55  ;;  %v4401_v4 = vrot.slane %v4399_v1, 5  ;;  %v1704_v11 = vrot.slane %v7833_v25, 5  ;;  %v7793_v16 = vld [vmem:[%s10215_s1 + $0xf8] sm:$0xff]  }
  0xd0   : > { %v4396_v44 = vor.u32 %v4395_v32, %v4392_v39  ;;  %v4388_v51 = vsel %vm8100_vm2, %v4383_v3, %v4387_v46  ;;  %v6204_v33 = vcombine.low %v9347_v28, %v9362_v12  ;;  %v4411_v29 = vrot.slane %v4409_v13, 5 }
  0xd1   : > { %v6173_v9 = vrot.slane %v7834_v15, 9  ;;  %7121 = vmatpush3.bf16.msra.mxu1 %v7789_v10  ;;  %v6507_v50 = vcombine.low %v4378_v36, %v4388_v51  ;;  %v4406_v55 = vor.u32 %v4405_v5, %v4401_v4  ;;  %v1707_v39 = vrot.slane %v8918_v58, 5 }
  0xd2   : > { %v4397_v8 = vrot.slane %v4396_v44, 4  ;;  %7122 = vmatprep.subr.bf16.mxu1 %v7791_v43  ;;  %v10335_v46 = vcombine.low %v9209_v42, %v9227_v48  ;;  %v1706_v32 = vrot.slane %v1704_v11, 4  ;;  %v10336_v15 = vshrl.u32 %v8921_v30, 16 }
  0xd3   : > { %v10337_v10 = vshll.u32 %v8921_v30, 16  ;;  %v4423_v5 = vshll.u32 %v8932_v60, 16  ;;  %v10338_v58 = vcombine.low %v9253_v37, %v9274_v7  ;;  %v4407_v13 = vrot.slane %v4406_v55, 4 }
  0xd4   : > { %7299 = vmatmul.mubr.bf16.gmra.mrb[28].mxu0 %v10335_v46  ;;  %v4416_v1 = vrot.slane %v10336_v15, 4  ;;  %v4402_v3 = vsel %vm8100_vm2, %v4397_v8, %v4401_v4  ;;  %v10339_v44 = vshrl.u32 %v8932_v60, 16  ;;  %v4433_v51 = vshll.u32 %v9371_v17, 16 }
  0xd5   : > { %v4419_v36 = vrot.slane %v10337_v10, 5  ;;  %7091 = vmatmul.mubr.bf16.gmra.mrb[12].mxu1 %v10338_v58  ;;  %7318 = vmatprep.mubr.bf16.mxu0 %v6506_v47  ;;  %v10340_v30 = vcombine.low %v9284_v57, %v9295_v52  ;;  %v9398_v46 = vsel %vm8213_vm5, %v6173_v9, %v1704_v11  ;;  %v4425_v7 = vrot.slane %v4423_v5, 5  ;;  %v7835_v47 = vld [vmem:[%s8026_s20 + $0x90] sm:$0xf]  ;;  %v7836_v57 = vld [vmem:[%s8026_s20 + $0x94] sm:$0xf] }
  0xd6   : > { %v4429_v25 = vrot.slane %v10339_v44, 4  ;;  %v6174_v15 = vrot.slane %v7835_v47, 9  ;;  %7123 = vmatpush3.bf16.msra.mxu1 %v7791_v43  ;;  %v4412_v60 = vsel %vm8100_vm2, %v4407_v13, %v4411_v29  ;;  %v9405_v8 = vsel %vm8213_vm5, %v1706_v32, %v1707_v39  ;;  %v9410_v10 = vld [vmem:[%s8026_s20 + $0x50] sm:$0x1] }
  0xd7   : > { %7094 = vmatprep.mubr.bf16.mxu1 %v10340_v30  ;;  %v4420_v37 = vor.u32 %v4419_v36, %v4416_v1  ;;  %v4435_v4 = vrot.slane %v4433_v51, 5  ;;  %v1711_v52 = vrot.slane %v7836_v57, 5  ;;  %7124 = vmatprep.subr.bf16.mxu1 %v7793_v16  ;;  %v6508_v55 = vcombine.low %v4402_v3, %v4412_v60  ;;  %v7839_v60 = vld [vmem:[%s8026_s20 + $0xa0] sm:$0xf] }
  0xd8   : > { %v4430_v9 = vor.u32 %v4429_v25, %v4425_v7  ;;  %v1714_v1 = vrot.slane %v8942_v35, 5  ;;  %v10341_v39 = vshrl.u32 %v8947_v49, 16  ;;  %v10342_v36 = vshll.u32 %v8947_v49, 16  ;;  %v7790_v25 = vld [vmem:[%s10215_s1 + $0x208] sm:$0xff]  }
  0xd9   : > { %v4421_v11 = vrot.slane %v4420_v37, 4  ;;  %v9414_v43 = vsel %vm8213_vm5, %v6174_v15, %v1711_v52  ;;  %v1713_v29 = vrot.slane %v1711_v52, 4  ;;  %v4447_v35 = vshll.u32 %v8954_v19, 16  ;;  %v7837_v37 = vld [vmem:[%s8026_s20 + $0x9c] sm:$0xf] }
  0xda   : > { %v4440_v32 = vrot.slane %v10341_v39, 4  ;;  %v4443_v5 = vrot.slane %v10342_v36, 5  ;;  %v4431_v3 = vrot.slane %v4430_v9, 4  ;;  %v10343_v13 = vshrl.u32 %v8954_v19, 16  ;;  %7125 = vmatpush3.bf16.msra.mxu1 %v7793_v16  ;;  %v9437_v19 = vld [vmem:[%s10215_s1 + $0x100] sm:$0xff]  }
  0xdb   : > { %v4426_v58 = vsel %vm8100_vm2, %v4421_v11, %v4425_v7  ;;  %v9430_v51 = vsel %vm8213_vm5, %v1713_v29, %v1714_v1  ;;  %v4457_v30 = vshll.u32 %v9410_v10, 16  ;;  %v6175_v7 = vrot.slane %v7837_v37, 9  ;;  %7398 = vmatprep.subr.bf16.mxu1 %v9437_v19 }
  0xdc   : > { %v4453_v44 = vrot.slane %v10343_v13, 4  ;;  %v4444_v49 = vor.u32 %v4443_v5, %v4440_v32  ;;  %7319 = vmatmul.mubr.bf16.vlgmr.msra.gmra.mrb[0].mxu0 %v6507_v50  ;;  %v6205_v16 = vcombine.low %v9398_v46, %v9405_v8  ;;  %v4436_v47 = vsel %vm8100_vm2, %v4431_v3, %v4435_v4  ;;  %v9453_v46 = vld [vmem:[%s8026_s20 + $0x5c] sm:$0x1]  ;;  %v7840_v5 = vld [vmem:[%s8026_s20 + $0xa8] sm:$0xf] }
  0xdd   : > { %v4449_v15 = vrot.slane %v4447_v35, 5  ;;  %v1718_v57 = vrot.slane %v7839_v60, 5  ;;  %v10344_v52 = vcombine.low %v9307_v21, %v9316_v40  ;;  %7351 = vmatpush3.bf16.msra.mxu0 %v9151_v26  ;;  %v6509_v11 = vcombine.low %v4426_v58, %v4436_v47  ;;  %7322 = vmatprep.mubr.bf16.mxu0 %v6508_v55  ;;  %v7841_v13 = vld [vmem:[%s8026_s20 + $0xac] sm:$0xf] }
  0xde   : > { %v6206_v9 = vcombine.low %v9414_v43, %v9430_v51  ;;  %v4445_v50 = vrot.slane %v4444_v49, 4  ;;  %v1721_v1 = vrot.slane %v8977_v0, 5  ;;  %v4459_v21 = vrot.slane %v4457_v30, 5  ;;  %v7792_v43 = vld [vmem:[%s10215_s1 + $0x210] sm:$0xff]   ;;  %7352 = vmatprep.subr.bf16.mxu0 %v7790_v25  ;;  %v9485_v30 = vld [vmem:[%s8026_s20 + $0x68] sm:$0x1] }
  0xdf   : > { %7095 = vmatmul.mubr.bf16.gmra.mrb[16].mxu1 %v10344_v52  ;;  %v4454_v8 = vor.u32 %v4453_v44, %v4449_v15  ;;  %v1720_v40 = vrot.slane %v1718_v57, 4  ;;  %v10345_v26 = vshrl.u32 %v8990_v20, 16  ;;  %v9465_v0 = vsel %vm8213_vm5, %v6175_v7, %v1718_v57  ;;  %v7794_v57 = vld [vmem:[%s10215_s1 + $0x218] sm:$0xff]  }
  0xe0   : > { %7098 = vmatprep.mubr.bf16.mxu1 %v6204_v33  ;;  %v10346_v28 = vshll.u32 %v8990_v20, 16  ;;  %v4471_v33 = vshll.u32 %v8998_v27, 16  ;;  %v10347_v55 = vshrl.u32 %v8998_v27, 16  ;;  %v4450_v39 = vsel %vm8100_vm2, %v4445_v50, %v4449_v15 }
  0xe1   : > { %v4464_v4 = vrot.slane %v10345_v26, 4  ;;  %v4455_v32 = vrot.slane %v4454_v8, 4  ;;  %v4481_v36 = vshll.u32 %v9453_v46, 16  ;;  %v6176_v58 = vrot.slane %v7840_v5, 9  ;;  %7353 = vmatpush3.bf16.msra.mxu0 %v7790_v25 }
  0xe2   : > { %v4467_v12 = vrot.slane %v10346_v28, 5  ;;  %v4477_v29 = vrot.slane %v10347_v55, 4  ;;  %v9478_v3 = vsel %vm8213_vm5, %v1720_v40, %v1721_v1  ;;  %v4473_v35 = vrot.slane %v4471_v33, 5  ;;  %7354 = vmatprep.subr.bf16.mxu0 %v7792_v43  ;;  %v7843_v55 = vld [vmem:[%s8026_s20 + $0xb4] sm:$0xf] }
  0xe3   : > { %v1725_v44 = vrot.slane %v7841_v13, 5  ;;  %v4460_v27 = vsel %vm8100_vm2, %v4455_v32, %v4459_v21  ;;  %v4483_v51 = vrot.slane %v4481_v36, 5  ;;  %v1728_v49 = vrot.slane %v9001_v14, 5  ;;  %v9512_v32 = vld [vmem:[%s8026_s20 + $0x74] sm:$0x1] }
  0xe4   : > { %v4468_v20 = vor.u32 %v4467_v12, %v4464_v4  ;;  %v10348_v37 = vshrl.u32 %v9007_v22, 16  ;;  %v6510_v7 = vcombine.low %v4450_v39, %v4460_v27  ;;  %v4478_v15 = vor.u32 %v4477_v29, %v4473_v35  ;;  %7323 = vmatmul.mubr.bf16.gmra.mrb[4].mxu0 %v6509_v11  ;;  %v7842_v12 = vld [vmem:[%s8026_s20 + $0xb8] sm:$0xf] }
  0xe5   : > { %v1726_v60 = vsel %vm8213_vm5, %v6176_v58, %v1725_v44  ;;  %v1727_v52 = vrot.slane %v1725_v44, 4  ;;  %v10349_v14 = vshll.u32 %v9007_v22, 16  ;;  %v4495_v1 = vshll.u32 %v9010_v23, 16  ;;  %7355 = vmatpush3.bf16.msra.mxu0 %v7792_v43 }
  0xe6   : > { %v4488_v25 = vrot.slane %v10348_v37, 4  ;;  %v4469_v47 = vrot.slane %v4468_v20, 4  ;;  %v10350_v8 = vshrl.u32 %v9010_v23, 16  ;;  %7326 = vmatprep.mubr.bf16.mxu0 %v6510_v7  ;;  %v6207_v40 = vcombine.low %v9465_v0, %v9478_v3  ;;  %7356 = vmatprep.subr.bf16.mxu0 %v7794_v57 }
  0xe7   : > { %v4491_v50 = vrot.slane %v10349_v14, 5  ;;  %7099 = vmatmul.mubr.bf16.gmra.mrb[20].mxu1 %v6205_v16  ;;  %v4479_v26 = vrot.slane %v4478_v15, 4  ;;  %v4505_v4 = vshll.u32 %v9485_v30, 16  ;;  %v1729_v22 = vsel %vm8213_vm5, %v1727_v52, %v1728_v49  ;;  %v7800_v52 = vld [vmem:[%s10215_s1 + $0x228] sm:$0xff]  }
  0xe8   : > { %v4501_v21 = vrot.slane %v10350_v8, 4  ;;  %v4474_v11 = vsel %vm8100_vm2, %v4469_v47, %v4473_v35  ;;  %7102 = vmatprep.mubr.bf16.mxu1 %v6206_v9  ;;  %v4497_v28 = vrot.slane %v4495_v1, 5  ;;  %v1732_v16 = vrot.slane %v7842_v12, 5  ;;  %v7797_v9 = vld [vmem:[%s10215_s1 + $0x220] sm:$0xff]   ;;  %v7844_v14 = vld [vmem:[%s8026_s20 + $0xc] sm:$0xf] }
  0xe9   : > { %v4492_v23 = vor.u32 %v4491_v50, %v4488_v25  ;;  %v4484_v33 = vsel %vm8100_vm2, %v4479_v26, %v4483_v51  ;;  %v6208_v0 = vcombine.low %v1726_v60, %v1729_v22  ;;  %v6177_v29 = vrot.slane %v7843_v55, 9  ;;  %7357 = vmatpush3.bf16.msra.mxu0 %v7794_v57  ;;  %v9532_v60 = vld [vmem:[%s8026_s20 + $0x80] sm:$0x1]  ;;  %v7845_v50 = vld [vmem:[%s8026_s20 + $0x10] sm:$0xf] }
  0xea   : > { %v1735_v39 = vrot.slane %v9035_v61, 5  ;;  %v6511_v43 = vcombine.low %v4474_v11, %v4484_v33  ;;  %v4502_v5 = vor.u32 %v4501_v21, %v4497_v28  ;;  %v4507_v58 = vrot.slane %v4505_v4, 5  ;;  %7358 = vmatprep.subr.bf16.mxu0 %v7797_v9 }
  0xeb   : > { %v4493_v36 = vrot.slane %v4492_v23, 4  ;;  %v1734_v3 = vrot.slane %v1732_v16, 4  ;;  %v10351_v20 = vshrl.u32 %v9038_v6, 16  ;;  %v10352_v13 = vshll.u32 %v9038_v6, 16 }
  0xec   : > { %v4519_v61 = vshll.u32 %v9044_v24, 16  ;;  %v4503_v51 = vrot.slane %v4502_v5, 4  ;;  %v10353_v49 = vshrl.u32 %v9044_v24, 16  ;;  %v4529_v25 = vshll.u32 %v9512_v32, 16  ;;  %7327 = vmatmul.mubr.bf16.gmra.mrb[8].mxu0 %v6511_v43 }
  0xed   : > { %v4512_v35 = vrot.slane %v10351_v20, 4  ;;  %v4515_v44 = vrot.slane %v10352_v13, 5  ;;  %v4498_v27 = vsel %vm8100_vm2, %v4493_v36, %v4497_v28  ;;  %v1733_v7 = vsel %vm8213_vm5, %v6177_v29, %v1732_v16  ;;  %v9550_v29 = vld [vmem:[%s8026_s20 + $0x8c] sm:$0x1]  ;;  %7359 = vmatpush3.bf16.msra.mxu0 %v7797_v9 }
  0xee   : > { %v4525_v37 = vrot.slane %v10353_v49, 4  ;;  %v1736_v6 = vsel %vm8213_vm5, %v1734_v3, %v1735_v39  ;;  %v4521_v15 = vrot.slane %v4519_v61, 5  ;;  %v4508_v24 = vsel %vm8100_vm2, %v4503_v51, %v4507_v58  ;;  %7360 = vmatprep.subr.bf16.mxu0 %v7800_v52 }
  0xef   : > { %v4516_v47 = vor.u32 %v4515_v44, %v4512_v35  ;;  %v4531_v57 = vrot.slane %v4529_v25, 5  ;;  %v6282_v1 = vcombine.low %v7844_v14, %v7845_v50  ;;  %v10354_v8 = vshrl.u32 %v9056_v31, 16  ;;  %7103 = vmatmul.mubr.bf16.gmra.mrb[24].mxu1 %v6207_v40  ;;  %v9568_v25 = vld [vmem:[%s8026_s20 + $0x98] sm:$0x1] }
  0xf0   : > { %v6512_v11 = vcombine.low %v4498_v27, %v4508_v24  ;;  %v4526_v4 = vor.u32 %v4525_v37, %v4521_v15  ;;  %v10355_v22 = vshll.u32 %v9056_v31, 16  ;;  %7106 = vmatprep.mubr.bf16.mxu1 %v6208_v0  ;;  %v6209_v28 = vcombine.low %v1733_v7, %v1736_v6  ;;  %v7806_v24 = vld [vmem:[%s10215_s1 + $0x238] sm:$0xff]  }
  0xf1   : > { %v4536_v21 = vrot.slane %v10354_v8, 4  ;;  %v4517_v26 = vrot.slane %v4516_v47, 4  ;;  %v4543_v12 = vshll.u32 %v9059_v2, 16  ;;  %v10356_v16 = vshrl.u32 %v9059_v2, 16  ;;  %v7803_v2 = vld [vmem:[%s10215_s1 + $0x230] sm:$0xff]   ;;  %7361 = vmatpush3.bf16.msra.mxu0 %v7800_v52  ;;  %v10360_v47 = vld [vmem:[#allocation6_spill] sm:$0xff] }
  0xf2   : > { %v4539_v23 = vrot.slane %v10355_v22, 5  ;;  %v4553_v55 = vshll.u32 %v9532_v60, 16  ;;  %7330 = vmatprep.mubr.bf16.mxu0 %v6512_v11  ;;  %v4527_v39 = vrot.slane %v4526_v4, 4  ;;  %v10357_v31 = vshrl.u32 %v9071_v63, 16  ;;  %7362 = vmatprep.subr.bf16.mxu0 %v7803_v2  ;;  %v7847_v11 = vld [vmem:[%s8026_s20 + $0x1c] sm:$0xf] }
  0xf3   : > { %v4549_v33 = vrot.slane %v10356_v16, 4  ;;  %v4522_v40 = vsel %vm8100_vm2, %v4517_v26, %v4521_v15  ;;  %v4545_v36 = vrot.slane %v4543_v12, 5  ;;  %v10358_v58 = vshll.u32 %v9071_v63, 16  ;;  %v10363_v4 = vld [vmem:[#allocation7_spill] sm:$0xff] }
  0xf4   : > { %v4540_v43 = vor.u32 %v4539_v23, %v4536_v21  ;;  %v4560_v0 = vrot.slane %v10357_v31, 4  ;;  %v4555_v5 = vrot.slane %v4553_v55, 5  ;;  %v4567_v3 = vshll.u32 %v9078_v53, 16  ;;  %v7846_v21 = vld [vmem:[%s8026_s20 + $0x18] sm:$0xf] }
  0xf5   : > { %v4563_v9 = vrot.slane %v10358_v58, 5  ;;  %v4532_v20 = vsel %vm8100_vm2, %v4527_v39, %v4531_v57  ;;  %v10359_v13 = vshrl.u32 %v9078_v53, 16  ;;  %v4577_v61 = vshll.u32 %v9550_v29, 16  ;;  %7363 = vmatpush3.bf16.msra.mxu0 %v7803_v2 }
  0xf6   : > { %v4541_v35 = vrot.slane %v4540_v43, 4  ;;  %v6513_v27 = vcombine.low %v4522_v40, %v4532_v20  ;;  %v4550_v51 = vor.u32 %v4549_v33, %v4545_v36  ;;  %v4569_v37 = vrot.slane %v4567_v3, 5  ;;  %7364 = vmatprep.subr.bf16.mxu0 %v7806_v24 }
  0xf7   : > { %v4573_v44 = vrot.slane %v10359_v13, 4  ;;  %v4564_v49 = vor.u32 %v4563_v9, %v4560_v0  ;;  %v4715_v63 = vshrl.u32 %v9227_v48, 16  ;;  %v4579_v6 = vrot.slane %v4577_v61, 5  ;;  %7107 = vmatmul.mubr.bf16.gmra.mrb[28].mxu1 %v6209_v28  ;;  %v9591_v28 = vld [vmem:[%s8026_s20 + $0xa4] sm:$0x1] }
  0xf8   : > { %v4546_v7 = vsel %vm8100_vm2, %v4541_v35, %v4545_v36  ;;  %v10361_v53 = vshrl.u32 %v10360_v47, 16  ;;  %7331 = vmatmul.mubr.bf16.gmra.mrb[12].mxu0 %v6513_v27  ;;  %v4551_v57 = vrot.slane %v4550_v51, 4  ;;  %v10362_v52 = vshll.u32 %v10360_v47, 16  ;;  %7126 = vmatprep.mubr.bf16.mxu1 %v6282_v1  ;;  %v7848_v27 = vld [vmem:[%s8026_s20 + $0x24] sm:$0xf] }
  0xf9   : > { %v4565_v14 = vrot.slane %v4564_v49, 4  ;;  %v4574_v50 = vor.u32 %v4573_v44, %v4569_v37  ;;  %v6283_v26 = vcombine.low %v7846_v21, %v7847_v11  ;;  %v4591_v22 = vshll.u32 %v10363_v4, 16  ;;  %v7849_v51 = vld [vmem:[%s8026_s20 + $0x28] sm:$0xf]  ;;  %7365 = vmatpush3.bf16.msra.mxu0 %v7806_v24  ;;  %v10371_v21 = vld [vmem:[#allocation10_spill] sm:$0xff] }
  0xfa   : > { %v4584_v15 = vrot.slane %v10361_v53, 4  ;;  %v4587_v8 = vrot.slane %v10362_v52, 5  ;;  %v10364_v23 = vshrl.u32 %v10363_v4, 16  ;;  %v4601_v16 = vshll.u32 %v9568_v25, 16 }
  0xfb   : > { %v4556_v33 = vsel %vm8100_vm2, %v4551_v57, %v4555_v5  ;;  %v4570_v55 = vsel %vm8100_vm2, %v4565_v14, %v4569_v37  ;;  %v4575_v40 = vrot.slane %v4574_v50, 4  ;;  %v4593_v31 = vrot.slane %v4591_v22, 5 }
  0xfc   : > { %v4597_v12 = vrot.slane %v10364_v23, 4  ;;  %v4588_v39 = vor.u32 %v4587_v8, %v4584_v15  ;;  %v6514_v43 = vcombine.low %v4546_v7, %v4556_v33  ;;  %v4603_v0 = vrot.slane %v4601_v16, 5  ;;  %v10368_v15 = vld [vmem:[#allocation8_spill] sm:$0xff]  ;;  %v7850_v23 = vld [vmem:[%s8026_s20 + $0x30] sm:$0xf] }
  0xfd   : > { %v10365_v36 = vshrl.u32 %v9119_v34, 16  ;;  %v4580_v1 = vsel %vm8100_vm2, %v4575_v40, %v4579_v6  ;;  %v10366_v9 = vshll.u32 %v9119_v34, 16  ;;  %v4615_v20 = vshll.u32 %v9122_v38, 16  ;;  %v9608_v6 = vld [vmem:[%s8026_s20 + $0xb0] sm:$0x1] }
  0xfe   : > { %v4589_v5 = vrot.slane %v4588_v39, 4  ;;  %7334 = vmatprep.mubr.bf16.mxu0 %v6514_v43  ;;  %v6515_v2 = vcombine.low %v4570_v55, %v4580_v1  ;;  %v4598_v35 = vor.u32 %v4597_v12, %v4593_v31  ;;  %v10367_v13 = vshrl.u32 %v9122_v38, 16  ;;  %v7851_v12 = vld [vmem:[%s8026_s20 + $0x34] sm:$0xf] }
  0xff   : > { %v4608_v58 = vrot.slane %v10365_v36, 4  ;;  %v4611_v3 = vrot.slane %v10366_v9, 5  ;;  %v4625_v61 = vshll.u32 %v9591_v28, 16  ;;  %v6284_v49 = vcombine.low %v7848_v27, %v7849_v51  ;;  %7127 = vmatmul.mubr.bf16.vlgmr.msra.gmra.mrb[0].mxu1 %v6283_v26  ;;  %v7854_v27 = vld [vmem:[%s8026_s20 + $0x40] sm:$0xf] }
 0x100   : > { %v4621_v44 = vrot.slane %v10367_v13, 4  ;;  %v4594_v37 = vsel %vm8100_vm2, %v4589_v5, %v4593_v31  ;;  %v4617_v34 = vrot.slane %v4615_v20, 5  ;;  %v4599_v47 = vrot.slane %v4598_v35, 4  ;;  %7335 = vmatmul.mubr.bf16.gmra.mrb[16].mxu0 %v6515_v2  ;;  %7406 = vmatpush3.bf16.msra.mxu1 %v9437_v19  ;;  %v9626_v31 = vld [vmem:[%s8026_s20 + $0xbc] sm:$0x1] }
 0x101   : > { %v4612_v7 = vor.u32 %v4611_v3, %v4608_v58  ;;  %v4627_v53 = vrot.slane %v4625_v61, 5  ;;  %v10369_v38 = vshrl.u32 %v10368_v15, 16  ;;  %v10370_v14 = vshll.u32 %v10368_v15, 16  ;;  %7130 = vmatprep.mubr.bf16.mxu1 %v6284_v49  ;;  %v7853_v61 = vld [vmem:[%s8026_s20 + $0x3c] sm:$0xf]  ;;  %v7855_v15 = vld [vmem:[%s10215_s1 + $0x110] sm:$0xff]  }
 0x102   : > { %v4622_v8 = vor.u32 %v4621_v44, %v4617_v34  ;;  %v4639_v11 = vshll.u32 %v10371_v21, 16  ;;  %v10372_v4 = vshrl.u32 %v10371_v21, 16  ;;  %v4604_v24 = vsel %vm8100_vm2, %v4599_v47, %v4603_v0  ;;  %v7852_v0 = vld [vmem:[%s10215_s1 + $0x108] sm:$0xff]  }
 0x103   : > { %v4632_v57 = vrot.slane %v10369_v38, 4  ;;  %v4635_v50 = vrot.slane %v10370_v14, 5  ;;  %v4613_v52 = vrot.slane %v4612_v7, 4  ;;  %v6285_v16 = vcombine.low %v7850_v23, %v7851_v12  ;;  %7399 = vmatprep.subr.bf16.mxu1 %v7852_v0  ;;  %v9644_v7 = vld [vmem:[%s8026_s20 + $0xc8] sm:$0x1] }
 0x104   : > { %v4645_v22 = vrot.slane %v10372_v4, 4  ;;  %v4649_v55 = vshll.u32 %v9608_v6, 16  ;;  %v6516_v40 = vcombine.low %v4594_v37, %v4604_v24  ;;  %v4623_v43 = vrot.slane %v4622_v8, 4  ;;  %7407 = vmatpush3.bf16.msra.mxu1 %v7852_v0  ;;  %v9662_v24 = vld [vmem:[%s8026_s20 + $0x80] sm:$0x1] }
 0x105   : > { %v4636_v33 = vor.u32 %v4635_v50, %v4632_v57  ;;  %v4618_v39 = vsel %vm8100_vm2, %v4613_v52, %v4617_v34  ;;  %v4641_v26 = vrot.slane %v4639_v11, 5  ;;  %v10373_v19 = vshrl.u32 %v9168_v18, 16  ;;  %7400 = vmatprep.subr.bf16.mxu1 %v7855_v15 }
 0x106   : > { %v4651_v58 = vrot.slane %v4649_v55, 5  ;;  %v10374_v5 = vshll.u32 %v9168_v18, 16  ;;  %7338 = vmatprep.mubr.bf16.mxu0 %v6516_v40  ;;  %v4628_v3 = vsel %vm8100_vm2, %v4623_v43, %v4627_v53  ;;  %v4663_v2 = vshll.u32 %v9171_v59, 16  ;;  %v9666_v55 = vld [vmem:[%s8026_s20 + $0xd4] sm:$0x1] }
 0x107   : > { %v4637_v36 = vrot.slane %v4636_v33, 4  ;;  %v4656_v1 = vrot.slane %v10373_v19, 4  ;;  %v4646_v20 = vor.u32 %v4645_v22, %v4641_v26  ;;  %v10375_v35 = vshrl.u32 %v9171_v59, 16  ;;  %7131 = vmatmul.mubr.bf16.gmra.mrb[4].mxu1 %v6285_v16 }
 0x108   : > { %v4659_v9 = vrot.slane %v10374_v5, 5  ;;  %v6517_v44 = vcombine.low %v4618_v39, %v4628_v3  ;;  %v6286_v51 = vcombine.low %v7853_v61, %v7854_v27  ;;  %v4673_v37 = vshll.u32 %v9626_v31, 16  ;;  %7408 = vmatpush3.bf16.msra.mxu1 %v7855_v15  ;;  %v7858_v5 = vld [vmem:[%s8026_s20 + $0x48] sm:$0xf]  ;;  %v7860_v27 = vld [vmem:[%s8026_s20 + $0x54] sm:$0xf] }
 0x109   : > { %v4669_v13 = vrot.slane %v10375_v35, 4  ;;  %v4642_v18 = vsel %vm8100_vm2, %v4637_v36, %v4641_v26  ;;  %v4647_v34 = vrot.slane %v4646_v20, 4  ;;  %v4665_v47 = vrot.slane %v4663_v2, 5  ;;  %v7857_v36 = vld [vmem:[%s10215_s1 + $0x118] sm:$0xff]  }
 0x10a   : > { %v4660_v49 = vor.u32 %v4659_v9, %v4656_v1  ;;  %v10376_v53 = vshrl.u32 %v9182_v56, 16  ;;  %v4675_v57 = vrot.slane %v4673_v37, 5  ;;  %v10377_v14 = vshll.u32 %v9182_v56, 16  ;;  %7339 = vmatmul.mubr.bf16.gmra.mrb[20].mxu0 %v6517_v44  ;;  %7134 = vmatprep.mubr.bf16.mxu1 %v6286_v51  ;;  %v7859_v9 = vld [vmem:[%s8026_s20 + $0x4c] sm:$0xf] }
 0x10b   : > { %v4687_v52 = vshll.u32 %v9199_v41, 16  ;;  %v4652_v8 = vsel %vm8100_vm2, %v4647_v34, %v4651_v58  ;;  %v4670_v21 = vor.u32 %v4669_v13, %v4665_v47  ;;  %v10378_v11 = vshrl.u32 %v9199_v41, 16  ;;  %7401 = vmatprep.subr.bf16.mxu1 %v7857_v36  ;;  %v7861_v51 = vld [vmem:[%s8026_s20 + $0x58] sm:$0xf] }
 0x10c   : > { %v4680_v59 = vrot.slane %v10376_v53, 4  ;;  %v4661_v38 = vrot.slane %v4660_v49, 4  ;;  %v4683_v50 = vrot.slane %v10377_v14, 5  ;;  %v4697_v22 = vshll.u32 %v9644_v7, 16  ;;  %7409 = vmatpush3.bf16.msra.mxu1 %v7857_v36 }
 0x10d   : > { %v4693_v4 = vrot.slane %v10378_v11, 4  ;;  %v2826_v23 = vshll.u32 %v9662_v24, 16  ;;  %v6518_v12 = vcombine.low %v4642_v18, %v4652_v8  ;;  %v4689_v33 = vrot.slane %v4687_v52, 5  ;;  %v7862_v18 = vld [vmem:[%s8026_s20 + $0x18] sm:$0xf] }
 0x10e   : > { %v4684_v56 = vor.u32 %v4683_v50, %v4680_v59  ;;  %v4666_v40 = vsel %vm8100_vm2, %v4661_v38, %v4665_v47  ;;  %v4671_v41 = vrot.slane %v4670_v21, 4  ;;  %v4699_v39 = vrot.slane %v4697_v22, 5  ;;  %v7863_v47 = vld [vmem:[%s8026_s20 + $0x1c] sm:$0xf]  ;;  %v7864_v50 = vld [vmem:[%s10215_s1 + $0x120] sm:$0xff]  }
 0x10f   : > { %v10379_v43 = vshrl.u32 %v9209_v42, 16  ;;  %7342 = vmatprep.mubr.bf16.mxu0 %v6518_v12  ;;  %v4694_v16 = vor.u32 %v4693_v4, %v4689_v33  ;;  %v10380_v58 = vshll.u32 %v9209_v42, 16  ;;  %v4711_v1 = vshll.u32 %v9227_v48, 16  ;;  %v10381_v48 = vld [vmem:[#allocation11_spill] sm:$0xff]  ;;  %7402 = vmatprep.subr.bf16.mxu1 %v7864_v50 }
 0x110   : > { %v4685_v0 = vrot.slane %v4684_v56, 4  ;;  %v6287_v3 = vcombine.low %v7858_v5, %v7859_v9  ;;  %v4676_v20 = vsel %vm8100_vm2, %v4671_v41, %v4675_v57  ;;  %v4717_v2 = vrot.slane %v4715_v63, 4  ;;  %v10383_v57 = vld [vmem:[#allocation3_spill] sm:$0xff]  ;;  %7410 = vmatpush3.bf16.msra.mxu1 %v7864_v50  ;;  %v7868_v9 = vld [vmem:[%s8026_s20 + $0x34] sm:$0xf] }
 0x111   : > { %v4704_v26 = vrot.slane %v10379_v43, 4  ;;  %v4707_v19 = vrot.slane %v10380_v58, 5  ;;  %v4721_v35 = vshll.u32 %v9666_v55, 16  ;;  %v6519_v13 = vcombine.low %v4666_v40, %v4676_v20  ;;  %v7865_v56 = vld [vmem:[%s8026_s20 + $0x24] sm:$0xf] }
 0x112   : > { %v4690_v42 = vsel %vm8100_vm2, %v4685_v0, %v4689_v33  ;;  %v4695_v44 = vrot.slane %v4694_v16, 4  ;;  %v6288_v49 = vcombine.low %v7860_v27, %v7861_v51  ;;  %v4713_v37 = vrot.slane %v4711_v1, 5  ;;  %7135 = vmatmul.mubr.bf16.gmra.mrb[8].mxu1 %v6287_v3  ;;  %v7866_v40 = vld [vmem:[%s8026_s20 + $0x28] sm:$0xf]  ;;  %v7867_v1 = vld [vmem:[%s8026_s20 + $0x30] sm:$0xf] }
 0x113   : > { %v4708_v61 = vor.u32 %v4707_v19, %v4704_v26  ;;  %v6530_v34 = vrot.slane %v7862_v18, 9  ;;  %v5129_v53 = vrot.slane %v7863_v47, 5  ;;  %v10382_v63 = vshrl.u32 %v10381_v48, 16  ;;  %7343 = vmatmul.mubr.bf16.gmra.mrb[24].mxu0 %v6519_v13  ;;  %v10385_v16 = vld [vmem:[#allocation12_spill] sm:$0xff]  ;;  %v7869_v20 = vld [vmem:[%s8026_s20 + $0x60] sm:$0xf] }
 0x114   : > { %v4700_v15 = vsel %vm8100_vm2, %v4695_v44, %v4699_v39  ;;  %v5132_v14 = vrot.slane %v10383_v57, 5  ;;  %v4718_v8 = vor.u32 %v4717_v2, %v4713_v37  ;;  %v4723_v21 = vrot.slane %v4721_v35, 5  ;;  %7138 = vmatprep.mubr.bf16.mxu1 %v6288_v49  ;;  %v7870_v2 = vld [vmem:[%s8026_s20 + $0x64] sm:$0xf]  ;;  %v7873_v51 = vld [vmem:[%s10215_s1 + $0x128] sm:$0xff]  }
 0x115   : > { %v9693_v59 = vrot.slane %v10382_v63, 4  ;;  %v4709_v38 = vrot.slane %v4708_v61, 4  ;;  %v6520_v52 = vcombine.low %v4690_v42, %v4700_v15  ;;  %v5131_v11 = vrot.slane %v5129_v53, 4  ;;  %v9725_v42 = vld [vmem:[%s8026_s20 + $0x6c] sm:$0xf]  ;;  %v10387_v61 = vld [vmem:[#allocation5_spill] sm:$0xff]  ;;  %7403 = vmatprep.subr.bf16.mxu1 %v7873_v51 }
 0x116   : > { %v10384_v4 = vshll.u32 %v10381_v48, 16  ;;  %v5130_v12 = vsel %vm8213_vm5, %v6530_v34, %v5129_v53  ;;  %v6531_v33 = vrot.slane %v7865_v56, 9  ;;  %v5136_v41 = vrot.slane %v7866_v40, 5  ;;  %v7874_v53 = vld [vmem:[%s8026_s20 + $0x3c] sm:$0xf]  ;;  %7411 = vmatpush3.bf16.msra.mxu1 %v7873_v51 }
 0x117   : > { %7346 = vmatprep.mubr.bf16.mxu0 %v6520_v52  ;;  %v4714_v39 = vsel %vm8100_vm2, %v4709_v38, %v4713_v37  ;;  %v4719_v43 = vrot.slane %v4718_v8, 4  ;;  %v5133_v26 = vsel %vm8213_vm5, %v5131_v11, %v5132_v14  ;;  %v5139_v0 = vrot.slane %v9299_v45, 5  ;;  %v9728_v45 = vld [vmem:[%s8026_s20 + $0x70] sm:$0xf]  ;;  %v7875_v63 = vld [vmem:[%s8026_s20 + $0x40] sm:$0xf] }
 0x118   : > { %v9703_v22 = vrot.slane %v10384_v4, 5  ;;  %v10386_v36 = vshrl.u32 %v10385_v16, 16  ;;  %v5138_v19 = vrot.slane %v5136_v41, 4  ;;  %v6532_v5 = vrot.slane %v7867_v1, 9  ;;  %v7876_v50 = vld [vmem:[%s8026_s20 + $0x48] sm:$0xf] }
 0x119   : > { %v5143_v3 = vrot.slane %v7868_v9, 5  ;;  %v6289_v35 = vcombine.low %v7869_v20, %v7870_v2  ;;  %v4724_v13 = vsel %vm8100_vm2, %v4719_v43, %v4723_v21  ;;  %v6290_v44 = vcombine.low %v9725_v42, %v9728_v45  ;;  %v7877_v8 = vld [vmem:[%s8026_s20 + $0x4c] sm:$0xf]  ;;  %v7879_v4 = vld [vmem:[%s8026_s20 + $0x7c] sm:$0xf] }
 0x11a   : > { %v9716_v58 = vrot.slane %v10386_v36, 4  ;;  %v5146_v27 = vrot.slane %v10387_v61, 5  ;;  %v6521_v49 = vcombine.low %v4714_v39, %v4724_v13  ;;  %v6562_v37 = vcombine.low %v5130_v12, %v5133_v26  ;;  %v9767_v56 = vld [vmem:[%s8026_s20 + $0x84] sm:$0xf]  ;;  %v9780_v39 = vld [vmem:[%s8026_s20 + $0x90] sm:$0xf] }
 0x11b   : > { %v9738_v18 = vsel %vm8213_vm5, %v6531_v33, %v5136_v41  ;;  %v5145_v34 = vrot.slane %v5143_v3, 4  ;;  %v9742_v47 = vsel %vm8213_vm5, %v5138_v19, %v5139_v0  ;;  %v6533_v48 = vrot.slane %v7874_v53, 9  ;;  %v9770_v33 = vld [vmem:[%s8026_s20 + $0x88] sm:$0xf]  ;;  %7139 = vmatmul.mubr.bf16.gmra.mrb[12].mxu1 %v6289_v35  ;;  %v9783_v43 = vld [vmem:[%s8026_s20 + $0x94] sm:$0xf] }
 0x11c   : > { %v5150_v15 = vrot.slane %v7875_v63, 5  ;;  %v5153_v38 = vrot.slane %v9371_v17, 5  ;;  %v9749_v57 = vsel %vm8213_vm5, %v6532_v5, %v5143_v3  ;;  %v6534_v52 = vrot.slane %v7876_v50, 9  ;;  %7347 = vmatmul.mubr.bf16.gmra.mrb[28].mxu0 %v6521_v49  ;;  %v9762_v17 = vld [vmem:[%s8026_s20 + $0x78] sm:$0xf]  ;;  %7142 = vmatprep.mubr.bf16.mxu1 %v6290_v44 }
 0x11d   : > { %v9753_v14 = vsel %vm8213_vm5, %v5145_v34, %v5146_v27  ;;  %v5157_v21 = vrot.slane %v7877_v8, 5  ;;  %v9759_v11 = vrot.slane %v2826_v23, 5  ;;  %v6291_v12 = vcombine.low %v9762_v17, %v7879_v4  ;;  %v7882_v23 = vld [vmem:[%s10215_s1 + $0x130] sm:$0xff]   ;;  %7366 = vmatprep.mubr.bf16.mxu0 %v6562_v37  ;;  %v9788_v0 = vld [vmem:[%s8026_s20 + $0x9c] sm:$0xf] }
 0x11e   : > { %v6292_v40 = vcombine.low %v9767_v56, %v9770_v33  ;;  %v5152_v24 = vrot.slane %v5150_v15, 4  ;;  %7404 = vmatprep.subr.bf16.mxu1 %v7882_v23  ;;  %v6563_v41 = vcombine.low %v9738_v18, %v9742_v47  ;;  %v6293_v26 = vcombine.low %v9780_v39, %v9783_v43  ;;  %v9791_v36 = vld [vmem:[%s8026_s20 + $0xa0] sm:$0xf]  ;;  %v7887_v1 = vld [vmem:[%s8026_s20 + $0x58] sm:$0xf] }
 0x11f   : > { %v6294_v19 = vcombine.low %v9788_v0, %v9791_v36  ;;  %v5164_v5 = vrot.slane %v7887_v1, 5  ;;  %v6564_v9 = vcombine.low %v9749_v57, %v9753_v14  ;;  %v9800_v3 = vsel %vm8213_vm5, %v6533_v48, %v5150_v15  ;;  %v9812_v44 = vld [vmem:[%s8026_s20 + $0xa8] sm:$0xf]  ;;  %v9815_v61 = vld [vmem:[%s8026_s20 + $0xac] sm:$0xf]  ;;  %7412 = vmatpush3.bf16.msra.mxu1 %v7882_v23  ;;  %v7894_v63 = vld [vmem:[%s10215_s1 + $0x138] sm:$0xff]  }
 0x120   : > { %v9804_v20 = vsel %vm8213_vm5, %v5152_v24, %v5153_v38  ;;  %v5160_v2 = vrot.slane %v9410_v10, 5  ;;  %v9809_v35 = vsel %vm8213_vm5, %v6534_v52, %v5157_v21  ;;  %v5159_v13 = vrot.slane %v5157_v21, 4  ;;  %v7890_v51 = vld [vmem:[%s8026_s20 + $0x54] sm:$0xf]  ;;  %v9825_v34 = vld [vmem:[%s8026_s20 + $0xb8] sm:$0xf]  ;;  %7405 = vmatprep.subr.bf16.mxu1 %v7894_v63 }
 0x121   : > { %v6295_v27 = vcombine.low %v9812_v44, %v9815_v61  ;;  %v6535_v49 = vrot.slane %v7890_v51, 9  ;;  %v5166_v37 = vrot.slane %v5164_v5, 4  ;;  %v5167_v10 = vrot.slane %v9453_v46, 5  ;;  %v9822_v18 = vld [vmem:[%s8026_s20 + $0xb4] sm:$0xf] }
 0x122   : > { %v6296_v47 = vcombine.low %v9822_v18, %v9825_v34  ;;  %v7893_v53 = vld [vmem:[%s8026_s20 + $0x64] sm:$0xf]  ;;  %v6565_v15 = vcombine.low %v9800_v3, %v9804_v20  ;;  %v7895_v38 = vld [vmem:[%s8026_s20 + $0x60] sm:$0xf]  ;;  %v7896_v46 = vld [vmem:[%s8026_s20 + $0x6c] sm:$0xf]  ;;  %v5161_v24 = vsel %vm8213_vm5, %v5159_v13, %v5160_v2 }
 0x123   : > { %v5171_v48 = vrot.slane %v7893_v53, 5  ;;  %v6536_v57 = vrot.slane %v7895_v38, 9  ;;  %v6537_v14 = vrot.slane %v7896_v46, 9  ;;  %v7897_v50 = vld [vmem:[%s8026_s20 + $0x70] sm:$0xf]  ;;  %v5174_v21 = vrot.slane %v9485_v30, 5  ;;  %7413 = vmatpush3.bf16.msra.mxu1 %v7894_v63 }
 0x124   : > { %v5178_v52 = vrot.slane %v7897_v50, 5  ;;  %v5181_v17 = vrot.slane %v9512_v32, 5  ;;  %v2783_v4 = vshrl.u32 %v9725_v42, 16  ;;  %v2786_v1 = vshll.u32 %v9725_v42, 16  ;;  %7367 = vmatmul.mubr.bf16.vlgmr.msra.gmra.mrb[0].mxu0 %v6563_v41  ;;  %7143 = vmatmul.mubr.bf16.gmra.mrb[16].mxu1 %v6291_v12  ;;  %v7898_v51 = vld [vmem:[%s8026_s20 + $0x74] sm:$0x1] }
 0x125   : > { %v5173_v8 = vrot.slane %v5171_v48, 4  ;;  %v2792_v3 = vshll.u32 %v9728_v45, 16  ;;  %v9847_v20 = vsel %vm8213_vm5, %v6535_v49, %v5164_v5  ;;  %v9851_v30 = vsel %vm8213_vm5, %v5166_v37, %v5167_v10  ;;  %7370 = vmatprep.mubr.bf16.mxu0 %v6564_v9  ;;  %7146 = vmatprep.mubr.bf16.mxu1 %v6292_v40  ;;  %v7899_v10 = vld [vmem:[%s8026_s20 + $0x78] sm:$0xf]  ;;  %v7901_v50 = vld [vmem:[%s8026_s20 + $0x84] sm:$0xf] }
 0x126   : > { %v5180_v23 = vrot.slane %v5178_v52, 4  ;;  %v2785_v32 = vrot.slane %v2783_v4, 4  ;;  %v2796_v2 = vshrl.u32 %v9728_v45, 16  ;;  %v9856_v42 = vsel %vm8213_vm5, %v6536_v57, %v5171_v48  ;;  %v7900_v48 = vld [vmem:[%s8026_s20 + $0x7c] sm:$0xf] }
 0x127   : > { %v9860_v41 = vsel %vm8213_vm5, %v6537_v14, %v5178_v52  ;;  %v2788_v5 = vrot.slane %v2786_v1, 5  ;;  %v9862_v13 = vrot.slane %v2792_v3, 5  ;;  %v9869_v45 = vsel %vm8213_vm5, %v5173_v8, %v5174_v21  ;;  %v7902_v4 = vld [vmem:[%s8026_s20 + $0x88] sm:$0xf] }
 0x128   : > { %v9873_v12 = vsel %vm8213_vm5, %v5180_v23, %v5181_v17  ;;  %v2798_v9 = vrot.slane %v2796_v2, 4  ;;  %v2802_v49 = vshll.u32 %v7898_v51, 16  ;;  %v6538_v53 = vrot.slane %v7899_v10, 9 }
 0x129   : > { %v2789_v37 = vor.u32 %v2788_v5, %v2785_v32  ;;  %v5185_v63 = vrot.slane %v7900_v48, 5  ;;  %v2813_v40 = vor.u32 %v9703_v22, %v9693_v59  ;;  %v5188_v57 = vrot.slane %v9532_v60, 5  ;;  %v9894_v22 = vld [vmem:[%s8026_s20 + $0xc0] sm:$0xf]  ;;  %v9897_v60 = vld [vmem:[%s8026_s20 + $0xc4] sm:$0xf] }
 0x12a   : > { %v2799_v38 = vor.u32 %v2798_v9, %v9862_v13  ;;  %v10388_v46 = vshll.u32 %v10385_v16, 16  ;;  %v6539_v52 = vrot.slane %v7901_v50, 9  ;;  %v6566_v8 = vcombine.low %v9809_v35, %v5161_v24 }
 0x12b   : > { %v2790_v21 = vrot.slane %v2789_v37, 4  ;;  %v5187_v17 = vrot.slane %v5185_v63, 4  ;;  %v5192_v23 = vrot.slane %v7902_v4, 5  ;;  %v6567_v1 = vcombine.low %v9847_v20, %v9851_v30 }
 0x12c   : > { %v9884_v14 = vrot.slane %v10388_v46, 5  ;;  %v6568_v59 = vcombine.low %v9856_v42, %v9869_v45  ;;  %v6297_v16 = vcombine.low %v9894_v22, %v9897_v60  ;;  %v9901_v3 = vrot.slane %v2813_v40, 4  ;;  %7371 = vmatmul.mubr.bf16.gmra.mrb[4].mxu0 %v6565_v15  ;;  %7147 = vmatmul.mubr.bf16.gmra.mrb[20].mxu1 %v6293_v26  ;;  %v7907_v46 = vld [vmem:[%s8026_s20 + $0x90] sm:$0xf] }
 0x12d   : > { %v6569_v35 = vcombine.low %v9860_v41, %v9873_v12  ;;  %v2800_v24 = vrot.slane %v2799_v38, 4  ;;  %v2804_v32 = vrot.slane %v2802_v49, 5  ;;  %v9907_v20 = vsel %vm8213_vm5, %v6538_v53, %v5185_v63  ;;  %7374 = vmatprep.mubr.bf16.mxu0 %v6566_v8  ;;  %7150 = vmatprep.mubr.bf16.mxu1 %v6294_v19  ;;  %v7905_v63 = vld [vmem:[%s8026_s20 + $0x8c] sm:$0x1]  ;;  %v7906_v38 = vld [vmem:[%s8026_s20 + $0x94] sm:$0xf] }
 0x12e   : > { %v9911_v30 = vsel %vm8213_vm5, %v5187_v17, %v5188_v57  ;;  %v2823_v2 = vor.u32 %v9716_v58, %v9884_v14  ;;  %v9917_v42 = vsel %vm8213_vm5, %v6539_v52, %v5192_v23  ;;  %v2831_v5 = vshrl.u32 %v9767_v56, 16  ;;  %v7912_v41 = vld [vmem:[%s8026_s20 + $0xa8] sm:$0xf] }
 0x12f   : > { %v2795_v15 = vsel %vm8100_vm2, %v2790_v21, %v9862_v13  ;;  %v5194_v45 = vrot.slane %v5192_v23, 4  ;;  %v2834_v58 = vshll.u32 %v9767_v56, 16  ;;  %v2840_v9 = vshll.u32 %v9770_v33, 16 }
 0x130   : > { %v2819_v26 = vsel %vm8100_vm2, %v9901_v3, %v9884_v14  ;;  %v5195_v51 = vrot.slane %v9550_v29, 5  ;;  %v2833_v49 = vrot.slane %v2831_v5, 4  ;;  %v2844_v13 = vshrl.u32 %v9770_v33, 16 }
 0x131   : > { %v2805_v56 = vsel %vm8100_vm2, %v2800_v24, %v2804_v32  ;;  %v6570_v37 = vcombine.low %v9907_v20, %v9911_v30  ;;  %v2836_v10 = vrot.slane %v2834_v58, 5  ;;  %v9941_v53 = vrot.slane %v2840_v9, 5 }
 0x132   : > { %v9943_v19 = vrot.slane %v2823_v2, 4  ;;  %v2846_v48 = vrot.slane %v2844_v13, 4  ;;  %v2850_v40 = vshll.u32 %v7905_v63, 16  ;;  %v5199_v57 = vrot.slane %v7906_v38, 5  ;;  %v7910_v63 = vld [vmem:[%s8026_s20 + $0x9c] sm:$0xf] }
 0x133   : > { %v2837_v29 = vor.u32 %v2836_v10, %v2833_v49  ;;  %v6540_v33 = vrot.slane %v7907_v46, 9  ;;  %v2855_v50 = vshrl.u32 %v9780_v39, 16  ;;  %v2858_v52 = vshll.u32 %v9780_v39, 16 }
 0x134   : > { %v2847_v8 = vor.u32 %v2846_v48, %v9941_v53  ;;  %v5201_v21 = vrot.slane %v5199_v57, 4  ;;  %v5202_v17 = vrot.slane %v9568_v25, 5  ;;  %v2864_v4 = vshll.u32 %v9783_v43, 16  ;;  %7375 = vmatmul.mubr.bf16.gmra.mrb[8].mxu0 %v6567_v1  ;;  %v7908_v25 = vld [vmem:[%s8026_s20 + $0x98] sm:$0x1]  ;;  %7151 = vmatmul.mubr.bf16.gmra.mrb[24].mxu1 %v6295_v27 }
 0x135   : > { %v6330_v23 = vcombine.low %v2795_v15, %v2805_v56  ;;  %v2857_v24 = vrot.slane %v2855_v50, 4  ;;  %v2860_v32 = vrot.slane %v2858_v52, 5  ;;  %v2868_v2 = vshrl.u32 %v9783_v43, 16  ;;  %7378 = vmatprep.mubr.bf16.mxu0 %v6568_v59  ;;  %7154 = vmatprep.mubr.bf16.mxu1 %v6296_v47  ;;  %v7909_v56 = vld [vmem:[%s8026_s20 + $0xa0] sm:$0xf] }
 0x136   : > { %v2829_v5 = vsel %vm8100_vm2, %v9943_v19, %v9759_v11  ;;  %v9960_v39 = vsel %vm8213_vm5, %v5194_v45, %v5195_v51  ;;  %v9962_v58 = vrot.slane %v2864_v4, 5  ;;  %v2874_v9 = vshll.u32 %v7908_v25, 16  ;;  %v7914_v19 = vld [vmem:[%s8026_s20 + $0xb0] sm:$0x1] }
 0x137   : > { %v2838_v43 = vrot.slane %v2837_v29, 4  ;;  %v2852_v1 = vrot.slane %v2850_v40, 5  ;;  %v2861_v15 = vor.u32 %v2860_v32, %v2857_v24  ;;  %v2870_v49 = vrot.slane %v2868_v2, 4 }
 0x138   : > { %v2848_v45 = vrot.slane %v2847_v8, 4  ;;  %v9973_v51 = vsel %vm8213_vm5, %v6540_v33, %v5199_v57  ;;  %v9977_v13 = vsel %vm8213_vm5, %v5201_v21, %v5202_v17  ;;  %v5206_v27 = vrot.slane %v7909_v56, 5 }
 0x139   : > { %v2862_v59 = vrot.slane %v2861_v15, 4  ;;  %v2871_v10 = vor.u32 %v2870_v49, %v9962_v58  ;;  %v2876_v48 = vrot.slane %v2874_v9, 5  ;;  %v6541_v40 = vrot.slane %v7910_v63, 9 }
 0x13a   : > { %v5208_v38 = vrot.slane %v5206_v27, 4  ;;  %v5209_v47 = vrot.slane %v9591_v28, 5  ;;  %v2879_v29 = vshrl.u32 %v9788_v0, 16  ;;  %v2882_v57 = vshll.u32 %v9788_v0, 16  ;;  %v7911_v28 = vld [vmem:[%s8026_s20 + $0xa4] sm:$0x1] }
 0x13b   : > { %v2843_v46 = vsel %vm8100_vm2, %v2838_v43, %v9941_v53  ;;  %v2872_v33 = vrot.slane %v2871_v10, 4  ;;  %v2888_v50 = vshll.u32 %v9791_v36, 16  ;;  %v2892_v52 = vshrl.u32 %v9791_v36, 16 }
 0x13c   : > { %v2853_v8 = vsel %vm8100_vm2, %v2848_v45, %v2852_v1  ;;  %v2881_v21 = vrot.slane %v2879_v29, 4  ;;  %v2884_v17 = vrot.slane %v2882_v57, 5  ;;  %v2898_v4 = vshll.u32 %v7911_v28, 16  ;;  %7379 = vmatmul.mubr.bf16.gmra.mrb[12].mxu0 %v6569_v35  ;;  %7155 = vmatmul.mubr.bf16.gmra.mrb[28].mxu1 %v6297_v16  ;;  %v7913_v35 = vld [vmem:[%s8026_s20 + $0xac] sm:$0xf] }
 0x13d   : > { %v2867_v0 = vsel %vm8100_vm2, %v2862_v59, %v9962_v58  ;;  %v9998_v53 = vsel %vm8213_vm5, %v6541_v40, %v5206_v27  ;;  %v2890_v24 = vrot.slane %v2888_v50, 5  ;;  %v2894_v32 = vrot.slane %v2892_v52, 4  ;;  %7382 = vmatprep.mubr.bf16.mxu0 %v6570_v37  ;;  %7190 = vmatprep.mubr.bf16.mxu1 %v6330_v23  ;;  %v7916_v57 = vld [vmem:[%s8026_s20 + $0xb4] sm:$0xf] }
 0x13e   : > { %v2877_v36 = vsel %vm8100_vm2, %v2872_v33, %v2876_v48  ;;  %v10007_v2 = vsel %vm8213_vm5, %v5208_v38, %v5209_v47  ;;  %v2885_v25 = vor.u32 %v2884_v17, %v2881_v21  ;;  %v2900_v9 = vrot.slane %v2898_v4, 5 }
 0x13f   : > { %v2895_v58 = vor.u32 %v2894_v32, %v2890_v24  ;;  %v6542_v12 = vrot.slane %v7912_v41, 9  ;;  %v5213_v43 = vrot.slane %v7913_v35, 5  ;;  %v2903_v1 = vshrl.u32 %v9812_v44, 16 }
 0x140   : > { %v2886_v15 = vrot.slane %v2885_v25, 4  ;;  %v2906_v49 = vshll.u32 %v9812_v44, 16  ;;  %v2912_v45 = vshll.u32 %v9815_v61, 16  ;;  %v2916_v56 = vshrl.u32 %v9815_v61, 16 }
 0x141   : > { %v2896_v16 = vrot.slane %v2895_v58, 4  ;;  %v5215_v27 = vrot.slane %v5213_v43, 4  ;;  %v5216_v20 = vrot.slane %v9608_v6, 5  ;;  %v2905_v30 = vrot.slane %v2903_v1, 4 }
 0x142   : > { %v6571_v37 = vcombine.low %v9917_v42, %v9960_v39  ;;  %v2908_v59 = vrot.slane %v2906_v49, 5  ;;  %v10024_v10 = vrot.slane %v2912_v45, 5  ;;  %v2918_v23 = vrot.slane %v2916_v56, 4 }
 0x143   : > { %v6331_v6 = vcombine.low %v2819_v26, %v2829_v5  ;;  %v6332_v44 = vcombine.low %v2843_v46, %v2853_v8  ;;  %v6572_v61 = vcombine.low %v9973_v51, %v9977_v13  ;;  %v6573_v42 = vcombine.low %v9998_v53, %v10007_v2  ;;  %v7915_v13 = vld [vmem:[%s8026_s20 + $0xb8] sm:$0xf]  ;;  %v7918_v2 = vld [vmem:[%s8026_s20 + $0xc4] sm:$0xf] }
 0x144   : > { %v6333_v39 = vcombine.low %v2867_v0, %v2877_v36  ;;  %v2891_v48 = vsel %vm8100_vm2, %v2886_v15, %v2890_v24  ;;  %v2901_v11 = vsel %vm8100_vm2, %v2896_v16, %v2900_v9  ;;  %v2922_v63 = vshll.u32 %v7914_v19, 16  ;;  %7383 = vmatmul.mubr.bf16.gmra.mrb[16].mxu0 %v6571_v37  ;;  %v7917_v0 = vld [vmem:[%s8026_s20 + $0xbc] sm:$0x1] }
 0x145   : > { %v5214_v14 = vsel %vm8213_vm5, %v6542_v12, %v5213_v43  ;;  %v5217_v3 = vsel %vm8213_vm5, %v5215_v27, %v5216_v20  ;;  %v2909_v26 = vor.u32 %v2908_v59, %v2905_v30  ;;  %v2927_v5 = vshrl.u32 %v9822_v18, 16  ;;  %7191 = vmatmul.mubr.bf16.vlgmr.msra.gmra.mrb[16].mxu1 %v6331_v6  ;;  %7386 = vmatprep.mubr.bf16.mxu0 %v6572_v61 }
 0x146   : > { %v2919_v51 = vor.u32 %v2918_v23, %v10024_v10  ;;  %v5220_v40 = vrot.slane %v7915_v13, 5  ;;  %v2930_v38 = vshll.u32 %v9822_v18, 16  ;;  %v2936_v47 = vshll.u32 %v9825_v34, 16  ;;  %7194 = vmatprep.mubr.bf16.mxu1 %v6332_v44  ;;  %v7920_v23 = vld [vmem:[%s8026_s20 + $0xc8] sm:$0x1] }
 0x147   : > { %v6334_v29 = vcombine.low %v2891_v48, %v2901_v11  ;;  %v6543_v46 = vrot.slane %v7916_v57, 9  ;;  %v2929_v33 = vrot.slane %v2927_v5, 4  ;;  %v2940_v50 = vshrl.u32 %v9825_v34, 16  ;;  %v7919_v34 = vld [vmem:[%s8026_s20 + $0xc0] sm:$0xf] }
 0x148   : > { %v6574_v52 = vcombine.low %v5214_v14, %v5217_v3  ;;  %v2924_v8 = vrot.slane %v2922_v63, 5  ;;  %v2932_v21 = vrot.slane %v2930_v38, 5  ;;  %v2938_v17 = vrot.slane %v2936_v47, 5  ;;  %v7922_v14 = vld [vmem:[%s8026_s20 + $0xcc] sm:$0xf] }
 0x149   : > { %v2910_v28 = vrot.slane %v2909_v26, 4  ;;  %v5223_v18 = vrot.slane %v9626_v31, 5  ;;  %v2942_v4 = vrot.slane %v2940_v50, 4  ;;  %v2946_v53 = vshll.u32 %v7917_v0, 16 }
 0x14a   : > { %v2920_v24 = vrot.slane %v2919_v51, 4  ;;  %v5222_v32 = vrot.slane %v5220_v40, 4  ;;  %v2933_v36 = vor.u32 %v2932_v21, %v2929_v33  ;;  %v5227_v25 = vrot.slane %v7918_v2, 5 }
 0x14b   : > { %v2943_v9 = vor.u32 %v2942_v4, %v2938_v17  ;;  %v2948_v58 = vrot.slane %v2946_v53, 5  ;;  %v6544_v41 = vrot.slane %v7919_v34, 9  ;;  %v2951_v12 = vshrl.u32 %v9894_v22, 16 }
 0x14c   : > { %v2934_v35 = vrot.slane %v2933_v36, 4  ;;  %v5229_v43 = vrot.slane %v5227_v25, 4  ;;  %v5230_v1 = vrot.slane %v9644_v7, 5  ;;  %v2954_v31 = vshll.u32 %v9894_v22, 16  ;;  %7387 = vmatmul.mubr.bf16.gmra.mrb[20].mxu0 %v6573_v42 }
 0x14d   : > { %v2944_v15 = vrot.slane %v2943_v9, 4  ;;  %v2953_v49 = vrot.slane %v2951_v12, 4  ;;  %v2960_v45 = vshll.u32 %v9897_v60, 16  ;;  %v2964_v56 = vshrl.u32 %v9897_v60, 16  ;;  %7195 = vmatmul.mubr.bf16.gmra.mrb[20].mxu1 %v6333_v39  ;;  %7390 = vmatprep.mubr.bf16.mxu0 %v6574_v52  ;;  %v7921_v39 = vld [vmem:[%s8026_s20 + $0xd0] sm:$0xf] }
 0x14e   : > { %v2915_v16 = vsel %vm8100_vm2, %v2910_v28, %v10024_v10  ;;  %v5221_v27 = vsel %vm8213_vm5, %v6543_v46, %v5220_v40  ;;  %v2956_v20 = vrot.slane %v2954_v31, 5  ;;  %v2925_v7 = vsel %vm8100_vm2, %v2920_v24, %v2924_v8  ;;  %7198 = vmatprep.mubr.bf16.mxu1 %v6334_v29  ;;  %v10107_v9 = vld [vmem:[%s10216_s2] ss:$0 sm:$0xff] }
 0x14f   : > { %v5224_v22 = vsel %vm8213_vm5, %v5222_v32, %v5223_v18  ;;  %v2962_v30 = vrot.slane %v2960_v45, 5  ;;  %v2966_v60 = vrot.slane %v2964_v56, 4  ;;  %v5228_v37 = vsel %vm8213_vm5, %v6544_v41, %v5227_v25  ;;  %v10112_v41 = vld [vmem:[%s10217_s3] ss:$0 sm:$0xff] }
 0x150   : > { %v5231_v59 = vsel %vm8213_vm5, %v5229_v43, %v5230_v1  ;;  %v2957_v10 = vor.u32 %v2956_v20, %v2953_v49  ;;  %v2970_v6 = vshll.u32 %v7920_v23, 16  ;;  %v2939_v44 = vsel %vm8100_vm2, %v2934_v35, %v2938_v17 }
 0x151   : > { %v2949_v61 = vsel %vm8100_vm2, %v2944_v15, %v2948_v58  ;;  %v2967_v42 = vor.u32 %v2966_v60, %v2962_v30  ;;  %v5234_v48 = vrot.slane %v7921_v39, 5  ;;  %v6335_v11 = vcombine.low %v2915_v16, %v2925_v7 }
 0x152   : > { %v6575_v19 = vcombine.low %v5221_v27, %v5224_v22  ;;  %v6576_v63 = vcombine.low %v5228_v37, %v5231_v59  ;;  %v6545_v3 = vrot.slane %v7922_v14, 9  ;;  %v5237_v5 = vrot.slane %v9666_v55, 5 }
 0x153   : > { %v5236_v26 = vrot.slane %v5234_v48, 4  ;;  %v6336_v51 = vcombine.low %v2939_v44, %v2949_v61  ;;  %v2958_v13 = vrot.slane %v2957_v10, 4  ;;  %v2968_v40 = vrot.slane %v2967_v42, 4 }
 0x154   : > { %v2972_v38 = vrot.slane %v2970_v6, 5  ;;  %7391 = vmatmul.mubr.bf16.gmra.mrb[24].mxu0 %v6575_v19  ;;  %v5235_v47 = vsel %vm8213_vm5, %v6545_v3, %v5234_v48 }
 0x155   : > { %7199 = vmatmul.mubr.bf16.gmra.mrb[24].mxu1 %v6335_v11  ;;  %7394 = vmatprep.mubr.bf16.mxu0 %v6576_v63  ;;  %v5238_v29 = vsel %vm8213_vm5, %v5236_v26, %v5237_v5  ;;  %v2963_v57 = vsel %vm8100_vm2, %v2958_v13, %v2962_v30 }
 0x156   : > { %7202 = vmatprep.mubr.bf16.mxu1 %v6336_v51  ;;  %v2973_v55 = vsel %vm8100_vm2, %v2968_v40, %v2972_v38  ;;  %v6577_v46 = vcombine.low %v5235_v47, %v5238_v29 }
 0x157   : > { %v6337_v33 = vcombine.low %v2963_v57, %v2973_v55 }
 0x15c   : > { %7395 = vmatmul.mubr.bf16.gmra.mrb[28].mxu0 %v6577_v46 }
 0x15d   : > { %7203 = vmatmul.mubr.bf16.gmra.mrb[28].mxu1 %v6337_v33 }
 0x1d2   : > { %v7128_v50 = vpop.f32.mrb[0].mxu1 }
 0x1d3   : > { %v2399_v52 = vpop.f32.mrb[1].mxu1 }
 0x1d4   : > { %v7129_v8 = vpop.f32.mrb[2].mxu1 }
 0x1d5   : > { %v2402_v21 = vpop.f32.mrb[3].mxu1 }
 0x1da   : > { %v7132_v17 = vpop.f32.mrb[4].mxu1 }
 0x1db   : > { %v2415_v28 = vpop.f32.mrb[5].mxu1 }
 0x1dc   : > { %v7133_v18 = vpop.f32.mrb[6].mxu1 }
 0x1dd   : > { %v2418_v62 = vpop.f32.mrb[7].mxu1 }
 0x1e5   : > { %v7136_v4 = vpop.f32.mrb[8].mxu1 }
 0x1e6   : > { %v2431_v0 = vpop.f32.mrb[9].mxu1 }
 0x1e7   : > { %v7137_v53 = vpop.f32.mrb[10].mxu1 }
 0x1e8   : > { %v10094_v24 = vpop.f32.mrb[11].mxu1 }
 0x1ee   : > { %v10096_v32 = vpop.f32.mrb[12].mxu1 }
 0x1ef   : > { %v10098_v54 = vpop.f32.mrb[13].mxu1 }
 0x1f0   : > { %v10100_v36 = vpop.f32.mrb[14].mxu1 }
 0x1f1   : > { %v10102_v2 = vpop.f32.mrb[15].mxu1 }
 0x1f7   : > { %v7368_v25 = vpop.f32.mrb[0].mxu0 }
 0x1f8   : > { %v7414_v58 = vadd.f32 %v7368_v25, %v7128_v50  ;;  %v5434_v34 = vpop.f32.mrb[1].mxu0 }
 0x1f9   : > { %v7415_v12 = vadd.f32 %v5434_v34, %v2399_v52  ;;  %v7369_v35 = vpop.f32.mrb[2].mxu0 }
 0x1fa   : > { %v5669_v43 = vmul.f32 %v7414_v58, %v10107_v9  ;;  %v7416_v1 = vadd.f32 %v7369_v35, %v7129_v8  ;;  %v5437_v31 = vpop.f32.mrb[3].mxu0 }
 0x1fb   : > { %v5667_v15 = vmul.f32 %v7415_v12, %v10107_v9  ;;  %v7417_v49 = vadd.f32 %v5437_v31, %v2402_v21 }
 0x1fc   : > { %v5708_v45 = vadd.f32 %v10112_v41, %v5669_v43  ;;  %v5670_v56 = vmul.f32 %v7416_v1, %v10107_v9 }
 0x1fd   : > { %v5706_v16 = vadd.f32 %v10112_v41, %v5667_v15  ;;  %v5668_v27 = vmul.f32 %v7417_v49, %v10107_v9 }
 0x1fe   : > { %v5709_v20 = vadd.f32 %v10112_v41, %v5670_v56  ;;  %v5740_v30 = vmax.f32 %v5708_v45, 0.0 }
 0x1ff   : > { %v5707_v7 = vadd.f32 %v10112_v41, %v5668_v27  ;;  %v7372_v22 = vpop.f32.mrb[4].mxu0  ;;  %v5738_v10 = vmax.f32 %v5706_v16, 0.0 }
 0x200   : > { %v5741_v60 = vmax.f32 %v5709_v20, 0.0  ;;  %v7418_v37 = vadd.f32 %v7372_v22, %v7132_v17  ;;  %v5450_v59 = vpop.f32.mrb[5].mxu0 }
 0x201   : > { %v5739_v23 = vmax.f32 %v5707_v7, 0.0  ;;  %v7419_v6 = vadd.f32 %v5450_v59, %v2415_v28  ;;  %v7373_v44 = vpop.f32.mrb[6].mxu0 }
 0x202   : > { %v6663_v61 = vpack.c.bf16 %v5741_v60, %v5740_v30  ;;  %v5673_v42 = vmul.f32 %v7418_v37, %v10107_v9  ;;  %v7420_v39 = vadd.f32 %v7373_v44, %v7133_v18  ;;  %v5453_v48 = vpop.f32.mrb[7].mxu0 }
 0x203   : > { %v6658_v11 = vpack.c.bf16 %v5739_v23, %v5738_v10  ;;  %v5671_v19 = vmul.f32 %v7419_v6, %v10107_v9  ;;  %v7421_v63 = vadd.f32 %v5453_v48, %v2418_v62 }
 0x204   : > { %6735 = vst [vmem:[%s10126_s19 + $0x8] sm:$0xff] %v6663_v61   ;;  %v5712_v14 = vadd.f32 %v10112_v41, %v5673_v42  ;;  %v5674_v3 = vmul.f32 %v7420_v39, %v10107_v9 }
 0x205   : > { %6659 = vst [vmem:[%s10126_s19] sm:$0xff] %v6658_v11   ;;  %v5710_v26 = vadd.f32 %v10112_v41, %v5671_v19  ;;  %v5672_v5 = vmul.f32 %v7421_v63, %v10107_v9 }
 0x206   : > { %v5713_v51 = vadd.f32 %v10112_v41, %v5674_v3  ;;  %v5744_v38 = vmax.f32 %v5712_v14, 0.0 }
 0x207   : > { %v5711_v13 = vadd.f32 %v10112_v41, %v5672_v5  ;;  %v7376_v40 = vpop.f32.mrb[8].mxu0  ;;  %v5742_v55 = vmax.f32 %v5710_v26, 0.0 }
 0x208   : > { %v5745_v47 = vmax.f32 %v5713_v51, 0.0  ;;  %v7422_v29 = vadd.f32 %v7376_v40, %v7136_v4  ;;  %v5466_v57 = vpop.f32.mrb[9].mxu0 }
 0x209   : > { %v5743_v46 = vmax.f32 %v5711_v13, 0.0  ;;  %v7423_v33 = vadd.f32 %v5466_v57, %v2431_v0  ;;  %v7377_v50 = vpop.f32.mrb[10].mxu0 }
 0x20a   : > { %v6673_v52 = vpack.c.bf16 %v5745_v47, %v5744_v38  ;;  %v5677_v8 = vmul.f32 %v7422_v29, %v10107_v9  ;;  %v7424_v21 = vadd.f32 %v7377_v50, %v7137_v53  ;;  %v5469_v17 = vpop.f32.mrb[11].mxu0 }
 0x20b   : > { %v6668_v28 = vpack.c.bf16 %v5743_v46, %v5742_v55  ;;  %v5675_v18 = vmul.f32 %v7423_v33, %v10107_v9  ;;  %v7425_v62 = vadd.f32 %v5469_v17, %v10094_v24 }
 0x20c   : > { %6737 = vst [vmem:[%s10126_s19 + $0x18] sm:$0xff] %v6673_v52   ;;  %v5716_v25 = vadd.f32 %v10112_v41, %v5677_v8  ;;  %v5678_v4 = vmul.f32 %v7424_v21, %v10107_v9 }
 0x20d   : > { %6736 = vst [vmem:[%s10126_s19 + $0x10] sm:$0xff] %v6668_v28   ;;  %v5714_v58 = vadd.f32 %v10112_v41, %v5675_v18  ;;  %v5676_v0 = vmul.f32 %v7425_v62, %v10107_v9 }
 0x20e   : > { %v5717_v34 = vadd.f32 %v10112_v41, %v5678_v4  ;;  %v5748_v35 = vmax.f32 %v5716_v25, 0.0 }
 0x20f   : > { %v5715_v53 = vadd.f32 %v10112_v41, %v5676_v0  ;;  %v7380_v12 = vpop.f32.mrb[12].mxu0  ;;  %v5746_v31 = vmax.f32 %v5714_v58, 0.0 }
 0x210   : > { %v5749_v43 = vmax.f32 %v5717_v34, 0.0  ;;  %v7426_v24 = vadd.f32 %v7380_v12, %v10096_v32  ;;  %v5482_v1 = vpop.f32.mrb[13].mxu0 }
 0x211   : > { %v5747_v15 = vmax.f32 %v5715_v53, 0.0  ;;  %v7427_v49 = vadd.f32 %v5482_v1, %v10098_v54  ;;  %v7381_v45 = vpop.f32.mrb[14].mxu0 }
 0x212   : > { %v6683_v56 = vpack.c.bf16 %v5749_v43, %v5748_v35  ;;  %v5681_v16 = vmul.f32 %v7426_v24, %v10107_v9  ;;  %v7428_v27 = vadd.f32 %v7381_v45, %v10100_v36  ;;  %v5485_v20 = vpop.f32.mrb[15].mxu0 }
 0x213   : > { %v6678_v7 = vpack.c.bf16 %v5747_v15, %v5746_v31  ;;  %v5679_v22 = vmul.f32 %v7427_v49, %v10107_v9  ;;  %v7429_v30 = vadd.f32 %v5485_v20, %v10102_v2 }
 0x214   : > { %6739 = vst [vmem:[%s10126_s19 + $0x28] sm:$0xff] %v6683_v56   ;;  %v5720_v32 = vadd.f32 %v10112_v41, %v5681_v16  ;;  %v5682_v60 = vmul.f32 %v7428_v27, %v10107_v9 }
 0x215   : > { %6738 = vst [vmem:[%s10126_s19 + $0x20] sm:$0xff] %v6678_v7   ;;  %v5718_v54 = vadd.f32 %v10112_v41, %v5679_v22  ;;  %v5680_v37 = vmul.f32 %v7429_v30, %v10107_v9 }
 0x216   : > { %v5721_v59 = vadd.f32 %v10112_v41, %v5682_v60  ;;  %v5752_v23 = vmax.f32 %v5720_v32, 0.0 }
 0x217   : > { %v5719_v36 = vadd.f32 %v10112_v41, %v5680_v37  ;;  %v7384_v10 = vpop.f32.mrb[16].mxu0  ;;  %v5750_v61 = vmax.f32 %v5718_v54, 0.0 }
 0x218   : > { %v5753_v6 = vmax.f32 %v5721_v59, 0.0  ;;  %v7192_v44 = vpop.f32.mrb[16].mxu1  ;;  %v5498_v2 = vpop.f32.mrb[17].mxu0 }
 0x219   : > { %v5751_v42 = vmax.f32 %v5719_v36, 0.0  ;;  %v7430_v39 = vadd.f32 %v7384_v10, %v7192_v44  ;;  %v3233_v48 = vpop.f32.mrb[17].mxu1  ;;  %v7385_v11 = vpop.f32.mrb[18].mxu0 }
 0x21a   : > { %v6693_v19 = vpack.c.bf16 %v5753_v6, %v5752_v23  ;;  %v7431_v63 = vadd.f32 %v5498_v2, %v3233_v48  ;;  %v7193_v14 = vpop.f32.mrb[18].mxu1  ;;  %v5501_v3 = vpop.f32.mrb[19].mxu0 }
 0x21b   : > { %v6688_v26 = vpack.c.bf16 %v5751_v42, %v5750_v61  ;;  %v5685_v5 = vmul.f32 %v7430_v39, %v10107_v9  ;;  %v7432_v51 = vadd.f32 %v7385_v11, %v7193_v14  ;;  %v3236_v13 = vpop.f32.mrb[19].mxu1 }
 0x21c   : > { %6741 = vst [vmem:[%s10126_s19 + $0x38] sm:$0xff] %v6693_v19   ;;  %v5683_v40 = vmul.f32 %v7431_v63, %v10107_v9  ;;  %v7433_v38 = vadd.f32 %v5501_v3, %v3236_v13 }
 0x21d   : > { %6740 = vst [vmem:[%s10126_s19 + $0x30] sm:$0xff] %v6688_v26   ;;  %v5724_v47 = vadd.f32 %v10112_v41, %v5685_v5  ;;  %v5686_v29 = vmul.f32 %v7432_v51, %v10107_v9 }
 0x21e   : > { %v5722_v57 = vadd.f32 %v10112_v41, %v5683_v40  ;;  %v5684_v55 = vmul.f32 %v7433_v38, %v10107_v9 }
 0x21f   : > { %v5725_v46 = vadd.f32 %v10112_v41, %v5686_v29  ;;  %v7388_v33 = vpop.f32.mrb[20].mxu0  ;;  %v5756_v21 = vmax.f32 %v5724_v47, 0.0 }
 0x220   : > { %v5723_v50 = vadd.f32 %v10112_v41, %v5684_v55  ;;  %v7196_v52 = vpop.f32.mrb[20].mxu1  ;;  %v5514_v8 = vpop.f32.mrb[21].mxu0  ;;  %v5754_v25 = vmax.f32 %v5722_v57, 0.0 }
 0x221   : > { %v5757_v17 = vmax.f32 %v5725_v46, 0.0  ;;  %v7434_v28 = vadd.f32 %v7388_v33, %v7196_v52  ;;  %v3249_v18 = vpop.f32.mrb[21].mxu1  ;;  %v7389_v62 = vpop.f32.mrb[22].mxu0 }
 0x222   : > { %v5755_v4 = vmax.f32 %v5723_v50, 0.0  ;;  %v7435_v58 = vadd.f32 %v5514_v8, %v3249_v18  ;;  %v7197_v0 = vpop.f32.mrb[22].mxu1  ;;  %v5517_v34 = vpop.f32.mrb[23].mxu0 }
 0x223   : > { %v6703_v53 = vpack.c.bf16 %v5757_v17, %v5756_v21  ;;  %v5689_v12 = vmul.f32 %v7434_v28, %v10107_v9  ;;  %v7436_v35 = vadd.f32 %v7389_v62, %v7197_v0  ;;  %v3252_v43 = vpop.f32.mrb[23].mxu1 }
 0x224   : > { %v6698_v24 = vpack.c.bf16 %v5755_v4, %v5754_v25  ;;  %v5687_v1 = vmul.f32 %v7435_v58, %v10107_v9  ;;  %v7437_v31 = vadd.f32 %v5517_v34, %v3252_v43 }
 0x225   : > { %6743 = vst [vmem:[%s10126_s19 + $0x48] sm:$0xff] %v6703_v53   ;;  %v5728_v15 = vadd.f32 %v10112_v41, %v5689_v12  ;;  %v5690_v49 = vmul.f32 %v7436_v35, %v10107_v9 }
 0x226   : > { %6742 = vst [vmem:[%s10126_s19 + $0x40] sm:$0xff] %v6698_v24   ;;  %v5726_v45 = vadd.f32 %v10112_v41, %v5687_v1  ;;  %v5688_v56 = vmul.f32 %v7437_v31, %v10107_v9 }
 0x227   : > { %v5729_v16 = vadd.f32 %v10112_v41, %v5690_v49  ;;  %v7392_v27 = vpop.f32.mrb[24].mxu0  ;;  %v5760_v30 = vmax.f32 %v5728_v15, 0.0 }
 0x228   : > { %v5727_v20 = vadd.f32 %v10112_v41, %v5688_v56  ;;  %v7200_v7 = vpop.f32.mrb[24].mxu1  ;;  %v5530_v22 = vpop.f32.mrb[25].mxu0  ;;  %v5758_v59 = vmax.f32 %v5726_v45, 0.0 }
 0x229   : > { %v5761_v32 = vmax.f32 %v5729_v16, 0.0  ;;  %v7438_v60 = vadd.f32 %v7392_v27, %v7200_v7  ;;  %v3265_v54 = vpop.f32.mrb[25].mxu1  ;;  %v7393_v37 = vpop.f32.mrb[26].mxu0 }
 0x22a   : > { %v5759_v36 = vmax.f32 %v5727_v20, 0.0  ;;  %v7439_v10 = vadd.f32 %v5530_v22, %v3265_v54  ;;  %v7201_v23 = vpop.f32.mrb[26].mxu1  ;;  %v5533_v6 = vpop.f32.mrb[27].mxu0 }
 0x22b   : > { %v6713_v44 = vpack.c.bf16 %v5761_v32, %v5760_v30  ;;  %v5693_v2 = vmul.f32 %v7438_v60, %v10107_v9  ;;  %v7440_v61 = vadd.f32 %v7393_v37, %v7201_v23  ;;  %v3268_v42 = vpop.f32.mrb[27].mxu1 }
 0x22c   : > { %v6708_v39 = vpack.c.bf16 %v5759_v36, %v5758_v59  ;;  %v5691_v48 = vmul.f32 %v7439_v10, %v10107_v9  ;;  %v7441_v11 = vadd.f32 %v5533_v6, %v3268_v42 }
 0x22d   : > { %6745 = vst [vmem:[%s10126_s19 + $0x58] sm:$0xff] %v6713_v44   ;;  %v5732_v19 = vadd.f32 %v10112_v41, %v5693_v2  ;;  %v5694_v63 = vmul.f32 %v7440_v61, %v10107_v9 }
 0x22e   : > { %6744 = vst [vmem:[%s10126_s19 + $0x50] sm:$0xff] %v6708_v39   ;;  %v5730_v14 = vadd.f32 %v10112_v41, %v5691_v48  ;;  %v5692_v3 = vmul.f32 %v7441_v11, %v10107_v9 }
 0x22f   : > { %v5733_v26 = vadd.f32 %v10112_v41, %v5694_v63  ;;  %v7396_v5 = vpop.f32.mrb[28].mxu0  ;;  %v5764_v38 = vmax.f32 %v5732_v19, 0.0 }
 0x230   : > { %v5731_v51 = vadd.f32 %v10112_v41, %v5692_v3  ;;  %v7204_v13 = vpop.f32.mrb[28].mxu1  ;;  %v5546_v40 = vpop.f32.mrb[29].mxu0  ;;  %v5762_v46 = vmax.f32 %v5730_v14, 0.0 }
 0x231   : > { %v5765_v47 = vmax.f32 %v5733_v26, 0.0  ;;  %v7442_v29 = vadd.f32 %v7396_v5, %v7204_v13  ;;  %v3281_v57 = vpop.f32.mrb[29].mxu1  ;;  %v7397_v55 = vpop.f32.mrb[30].mxu0 }
 0x232   : > { %v5763_v33 = vmax.f32 %v5731_v51, 0.0  ;;  %v7443_v50 = vadd.f32 %v5546_v40, %v3281_v57  ;;  %v7205_v52 = vpop.f32.mrb[30].mxu1  ;;  %v5549_v8 = vpop.f32.mrb[31].mxu0 }
 0x233   : > { %v6723_v21 = vpack.c.bf16 %v5765_v47, %v5764_v38  ;;  %v5697_v17 = vmul.f32 %v7442_v29, %v10107_v9  ;;  %v7444_v28 = vadd.f32 %v7397_v55, %v7205_v52  ;;  %v3284_v18 = vpop.f32.mrb[31].mxu1 }
 0x234   : > { %v6718_v62 = vpack.c.bf16 %v5763_v33, %v5762_v46  ;;  %v5695_v25 = vmul.f32 %v7443_v50, %v10107_v9  ;;  %v7445_v4 = vadd.f32 %v5549_v8, %v3284_v18 }
 0x235   : > { %6747 = vst [vmem:[%s10126_s19 + $0x68] sm:$0xff] %v6723_v21   ;;  %v5736_v58 = vadd.f32 %v10112_v41, %v5697_v17  ;;  %v5698_v0 = vmul.f32 %v7444_v28, %v10107_v9 }
 0x236   : > { %6746 = vst [vmem:[%s10126_s19 + $0x60] sm:$0xff] %v6718_v62   ;;  %v5734_v34 = vadd.f32 %v10112_v41, %v5695_v25  ;;  %v5696_v53 = vmul.f32 %v7445_v4, %v10107_v9 }
 0x237   : > { %v5737_v12 = vadd.f32 %v10112_v41, %v5698_v0  ;;  %v5768_v43 = vmax.f32 %v5736_v58, 0.0 }
 0x238   : > { %v5735_v35 = vadd.f32 %v10112_v41, %v5696_v53  ;;  %v5766_v1 = vmax.f32 %v5734_v34, 0.0 }
 0x239   : > { %v5769_v24 = vmax.f32 %v5737_v12, 0.0 }
 0x23a   : > { %v5767_v31 = vmax.f32 %v5735_v35, 0.0 }
 0x23b   : > { %v6733_v15 = vpack.c.bf16 %v5769_v24, %v5768_v43 }
 0x23c   : > { %v6728_v49 = vpack.c.bf16 %v5767_v31, %v5766_v1 }
 0x23d   : > { %6749 = vst [vmem:[%s10126_s19 + $0x78] sm:$0xff] %v6733_v15  }
 0x23e   : > { %6748 = vst [vmem:[%s10126_s19 + $0x70] sm:$0xff] %v6728_v49  }
 0x23f PF: > { %s14_s17 = sadd.s32 1, %s7945_s17   ;;  %s10389_s15 = smov %s7941_s16 }
 0x240   : > { %p11_p5 = scmp.ge.s32.totalorder %s14_s17, 4   ;;  %s10390_s16 = smov %s10392_s18 }
 0x242   :  { %13 = sbr.rel (!%p11_p5) target bundleno = 2 (0x2), region = 93 }

// kernel: resnet_forward.17
= control target key start
LH: loop header
LB: loop body
LE: loop exit
PB: predicated region body
PF: predicated region fallthrough
CT: control target
= control target key end

     0   :  { %s2312_s0 = inlined_call_operand.vmem [shape: bf16[2,256,512], index: 0, kind: input, shape index: {}]   ;;  %s2313_s1 = inlined_call_operand.vmem [shape: f32[512,128], index: 1, kind: input, shape index: {}]   ;;  %s2314_s2 = inlined_call_operand.vmem [shape: f32[1,128], index: 2, kind: input, shape index: {}]   ;;  %s2315_s3 = inlined_call_operand.hbm [shape: f32[2,128], index: 3, kind: output, shape index: {}]  }
   0x1   :  { %v720_v0 = vld [vmem:[%s2313_s1 + $0x80] sm:$0xff]  ;;  %v721_v1 = vld [vmem:[%s2313_s1 + $0x88] sm:$0xff]  ;;  %v722_v11 = vld [vmem:[%s2313_s1 + $0x90] sm:$0xff] }
   0x2   :  { %v704_v2 = vld [vmem:[%s2313_s1] sm:$0xff]  ;;  %v1025_v3 = vpack.c.bf16 %v721_v1, %v720_v0  ;;  %v705_v4 = vld [vmem:[%s2313_s1 + $0x8] sm:$0xff]  ;;  %v723_v13 = vld [vmem:[%s2313_s1 + $0x98] sm:$0xff] }
   0x3   :  { %v752_v5 = vld [vmem:[%s2313_s1 + $0x180] sm:$0xff]  ;;  %v753_v6 = vld [vmem:[%s2313_s1 + $0x188] sm:$0xff]  ;;  %v1027_v7 = vpack.c.bf16 %v705_v4, %v704_v2  ;;  %v706_v14 = vld [vmem:[%s2313_s1 + $0x10] sm:$0xff]  ;;  %v1029_v16 = vpack.c.bf16 %v723_v13, %v722_v11 }
   0x4   :  { %v1057_v8 = vpack.c.bf16 %v753_v6, %v752_v5  ;;  %v736_v9 = vld [vmem:[%s2313_s1 + $0x100] sm:$0xff]  ;;  %v737_v10 = vld [vmem:[%s2313_s1 + $0x108] sm:$0xff]  ;;  %1026 = vmatprep.subr.bf16.mxu0 %v1025_v3  ;;  %v707_v15 = vld [vmem:[%s2313_s1 + $0x18] sm:$0xff] }
   0x5   :  { %v1059_v12 = vpack.c.bf16 %v737_v10, %v736_v9  ;;  %1028 = vmatpush3.bf16.msra.mxu0 %v1027_v7  ;;  %v1031_v17 = vpack.c.bf16 %v707_v15, %v706_v14  ;;  %v754_v18 = vld [vmem:[%s2313_s1 + $0x190] sm:$0xff]  ;;  %v755_v19 = vld [vmem:[%s2313_s1 + $0x198] sm:$0xff]  ;;  %v724_v23 = vld [vmem:[%s2313_s1 + $0xa0] sm:$0xff] }
   0x6   :  { %1058 = vmatprep.subr.bf16.mxu1 %v1057_v8  ;;  %v738_v20 = vld [vmem:[%s2313_s1 + $0x110] sm:$0xff]  ;;  %v1061_v21 = vpack.c.bf16 %v755_v19, %v754_v18  ;;  %v739_v22 = vld [vmem:[%s2313_s1 + $0x118] sm:$0xff]  ;;  %v725_v24 = vld [vmem:[%s2313_s1 + $0xa8] sm:$0xff]  ;;  %1030 = vmatprep.subr.bf16.mxu0 %v1029_v16 }
   0x7   :  { %1060 = vmatpush3.bf16.msra.mxu1 %v1059_v12  ;;  %v1063_v25 = vpack.c.bf16 %v739_v22, %v738_v20  ;;  %v1033_v26 = vpack.c.bf16 %v725_v24, %v724_v23  ;;  %v708_v27 = vld [vmem:[%s2313_s1 + $0x20] sm:$0xff]  ;;  %v709_v28 = vld [vmem:[%s2313_s1 + $0x28] sm:$0xff]  ;;  %v726_v35 = vld [vmem:[%s2313_s1 + $0xb0] sm:$0xff] }
   0x8   :  { %v756_v29 = vld [vmem:[%s2313_s1 + $0x1a0] sm:$0xff]  ;;  %1062 = vmatprep.subr.bf16.mxu1 %v1061_v21  ;;  %v757_v30 = vld [vmem:[%s2313_s1 + $0x1a8] sm:$0xff]  ;;  %v1035_v33 = vpack.c.bf16 %v709_v28, %v708_v27  ;;  %v727_v36 = vld [vmem:[%s2313_s1 + $0xb8] sm:$0xff] }
   0x9   :  { %v740_v31 = vld [vmem:[%s2313_s1 + $0x120] sm:$0xff]  ;;  %v741_v32 = vld [vmem:[%s2313_s1 + $0x128] sm:$0xff]  ;;  %1032 = vmatpush3.bf16.msra.mxu0 %v1031_v17  ;;  %v1065_v34 = vpack.c.bf16 %v757_v30, %v756_v29  ;;  %v710_v37 = vld [vmem:[%s2313_s1 + $0x30] sm:$0xff]  ;;  %v1037_v39 = vpack.c.bf16 %v727_v36, %v726_v35 }
   0xa   :  { %1034 = vmatprep.subr.bf16.mxu0 %v1033_v26  ;;  %v1067_v38 = vpack.c.bf16 %v741_v32, %v740_v31  ;;  %v711_v40 = vld [vmem:[%s2313_s1 + $0x38] sm:$0xff]  ;;  %v758_v41 = vld [vmem:[%s2313_s1 + $0x1b0] sm:$0xff]  ;;  %v728_v46 = vld [vmem:[%s2313_s1 + $0xc0] sm:$0xff] }
   0xb   :  { %1064 = vmatpush3.bf16.msra.mxu1 %v1063_v25  ;;  %v759_v42 = vld [vmem:[%s2313_s1 + $0x1b8] sm:$0xff]  ;;  %v742_v44 = vld [vmem:[%s2313_s1 + $0x130] sm:$0xff]  ;;  %v729_v47 = vld [vmem:[%s2313_s1 + $0xc8] sm:$0xff]  ;;  %v1039_v48 = vpack.c.bf16 %v711_v40, %v710_v37 }
   0xc   :  { %1066 = vmatprep.subr.bf16.mxu1 %v1065_v34  ;;  %v1069_v43 = vpack.c.bf16 %v759_v42, %v758_v41  ;;  %v743_v45 = vld [vmem:[%s2313_s1 + $0x138] sm:$0xff]  ;;  %v760_v49 = vld [vmem:[%s2313_s1 + $0x1c0] sm:$0xff]  ;;  %v761_v50 = vld [vmem:[%s2313_s1 + $0x1c8] sm:$0xff]  ;;  %v1041_v52 = vpack.c.bf16 %v729_v47, %v728_v46 }
   0xd   :  { %1036 = vmatpush3.bf16.msra.mxu0 %v1035_v33  ;;  %v1071_v51 = vpack.c.bf16 %v743_v45, %v742_v44  ;;  %v712_v53 = vld [vmem:[%s2313_s1 + $0x40] sm:$0xff]  ;;  %v713_v54 = vld [vmem:[%s2313_s1 + $0x48] sm:$0xff]  ;;  %v1073_v56 = vpack.c.bf16 %v761_v50, %v760_v49  ;;  %v730_v58 = vld [vmem:[%s2313_s1 + $0xd0] sm:$0xff] }
   0xe   :  { %1038 = vmatprep.subr.bf16.mxu0 %v1037_v39  ;;  %v744_v55 = vld [vmem:[%s2313_s1 + $0x140] sm:$0xff]  ;;  %v745_v57 = vld [vmem:[%s2313_s1 + $0x148] sm:$0xff]  ;;  %v731_v59 = vld [vmem:[%s2313_s1 + $0xd8] sm:$0xff]  ;;  %v1043_v62 = vpack.c.bf16 %v713_v54, %v712_v53 }
   0xf   :  { %1068 = vmatpush3.bf16.msra.mxu1 %v1067_v38  ;;  %v762_v60 = vld [vmem:[%s2313_s1 + $0x1d0] sm:$0xff]  ;;  %v763_v61 = vld [vmem:[%s2313_s1 + $0x1d8] sm:$0xff]  ;;  %v1075_v63 = vpack.c.bf16 %v745_v57, %v744_v55  ;;  %v1045_v0 = vpack.c.bf16 %v731_v59, %v730_v58  ;;  %v732_v6 = vld [vmem:[%s2313_s1 + $0xe0] sm:$0xff] }
  0x10   :  { %1070 = vmatprep.subr.bf16.mxu1 %v1069_v43  ;;  %v714_v1 = vld [vmem:[%s2313_s1 + $0x50] sm:$0xff]  ;;  %v715_v2 = vld [vmem:[%s2313_s1 + $0x58] sm:$0xff]  ;;  %v1077_v4 = vpack.c.bf16 %v763_v61, %v762_v60  ;;  %v733_v7 = vld [vmem:[%s2313_s1 + $0xe8] sm:$0xff] }
  0x11   :  { %1040 = vmatpush3.bf16.msra.mxu0 %v1039_v48  ;;  %v746_v3 = vld [vmem:[%s2313_s1 + $0x150] sm:$0xff]  ;;  %v747_v5 = vld [vmem:[%s2313_s1 + $0x158] sm:$0xff]  ;;  %v716_v8 = vld [vmem:[%s2313_s1 + $0x60] sm:$0xff]  ;;  %v1047_v11 = vpack.c.bf16 %v715_v2, %v714_v1  ;;  %v1049_v16 = vpack.c.bf16 %v733_v7, %v732_v6 }
  0x12   :  { %1042 = vmatprep.subr.bf16.mxu0 %v1041_v52  ;;  %v764_v9 = vld [vmem:[%s2313_s1 + $0x1e0] sm:$0xff]  ;;  %v765_v10 = vld [vmem:[%s2313_s1 + $0x1e8] sm:$0xff]  ;;  %v1079_v15 = vpack.c.bf16 %v747_v5, %v746_v3  ;;  %v734_v17 = vld [vmem:[%s2313_s1 + $0xf0] sm:$0xff] }
  0x13   :  { %1072 = vmatpush3.bf16.msra.mxu1 %v1071_v51  ;;  %v717_v12 = vld [vmem:[%s2313_s1 + $0x68] sm:$0xff]  ;;  %v748_v13 = vld [vmem:[%s2313_s1 + $0x160] sm:$0xff]  ;;  %v1318_v19 = vld [vmem:[%s2312_s0 + $0x10] sm:$0xff]  ;;  %v1081_v20 = vpack.c.bf16 %v765_v10, %v764_v9 }
  0x14   :  { %1074 = vmatprep.subr.bf16.mxu1 %v1073_v56  ;;  %v749_v14 = vld [vmem:[%s2313_s1 + $0x168] sm:$0xff]  ;;  %v1313_v18 = vld [vmem:[%s2312_s0] sm:$0xff]  ;;  %v735_v21 = vld [vmem:[%s2313_s1 + $0xf8] sm:$0xff]  ;;  %v148_v25 = vunpack.c.h.bf16 %v1318_v19  ;;  %v1051_v30 = vpack.c.bf16 %v717_v12, %v716_v8 }
  0x15   :  { %1044 = vmatpush3.bf16.msra.mxu0 %v1043_v62  ;;  %v1326_v22 = vld [vmem:[%s2312_s0 + $0x20] sm:$0xff]  ;;  %v1331_v23 = vld [vmem:[%s2312_s0 + $0x30] sm:$0xff]  ;;  %v144_v24 = vunpack.c.h.bf16 %v1313_v18  ;;  %v767_v27 = vld [vmem:[%s2313_s1 + $0x1f8] sm:$0xff]  ;;  %v1083_v33 = vpack.c.bf16 %v749_v14, %v748_v13  ;;  %v1053_v34 = vpack.c.bf16 %v735_v21, %v734_v17 }
  0x16   :  { %1046 = vmatprep.subr.bf16.mxu0 %v1045_v0  ;;  %v766_v26 = vld [vmem:[%s2313_s1 + $0x1f0] sm:$0xff]  ;;  %v1344_v28 = vld [vmem:[%s2312_s0 + $0x40] sm:$0xff]  ;;  %v152_v29 = vunpack.c.h.bf16 %v1326_v22  ;;  %v156_v31 = vunpack.c.h.bf16 %v1331_v23  ;;  %v719_v36 = vld [vmem:[%s2313_s1 + $0x78] sm:$0xff] }
  0x17   :  { %1076 = vmatpush3.bf16.msra.mxu1 %v1075_v63  ;;  %v436_v32 = vadd.f32 %v148_v25, %v144_v24  ;;  %v718_v35 = vld [vmem:[%s2313_s1 + $0x70] sm:$0xff]  ;;  %v1085_v38 = vpack.c.bf16 %v767_v27, %v766_v26  ;;  %v751_v40 = vld [vmem:[%s2313_s1 + $0x178] sm:$0xff]  ;;  %v160_v41 = vunpack.c.h.bf16 %v1344_v28  ;;  %v1369_v43 = vld [vmem:[%s2312_s0 + $0x60] sm:$0xff] }
  0x18   :  { %1078 = vmatprep.subr.bf16.mxu1 %v1077_v4  ;;  %v1357_v37 = vld [vmem:[%s2312_s0 + $0x50] sm:$0xff]  ;;  %v1055_v44 = vpack.c.bf16 %v719_v36, %v718_v35  ;;  %v168_v49 = vunpack.c.h.bf16 %v1369_v43  ;;  %v1381_v51 = vld [vmem:[%s2312_s0 + $0x80] sm:$0xff] }
  0x19   :  { %1048 = vmatpush3.bf16.msra.mxu0 %v1047_v11  ;;  %v750_v39 = vld [vmem:[%s2313_s1 + $0x170] sm:$0xff]  ;;  %v437_v42 = vadd.f32 %v436_v32, %v152_v29  ;;  %v164_v45 = vunpack.c.h.bf16 %v1357_v37  ;;  %v1386_v52 = vld [vmem:[%s2312_s0 + $0x200] sm:$0xff]  ;;  %v176_v63 = vunpack.c.h.bf16 %v1381_v51 }
  0x1a   :  { %1050 = vmatprep.subr.bf16.mxu0 %v1049_v16  ;;  %v1087_v47 = vpack.c.bf16 %v751_v40, %v750_v39  ;;  %v1375_v48 = vld [vmem:[%s2312_s0 + $0x70] sm:$0xff]  ;;  %v1396_v54 = vld [vmem:[%s2312_s0 + $0x220] sm:$0xff]  ;;  %v272_v59 = vunpack.c.h.bf16 %v1386_v52 }
  0x1b   :  { %1080 = vmatpush3.bf16.msra.mxu1 %v1079_v15  ;;  %v438_v46 = vadd.f32 %v437_v42, %v156_v31  ;;  %v1391_v53 = vld [vmem:[%s2312_s0 + $0x210] sm:$0xff]  ;;  %v172_v55 = vunpack.c.h.bf16 %v1375_v48  ;;  %v280_v61 = vunpack.c.h.bf16 %v1396_v54  ;;  %v1415_v62 = vld [vmem:[%s2312_s0 + $0x240] sm:$0xff] }
  0x1c   :  { %1082 = vmatprep.subr.bf16.mxu1 %v1081_v20  ;;  %v1402_v57 = vld [vmem:[%s2312_s0 + $0x90] sm:$0xff]  ;;  %v276_v60 = vunpack.c.h.bf16 %v1391_v53  ;;  %v1421_v1 = vld [vmem:[%s2312_s0 + $0xa0] sm:$0xff]  ;;  %v288_v8 = vunpack.c.h.bf16 %v1415_v62 }
  0x1d   :  { %1052 = vmatpush3.bf16.msra.mxu0 %v1051_v30  ;;  %v439_v50 = vadd.f32 %v438_v46, %v160_v41  ;;  %v1407_v58 = vld [vmem:[%s2312_s0 + $0x230] sm:$0xff]  ;;  %v180_v5 = vunpack.c.h.bf16 %v1402_v57  ;;  %v1439_v10 = vld [vmem:[%s2312_s0 + $0x260] sm:$0xff]  ;;  %v184_v11 = vunpack.c.h.bf16 %v1421_v1 }
  0x1e   :  { %1054 = vmatprep.subr.bf16.mxu0 %v1053_v34  ;;  %v284_v2 = vunpack.c.h.bf16 %v1407_v58  ;;  %v584_v3 = vadd.f32 %v276_v60, %v272_v59  ;;  %v1427_v4 = vld [vmem:[%s2312_s0 + $0x250] sm:$0xff]  ;;  %v1445_v13 = vld [vmem:[%s2312_s0 + $0xc0] sm:$0xff]  ;;  %v296_v24 = vunpack.c.h.bf16 %v1439_v10 }
  0x1f   :  { %1084 = vmatpush3.bf16.msra.mxu1 %v1083_v33  ;;  %v440_v56 = vadd.f32 %v439_v50, %v164_v45  ;;  %v1433_v7 = vld [vmem:[%s2312_s0 + $0xb0] sm:$0xff]  ;;  %v292_v14 = vunpack.c.h.bf16 %v1427_v4  ;;  %v1463_v26 = vld [vmem:[%s2312_s0 + $0x280] sm:$0xff]  ;;  %v192_v27 = vunpack.c.h.bf16 %v1445_v13 }
  0x20   :  { %1086 = vmatprep.subr.bf16.mxu1 %v1085_v38  ;;  %v585_v9 = vadd.f32 %v584_v3, %v280_v61  ;;  %v1451_v16 = vld [vmem:[%s2312_s0 + $0x270] sm:$0xff]  ;;  %v188_v17 = vunpack.c.h.bf16 %v1433_v7  ;;  %v1469_v30 = vld [vmem:[%s2312_s0 + $0xe0] sm:$0xff]  ;;  %v304_v38 = vunpack.c.h.bf16 %v1463_v26 }
  0x21   :  { %1056 = vmatpush3.bf16.msra.mxu0 %v1055_v44  ;;  %v441_v0 = vadd.f32 %v440_v56, %v168_v49  ;;  %v1457_v21 = vld [vmem:[%s2312_s0 + $0xd0] sm:$0xff]  ;;  %v300_v31 = vunpack.c.h.bf16 %v1451_v16  ;;  %v1487_v40 = vld [vmem:[%s2312_s0 + $0x2a0] sm:$0xff]  ;;  %v200_v41 = vunpack.c.h.bf16 %v1469_v30 }
  0x22   :  { %v586_v15 = vadd.f32 %v585_v9, %v284_v2  ;;  %v1475_v33 = vld [vmem:[%s2312_s0 + $0x290] sm:$0xff]  ;;  %v196_v34 = vunpack.c.h.bf16 %v1457_v21  ;;  %v1493_v44 = vld [vmem:[%s2312_s0 + $0x100] sm:$0xff]  ;;  %v312_v56 = vunpack.c.h.bf16 %v1487_v40 }
  0x23   :  { %1088 = vmatpush3.bf16.msra.mxu1 %v1087_v47  ;;  %v442_v6 = vadd.f32 %v441_v0, %v172_v55  ;;  %v1481_v36 = vld [vmem:[%s2312_s0 + $0xf0] sm:$0xff]  ;;  %v308_v45 = vunpack.c.h.bf16 %v1475_v33  ;;  %v1511_v60 = vld [vmem:[%s2312_s0 + $0x2c0] sm:$0xff]  ;;  %v208_v61 = vunpack.c.h.bf16 %v1493_v44 }
  0x24   :  { %v587_v25 = vadd.f32 %v586_v15, %v288_v8  ;;  %v1499_v47 = vld [vmem:[%s2312_s0 + $0x2b0] sm:$0xff]  ;;  %v204_v49 = vunpack.c.h.bf16 %v1481_v36  ;;  %v1517_v0 = vld [vmem:[%s2312_s0 + $0x120] sm:$0xff]  ;;  %v320_v15 = vunpack.c.h.bf16 %v1511_v60 }
  0x25   :  { %v443_v12 = vadd.f32 %v442_v6, %v176_v63  ;;  %v1505_v55 = vld [vmem:[%s2312_s0 + $0x110] sm:$0xff]  ;;  %v316_v2 = vunpack.c.h.bf16 %v1499_v47  ;;  %v1528_v6 = vld [vmem:[%s2312_s0 + $0x140] sm:$0xff] }
  0x26   :  { %v588_v32 = vadd.f32 %v587_v25, %v292_v14  ;;  %v1533_v8 = vld [vmem:[%s2312_s0 + $0x2d0] sm:$0xff]  ;;  %v212_v9 = vunpack.c.h.bf16 %v1505_v55  ;;  %v1544_v14 = vld [vmem:[%s2312_s0 + $0x160] sm:$0xff] }
  0x27   :  { %v444_v20 = vadd.f32 %v443_v12, %v180_v5  ;;  %v1523_v5 = vld [vmem:[%s2312_s0 + $0x130] sm:$0xff]  ;;  %2347 = vst [vmem:[#allocation5_spill] sm:$0xff] %v1533_v8  ;;  %2348 = vst [vmem:[#allocation6_spill] sm:$0xff] %v1544_v14 }
  0x28   :  { %v589_v39 = vadd.f32 %v588_v32, %v296_v24  ;;  %v1539_v12 = vld [vmem:[%s2312_s0 + $0x150] sm:$0xff]  ;;  %v147_v24 = vunpack.c.l.bf16 %v1318_v19  ;;  %v151_v19 = vunpack.c.l.bf16 %v1326_v22  ;;  %v224_v22 = vunpack.c.h.bf16 %v1528_v6 }
  0x29   :  { %v445_v29 = vadd.f32 %v444_v20, %v184_v11  ;;  %v143_v20 = vunpack.c.l.bf16 %v1313_v18  ;;  %v1552_v25 = vld [vmem:[%s2312_s0 + $0x170] sm:$0xff] }
  0x2a   :  { %v590_v46 = vadd.f32 %v589_v39, %v300_v31  ;;  %2349 = vst [vmem:[#allocation7_spill] sm:$0xff] %v1552_v25  ;;  %v216_v31 = vunpack.c.h.bf16 %v1517_v0  ;;  %v220_v39 = vunpack.c.h.bf16 %v1523_v5 }
  0x2b   :  { %v446_v35 = vadd.f32 %v445_v29, %v188_v17  ;;  %v1562_v29 = vld [vmem:[%s2312_s0 + $0x2e0] sm:$0xff] }
  0x2c   :  { %v591_v59 = vadd.f32 %v590_v46, %v304_v38  ;;  %2350 = vst [vmem:[#allocation8_spill] sm:$0xff] %v1562_v29  ;;  %v1580_v38 = vld [vmem:[%s2312_s0 + $0x1b0] sm:$0xff]  ;;  %v228_v46 = vunpack.c.h.bf16 %v1539_v12 }
  0x2d   :  { %v447_v42 = vadd.f32 %v446_v35, %v192_v27  ;;  %v1557_v27 = vld [vmem:[%s2312_s0 + $0x180] sm:$0xff] }
  0x2e   :  { %v592_v3 = vadd.f32 %v591_v59, %v308_v45  ;;  %v1575_v35 = vld [vmem:[%s2312_s0 + $0x1a0] sm:$0xff]  ;;  %v1588_v45 = vld [vmem:[%s2312_s0 + $0x2f0] sm:$0xff] }
  0x2f   :  { %v448_v50 = vadd.f32 %v447_v42, %v196_v34  ;;  %v1570_v34 = vld [vmem:[%s2312_s0 + $0x190] sm:$0xff]  ;;  %2351 = vst [vmem:[#allocation9_spill] sm:$0xff] %v1588_v45  ;;  %v1596_v59 = vld [vmem:[%s2312_s0 + $0x1c0] sm:$0xff] }
  0x30   :  { %v593_v17 = vadd.f32 %v592_v3, %v312_v56  ;;  %v328_v3 = vunpack.c.h.bf16 %v1562_v29  ;;  %v163_v56 = vunpack.c.l.bf16 %v1357_v37  ;;  %v1651_v37 = vld [vmem:[%s2312_s0 + $0x340] sm:$0xff] }
  0x31   :  { %v449_v63 = vadd.f32 %v448_v50, %v200_v41  ;;  %v324_v41 = vunpack.c.h.bf16 %v1533_v8  ;;  %v275_v8 = vunpack.c.l.bf16 %v1391_v53  ;;  %v1658_v53 = vld [vmem:[%s2312_s0 + $0x350] sm:$0xff] }
  0x32   :  { %v594_v42 = vadd.f32 %v593_v17, %v316_v2  ;;  %v1614_v17 = vld [vmem:[%s2312_s0 + $0x300] sm:$0xff]  ;;  %2356 = vst [vmem:[#allocation14_spill] sm:$0xff] %v1658_v53 }
  0x33   :  { %v450_v11 = vadd.f32 %v449_v63, %v204_v49  ;;  %v232_v49 = vunpack.c.h.bf16 %v1544_v14  ;;  %v236_v63 = vunpack.c.h.bf16 %v1552_v25  ;;  %2352 = vst [vmem:[#allocation10_spill] sm:$0xff] %v1614_v17  ;;  %v271_v25 = vunpack.c.l.bf16 %v1386_v52  ;;  %v1643_v52 = vld [vmem:[%s2312_s0 + $0x330] sm:$0xff] }
  0x34   :  { %2355 = vst [vmem:[#allocation13_spill] sm:$0xff] %v1643_v52  ;;  %v399_v14 = vadd.f32 %v147_v24, %v143_v20  ;;  %v348_v24 = vunpack.c.h.bf16 %v1643_v52 }
  0x35   :  { %v451_v18 = vadd.f32 %v450_v11, %v208_v61  ;;  %v1601_v61 = vld [vmem:[%s2312_s0 + $0x1d0] sm:$0xff]  ;;  %v595_v11 = vadd.f32 %v594_v42, %v320_v15  ;;  %v332_v42 = vunpack.c.h.bf16 %v1588_v45  ;;  %v167_v45 = vunpack.c.l.bf16 %v1369_v43 }
  0x36   :  { %v1622_v15 = vld [vmem:[%s2312_s0 + $0x1f0] sm:$0xff] }
  0x37   :  { %v452_v50 = vadd.f32 %v451_v18, %v212_v9  ;;  %v1609_v9 = vld [vmem:[%s2312_s0 + $0x1e0] sm:$0xff]  ;;  %v596_v29 = vadd.f32 %v595_v11, %v324_v41  ;;  %v1630_v18 = vld [vmem:[%s2312_s0 + $0x310] sm:$0xff]  ;;  %v336_v11 = vunpack.c.h.bf16 %v1614_v17  ;;  %v283_v17 = vunpack.c.l.bf16 %v1407_v58 }
  0x38   :  { %2353 = vst [vmem:[#allocation11_spill] sm:$0xff] %v1630_v18  ;;  %v1638_v41 = vld [vmem:[%s2312_s0 + $0x320] sm:$0xff]  ;;  %v1670_v43 = vld [vmem:[%s2312_s0 + $0x370] sm:$0xff] }
  0x39   :  { %v453_v2 = vadd.f32 %v452_v50, %v216_v31  ;;  %2354 = vst [vmem:[#allocation12_spill] sm:$0xff] %v1638_v41  ;;  %v597_v32 = vadd.f32 %v596_v29, %v328_v3  ;;  %v279_v31 = vunpack.c.l.bf16 %v1396_v54  ;;  %v1663_v54 = vld [vmem:[%s2312_s0 + $0x360] sm:$0xff]  ;;  %v340_v29 = vunpack.c.h.bf16 %v1630_v18  ;;  %2357 = vst [vmem:[#allocation15_spill] sm:$0xff] %v1670_v43 }
  0x3a   :  { %v344_v20 = vunpack.c.h.bf16 %v1638_v41 }
  0x3b   :  { %v454_v50 = vadd.f32 %v453_v2, %v220_v39  ;;  %v598_v3 = vadd.f32 %v597_v32, %v332_v42  ;;  %v547_v39 = vadd.f32 %v275_v8, %v271_v25 }
  0x3d   :  { %v455_v2 = vadd.f32 %v454_v50, %v224_v22  ;;  %v400_v50 = vadd.f32 %v399_v14, %v151_v19 }
  0x3f   :  { %v456_v22 = vadd.f32 %v455_v2, %v228_v46 }
  0x40   :  { %8 = vsyncpa [#allocation3], 0  ;;  %v1677_v18 = vld [vmem:[%s2312_s0 + $0x380] sm:$0xff]  ;;  %v1682_v58 = vld [vmem:[%s2312_s0 + $0x390] sm:$0xff]  ;;  %v352_v8 = vunpack.c.h.bf16 %v1651_v37  ;;  %v599_v25 = vadd.f32 %v598_v3, %v336_v11  ;;  %v287_v32 = vunpack.c.l.bf16 %v1415_v62  ;;  %v548_v42 = vadd.f32 %v547_v39, %v279_v31  ;;  %s1118_s10 = smov [#allocation2]  }
  0x41   :  { %2358 = vst [vmem:[#allocation16_spill] sm:$0xff] %v1677_v18  ;;  %2359 = vst [vmem:[#allocation17_spill] sm:$0xff] %v1682_v58  ;;  %v1689_v14 = vld [vmem:[%s2312_s0 + $0x3a0] sm:$0xff]  ;;  %v356_v19 = vunpack.c.h.bf16 %v1658_v53  ;;  %v360_v46 = vunpack.c.h.bf16 %v1663_v54  ;;  %v457_v2 = vadd.f32 %v456_v22, %v232_v49  ;;  %v2360_v52 = vunpack.c.l.bf16 %v1331_v23  ;;  %v1698_v11 = vld [vmem:[%s2312_s0 + $0x3b0] sm:$0xff]  ;;  %s946_s11 = sshll.u32 %s1118_s10, 4  ;;  %s947_s11 = int_to_ptr.vmem [resolvable:$true] %s946_s11 }
  0x42   :  { %v364_v62 = vunpack.c.h.bf16 %v1670_v43  ;;  %v600_v31 = vadd.f32 %v599_v25, %v340_v29  ;;  %v291_v39 = vunpack.c.l.bf16 %v1427_v4  ;;  %v549_v3 = vadd.f32 %v548_v42, %v283_v17  ;;  %v1705_v53 = vld [vmem:[%s2312_s0 + $0x3c0] sm:$0xff]  ;;  %v1714_v29 = vld [vmem:[%s2312_s0 + $0x3d0] sm:$0xff]  ;;  %s1094_s12 = scalar_lea.vmem %s947_s11, 32  ;;  %p1099_p1 = scmp.lt.s32.totalorder %s947_s11, %s947_s11 }
  0x43   :  { %v401_v41 = vadd.f32 %v400_v50, %v2360_v52  ;;  %v368_v49 = vunpack.c.h.bf16 %v1677_v18  ;;  %v372_v23 = vunpack.c.h.bf16 %v1682_v58  ;;  %v458_v52 = vadd.f32 %v457_v2, %v236_v63  ;;  %v1721_v18 = vld [vmem:[%s2312_s0 + $0x3e0] sm:$0xff]  ;;  %p1095_p0 = scmp.ne.s32.totalorder %s947_s11, %s1094_s12  ;;  %p1100_p2 = scmp.lt.s32.totalorder %s1094_s12, %s1094_s12 }
  0x44   :  { %v2361_v22 = vunpack.c.l.bf16 %v1344_v28  ;;  %v601_v17 = vadd.f32 %v600_v31, %v344_v20  ;;  %v295_v25 = vunpack.c.l.bf16 %v1439_v10  ;;  %v550_v42 = vadd.f32 %v549_v3, %v287_v32  ;;  %v1730_v20 = vld [vmem:[%s2312_s0 + $0x3f0] sm:$0xff] }
  0x45   :  { %v2362_v28 = vunpack.c.h.bf16 %v1557_v27  ;;  %v171_v2 = vunpack.c.l.bf16 %v1375_v48  ;;  %v299_v31 = vunpack.c.l.bf16 %v1451_v16  ;;  %v388_v4 = vunpack.c.h.bf16 %v1714_v29  ;;  %p1101_p3 = por %p1100_p2, %p1099_p1 }
  0x46   :  { %v402_v50 = vadd.f32 %v401_v41, %v2361_v22  ;;  %v602_v32 = vadd.f32 %v601_v17, %v348_v24  ;;  %v551_v3 = vadd.f32 %v550_v42, %v291_v39  ;;  %v2363_v63 = vunpack.c.h.bf16 %v1570_v34 }
  0x47   :  { %v459_v41 = vadd.f32 %v458_v52, %v2362_v28  ;;  %v175_v52 = vunpack.c.l.bf16 %v1381_v51  ;;  %v303_v28 = vunpack.c.l.bf16 %v1463_v26  ;;  %v396_v10 = vunpack.c.h.bf16 %v1730_v20  ;;  %p1102_p4 = pnand %p1101_p3, %p1095_p0 }
  0x48   :  { %v403_v22 = vadd.f32 %v402_v50, %v163_v56  ;;  %v392_v56 = vunpack.c.h.bf16 %v1721_v18  ;;  %v603_v50 = vadd.f32 %v602_v32, %v352_v8  ;;  %v552_v43 = vadd.f32 %v551_v3, %v295_v25 }
  0x49   :  { %v460_v58 = vadd.f32 %v459_v41, %v2363_v63  ;;  %v2364_v24 = vunpack.c.h.bf16 %v1575_v35  ;;  %v179_v39 = vunpack.c.l.bf16 %v1402_v57  ;;  %v183_v63 = vunpack.c.l.bf16 %v1421_v1 }
  0x4a   :  { %v404_v48 = vadd.f32 %v403_v22, %v167_v45  ;;  %v604_v42 = vadd.f32 %v603_v50, %v356_v19  ;;  %v307_v51 = vunpack.c.l.bf16 %v1475_v33  ;;  %v553_v45 = vadd.f32 %v552_v43, %v299_v31 }
  0x4b   :  { %v461_v16 = vadd.f32 %v460_v58, %v2364_v24  ;;  %v2365_v41 = vunpack.c.h.bf16 %v1580_v38  ;;  %v187_v26 = vunpack.c.l.bf16 %v1433_v7  ;;  %v191_v25 = vunpack.c.l.bf16 %v1445_v13 }
  0x4c   :  { %v405_v17 = vadd.f32 %v404_v48, %v171_v2  ;;  %v605_v32 = vadd.f32 %v604_v42, %v360_v46  ;;  %v195_v58 = vunpack.c.l.bf16 %v1457_v21  ;;  %v311_v57 = vunpack.c.l.bf16 %v1487_v40  ;;  %v2369_v42 = vld [vmem:[#allocation6_spill] sm:$0xff] }
  0x4d   :  { %v462_v8 = vadd.f32 %v461_v16, %v2365_v41  ;;  %v554_v2 = vadd.f32 %v553_v45, %v303_v28  ;;  %v2366_v19 = vunpack.c.h.bf16 %v1596_v59  ;;  %v199_v33 = vunpack.c.l.bf16 %v1469_v30  ;;  %v2370_v45 = vld [vmem:[#allocation5_spill] sm:$0xff] }
  0x4e   :  { %v406_v22 = vadd.f32 %v405_v17, %v175_v52  ;;  %v203_v43 = vunpack.c.l.bf16 %v1481_v36  ;;  %v606_v3 = vadd.f32 %v605_v32, %v364_v62  ;;  %v207_v7 = vunpack.c.l.bf16 %v1493_v44 }
  0x4f   :  { %v463_v1 = vadd.f32 %v462_v8, %v2366_v19  ;;  %v315_v13 = vunpack.c.l.bf16 %v1499_v47  ;;  %v555_v52 = vadd.f32 %v554_v2, %v307_v51  ;;  %v2367_v46 = vunpack.c.h.bf16 %v1601_v61 }
  0x50   :  { %v407_v31 = vadd.f32 %v406_v22, %v179_v39  ;;  %v211_v40 = vunpack.c.l.bf16 %v1505_v55  ;;  %v215_v48 = vunpack.c.l.bf16 %v1517_v0  ;;  %v607_v28 = vadd.f32 %v606_v3, %v368_v49  ;;  %v2372_v22 = vld [vmem:[#allocation7_spill] sm:$0xff] }
  0x51   :  { %v464_v21 = vadd.f32 %v463_v1, %v2367_v46  ;;  %v219_v30 = vunpack.c.l.bf16 %v1523_v5  ;;  %v319_v36 = vunpack.c.l.bf16 %v1511_v60  ;;  %v556_v24 = vadd.f32 %v555_v52, %v311_v57  ;;  %v1844_v52 = vld [vmem:[%s2312_s0 + $0x48] sm:$0xff]  ;;  %v2384_v5 = vld [vmem:[#allocation16_spill] sm:$0xff] }
  0x52   :  { %v408_v50 = vadd.f32 %v407_v31, %v183_v63  ;;  %v2368_v62 = vunpack.c.h.bf16 %v1609_v9  ;;  %v223_v47 = vunpack.c.l.bf16 %v1528_v6  ;;  %v227_v16 = vunpack.c.l.bf16 %v1539_v12  ;;  %v1849_v1 = vld [vmem:[%s2312_s0 + $0x248] sm:$0xff] }
  0x53   :  { %v608_v17 = vadd.f32 %v607_v28, %v372_v23  ;;  %v231_v51 = vunpack.c.l.bf16 %v2369_v42  ;;  %v323_v41 = vunpack.c.l.bf16 %v2370_v45  ;;  %v557_v63 = vadd.f32 %v556_v24, %v315_v13  ;;  %v2378_v45 = vld [vmem:[#allocation11_spill] sm:$0xff]  ;;  %v2382_v28 = vld [vmem:[#allocation14_spill] sm:$0xff]  ;;  %v2385_v12 = vld [vmem:[#allocation17_spill] sm:$0xff] }
  0x54   :  { %v465_v44 = vadd.f32 %v464_v21, %v2368_v62  ;;  %v409_v39 = vadd.f32 %v408_v50, %v187_v26  ;;  %v2371_v49 = vunpack.c.h.bf16 %v1622_v15  ;;  %v2373_v2 = vunpack.c.h.bf16 %v1689_v14  ;;  %v2374_v26 = vld [vmem:[#allocation8_spill] sm:$0xff] }
  0x55   :  { %v327_v23 = vunpack.c.l.bf16 %v2374_v26  ;;  %v558_v31 = vadd.f32 %v557_v63, %v319_v36  ;;  %v2375_v21 = vunpack.c.h.bf16 %v1698_v11  ;;  %v1792_v36 = vld [vmem:[%s2312_s0 + $0x18] sm:$0xff]  ;;  %v339_v63 = vunpack.c.l.bf16 %v2378_v45 }
  0x56   :  { %v466_v8 = vadd.f32 %v465_v44, %v2371_v49  ;;  %v410_v57 = vadd.f32 %v409_v39, %v191_v25  ;;  %v609_v19 = vadd.f32 %v608_v17, %v2373_v2  ;;  %v2376_v25 = vld [vmem:[#allocation9_spill] sm:$0xff]  ;;  %v2379_v2 = vunpack.c.h.bf16 %v1705_v53  ;;  %v2380_v26 = vld [vmem:[#allocation12_spill] sm:$0xff] }
  0x57   :  { %v331_v24 = vunpack.c.l.bf16 %v2376_v25  ;;  %v559_v62 = vadd.f32 %v558_v31, %v323_v41  ;;  %v1787_v44 = vld [vmem:[%s2312_s0 + $0x8] sm:$0xff]  ;;  %v355_v13 = vunpack.c.l.bf16 %v2382_v28  ;;  %vm783_vm0 = vcmask 1041409  }
  0x58   :  { %v467_v3 = vrot.slane %v466_v8, 4  ;;  %v411_v46 = vadd.f32 %v410_v57, %v195_v58  ;;  %v610_v50 = vadd.f32 %v609_v19, %v2375_v21  ;;  %v2377_v58 = vld [vmem:[#allocation10_spill] sm:$0xff]  ;;  %v1804_v57 = vld [vmem:[%s2312_s0 + $0x218] sm:$0xff]  ;;  %v2381_v31 = vld [vmem:[#allocation13_spill] sm:$0xff]  ;;  %v146_v45 = vunpack.c.h.bf16 %v1787_v44 }
  0x59   :  { %v335_v17 = vunpack.c.l.bf16 %v2377_v58  ;;  %v1799_v41 = vld [vmem:[%s2312_s0 + $0x208] sm:$0xff]  ;;  %v560_v21 = vadd.f32 %v559_v62, %v327_v23  ;;  %v1832_v62 = vld [vmem:[%s2312_s0 + $0x238] sm:$0xff] }
  0x5a   :  { %v468_v39 = vadd.f32 %v467_v3, %v466_v8  ;;  %v412_v49 = vadd.f32 %v411_v46, %v199_v33  ;;  %v611_v19 = vadd.f32 %v610_v50, %v2379_v2  ;;  %v343_v8 = vunpack.c.l.bf16 %v2380_v26  ;;  %v1813_v46 = vld [vmem:[%s2312_s0 + $0x28] sm:$0xff] }
  0x5b   :  { %v347_v3 = vunpack.c.l.bf16 %v2381_v31  ;;  %v1818_v58 = vld [vmem:[%s2312_s0 + $0x228] sm:$0xff]  ;;  %v150_v50 = vunpack.c.h.bf16 %v1792_v36  ;;  %v561_v23 = vadd.f32 %v560_v21, %v331_v24  ;;  %v278_v26 = vunpack.c.h.bf16 %v1804_v57 }
  0x5c   :  { %v469_v25 = vrot.slane %v468_v39, 2  ;;  %v413_v33 = vadd.f32 %v412_v49, %v203_v43  ;;  %v612_v2 = vadd.f32 %v611_v19, %v388_v4  ;;  %v1827_v43 = vld [vmem:[%s2312_s0 + $0x38] sm:$0xff]  ;;  %v274_v49 = vunpack.c.h.bf16 %v1799_v41  ;;  %v1877_v4 = vld [vmem:[%s2312_s0 + $0x68] sm:$0xff] }
  0x5d   :  { %v351_v31 = vunpack.c.l.bf16 %v1651_v37  ;;  %v562_v21 = vadd.f32 %v561_v23, %v335_v17  ;;  %v154_v37 = vunpack.c.h.bf16 %v1813_v46  ;;  %v282_v28 = vunpack.c.h.bf16 %v1818_v58  ;;  %v1862_v23 = vld [vmem:[%s2312_s0 + $0x58] sm:$0xff] }
  0x5e   :  { %v414_v24 = vadd.f32 %v413_v33, %v207_v7  ;;  %v613_v19 = vadd.f32 %v612_v2, %v392_v56  ;;  %v470_v32 = vadd.f32 %v469_v25, %v468_v39  ;;  %v158_v56 = vunpack.c.h.bf16 %v1827_v43  ;;  %v1867_v39 = vld [vmem:[%s2312_s0 + $0x258] sm:$0xff] }
  0x5f   :  { %v286_v17 = vunpack.c.h.bf16 %v1832_v62  ;;  %v563_v2 = vadd.f32 %v562_v21, %v339_v63  ;;  %v510_v55 = vadd.f32 %v150_v50, %v146_v45  ;;  %v2383_v25 = vld [vmem:[#allocation15_spill] sm:$0xff]  ;;  %v290_v63 = vunpack.c.h.bf16 %v1849_v1  ;;  %v1882_v45 = vld [vmem:[%s2312_s0 + $0x268] sm:$0xff] }
  0x60   :  { %v415_v7 = vadd.f32 %v414_v24, %v211_v40  ;;  %v614_v33 = vadd.f32 %v613_v19, %v396_v10  ;;  %v658_v40 = vadd.f32 %v278_v26, %v274_v49  ;;  %v363_v24 = vunpack.c.l.bf16 %v2383_v25  ;;  %v1891_v25 = vld [vmem:[%s2312_s0 + $0x78] sm:$0xff] }
  0x61   :  { %v162_v10 = vunpack.c.h.bf16 %v1844_v52  ;;  %v564_v21 = vadd.f32 %v563_v2, %v343_v8  ;;  %v511_v50 = vadd.f32 %v510_v55, %v154_v37  ;;  %v471_v0 = vrot.slane %v470_v32, 1  ;;  %v1896_v37 = vld [vmem:[%s2312_s0 + $0x278] sm:$0xff] }
  0x62   :  { %v416_v60 = vadd.f32 %v415_v7, %v215_v48  ;;  %v615_v19 = vrot.slane %v614_v33, 4  ;;  %v659_v49 = vadd.f32 %v658_v40, %v282_v28  ;;  %v166_v26 = vunpack.c.h.bf16 %v1862_v23 }
  0x63   :  { %v294_v8 = vunpack.c.h.bf16 %v1867_v39  ;;  %v565_v2 = vadd.f32 %v564_v21, %v347_v3  ;;  %v512_v28 = vadd.f32 %v511_v50, %v158_v56  ;;  %v170_v3 = vunpack.c.h.bf16 %v1877_v4  ;;  %v1906_v21 = vld [vmem:[%s2312_s0 + $0x88] sm:$0xff] }
  0x64   :  { %v417_v48 = vadd.f32 %v416_v60, %v219_v30  ;;  %v616_v7 = vadd.f32 %v615_v19, %v614_v33  ;;  %v660_v55 = vadd.f32 %v659_v49, %v286_v17  ;;  %v367_v30 = vunpack.c.l.bf16 %v2384_v5  ;;  %v1911_v56 = vld [vmem:[%s2312_s0 + $0x288] sm:$0xff]  ;;  %v1920_v5 = vld [vmem:[%s2312_s0 + $0x98] sm:$0xff] }
  0x65   :  { %v298_v33 = vunpack.c.h.bf16 %v1882_v45  ;;  %v566_v19 = vadd.f32 %v565_v2, %v351_v31  ;;  %v513_v17 = vadd.f32 %v512_v28, %v162_v10  ;;  %v472_v6 = vadd.f32 %v471_v0, %v470_v32  ;;  %v1925_v10 = vld [vmem:[%s2312_s0 + $0x298] sm:$0xff] }
  0x66   :  { %v418_v60 = vadd.f32 %v417_v48, %v223_v47  ;;  %v617_v40 = vrot.slane %v616_v7, 2  ;;  %v661_v50 = vadd.f32 %v660_v55, %v290_v63  ;;  %v174_v49 = vunpack.c.h.bf16 %v1891_v25 }
  0x67   :  { %v302_v31 = vunpack.c.h.bf16 %v1896_v37  ;;  %v567_v2 = vadd.f32 %v566_v19, %v355_v13  ;;  %v514_v32 = vadd.f32 %v513_v17, %v166_v26  ;;  %v306_v13 = vunpack.c.h.bf16 %v1911_v56  ;;  %v1942_v26 = vld [vmem:[%s2312_s0 + $0x2a8] sm:$0xff] }
  0x68   :  { %v419_v47 = vadd.f32 %v418_v60, %v227_v16  ;;  %v618_v48 = vadd.f32 %v617_v40, %v616_v7  ;;  %v662_v63 = vadd.f32 %v661_v50, %v294_v8  ;;  %v371_v16 = vunpack.c.l.bf16 %v2385_v12  ;;  %v1937_v40 = vld [vmem:[%s2312_s0 + $0xa8] sm:$0xff]  ;;  %v1951_v12 = vld [vmem:[%s2312_s0 + $0xb8] sm:$0xff] }
  0x69   :  { %v178_v7 = vunpack.c.h.bf16 %v1906_v21  ;;  %v2386_v55 = vunpack.c.l.bf16 %v1663_v54  ;;  %v515_v42 = vadd.f32 %v514_v32, %v170_v3  ;;  %v697_v8 = vmul.f32 0.00390625, %v472_v6  ;;  %v1956_v3 = vld [vmem:[%s2312_s0 + $0x2b8] sm:$0xff] }
  0x6a   :  { %v420_v0 = vadd.f32 %v419_v47, %v231_v51  ;;  %v619_v28 = vrot.slane %v618_v48, 1  ;;  %v663_v51 = vadd.f32 %v662_v63, %v298_v33  ;;  %v2387_v19 = vunpack.c.l.bf16 %v2372_v22 }
  0x6b   :  { %v568_v60 = vadd.f32 %v567_v2, %v2386_v55  ;;  %v182_v50 = vunpack.c.h.bf16 %v1920_v5  ;;  %v310_v54 = vunpack.c.h.bf16 %v1925_v10  ;;  %v516_v33 = vadd.f32 %v515_v42, %v174_v49  ;;  %v1966_v55 = vld [vmem:[%s2312_s0 + $0xc8] sm:$0xff] }
  0x6c   :  { %v421_v17 = vadd.f32 %v420_v0, %v2387_v19  ;;  %v620_v47 = vadd.f32 %v619_v28, %v618_v48  ;;  %v664_v6 = vadd.f32 %v663_v51, %v302_v31  ;;  %v375_v22 = vunpack.c.l.bf16 %v1689_v14 }
  0x6d   :  { %v569_v2 = vadd.f32 %v568_v60, %v363_v24  ;;  %v2388_v32 = vunpack.c.l.bf16 %v1557_v27  ;;  %v186_v48 = vunpack.c.h.bf16 %v1937_v40  ;;  %v314_v24 = vunpack.c.h.bf16 %v1942_v26  ;;  %v1974_v27 = vld [vmem:[%s2312_s0 + $0x2c8] sm:$0xff] }
  0x6e   :  { %v701_v0 = vmul.f32 0.00390625, %v620_v47  ;;  %v517_v60 = vadd.f32 %v516_v33, %v178_v7  ;;  %v665_v19 = vadd.f32 %v664_v6, %v306_v13  ;;  %v379_v49 = vunpack.c.l.bf16 %v1698_v11  ;;  %v1982_v7 = vld [vmem:[%s2312_s0 + $0xd8] sm:$0xff] }
  0x6f   :  { %v422_v63 = vadd.f32 %v421_v17, %v2388_v32  ;;  %v570_v28 = vadd.f32 %v569_v2, %v367_v30  ;;  %v2389_v14 = vunpack.c.l.bf16 %v1570_v34  ;;  %v190_v42 = vunpack.c.h.bf16 %v1951_v12 }
  0x70   :  { %v318_v30 = vunpack.c.h.bf16 %v1956_v3  ;;  %v785_v51 = vsel %vm783_vm0, %v701_v0, %v697_v8  ;;  %v518_v11 = vadd.f32 %v517_v60, %v182_v50  ;;  %v666_v34 = vadd.f32 %v665_v19, %v310_v54  ;;  %v1991_v8 = vld [vmem:[%s2312_s0 + $0x2d8] sm:$0xff]  ;;  %v1997_v50 = vld [vmem:[%s2312_s0 + $0xe8] sm:$0xff] }
  0x71   :  { %v423_v31 = vadd.f32 %v422_v63, %v2389_v14  ;;  %v571_v17 = vadd.f32 %v570_v28, %v371_v16  ;;  %856 = vmatprep.mubr.f32.mxu0 %v785_v51  ;;  %v259_v13 = vunpack.c.l.bf16 %v1601_v61  ;;  %v383_v47 = vunpack.c.l.bf16 %v1705_v53  ;;  %v2028_v51 = vld [vmem:[%s2312_s0 + $0x2f8] sm:$0xff] }
  0x72   :  { %v2390_v2 = vunpack.c.l.bf16 %v1575_v35  ;;  %v194_v16 = vunpack.c.h.bf16 %v1966_v55  ;;  %v322_v61 = vunpack.c.h.bf16 %v1974_v27  ;;  %v519_v54 = vadd.f32 %v518_v11, %v186_v48  ;;  %v2013_v48 = vld [vmem:[%s2312_s0 + $0xf8] sm:$0xff]  ;;  %2396 = vst [vmem:[#allocation8_spill] sm:$0xff] %v2028_v51 }
  0x73   :  { %v572_v6 = vadd.f32 %v571_v17, %v375_v22  ;;  %v667_v53 = vadd.f32 %v666_v34, %v314_v24  ;;  %v263_v35 = vunpack.c.l.bf16 %v1609_v9  ;;  %v387_v32 = vunpack.c.l.bf16 %v1714_v29  ;;  %v2007_v22 = vld [vmem:[%s2312_s0 + $0x2e8] sm:$0xff]  ;;  %2393 = vst [vmem:[#allocation5_spill] sm:$0xff] %v2013_v48 }
  0x74   :  { %v424_v33 = vadd.f32 %v423_v31, %v2390_v2  ;;  %v2391_v63 = vunpack.c.l.bf16 %v1580_v38  ;;  %2392 = vst [vmem:[#allocation6_spill] sm:$0xff] %v2007_v22  ;;  %v198_v28 = vunpack.c.h.bf16 %v1982_v7  ;;  %v2018_v9 = vld [vmem:[%s2312_s0 + $0x108] sm:$0xff]  ;;  %v326_v38 = vunpack.c.h.bf16 %v1991_v8 }
  0x75   :  { %v573_v60 = vadd.f32 %v572_v6, %v379_v49  ;;  %2394 = vst [vmem:[#allocation7_spill] sm:$0xff] %v2018_v9  ;;  %v520_v29 = vadd.f32 %v519_v54, %v190_v42  ;;  %v668_v24 = vadd.f32 %v667_v53, %v318_v30  ;;  %v267_v19 = vunpack.c.l.bf16 %v1622_v15  ;;  %v2034_v42 = vld [vmem:[%s2312_s0 + $0x118] sm:$0xff] }
  0x76   :  { %v425_v0 = vadd.f32 %v424_v33, %v2391_v63  ;;  %v391_v14 = vunpack.c.l.bf16 %v1721_v18  ;;  %v2395_v49 = vunpack.c.l.bf16 %v1596_v59  ;;  %v202_v17 = vunpack.c.h.bf16 %v1997_v50  ;;  %2397 = vst [vmem:[#allocation9_spill] sm:$0xff] %v2034_v42  ;;  %v2039_v18 = vld [vmem:[%s2312_s0 + $0x128] sm:$0xff]  ;;  %v2044_v59 = vld [vmem:[%s2312_s0 + $0x138] sm:$0xff] }
  0x77   :  { %v574_v11 = vadd.f32 %v573_v60, %v383_v47  ;;  %2398 = vst [vmem:[#allocation10_spill] sm:$0xff] %v2039_v18  ;;  %2399 = vst [vmem:[#allocation11_spill] sm:$0xff] %v2044_v59  ;;  %v330_v15 = vunpack.c.h.bf16 %v2007_v22  ;;  %v521_v30 = vadd.f32 %v520_v29, %v194_v16  ;;  %v669_v34 = vadd.f32 %v668_v24, %v322_v61  ;;  %v2051_v33 = vld [vmem:[%s2312_s0 + $0x308] sm:$0xff]  ;;  %v2074_v60 = vld [vmem:[%s2312_s0 + $0x318] sm:$0xff] }
  0x78   :  { %v426_v31 = vadd.f32 %v425_v0, %v2395_v49  ;;  %v395_v47 = vunpack.c.l.bf16 %v1730_v20  ;;  %2400 = vst [vmem:[#allocation12_spill] sm:$0xff] %v2051_v33  ;;  %v206_v6 = vunpack.c.h.bf16 %v2013_v48  ;;  %v210_v54 = vunpack.c.h.bf16 %v2018_v9  ;;  %v2058_v63 = vld [vmem:[%s2312_s0 + $0x148] sm:$0xff]  ;;  %v2063_v20 = vld [vmem:[%s2312_s0 + $0x158] sm:$0xff]  ;;  %2403 = vst [vmem:[#allocation15_spill] sm:$0xff] %v2074_v60 }
  0x79   :  { %v575_v53 = vadd.f32 %v574_v11, %v387_v32  ;;  %2401 = vst [vmem:[#allocation13_spill] sm:$0xff] %v2058_v63  ;;  %2402 = vst [vmem:[#allocation14_spill] sm:$0xff] %v2063_v20  ;;  %v334_v16 = vunpack.c.h.bf16 %v2028_v51  ;;  %v522_v61 = vadd.f32 %v521_v30, %v198_v28  ;;  %v670_v0 = vadd.f32 %v669_v34, %v326_v38  ;;  %v2082_v11 = vld [vmem:[%s2312_s0 + $0x178] sm:$0xff] }
  0x7a   :  { %v427_v2 = vadd.f32 %v426_v31, %v259_v13  ;;  %v2068_v13 = vld [vmem:[%s2312_s0 + $0x168] sm:$0xff]  ;;  %v214_v29 = vunpack.c.h.bf16 %v2034_v42  ;;  %v218_v24 = vunpack.c.h.bf16 %v2039_v18  ;;  %v222_v49 = vunpack.c.h.bf16 %v2044_v59  ;;  %v2092_v28 = vld [vmem:[%s2312_s0 + $0x198] sm:$0xff] }
  0x7b   :  { %v576_v31 = vadd.f32 %v575_v53, %v391_v14  ;;  %v338_v38 = vunpack.c.h.bf16 %v2051_v33  ;;  %v523_v30 = vadd.f32 %v522_v61, %v202_v17  ;;  %v671_v34 = vadd.f32 %v670_v0, %v330_v15  ;;  %v2106_v9 = vld [vmem:[%s2312_s0 + $0x338] sm:$0xff] }
  0x7c   :  { %v428_v32 = vadd.f32 %v427_v2, %v263_v35  ;;  %v2087_v35 = vld [vmem:[%s2312_s0 + $0x188] sm:$0xff]  ;;  %v226_v53 = vunpack.c.h.bf16 %v2058_v63  ;;  %v230_v59 = vunpack.c.h.bf16 %v2063_v20  ;;  %2405 = vst [vmem:[#allocation17_spill] sm:$0xff] %v2106_v9  ;;  %v2116_v17 = vld [vmem:[%s2312_s0 + $0x358] sm:$0xff]  ;;  %v342_v15 = vunpack.c.h.bf16 %v2074_v60 }
  0x7d   :  { %v2098_v2 = vld [vmem:[%s2312_s0 + $0x328] sm:$0xff]  ;;  %v577_v42 = vadd.f32 %v576_v31, %v395_v47  ;;  %2407 = vst [vmem:[#allocation19_spill] sm:$0xff] %v2116_v17  ;;  %v524_v61 = vadd.f32 %v523_v30, %v206_v6  ;;  %v672_v0 = vadd.f32 %v671_v34, %v334_v16  ;;  %v350_v6 = vunpack.c.h.bf16 %v2106_v9  ;;  %v2134_v31 = vld [vmem:[%s2312_s0 + $0x378] sm:$0xff] }
  0x7e   :  { %v429_v14 = vadd.f32 %v428_v32, %v267_v19  ;;  %2404 = vst [vmem:[#allocation16_spill] sm:$0xff] %v2098_v2  ;;  %v2111_v19 = vld [vmem:[%s2312_s0 + $0x348] sm:$0xff]  ;;  %v346_v33 = vunpack.c.h.bf16 %v2098_v2  ;;  %v358_v30 = vunpack.c.h.bf16 %v2116_v17  ;;  %v366_v2 = vunpack.c.h.bf16 %v2134_v31 }
  0x7f   :  { %2406 = vst [vmem:[#allocation18_spill] sm:$0xff] %v2111_v19  ;;  %v2122_v32 = vld [vmem:[%s2312_s0 + $0x368] sm:$0xff]  ;;  %v578_v63 = vrot.slane %v577_v42, 4  ;;  %v525_v51 = vadd.f32 %v524_v61, %v210_v54  ;;  %v673_v48 = vadd.f32 %v672_v0, %v338_v38  ;;  %v354_v16 = vunpack.c.h.bf16 %v2111_v19 }
  0x80   :  { %v430_v47 = vrot.slane %v429_v14, 4  ;;  %v2139_v20 = vld [vmem:[%s2312_s0 + $0x388] sm:$0xff]  ;;  %v362_v54 = vunpack.c.h.bf16 %v2122_v32  ;;  %v145_v0 = vunpack.c.l.bf16 %v1787_v44  ;;  %v277_v19 = vunpack.c.l.bf16 %v1804_v57 }
  0x81   :  { %v579_v34 = vadd.f32 %v578_v63, %v577_v42  ;;  %2408 = vst [vmem:[#allocation20_spill] sm:$0xff] %v2139_v20  ;;  %v526_v38 = vadd.f32 %v525_v51, %v214_v29  ;;  %v273_v42 = vunpack.c.l.bf16 %v1799_v41  ;;  %v370_v22 = vunpack.c.h.bf16 %v2139_v20 }
  0x82   :  { %v431_v60 = vadd.f32 %v430_v47, %v429_v14  ;;  %v674_v14 = vadd.f32 %v673_v48, %v342_v15  ;;  %v149_v47 = vunpack.c.l.bf16 %v1792_v36  ;;  %v153_v51 = vunpack.c.l.bf16 %v1813_v46 }
  0x83   :  { %v580_v63 = vrot.slane %v579_v34, 2  ;;  %v527_v18 = vadd.f32 %v526_v38, %v218_v24  ;;  %v281_v44 = vunpack.c.l.bf16 %v1818_v58  ;;  %v157_v41 = vunpack.c.l.bf16 %v1827_v43  ;;  %v2157_v58 = vld [vmem:[%s2312_s0 + $0x398] sm:$0xff] }
  0x84   :  { %v432_v61 = vrot.slane %v431_v60, 2  ;;  %v675_v17 = vadd.f32 %v674_v14, %v346_v33  ;;  %v285_v24 = vunpack.c.l.bf16 %v1832_v62  ;;  %v473_v33 = vadd.f32 %v149_v47, %v145_v0 }
  0x85   :  { %v581_v48 = vadd.f32 %v580_v63, %v579_v34  ;;  %v528_v29 = vadd.f32 %v527_v18, %v222_v49  ;;  %v621_v14 = vadd.f32 %v277_v19, %v273_v42  ;;  %v161_v20 = vunpack.c.l.bf16 %v1844_v52  ;;  %v2169_v52 = vld [vmem:[%s2312_s0 + $0x3a8] sm:$0xff] }
  0x86   :  { %v433_v9 = vadd.f32 %v432_v61, %v431_v60  ;;  %v676_v15 = vadd.f32 %v675_v17, %v350_v6  ;;  %v289_v46 = vunpack.c.l.bf16 %v1849_v1  ;;  %v474_v34 = vadd.f32 %v473_v33, %v153_v51  ;;  %v2164_v1 = vld [vmem:[%s2312_s0 + $0x1a8] sm:$0xff]  ;;  %v2180_v51 = vld [vmem:[%s2312_s0 + $0x1b8] sm:$0xff] }
  0x87   :  { %v582_v38 = vrot.slane %v581_v48, 1  ;;  %v529_v57 = vadd.f32 %v528_v29, %v226_v53  ;;  %v622_v62 = vadd.f32 %v621_v14, %v281_v44  ;;  %v165_v53 = vunpack.c.l.bf16 %v1862_v23 }
  0x88   :  { %v434_v36 = vrot.slane %v433_v9, 1  ;;  %v677_v60 = vadd.f32 %v676_v15, %v354_v16  ;;  %v293_v19 = vunpack.c.l.bf16 %v1867_v39  ;;  %v374_v23 = vunpack.c.h.bf16 %v2157_v58 }
  0x89   :  { %v583_v18 = vadd.f32 %v582_v38, %v581_v48  ;;  %v530_v43 = vadd.f32 %v529_v57, %v230_v59  ;;  %v2409_v59 = vunpack.c.h.bf16 %v2068_v13  ;;  %v623_v0 = vadd.f32 %v622_v62, %v285_v24  ;;  %v2185_v48 = vld [vmem:[%s2312_s0 + $0x3b8] sm:$0xff]  ;;  %v2200_v24 = vld [vmem:[%s2312_s0 + $0x3c8] sm:$0xff] }
  0x8a   :  { %v435_v61 = vadd.f32 %v434_v36, %v433_v9  ;;  %v678_v49 = vadd.f32 %v677_v60, %v358_v30  ;;  %v475_v9 = vadd.f32 %v474_v34, %v157_v41  ;;  %v169_v39 = vunpack.c.l.bf16 %v1877_v4  ;;  %v2195_v41 = vld [vmem:[%s2312_s0 + $0x1c8] sm:$0xff]  ;;  %v2211_v34 = vld [vmem:[%s2312_s0 + $0x1d8] sm:$0xff] }
  0x8b   :  { %v700_v6 = vmul.f32 0.00390625, %v583_v18  ;;  %v531_v16 = vadd.f32 %v530_v43, %v2409_v59  ;;  %v297_v47 = vunpack.c.l.bf16 %v1882_v45  ;;  %v624_v4 = vadd.f32 %v623_v0, %v289_v46  ;;  %v2216_v18 = vld [vmem:[%s2312_s0 + $0x3d8] sm:$0xff] }
  0x8c   :  { %v696_v17 = vmul.f32 0.00390625, %v435_v61  ;;  %v679_v30 = vadd.f32 %v678_v49, %v362_v54  ;;  %v476_v42 = vadd.f32 %v475_v9, %v161_v20  ;;  %v2410_v54 = vunpack.c.h.bf16 %v2082_v11  ;;  %v2227_v9 = vld [vmem:[%s2312_s0 + $0x1e8] sm:$0xff] }
  0x8d   :  { %v250_v45 = vunpack.c.h.bf16 %v2164_v1  ;;  %v378_v20 = vunpack.c.h.bf16 %v2169_v52  ;;  %v173_v44 = vunpack.c.l.bf16 %v1891_v25  ;;  %v301_v57 = vunpack.c.l.bf16 %v1896_v37 }
  0x8e   :  { %v784_v63 = vsel %vm783_vm0, %v700_v6, %v696_v17  ;;  %v532_v29 = vadd.f32 %v531_v16, %v2410_v54  ;;  %v680_v15 = vadd.f32 %v679_v30, %v366_v2  ;;  %v477_v36 = vadd.f32 %v476_v42, %v165_v53  ;;  %v2232_v6 = vld [vmem:[%s2312_s0 + $0x3e8] sm:$0xff]  ;;  %v2246_v42 = vld [vmem:[%s2312_s0 + $0x3f8] sm:$0xff] }
  0x8f   :  { %857 = vmatmul.mubr.f32.vlgmr.msra.gmra.mrb[0].mxu0 %v784_v63  ;;  %v2411_v2 = vunpack.c.h.bf16 %v2087_v35  ;;  %v625_v60 = vadd.f32 %v624_v4, %v293_v19  ;;  %v254_v25 = vunpack.c.h.bf16 %v2180_v51  ;;  %v382_v14 = vunpack.c.h.bf16 %v2185_v48 }
  0x90   :  { %v681_v38 = vadd.f32 %v680_v15, %v370_v22  ;;  %v177_v61 = vunpack.c.l.bf16 %v1906_v21  ;;  %v478_v46 = vadd.f32 %v477_v36, %v169_v39  ;;  %v2412_v37 = vunpack.c.h.bf16 %v2092_v28 }
  0x91   :  { %v533_v33 = vadd.f32 %v532_v29, %v2411_v2  ;;  %v305_v49 = vunpack.c.l.bf16 %v1911_v56  ;;  %v626_v62 = vadd.f32 %v625_v60, %v297_v47  ;;  %v258_v21 = vunpack.c.h.bf16 %v2195_v41  ;;  %v2241_v47 = vld [vmem:[%s2312_s0 + $0x1f8] sm:$0xff] }
  0x92   :  { %v682_v43 = vadd.f32 %v681_v38, %v374_v23  ;;  %v386_v17 = vunpack.c.h.bf16 %v2200_v24  ;;  %v181_v53 = vunpack.c.l.bf16 %v1920_v5  ;;  %v479_v19 = vadd.f32 %v478_v46, %v173_v44 }
  0x93   :  { %v534_v22 = vadd.f32 %v533_v33, %v2412_v37  ;;  %v309_v16 = vunpack.c.l.bf16 %v1925_v10  ;;  %v627_v30 = vadd.f32 %v626_v62, %v301_v57  ;;  %v262_v0 = vunpack.c.h.bf16 %v2211_v34 }
  0x94   :  { %v683_v56 = vadd.f32 %v682_v43, %v378_v20  ;;  %v390_v5 = vunpack.c.h.bf16 %v2216_v18  ;;  %v185_v23 = vunpack.c.l.bf16 %v1937_v40  ;;  %v480_v39 = vadd.f32 %v479_v19, %v177_v61 }
  0x95   :  { %v535_v59 = vadd.f32 %v534_v22, %v250_v45  ;;  %v313_v54 = vunpack.c.l.bf16 %v1942_v26  ;;  %v628_v29 = vadd.f32 %v627_v30, %v305_v49  ;;  %v266_v15 = vunpack.c.h.bf16 %v2227_v9 }
  0x96   :  { %v684_v10 = vadd.f32 %v683_v56, %v382_v14  ;;  %v394_v40 = vunpack.c.h.bf16 %v2232_v6  ;;  %v189_v4 = vunpack.c.l.bf16 %v1951_v12  ;;  %v481_v45 = vadd.f32 %v480_v39, %v181_v53 }
  0x97   :  { %v536_v63 = vadd.f32 %v535_v59, %v254_v25  ;;  %v317_v36 = vunpack.c.l.bf16 %v1956_v3  ;;  %v629_v2 = vadd.f32 %v628_v29, %v309_v16  ;;  %v270_v33 = vunpack.c.h.bf16 %v2241_v47  ;;  %v2414_v59 = vld [vmem:[#allocation5_spill] sm:$0xff] }
  0x98   :  { %v685_v44 = vadd.f32 %v684_v10, %v386_v17  ;;  %v398_v38 = vunpack.c.h.bf16 %v2246_v42  ;;  %v193_v57 = vunpack.c.l.bf16 %v1966_v55  ;;  %v482_v26 = vadd.f32 %v481_v45, %v185_v23  ;;  %v2413_v55 = vld [vmem:[#allocation6_spill] sm:$0xff]  ;;  %v2416_v23 = vld [vmem:[#allocation7_spill] sm:$0xff] }
  0x99   :  { %v537_v20 = vadd.f32 %v536_v63, %v258_v21  ;;  %v321_v14 = vunpack.c.l.bf16 %v1974_v27  ;;  %v630_v61 = vadd.f32 %v629_v2, %v313_v54  ;;  %v197_v12 = vunpack.c.l.bf16 %v1982_v7  ;;  %v2415_v7 = vld [vmem:[#allocation8_spill] sm:$0xff] }
  0x9a   :  { %v686_v25 = vadd.f32 %v685_v44, %v390_v5  ;;  %v483_v46 = vadd.f32 %v482_v26, %v189_v4  ;;  %v325_v3 = vunpack.c.l.bf16 %v1991_v8  ;;  %v201_v49 = vunpack.c.l.bf16 %v1997_v50  ;;  %v2417_v50 = vld [vmem:[#allocation12_spill] sm:$0xff]  ;;  %v2419_v44 = vld [vmem:[#allocation15_spill] sm:$0xff] }
  0x9b   :  { %v538_v60 = vadd.f32 %v537_v20, %v262_v0  ;;  %v631_v43 = vadd.f32 %v630_v61, %v317_v36  ;;  %v329_v53 = vunpack.c.l.bf16 %v2413_v55  ;;  %v205_v56 = vunpack.c.l.bf16 %v2414_v59  ;;  %v2425_v59 = vld [vmem:[#allocation18_spill] sm:$0xff] }
  0x9c   :  { %v687_v22 = vadd.f32 %v686_v25, %v394_v40  ;;  %v484_v62 = vadd.f32 %v483_v46, %v193_v57  ;;  %v333_v0 = vunpack.c.l.bf16 %v2415_v7  ;;  %v209_v39 = vunpack.c.l.bf16 %v2416_v23  ;;  %v2421_v25 = vld [vmem:[#allocation16_spill] sm:$0xff]  ;;  %v2427_v23 = vld [vmem:[#allocation19_spill] sm:$0xff] }
  0x9d   :  { %v539_v37 = vadd.f32 %v538_v60, %v266_v15  ;;  %v632_v19 = vadd.f32 %v631_v43, %v321_v14  ;;  %v337_v54 = vunpack.c.l.bf16 %v2417_v50  ;;  %v2418_v15 = vld [vmem:[#allocation9_spill] sm:$0xff]  ;;  %v341_v36 = vunpack.c.l.bf16 %v2419_v44 }
  0x9e   :  { %v688_v17 = vadd.f32 %v687_v22, %v398_v38  ;;  %v485_v27 = vadd.f32 %v484_v62, %v197_v12  ;;  %v213_v40 = vunpack.c.l.bf16 %v2418_v15  ;;  %v345_v14 = vunpack.c.l.bf16 %v2421_v25  ;;  %v2422_v12 = vld [vmem:[#allocation11_spill] sm:$0xff]  ;;  %v2423_v43 = vld [vmem:[#allocation17_spill] sm:$0xff] }
  0x9f   :  { %v540_v21 = vadd.f32 %v539_v37, %v270_v33  ;;  %v633_v5 = vadd.f32 %v632_v19, %v325_v3  ;;  %v2420_v33 = vld [vmem:[#allocation10_spill] sm:$0xff]  ;;  %v221_v46 = vunpack.c.l.bf16 %v2422_v12  ;;  %v237_v15 = vunpack.c.l.bf16 %v2082_v11 }
  0xa0   :  { %v689_v30 = vrot.slane %v688_v17, 4  ;;  %v486_v8 = vadd.f32 %v485_v27, %v201_v49  ;;  %v217_v38 = vunpack.c.l.bf16 %v2420_v33  ;;  %v349_v49 = vunpack.c.l.bf16 %v2423_v43 }
  0xa1   :  { %v541_v16 = vrot.slane %v540_v21, 4  ;;  %v634_v29 = vadd.f32 %v633_v5, %v329_v53  ;;  %v377_v11 = vunpack.c.l.bf16 %v2169_v52  ;;  %v257_v12 = vunpack.c.l.bf16 %v2195_v41 }
  0xa2   :  { %v690_v10 = vadd.f32 %v689_v30, %v688_v17  ;;  %v487_v4 = vadd.f32 %v486_v8, %v205_v56  ;;  %v353_v56 = vunpack.c.l.bf16 %v2425_v59  ;;  %v265_v52 = vunpack.c.l.bf16 %v2227_v9 }
  0xa3   :  { %v542_v63 = vadd.f32 %v541_v16, %v540_v21  ;;  %v635_v2 = vadd.f32 %v634_v29, %v333_v0  ;;  %v2424_v21 = vld [vmem:[#allocation13_spill] sm:$0xff]  ;;  %v2426_v16 = vld [vmem:[#allocation14_spill] sm:$0xff]  ;;  %v397_v41 = vunpack.c.l.bf16 %v2246_v42 }
  0xa4   :  { %v691_v20 = vrot.slane %v690_v10, 2  ;;  %v488_v57 = vadd.f32 %v487_v4, %v209_v39  ;;  %v225_v17 = vunpack.c.l.bf16 %v2424_v21  ;;  %v229_v30 = vunpack.c.l.bf16 %v2426_v16 }
  0xa5   :  { %v543_v45 = vrot.slane %v542_v63, 2  ;;  %v636_v61 = vadd.f32 %v635_v2, %v337_v54  ;;  %v357_v39 = vunpack.c.l.bf16 %v2427_v23  ;;  %v361_v54 = vunpack.c.l.bf16 %v2122_v32 }
  0xa6   :  { %v692_v60 = vadd.f32 %v691_v20, %v690_v10  ;;  %v489_v37 = vadd.f32 %v488_v57, %v213_v40  ;;  %v365_v4 = vunpack.c.l.bf16 %v2134_v31  ;;  %v241_v20 = vunpack.c.l.bf16 %v2087_v35 }
  0xa7   :  { %v544_v26 = vadd.f32 %v543_v45, %v542_v63  ;;  %v637_v62 = vadd.f32 %v636_v61, %v341_v36  ;;  %v233_v63 = vunpack.c.l.bf16 %v2068_v13  ;;  %v2428_v36 = vld [vmem:[#allocation20_spill] sm:$0xff]  ;;  %v245_v13 = vunpack.c.l.bf16 %v2092_v28 }
  0xa8   :  { %v693_v3 = vrot.slane %v692_v60, 1  ;;  %v490_v55 = vadd.f32 %v489_v37, %v217_v38  ;;  %v369_v2 = vunpack.c.l.bf16 %v2428_v36  ;;  %v373_v57 = vunpack.c.l.bf16 %v2157_v58 }
  0xa9   :  { %v545_v22 = vrot.slane %v544_v26, 1  ;;  %v638_v27 = vadd.f32 %v637_v62, %v345_v14  ;;  %v253_v31 = vunpack.c.l.bf16 %v2180_v51  ;;  %v381_v35 = vunpack.c.l.bf16 %v2185_v48 }
  0xaa   :  { %v694_v19 = vadd.f32 %v693_v3, %v692_v60  ;;  %v491_v7 = vadd.f32 %v490_v55, %v221_v46  ;;  %v385_v28 = vunpack.c.l.bf16 %v2200_v24  ;;  %v261_v58 = vunpack.c.l.bf16 %v2211_v34 }
  0xab   :  { %v546_v53 = vadd.f32 %v545_v22, %v544_v26  ;;  %v639_v8 = vadd.f32 %v638_v27, %v349_v49  ;;  %v249_v26 = vunpack.c.l.bf16 %v2164_v1  ;;  %v389_v1 = vunpack.c.l.bf16 %v2216_v18 }
  0xac   :  { %v703_v5 = vmul.f32 0.00390625, %v694_v19  ;;  %v492_v10 = vadd.f32 %v491_v7, %v225_v17  ;;  %v393_v51 = vunpack.c.l.bf16 %v2232_v6  ;;  %v269_v48 = vunpack.c.l.bf16 %v2241_v47 }
  0xad   :  { %v699_v0 = vmul.f32 0.00390625, %v546_v53  ;;  %v640_v29 = vadd.f32 %v639_v8, %v353_v56 }
  0xae   :  { %v493_v40 = vadd.f32 %v492_v10, %v229_v30 }
  0xaf   :  { %v787_v50 = vsel %vm783_vm0, %v703_v5, %v699_v0  ;;  %v641_v45 = vadd.f32 %v640_v29, %v357_v39 }
  0xb0   :  { %926 = vmatprep.mubr.f32.mxu1 %v787_v50  ;;  %v494_v44 = vadd.f32 %v493_v40, %v233_v63  ;;  %v954_v63 = vld [vmem:[%s2314_s2] ss:$0 sm:$0xff] }
  0xb1   :  { %v642_v33 = vadd.f32 %v641_v45, %v361_v54 }
  0xb2   :  { %v495_v38 = vadd.f32 %v494_v44, %v237_v15 }
  0xb3   :  { %v643_v32 = vadd.f32 %v642_v33, %v365_v4 }
  0xb4   :  { %v496_v60 = vadd.f32 %v495_v38, %v241_v20 }
  0xb5   :  { %v644_v25 = vadd.f32 %v643_v32, %v369_v2 }
  0xb6   :  { %v497_v14 = vadd.f32 %v496_v60, %v245_v13 }
  0xb7   :  { %v645_v61 = vadd.f32 %v644_v25, %v373_v57 }
  0xb8   :  { %v498_v46 = vadd.f32 %v497_v14, %v249_v26 }
  0xb9   :  { %v646_v37 = vadd.f32 %v645_v61, %v377_v11 }
  0xba   :  { %v499_v22 = vadd.f32 %v498_v46, %v253_v31 }
  0xbb   :  { %v647_v3 = vadd.f32 %v646_v37, %v381_v35 }
  0xbc   :  { %v500_v43 = vadd.f32 %v499_v22, %v257_v12 }
  0xbd   :  { %v648_v49 = vadd.f32 %v647_v3, %v385_v28 }
  0xbe   :  { %v501_v62 = vadd.f32 %v500_v43, %v261_v58 }
  0xbf   :  { %v649_v21 = vadd.f32 %v648_v49, %v389_v1 }
  0xc0   :  { %v502_v24 = vadd.f32 %v501_v62, %v265_v52 }
  0xc1   :  { %v650_v17 = vadd.f32 %v649_v21, %v393_v51 }
  0xc2   :  { %v503_v55 = vadd.f32 %v502_v24, %v269_v48 }
  0xc3   :  { %v651_v34 = vadd.f32 %v650_v17, %v397_v41 }
  0xc4   :  { %v504_v53 = vrot.slane %v503_v55, 4 }
  0xc5   :  { %v652_v19 = vrot.slane %v651_v34, 4 }
  0xc6   :  { %v505_v18 = vadd.f32 %v504_v53, %v503_v55 }
  0xc7   :  { %v653_v59 = vadd.f32 %v652_v19, %v651_v34 }
  0xc8   :  { %v506_v56 = vrot.slane %v505_v18, 2 }
  0xc9   :  { %v654_v9 = vrot.slane %v653_v59, 2 }
  0xca   :  { %v507_v27 = vadd.f32 %v506_v56, %v505_v18 }
  0xcb   :  { %v655_v16 = vadd.f32 %v654_v9, %v653_v59 }
  0xcc   :  { %v508_v6 = vrot.slane %v507_v27, 1 }
  0xcd   :  { %v656_v30 = vrot.slane %v655_v16, 1 }
  0xce   :  { %v509_v7 = vadd.f32 %v508_v6, %v507_v27 }
  0xcf   :  { %v657_v47 = vadd.f32 %v656_v30, %v655_v16 }
  0xd0   :  { %v698_v0 = vmul.f32 0.00390625, %v509_v7 }
  0xd1   :  { %v702_v5 = vmul.f32 0.00390625, %v657_v47 }
  0xd3   :  { %v786_v42 = vsel %vm783_vm0, %v702_v5, %v698_v0 }
  0xd4   :  { %927 = vmatmul.mubr.f32.vlgmr.msra.gmra.mrb[0].mxu1 %v786_v42 }
 0x162   :  { %v987_v23 = vpop.f32.mrb[0].mxu0 }
 0x163   :  { %v988_v39 = vpop.f32.mrb[1].mxu0 }
 0x164   :  { %v989_v8 = vadd.f32 %v988_v39, %v987_v23 }
 0x166   :  { %v859_v10 = vadd.f32 %v989_v8, %v954_v63 }
 0x1a7   :  { %v1022_v50 = vpop.f32.mrb[0].mxu1 }
 0x1a8   :  { %v1023_v54 = vpop.f32.mrb[1].mxu1 }
 0x1a9   :  { %v1024_v29 = vadd.f32 %v1023_v54, %v1022_v50 }
 0x1ab   :  { %v929_v15 = vadd.f32 %v1024_v29, %v859_v10 }
 0x1ad   :  { %v932_v40 = vsub.f32 0.0, %v929_v15 }
 0x1af   :  { %v933_v4 = vmul.f32 1.442695, %v932_v40 }
 0x1b1   :  { %1090 = vpow2.f32 %v933_v4 }
 0x1bb   :  { %v1091_v45 = vpop.eup %1090 }
 0x1bc   :  { %v935_v20 = vadd.f32 1.0, %v1091_v45 }
 0x1be   :  { %1092 = vrcp.f32 %v935_v20 }
 0x1c8   :  { %v1093_v44 = vpop.eup %1092 }
 0x1c9   :  { %v937_v36 = vmax.f32 %v1093_v44, 0.0 }
 0x1cb   :  { %v938_v2 = vmin.f32 %v937_v36, 1.0 }
 0x1cd   :  { %939 = vst [vmem:[#allocation2] sm:$0x3] %v938_v2 }
 0x1ce   :  { %1105 = shalt.err (!%p1102_p4)
}
 0x1cf   :  { %s1106_s14 = scalar_lea.hbm %s2315_s3, 32 }
 0x1d0   :  { %p1107_p5 = scmp.ne.s32.totalorder %s2315_s3, %s1106_s14  ;;  %p1110_p6 = scmp.lt.u32.totalorder %s1106_s14, %s2315_s3 }
 0x1d2   :  { %p1112_p7 = pnand %p1110_p6, %p1107_p5 }
 0x1d4   :  { %1115 = shalt.err (!%p1112_p7)
}
 0x1d5   :  { %949 = dma.vmem_to_hbm [thread:$0]  %s947_s11, 32, %s2315_s3, [#allocation3]  }
 0x1d6   :  { %1116 = dma.done.wait [#allocation3], 32  }
 0x1d7   :  { %1117 = vsyncadd [#allocation3], 4294967264 }
 0x1d8   :  { %953 = vsyncpa [#allocation3], 1 }

</bundles_post_ra>
